<compile_context>
chip_gen: v7x
topology: tpu7x:2x2x1
jax: 0.10.0
libtpu: 0.0.40
codegen_flags: <defaults>
</compile_context>

<pallas_src>
import functools

import jax
import jax.numpy as jnp
from jax import lax
from jax.experimental import pallas as pl
from jax.experimental.pallas import tpu as pltpu


def peps_chain_kernel(x_ref, t_ref, o_ref, scr_ref):
    # x_ref   : (S, B, P)       bf16  per-site physics features
    # t_ref   : (S, P, D*E)     bf16  per-site tensors (left/wout pre-folded)
    # o_ref   : (B, F)          f32
    # scr_ref : (S, B, D, E)    f32   per-site transfer matrices (scratch)
    S, B, P = x_ref.shape
    _, _, D, E = scr_ref.shape

    # (1) Physics-bond contraction for ALL sites: one batched, lane-dense
    #     (N = D*E = 256) MXU dot, bf16 operands, f32 accumulation.
    a = lax.dot_general(
        x_ref[...], t_ref[...],
        dimension_numbers=(((2,), (1,)), ((0,), (0,))),
        preferred_element_type=jnp.float32)                  # (S, B, D*E) f32

    # (2) Un-flatten lanes (d*E + e) -> (d sublane, e lane): 16 static lane
    #     slice stores (no pad rows, no identity fills).
    for d in range(D):                                       # static unroll
        scr_ref[:, :, d, :] = a[:, :, d * E:(d + 1) * E]

    # (3) Ordered pair-product reduction with NO power-of-two padding: each
    #     level multiplies the first 2*(n//2) matrices pairwise and carries a
    #     single leftover matrix to the next level (order preserved).
    #     Matmul operands cast to bf16 (single-pass MXU), f32 accumulation.
    v = scr_ref[...].reshape(S * B, D, E)                    # leading-dim merge
    n = S
    while n > 1:                                             # static unroll
        m = n // 2
        vp = v[:2 * m * B].reshape(m, 2 * B, D, E)           # leading dims only
        lhs = vp[:, :B].reshape(m * B, D, E).astype(jnp.bfloat16)
        rhs = vp[:, B:].reshape(m * B, D, E).astype(jnp.bfloat16)
        prod = lax.dot_general(
            lhs, rhs,
            dimension_numbers=(((2,), (1,)), ((0,), (0,))),
            preferred_element_type=jnp.float32)              # (m*B, D, E) f32
        if n % 2 == 1:
            v = jnp.concatenate([prod, v[2 * m * B:]], axis=0)
            n = m + 1
        else:
            v = prod
            n = m

    # (4) `left` was folded into site 0 (every row of the final product equals
    #     the desired output row), so the result is just row 0.
    o_ref[...] = v[:, 0, :].astype(o_ref.dtype)              # (B, F)


def prepare_peps_params(T, left, wout):
    """One-time weight preprocessing, hoisted OFF the per-call forward path."""
    S, D, P, E = T.shape
    F = wout.shape[-1]
    assert wout.shape[0] == E
    assert F == E, "wout is folded into the last site tensor; requires F == E"
    T_eff = T.astype(jnp.float32)
    # Fold the left boundary vector into site 0 (broadcast over the row index).
    l = left.reshape(D).astype(jnp.float32)
    t0 = jnp.einsum('d,dpe->pe', l, T_eff[0])
    T_eff = T_eff.at[0].set(jnp.broadcast_to(t0[None, :, :], (D, P, E)))
    # Fold the output projection into the last site.
    T_eff = T_eff.at[S - 1].set(
        jnp.einsum('dpe,ef->dpf', T_eff[S - 1], wout.astype(jnp.float32)))
    # (S, D, P, E) -> (S, P, D*E): lane-dense weight for the batched dot.
    t_pdn = jnp.transpose(T_eff, (0, 2, 1, 3)).reshape(S, P, D * E)
    return t_pdn.astype(jnp.bfloat16)


@jax.jit
def peps_forward(x_bhwp, t_pdn):
    """x_bhwp: (B, H, W, P) -> (B, F).  t_pdn: prepare_peps_params output."""
    B, H, W, P = x_bhwp.shape
    S, P_t, N = t_pdn.shape
    D = int(round(N ** 0.5))
    E = N // D
    F = E
    assert P_t == P and H * W == S and D * E == N

    # Only per-call input glue: reshape + transpose + bf16 cast of x (~2 KiB),
    # fused with the pallas_call under jit.
    x_sbp = jnp.transpose(x_bhwp.reshape(B, S, P), (1, 0, 2)).astype(jnp.bfloat16)

    flops = (2 * S * B * P * D * E          # physics-bond contraction
             + 2 * B * (S - 1) * D * D * E  # 35 pair products per batch elem
             )
    bytes_accessed = x_sbp.size * 2 + t_pdn.size * 2 + B * F * 4

    return pl.pallas_call(
        peps_chain_kernel,
        out_shape=jax.ShapeDtypeStruct((B, F), jnp.float32),
        in_specs=[
            pl.BlockSpec(memory_space=pltpu.MemorySpace.VMEM),  # x
            pl.BlockSpec(memory_space=pltpu.MemorySpace.VMEM),  # prepped T
        ],
        out_specs=pl.BlockSpec(memory_space=pltpu.MemorySpace.VMEM),
        scratch_shapes=[pltpu.VMEM((S, B, D, E), jnp.float32)],
        cost_estimate=pl.CostEstimate(flops=flops, transcendentals=0,
                                      bytes_accessed=bytes_accessed),
    )(x_sbp, t_pdn)


def peps_reference(x_bhwp, T, left, wout):
    """Pure-JAX f32 reference of the same chain contraction."""
    B, H, W, P = x_bhwp.shape
    S = H * W
    D = T.shape[1]
    x = x_bhwp.reshape(B, S, P).astype(jnp.float32)
    h = jnp.broadcast_to(left.reshape(1, D), (B, D)).astype(jnp.float32)
    for s in range(S):
        a = jnp.einsum('bp,dpe->bde', x[:, s], T[s].astype(jnp.float32))
        h = jnp.einsum('bd,bde->be', h, a)
    return h @ wout.astype(jnp.float32)


def init_params(key, H=6, W=6, P=16, D=16, F=16):
    S = H * W
    k_t, k_o = jax.random.split(key)
    # variance-preserving init for the chain contraction: Var(T) = 1/(P*D)
    T = jax.random.normal(k_t, (S, D, P, D), dtype=jnp.float32) / jnp.sqrt(P * D)
    left = jnp.ones((1, D), dtype=jnp.float32)
    wout = jax.random.normal(k_o, (D, F), dtype=jnp.float32) / jnp.sqrt(D)
    return T, left, wout


if __name__ == "__main__":
    # Module config: divide=4 -> H = W = 24 // 4 = 6, in_physics_bond = 16,
    # out_features = 16.  Small batch B = 2.
    B, H, W, P, D, F = 2, 6, 6, 16, 16, 16

    key = jax.random.PRNGKey(0)
    k_x, k_p = jax.random.split(key)

    x = jax.random.normal(k_x, (B, H, W, P), dtype=jnp.float32)
    T, left, wout = init_params(k_p, H=H, W=W, P=P, D=D, F=F)

    # One-time weight prep (off the per-call forward path).
    t_pdn = jax.block_until_ready(prepare_peps_params(T, left, wout))

    out = peps_forward(x, t_pdn)
    out = jax.block_until_ready(out)

    assert out.shape == (B, F), out.shape
    assert bool(jnp.all(jnp.isfinite(out)))

    # generous tolerance: kernel feeds bf16 operands to the MXU (f32 accumulate)
    ref = peps_reference(x, T, left, wout)
    assert jnp.allclose(out, ref, rtol=1e-1, atol=1e-1), (out, ref)

    print("KERNEL_OK")
</pallas_src>

<mosaic_0001>
module attributes {stable_mosaic.version = 11 : i64} {
  func.func @peps_chain_kernel(%arg0: memref<36x2x16xbf16, #tpu.memory_space<vmem>>, %arg1: memref<36x16x256xbf16, #tpu.memory_space<vmem>>, %arg2: memref<2x16xf32, #tpu.memory_space<vmem>>, %arg3: memref<36x2x16x16xf32, #tpu.memory_space<vmem>>) attributes {dimension_semantics = [], scalar_prefetch = 0 : i64, scratch_operands = 1 : i64, tpu.core_type = #tpu.core_type<tc>} {
    %c0 = arith.constant 0 : index
    %c0_0 = arith.constant 0 : index
    %c0_1 = arith.constant 0 : index
    %0 = vector.load %arg0[%c0, %c0_0, %c0_1] : memref<36x2x16xbf16, #tpu.memory_space<vmem>>, vector<36x2x16xbf16>
    %c0_2 = arith.constant 0 : index
    %c0_3 = arith.constant 0 : index
    %c0_4 = arith.constant 0 : index
    %1 = vector.load %arg1[%c0_2, %c0_3, %c0_4] : memref<36x16x256xbf16, #tpu.memory_space<vmem>>, vector<36x16x256xbf16>
    %cst = arith.constant dense<0.000000e+00> : vector<36x2x256xf32>
    %2 = tpu.matmul %0, %1, %cst {dimension_numbers = #tpu.dot_dimension_numbers<[2], [1], [1], [2], [0, 0, 0, 1, 1, 2], [0], [0]>} : vector<36x2x16xbf16>, vector<36x16x256xbf16>, vector<36x2x256xf32> -> vector<36x2x256xf32>
    %3 = vector.extract_strided_slice %2 {offsets = [0, 0, 0], sizes = [36, 2, 16], strides = [1, 1, 1]} : vector<36x2x256xf32> to vector<36x2x16xf32>
    %c0_5 = arith.constant 0 : index
    %c0_6 = arith.constant 0 : index
    %c0_7 = arith.constant 0 : index
    %c0_8 = arith.constant 0 : index
    %4 = vector.load %arg3[%c0_5, %c0_6, %c0_7, %c0_8] : memref<36x2x16x16xf32, #tpu.memory_space<vmem>>, vector<36x2x1x16xf32>
    %5 = vector.shape_cast %4 : vector<36x2x1x16xf32> to vector<36x2x16xf32>
    %6 = vector.shape_cast %3 : vector<36x2x16xf32> to vector<36x2x1x16xf32>
    tpu.vector_store %arg3[%c0_5, %c0_6, %c0_7, %c0_8], %6 {strides = array<i32>} : memref<36x2x16x16xf32, #tpu.memory_space<vmem>>, vector<36x2x1x16xf32>,
    %7 = vector.extract_strided_slice %2 {offsets = [0, 0, 16], sizes = [36, 2, 16], strides = [1, 1, 1]} : vector<36x2x256xf32> to vector<36x2x16xf32>
    %c0_9 = arith.constant 0 : index
    %c0_10 = arith.constant 0 : index
    %c1 = arith.constant 1 : index
    %c0_11 = arith.constant 0 : index
    %8 = vector.load %arg3[%c0_9, %c0_10, %c1, %c0_11] : memref<36x2x16x16xf32, #tpu.memory_space<vmem>>, vector<36x2x1x16xf32>
    %9 = vector.shape_cast %8 : vector<36x2x1x16xf32> to vector<36x2x16xf32>
    %10 = vector.shape_cast %7 : vector<36x2x16xf32> to vector<36x2x1x16xf32>
    tpu.vector_store %arg3[%c0_9, %c0_10, %c1, %c0_11], %10 {strides = array<i32>} : memref<36x2x16x16xf32, #tpu.memory_space<vmem>>, vector<36x2x1x16xf32>,
    %11 = vector.extract_strided_slice %2 {offsets = [0, 0, 32], sizes = [36, 2, 16], strides = [1, 1, 1]} : vector<36x2x256xf32> to vector<36x2x16xf32>
    %c0_12 = arith.constant 0 : index
    %c0_13 = arith.constant 0 : index
    %c2 = arith.constant 2 : index
    %c0_14 = arith.constant 0 : index
    %12 = vector.load %arg3[%c0_12, %c0_13, %c2, %c0_14] : memref<36x2x16x16xf32, #tpu.memory_space<vmem>>, vector<36x2x1x16xf32>
    %13 = vector.shape_cast %12 : vector<36x2x1x16xf32> to vector<36x2x16xf32>
    %14 = vector.shape_cast %11 : vector<36x2x16xf32> to vector<36x2x1x16xf32>
    tpu.vector_store %arg3[%c0_12, %c0_13, %c2, %c0_14], %14 {strides = array<i32>} : memref<36x2x16x16xf32, #tpu.memory_space<vmem>>, vector<36x2x1x16xf32>,
    %15 = vector.extract_strided_slice %2 {offsets = [0, 0, 48], sizes = [36, 2, 16], strides = [1, 1, 1]} : vector<36x2x256xf32> to vector<36x2x16xf32>
    %c0_15 = arith.constant 0 : index
    %c0_16 = arith.constant 0 : index
    %c3 = arith.constant 3 : index
    %c0_17 = arith.constant 0 : index
    %16 = vector.load %arg3[%c0_15, %c0_16, %c3, %c0_17] : memref<36x2x16x16xf32, #tpu.memory_space<vmem>>, vector<36x2x1x16xf32>
    %17 = vector.shape_cast %16 : vector<36x2x1x16xf32> to vector<36x2x16xf32>
    %18 = vector.shape_cast %15 : vector<36x2x16xf32> to vector<36x2x1x16xf32>
    tpu.vector_store %arg3[%c0_15, %c0_16, %c3, %c0_17], %18 {strides = array<i32>} : memref<36x2x16x16xf32, #tpu.memory_space<vmem>>, vector<36x2x1x16xf32>,
    %19 = vector.extract_strided_slice %2 {offsets = [0, 0, 64], sizes = [36, 2, 16], strides = [1, 1, 1]} : vector<36x2x256xf32> to vector<36x2x16xf32>
    %c0_18 = arith.constant 0 : index
    %c0_19 = arith.constant 0 : index
    %c4 = arith.constant 4 : index
    %c0_20 = arith.constant 0 : index
    %20 = vector.load %arg3[%c0_18, %c0_19, %c4, %c0_20] : memref<36x2x16x16xf32, #tpu.memory_space<vmem>>, vector<36x2x1x16xf32>
    %21 = vector.shape_cast %20 : vector<36x2x1x16xf32> to vector<36x2x16xf32>
    %22 = vector.shape_cast %19 : vector<36x2x16xf32> to vector<36x2x1x16xf32>
    tpu.vector_store %arg3[%c0_18, %c0_19, %c4, %c0_20], %22 {strides = array<i32>} : memref<36x2x16x16xf32, #tpu.memory_space<vmem>>, vector<36x2x1x16xf32>,
    %23 = vector.extract_strided_slice %2 {offsets = [0, 0, 80], sizes = [36, 2, 16], strides = [1, 1, 1]} : vector<36x2x256xf32> to vector<36x2x16xf32>
    %c0_21 = arith.constant 0 : index
    %c0_22 = arith.constant 0 : index
    %c5 = arith.constant 5 : index
    %c0_23 = arith.constant 0 : index
    %24 = vector.load %arg3[%c0_21, %c0_22, %c5, %c0_23] : memref<36x2x16x16xf32, #tpu.memory_space<vmem>>, vector<36x2x1x16xf32>
    %25 = vector.shape_cast %24 : vector<36x2x1x16xf32> to vector<36x2x16xf32>
    %26 = vector.shape_cast %23 : vector<36x2x16xf32> to vector<36x2x1x16xf32>
    tpu.vector_store %arg3[%c0_21, %c0_22, %c5, %c0_23], %26 {strides = array<i32>} : memref<36x2x16x16xf32, #tpu.memory_space<vmem>>, vector<36x2x1x16xf32>,
    %27 = vector.extract_strided_slice %2 {offsets = [0, 0, 96], sizes = [36, 2, 16], strides = [1, 1, 1]} : vector<36x2x256xf32> to vector<36x2x16xf32>
    %c0_24 = arith.constant 0 : index
    %c0_25 = arith.constant 0 : index
    %c6 = arith.constant 6 : index
    %c0_26 = arith.constant 0 : index
    %28 = vector.load %arg3[%c0_24, %c0_25, %c6, %c0_26] : memref<36x2x16x16xf32, #tpu.memory_space<vmem>>, vector<36x2x1x16xf32>
    %29 = vector.shape_cast %28 : vector<36x2x1x16xf32> to vector<36x2x16xf32>
    %30 = vector.shape_cast %27 : vector<36x2x16xf32> to vector<36x2x1x16xf32>
    tpu.vector_store %arg3[%c0_24, %c0_25, %c6, %c0_26], %30 {strides = array<i32>} : memref<36x2x16x16xf32, #tpu.memory_space<vmem>>, vector<36x2x1x16xf32>,
    %31 = vector.extract_strided_slice %2 {offsets = [0, 0, 112], sizes = [36, 2, 16], strides = [1, 1, 1]} : vector<36x2x256xf32> to vector<36x2x16xf32>
    %c0_27 = arith.constant 0 : index
    %c0_28 = arith.constant 0 : index
    %c7 = arith.constant 7 : index
    %c0_29 = arith.constant 0 : index
    %32 = vector.load %arg3[%c0_27, %c0_28, %c7, %c0_29] : memref<36x2x16x16xf32, #tpu.memory_space<vmem>>, vector<36x2x1x16xf32>
    %33 = vector.shape_cast %32 : vector<36x2x1x16xf32> to vector<36x2x16xf32>
    %34 = vector.shape_cast %31 : vector<36x2x16xf32> to vector<36x2x1x16xf32>
    tpu.vector_store %arg3[%c0_27, %c0_28, %c7, %c0_29], %34 {strides = array<i32>} : memref<36x2x16x16xf32, #tpu.memory_space<vmem>>, vector<36x2x1x16xf32>,
    %35 = vector.extract_strided_slice %2 {offsets = [0, 0, 128], sizes = [36, 2, 16], strides = [1, 1, 1]} : vector<36x2x256xf32> to vector<36x2x16xf32>
    %c0_30 = arith.constant 0 : index
    %c0_31 = arith.constant 0 : index
    %c8 = arith.constant 8 : index
    %c0_32 = arith.constant 0 : index
    %36 = vector.load %arg3[%c0_30, %c0_31, %c8, %c0_32] : memref<36x2x16x16xf32, #tpu.memory_space<vmem>>, vector<36x2x1x16xf32>
    %37 = vector.shape_cast %36 : vector<36x2x1x16xf32> to vector<36x2x16xf32>
    %38 = vector.shape_cast %35 : vector<36x2x16xf32> to vector<36x2x1x16xf32>
    tpu.vector_store %arg3[%c0_30, %c0_31, %c8, %c0_32], %38 {strides = array<i32>} : memref<36x2x16x16xf32, #tpu.memory_space<vmem>>, vector<36x2x1x16xf32>,
    %39 = vector.extract_strided_slice %2 {offsets = [0, 0, 144], sizes = [36, 2, 16], strides = [1, 1, 1]} : vector<36x2x256xf32> to vector<36x2x16xf32>
    %c0_33 = arith.constant 0 : index
    %c0_34 = arith.constant 0 : index
    %c9 = arith.constant 9 : index
    %c0_35 = arith.constant 0 : index
    %40 = vector.load %arg3[%c0_33, %c0_34, %c9, %c0_35] : memref<36x2x16x16xf32, #tpu.memory_space<vmem>>, vector<36x2x1x16xf32>
    %41 = vector.shape_cast %40 : vector<36x2x1x16xf32> to vector<36x2x16xf32>
    %42 = vector.shape_cast %39 : vector<36x2x16xf32> to vector<36x2x1x16xf32>
    tpu.vector_store %arg3[%c0_33, %c0_34, %c9, %c0_35], %42 {strides = array<i32>} : memref<36x2x16x16xf32, #tpu.memory_space<vmem>>, vector<36x2x1x16xf32>,
    %43 = vector.extract_strided_slice %2 {offsets = [0, 0, 160], sizes = [36, 2, 16], strides = [1, 1, 1]} : vector<36x2x256xf32> to vector<36x2x16xf32>
    %c0_36 = arith.constant 0 : index
    %c0_37 = arith.constant 0 : index
    %c10 = arith.constant 10 : index
    %c0_38 = arith.constant 0 : index
    %44 = vector.load %arg3[%c0_36, %c0_37, %c10, %c0_38] : memref<36x2x16x16xf32, #tpu.memory_space<vmem>>, vector<36x2x1x16xf32>
    %45 = vector.shape_cast %44 : vector<36x2x1x16xf32> to vector<36x2x16xf32>
    %46 = vector.shape_cast %43 : vector<36x2x16xf32> to vector<36x2x1x16xf32>
    tpu.vector_store %arg3[%c0_36, %c0_37, %c10, %c0_38], %46 {strides = array<i32>} : memref<36x2x16x16xf32, #tpu.memory_space<vmem>>, vector<36x2x1x16xf32>,
    %47 = vector.extract_strided_slice %2 {offsets = [0, 0, 176], sizes = [36, 2, 16], strides = [1, 1, 1]} : vector<36x2x256xf32> to vector<36x2x16xf32>
    %c0_39 = arith.constant 0 : index
    %c0_40 = arith.constant 0 : index
    %c11 = arith.constant 11 : index
    %c0_41 = arith.constant 0 : index
    %48 = vector.load %arg3[%c0_39, %c0_40, %c11, %c0_41] : memref<36x2x16x16xf32, #tpu.memory_space<vmem>>, vector<36x2x1x16xf32>
    %49 = vector.shape_cast %48 : vector<36x2x1x16xf32> to vector<36x2x16xf32>
    %50 = vector.shape_cast %47 : vector<36x2x16xf32> to vector<36x2x1x16xf32>
    tpu.vector_store %arg3[%c0_39, %c0_40, %c11, %c0_41], %50 {strides = array<i32>} : memref<36x2x16x16xf32, #tpu.memory_space<vmem>>, vector<36x2x1x16xf32>,
    %51 = vector.extract_strided_slice %2 {offsets = [0, 0, 192], sizes = [36, 2, 16], strides = [1, 1, 1]} : vector<36x2x256xf32> to vector<36x2x16xf32>
    %c0_42 = arith.constant 0 : index
    %c0_43 = arith.constant 0 : index
    %c12 = arith.constant 12 : index
    %c0_44 = arith.constant 0 : index
    %52 = vector.load %arg3[%c0_42, %c0_43, %c12, %c0_44] : memref<36x2x16x16xf32, #tpu.memory_space<vmem>>, vector<36x2x1x16xf32>
    %53 = vector.shape_cast %52 : vector<36x2x1x16xf32> to vector<36x2x16xf32>
    %54 = vector.shape_cast %51 : vector<36x2x16xf32> to vector<36x2x1x16xf32>
    tpu.vector_store %arg3[%c0_42, %c0_43, %c12, %c0_44], %54 {strides = array<i32>} : memref<36x2x16x16xf32, #tpu.memory_space<vmem>>, vector<36x2x1x16xf32>,
    %55 = vector.extract_strided_slice %2 {offsets = [0, 0, 208], sizes = [36, 2, 16], strides = [1, 1, 1]} : vector<36x2x256xf32> to vector<36x2x16xf32>
    %c0_45 = arith.constant 0 : index
    %c0_46 = arith.constant 0 : index
    %c13 = arith.constant 13 : index
    %c0_47 = arith.constant 0 : index
    %56 = vector.load %arg3[%c0_45, %c0_46, %c13, %c0_47] : memref<36x2x16x16xf32, #tpu.memory_space<vmem>>, vector<36x2x1x16xf32>
    %57 = vector.shape_cast %56 : vector<36x2x1x16xf32> to vector<36x2x16xf32>
    %58 = vector.shape_cast %55 : vector<36x2x16xf32> to vector<36x2x1x16xf32>
    tpu.vector_store %arg3[%c0_45, %c0_46, %c13, %c0_47], %58 {strides = array<i32>} : memref<36x2x16x16xf32, #tpu.memory_space<vmem>>, vector<36x2x1x16xf32>,
    %59 = vector.extract_strided_slice %2 {offsets = [0, 0, 224], sizes = [36, 2, 16], strides = [1, 1, 1]} : vector<36x2x256xf32> to vector<36x2x16xf32>
    %c0_48 = arith.constant 0 : index
    %c0_49 = arith.constant 0 : index
    %c14 = arith.constant 14 : index
    %c0_50 = arith.constant 0 : index
    %60 = vector.load %arg3[%c0_48, %c0_49, %c14, %c0_50] : memref<36x2x16x16xf32, #tpu.memory_space<vmem>>, vector<36x2x1x16xf32>
    %61 = vector.shape_cast %60 : vector<36x2x1x16xf32> to vector<36x2x16xf32>
    %62 = vector.shape_cast %59 : vector<36x2x16xf32> to vector<36x2x1x16xf32>
    tpu.vector_store %arg3[%c0_48, %c0_49, %c14, %c0_50], %62 {strides = array<i32>} : memref<36x2x16x16xf32, #tpu.memory_space<vmem>>, vector<36x2x1x16xf32>,
    %63 = vector.extract_strided_slice %2 {offsets = [0, 0, 240], sizes = [36, 2, 16], strides = [1, 1, 1]} : vector<36x2x256xf32> to vector<36x2x16xf32>
    %c0_51 = arith.constant 0 : index
    %c0_52 = arith.constant 0 : index
    %c15 = arith.constant 15 : index
    %c0_53 = arith.constant 0 : index
    %64 = vector.load %arg3[%c0_51, %c0_52, %c15, %c0_53] : memref<36x2x16x16xf32, #tpu.memory_space<vmem>>, vector<36x2x1x16xf32>
    %65 = vector.shape_cast %64 : vector<36x2x1x16xf32> to vector<36x2x16xf32>
    %66 = vector.shape_cast %63 : vector<36x2x16xf32> to vector<36x2x1x16xf32>
    tpu.vector_store %arg3[%c0_51, %c0_52, %c15, %c0_53], %66 {strides = array<i32>} : memref<36x2x16x16xf32, #tpu.memory_space<vmem>>, vector<36x2x1x16xf32>,
    %c0_54 = arith.constant 0 : index
    %c0_55 = arith.constant 0 : index
    %c0_56 = arith.constant 0 : index
    %c0_57 = arith.constant 0 : index
    %67 = vector.load %arg3[%c0_54, %c0_55, %c0_56, %c0_57] : memref<36x2x16x16xf32, #tpu.memory_space<vmem>>, vector<36x2x16x16xf32>
    %68 = vector.shape_cast %67 : vector<36x2x16x16xf32> to vector<72x16x16xf32>
    %69 = vector.shape_cast %68 : vector<72x16x16xf32> to vector<18x4x16x16xf32>
    %70 = vector.extract_strided_slice %69 {offsets = [0, 0, 0, 0], sizes = [18, 2, 16, 16], strides = [1, 1, 1, 1]} : vector<18x4x16x16xf32> to vector<18x2x16x16xf32>
    %71 = vector.shape_cast %70 : vector<18x2x16x16xf32> to vector<36x16x16xf32>
    %72 = arith.truncf %71 : vector<36x16x16xf32> to vector<36x16x16xbf16>
    %73 = vector.extract_strided_slice %69 {offsets = [0, 2, 0, 0], sizes = [18, 2, 16, 16], strides = [1, 1, 1, 1]} : vector<18x4x16x16xf32> to vector<18x2x16x16xf32>
    %74 = vector.shape_cast %73 : vector<18x2x16x16xf32> to vector<36x16x16xf32>
    %75 = arith.truncf %74 : vector<36x16x16xf32> to vector<36x16x16xbf16>
    %cst_58 = arith.constant dense<0.000000e+00> : vector<36x16x16xf32>
    %76 = tpu.matmul %72, %75, %cst_58 {dimension_numbers = #tpu.dot_dimension_numbers<[2], [1], [1], [2], [0, 0, 0, 1, 1, 2], [0], [0]>} : vector<36x16x16xbf16>, vector<36x16x16xbf16>, vector<36x16x16xf32> -> vector<36x16x16xf32>
    %77 = vector.shape_cast %76 : vector<36x16x16xf32> to vector<9x4x16x16xf32>
    %78 = vector.extract_strided_slice %77 {offsets = [0, 0, 0, 0], sizes = [9, 2, 16, 16], strides = [1, 1, 1, 1]} : vector<9x4x16x16xf32> to vector<9x2x16x16xf32>
    %79 = vector.shape_cast %78 : vector<9x2x16x16xf32> to vector<18x16x16xf32>
    %80 = arith.truncf %79 : vector<18x16x16xf32> to vector<18x16x16xbf16>
    %81 = vector.extract_strided_slice %77 {offsets = [0, 2, 0, 0], sizes = [9, 2, 16, 16], strides = [1, 1, 1, 1]} : vector<9x4x16x16xf32> to vector<9x2x16x16xf32>
    %82 = vector.shape_cast %81 : vector<9x2x16x16xf32> to vector<18x16x16xf32>
    %83 = arith.truncf %82 : vector<18x16x16xf32> to vector<18x16x16xbf16>
    %cst_59 = arith.constant dense<0.000000e+00> : vector<18x16x16xf32>
    %84 = tpu.matmul %80, %83, %cst_59 {dimension_numbers = #tpu.dot_dimension_numbers<[2], [1], [1], [2], [0, 0, 0, 1, 1, 2], [0], [0]>} : vector<18x16x16xbf16>, vector<18x16x16xbf16>, vector<18x16x16xf32> -> vector<18x16x16xf32>
    %85 = vector.extract_strided_slice %84 {offsets = [0, 0, 0], sizes = [16, 16, 16], strides = [1, 1, 1]} : vector<18x16x16xf32> to vector<16x16x16xf32>
    %86 = vector.shape_cast %85 : vector<16x16x16xf32> to vector<4x4x16x16xf32>
    %87 = vector.extract_strided_slice %86 {offsets = [0, 0, 0, 0], sizes = [4, 2, 16, 16], strides = [1, 1, 1, 1]} : vector<4x4x16x16xf32> to vector<4x2x16x16xf32>
    %88 = vector.shape_cast %87 : vector<4x2x16x16xf32> to vector<8x16x16xf32>
    %89 = arith.truncf %88 : vector<8x16x16xf32> to vector<8x16x16xbf16>
    %90 = vector.extract_strided_slice %86 {offsets = [0, 2, 0, 0], sizes = [4, 2, 16, 16], strides = [1, 1, 1, 1]} : vector<4x4x16x16xf32> to vector<4x2x16x16xf32>
    %91 = vector.shape_cast %90 : vector<4x2x16x16xf32> to vector<8x16x16xf32>
    %92 = arith.truncf %91 : vector<8x16x16xf32> to vector<8x16x16xbf16>
    %cst_60 = arith.constant dense<0.000000e+00> : vector<8x16x16xf32>
    %93 = tpu.matmul %89, %92, %cst_60 {dimension_numbers = #tpu.dot_dimension_numbers<[2], [1], [1], [2], [0, 0, 0, 1, 1, 2], [0], [0]>} : vector<8x16x16xbf16>, vector<8x16x16xbf16>, vector<8x16x16xf32> -> vector<8x16x16xf32>
    %94 = vector.extract_strided_slice %84 {offsets = [16, 0, 0], sizes = [2, 16, 16], strides = [1, 1, 1]} : vector<18x16x16xf32> to vector<2x16x16xf32>
    %95 = tpu.concatenate %93, %94 in 0 : vector<8x16x16xf32>, vector<2x16x16xf32> -> vector<10x16x16xf32>
    %96 = vector.extract_strided_slice %95 {offsets = [0, 0, 0], sizes = [8, 16, 16], strides = [1, 1, 1]} : vector<10x16x16xf32> to vector<8x16x16xf32>
    %97 = vector.shape_cast %96 : vector<8x16x16xf32> to vector<2x4x16x16xf32>
    %98 = vector.extract_strided_slice %97 {offsets = [0, 0, 0, 0], sizes = [2, 2, 16, 16], strides = [1, 1, 1, 1]} : vector<2x4x16x16xf32> to vector<2x2x16x16xf32>
    %99 = vector.shape_cast %98 : vector<2x2x16x16xf32> to vector<4x16x16xf32>
    %100 = arith.truncf %99 : vector<4x16x16xf32> to vector<4x16x16xbf16>
    %101 = vector.extract_strided_slice %97 {offsets = [0, 2, 0, 0], sizes = [2, 2, 16, 16], strides = [1, 1, 1, 1]} : vector<2x4x16x16xf32> to vector<2x2x16x16xf32>
    %102 = vector.shape_cast %101 : vector<2x2x16x16xf32> to vector<4x16x16xf32>
    %103 = arith.truncf %102 : vector<4x16x16xf32> to vector<4x16x16xbf16>
    %cst_61 = arith.constant dense<0.000000e+00> : vector<4x16x16xf32>
    %104 = tpu.matmul %100, %103, %cst_61 {dimension_numbers = #tpu.dot_dimension_numbers<[2], [1], [1], [2], [0, 0, 0, 1, 1, 2], [0], [0]>} : vector<4x16x16xbf16>, vector<4x16x16xbf16>, vector<4x16x16xf32> -> vector<4x16x16xf32>
    %105 = vector.extract_strided_slice %95 {offsets = [8, 0, 0], sizes = [2, 16, 16], strides = [1, 1, 1]} : vector<10x16x16xf32> to vector<2x16x16xf32>
    %106 = tpu.concatenate %104, %105 in 0 : vector<4x16x16xf32>, vector<2x16x16xf32> -> vector<6x16x16xf32>
    %107 = vector.extract_strided_slice %106 {offsets = [0, 0, 0], sizes = [4, 16, 16], strides = [1, 1, 1]} : vector<6x16x16xf32> to vector<4x16x16xf32>
    %108 = vector.shape_cast %107 : vector<4x16x16xf32> to vector<1x4x16x16xf32>
    %109 = vector.extract_strided_slice %108 {offsets = [0, 0, 0, 0], sizes = [1, 2, 16, 16], strides = [1, 1, 1, 1]} : vector<1x4x16x16xf32> to vector<1x2x16x16xf32>
    %110 = vector.shape_cast %109 : vector<1x2x16x16xf32> to vector<2x16x16xf32>
    %111 = arith.truncf %110 : vector<2x16x16xf32> to vector<2x16x16xbf16>
    %112 = vector.extract_strided_slice %108 {offsets = [0, 2, 0, 0], sizes = [1, 2, 16, 16], strides = [1, 1, 1, 1]} : vector<1x4x16x16xf32> to vector<1x2x16x16xf32>
    %113 = vector.shape_cast %112 : vector<1x2x16x16xf32> to vector<2x16x16xf32>
    %114 = arith.truncf %113 : vector<2x16x16xf32> to vector<2x16x16xbf16>
    %cst_62 = arith.constant dense<0.000000e+00> : vector<2x16x16xf32>
    %115 = tpu.matmul %111, %114, %cst_62 {dimension_numbers = #tpu.dot_dimension_numbers<[2], [1], [1], [2], [0, 0, 0, 1, 1, 2], [0], [0]>} : vector<2x16x16xbf16>, vector<2x16x16xbf16>, vector<2x16x16xf32> -> vector<2x16x16xf32>
    %116 = vector.extract_strided_slice %106 {offsets = [4, 0, 0], sizes = [2, 16, 16], strides = [1, 1, 1]} : vector<6x16x16xf32> to vector<2x16x16xf32>
    %117 = tpu.concatenate %115, %116 in 0 : vector<2x16x16xf32>, vector<2x16x16xf32> -> vector<4x16x16xf32>
    %118 = vector.shape_cast %117 : vector<4x16x16xf32> to vector<1x4x16x16xf32>
    %119 = vector.extract_strided_slice %118 {offsets = [0, 0, 0, 0], sizes = [1, 2, 16, 16], strides = [1, 1, 1, 1]} : vector<1x4x16x16xf32> to vector<1x2x16x16xf32>
    %120 = vector.shape_cast %119 : vector<1x2x16x16xf32> to vector<2x16x16xf32>
    %121 = arith.truncf %120 : vector<2x16x16xf32> to vector<2x16x16xbf16>
    %122 = vector.extract_strided_slice %118 {offsets = [0, 2, 0, 0], sizes = [1, 2, 16, 16], strides = [1, 1, 1, 1]} : vector<1x4x16x16xf32> to vector<1x2x16x16xf32>
    %123 = vector.shape_cast %122 : vector<1x2x16x16xf32> to vector<2x16x16xf32>
    %124 = arith.truncf %123 : vector<2x16x16xf32> to vector<2x16x16xbf16>
    %cst_63 = arith.constant dense<0.000000e+00> : vector<2x16x16xf32>
    %125 = tpu.matmul %121, %124, %cst_63 {dimension_numbers = #tpu.dot_dimension_numbers<[2], [1], [1], [2], [0, 0, 0, 1, 1, 2], [0], [0]>} : vector<2x16x16xbf16>, vector<2x16x16xbf16>, vector<2x16x16xf32> -> vector<2x16x16xf32>
    %126 = vector.extract_strided_slice %125 {offsets = [0, 0, 0], sizes = [2, 1, 16], strides = [1, 1, 1]} : vector<2x16x16xf32> to vector<2x1x16xf32>
    %127 = vector.shape_cast %126 : vector<2x1x16xf32> to vector<2x16xf32>
    %c0_64 = arith.constant 0 : index
    %c0_65 = arith.constant 0 : index
    %128 = vector.load %arg2[%c0_64, %c0_65] : memref<2x16xf32, #tpu.memory_space<vmem>>, vector<2x16xf32>
    tpu.vector_store %arg2[%c0_64, %c0_65], %127 {strides = array<i32>} : memref<2x16xf32, #tpu.memory_space<vmem>>, vector<2x16xf32>,
    return
  }
}

</mosaic_0001>

<bundles_post_ra>
// kernel: peps_forward.1
= control target key start
LH: loop header
LB: loop body
LE: loop exit
PB: predicated region body
PF: predicated region fallthrough
CT: control target
= control target key end

     0   :  { %7 = vsyncpa [#allocation4], 0  ;;  %s17457_s0 = inlined_call_operand.vmem [shape: bf16[36,2,16], index: 0, kind: input, shape index: {}]   ;;  %s17458_s1 = inlined_call_operand.hbm [shape: bf16[36,16,256], index: 1, kind: input, shape index: {}]   ;;  %s17459_s2 = inlined_call_operand.hbm [shape: f32[2,16], index: 2, kind: output, shape index: {}]  }
   0x1   :  { %8 = vsyncpa [#allocation5], 0  ;;  %s12927_s9 = smov [#allocation3]   ;;  %s12879_s13 = scalar_lea.hbm %s17458_s1, 9216 }
   0x2   :  { %s16_s10 = sshll.u32 %s12927_s9, 4  ;;  %p12880_p0 = scmp.ne.s32.totalorder %s17458_s1, %s12879_s13  ;;  %s17_s10 = int_to_ptr.vmem [resolvable:$true] %s16_s10 }
   0x3   :  { %p12883_p1 = scmp.lt.u32.totalorder %s12879_s13, %s17458_s1 }
   0x5   :  { %p12885_p2 = pnand %p12883_p1, %p12880_p0 }
   0x7   :  { %12888 = shalt.err (!%p12885_p2)
}
   0x8   :  { %s12889_s18 = scalar_lea.vmem %s17_s10, 9216  ;;  %p12894_p4 = scmp.lt.s32.totalorder %s17_s10, %s17_s10 }
   0x9   :  { %p12890_p3 = scmp.ne.s32.totalorder %s17_s10, %s12889_s18  ;;  %p12895_p5 = scmp.lt.s32.totalorder %s12889_s18, %s12889_s18 }
   0xb   :  { %p12896_p6 = por %p12895_p5, %p12894_p4 }
   0xd   :  { %p12897_p7 = pnand %p12896_p6, %p12890_p3 }
   0xf   :  { %12900 = shalt.err (!%p12897_p7)
}
  0x10   :  { %s12928_s19 = smov 128   ;;  %s12929_s20 = smov 8  }
  0x11   :  { %22 = dma.hbm_to_vmem [thread:$0]  %s17458_s1, 9216, %s17_s10, [#allocation4], %s12928_s19, %s12928_s19, %s12929_s20  }
  0x12   :  { %12923 = dma.done.wait [#allocation4], 9216  }
  0x13   :  { %12924 = vsyncadd [#allocation4], 4294958080  ;;  %v12930_v0 = vmov 0   ;;  %v12771_v1 = vld [vmem:[#allocation3 + $0x4] ss:$8 sps:$4 sm:$0xff]   ;;  %vm145_vm0 = vcmask 130048  }
  0x14   :  { %181 = vmatprep.mubr.bf16.mxu0 %v12930_v0  ;;  %235 = vmatprep.mubr.bf16.mxu1 %v12930_v0  ;;  %v12773_v2 = vld [vmem:[#allocation3 + $0x14] ss:$8 sps:$4 sm:$0xff]   ;;  %v12775_v3 = vld [vmem:[#allocation3] ss:$8 sps:$4 sm:$0xff]   ;;  %v12776_v4 = vld [vmem:[#allocation3 + $0x10] ss:$8 sps:$4 sm:$0xff]  }
  0x15   :  { %149 = vmatprep.subr.bf16.mxu0 %v12771_v1  ;;  %203 = vmatprep.subr.bf16.mxu1 %v12773_v2  ;;  %v27_v5 = vld [vmem:[%s17457_s0] sm:$0x1]  ;;  %v28_v6 = vld [vmem:[%s17457_s0 + $0x1] sm:$0x1]  ;;  %v12779_v8 = vld [vmem:[#allocation3 + $0x24] ss:$8 sps:$4 sm:$0xff]  }
  0x16   :  { %150 = vmatpush1.bf16.msra.mxu0 %v12775_v3  ;;  %204 = vmatpush1.bf16.msra.mxu1 %v12776_v4  ;;  %v12777_v7 = vld [vmem:[#allocation3 + $0x20] ss:$8 sps:$4 sm:$0xff]   ;;  %v12780_v9 = vld [vmem:[#allocation3 + $0x30] ss:$8 sps:$4 sm:$0xff]   ;;  %v12782_v10 = vld [vmem:[#allocation3 + $0x34] ss:$8 sps:$4 sm:$0xff]  }
  0x17   :  { %257 = vmatprep.subr.bf16.mxu0 %v12779_v8  ;;  %v12785_v11 = vld [vmem:[#allocation3 + $0x44] ss:$8 sps:$4 sm:$0xff]   ;;  %311 = vmatprep.subr.bf16.mxu1 %v12782_v10  ;;  %v12788_v12 = vld [vmem:[#allocation3 + $0x54] ss:$8 sps:$4 sm:$0xff]   ;;  %v29_v13 = vld [vmem:[%s17457_s0 + $0x2] sm:$0x1] }
  0x18   :  { %v30_v14 = vld [vmem:[%s17457_s0 + $0x3] sm:$0x1]  ;;  %v12786_v16 = vld [vmem:[#allocation3 + $0x50] ss:$8 sps:$4 sm:$0xff]   ;;  %v12791_v17 = vld [vmem:[#allocation3 + $0x64] ss:$8 sps:$4 sm:$0xff]  }
  0x19   :  { %12020 = vmatmul.mubr.msk.bf16.vlgmr.msra.gmra.mrb[0].mxu0 %vm145_vm0, %v27_v5  ;;  %12023 = vmatmul.mubr.msk.bf16.vlgmr.msra.gmra.mrb[0].mxu1 %vm145_vm0, %v28_v6  ;;  %v12783_v15 = vld [vmem:[#allocation3 + $0x40] ss:$8 sps:$4 sm:$0xff]   ;;  %v12794_v18 = vld [vmem:[#allocation3 + $0x74] ss:$8 sps:$4 sm:$0xff]   ;;  %v31_v19 = vld [vmem:[%s17457_s0 + $0x4] sm:$0x1] }
  0x1a   :  { %258 = vmatpush1.bf16.msra.mxu0 %v12777_v7  ;;  %289 = vmatprep.mubr.bf16.mxu0 %v12930_v0  ;;  %v32_v20 = vld [vmem:[%s17457_s0 + $0x5] sm:$0x1]  ;;  %v12789_v21 = vld [vmem:[#allocation3 + $0x60] ss:$8 sps:$4 sm:$0xff]   ;;  %v12792_v22 = vld [vmem:[#allocation3 + $0x70] ss:$8 sps:$4 sm:$0xff]  }
  0x1b   :  { %343 = vmatprep.mubr.bf16.mxu1 %v12930_v0  ;;  %312 = vmatpush1.bf16.msra.mxu1 %v12780_v9  ;;  %v12797_v23 = vld [vmem:[#allocation3 + $0x84] ss:$8 sps:$4 sm:$0xff]   ;;  %v12800_v24 = vld [vmem:[#allocation3 + $0x94] ss:$8 sps:$4 sm:$0xff]   ;;  %v12795_v27 = vld [vmem:[#allocation3 + $0x80] ss:$8 sps:$4 sm:$0xff]  }
  0x1c   :  { %365 = vmatprep.subr.bf16.mxu0 %v12785_v11  ;;  %419 = vmatprep.subr.bf16.mxu1 %v12788_v12  ;;  %v33_v25 = vld [vmem:[%s17457_s0 + $0x6] sm:$0x1]  ;;  %v34_v26 = vld [vmem:[%s17457_s0 + $0x7] sm:$0x1]  ;;  %v12798_v28 = vld [vmem:[#allocation3 + $0x90] ss:$8 sps:$4 sm:$0xff]  }
  0x1d   :  { %v12803_v29 = vld [vmem:[#allocation3 + $0xa4] ss:$8 sps:$4 sm:$0xff]   ;;  %v12806_v30 = vld [vmem:[#allocation3 + $0xb4] ss:$8 sps:$4 sm:$0xff]   ;;  %v35_v31 = vld [vmem:[%s17457_s0 + $0x8] sm:$0x1] }
  0x1e   :  { %v36_v32 = vld [vmem:[%s17457_s0 + $0x9] sm:$0x1]  ;;  %v12804_v34 = vld [vmem:[#allocation3 + $0xb0] ss:$8 sps:$4 sm:$0xff]   ;;  %v12809_v35 = vld [vmem:[#allocation3 + $0xc4] ss:$8 sps:$4 sm:$0xff]  }
  0x1f   :  { %v12801_v33 = vld [vmem:[#allocation3 + $0xa0] ss:$8 sps:$4 sm:$0xff]   ;;  %v12812_v36 = vld [vmem:[#allocation3 + $0xd4] ss:$8 sps:$4 sm:$0xff]   ;;  %v12810_v40 = vld [vmem:[#allocation3 + $0xd0] ss:$8 sps:$4 sm:$0xff]  }
  0x20   :  { %v37_v37 = vld [vmem:[%s17457_s0 + $0xa] sm:$0x1]  ;;  %v38_v38 = vld [vmem:[%s17457_s0 + $0xb] sm:$0x1]  ;;  %v12815_v41 = vld [vmem:[#allocation3 + $0xe4] ss:$8 sps:$4 sm:$0xff]  }
  0x21   :  { %12026 = vmatmul.mubr.msk.bf16.vlgmr.msra.gmra.mrb[4].mxu0 %vm145_vm0, %v29_v13  ;;  %12029 = vmatmul.mubr.msk.bf16.vlgmr.msra.gmra.mrb[4].mxu1 %vm145_vm0, %v30_v14  ;;  %v12807_v39 = vld [vmem:[#allocation3 + $0xc0] ss:$8 sps:$4 sm:$0xff]   ;;  %v12818_v42 = vld [vmem:[#allocation3 + $0xf4] ss:$8 sps:$4 sm:$0xff]   ;;  %v39_v43 = vld [vmem:[%s17457_s0 + $0xc] sm:$0x1] }
  0x22   :  { %366 = vmatpush1.bf16.msra.mxu0 %v12783_v15  ;;  %397 = vmatprep.mubr.bf16.mxu0 %v12930_v0  ;;  %v40_v44 = vld [vmem:[%s17457_s0 + $0xd] sm:$0x1]  ;;  %v12813_v45 = vld [vmem:[#allocation3 + $0xe0] ss:$8 sps:$4 sm:$0xff]   ;;  %v12816_v46 = vld [vmem:[#allocation3 + $0xf0] ss:$8 sps:$4 sm:$0xff]  }
  0x23   :  { %420 = vmatpush1.bf16.msra.mxu1 %v12786_v16  ;;  %451 = vmatprep.mubr.bf16.mxu1 %v12930_v0  ;;  %v12821_v47 = vld [vmem:[#allocation3 + $0x104] ss:$8 sps:$4 sm:$0xff]   ;;  %v12824_v48 = vld [vmem:[#allocation3 + $0x114] ss:$8 sps:$4 sm:$0xff]   ;;  %v12819_v51 = vld [vmem:[#allocation3 + $0x100] ss:$8 sps:$4 sm:$0xff]  }
  0x24   :  { %473 = vmatprep.subr.bf16.mxu0 %v12791_v17  ;;  %527 = vmatprep.subr.bf16.mxu1 %v12794_v18  ;;  %v41_v49 = vld [vmem:[%s17457_s0 + $0xe] sm:$0x1]  ;;  %v42_v50 = vld [vmem:[%s17457_s0 + $0xf] sm:$0x1]  ;;  %v12822_v52 = vld [vmem:[#allocation3 + $0x110] ss:$8 sps:$4 sm:$0xff]  }
  0x25   :  { %v12827_v53 = vld [vmem:[#allocation3 + $0x124] ss:$8 sps:$4 sm:$0xff]   ;;  %v43_v54 = vld [vmem:[%s17457_s0 + $0x10] sm:$0x1]  ;;  %v44_v55 = vld [vmem:[%s17457_s0 + $0x11] sm:$0x1] }
  0x26   :  { %v12825_v56 = vld [vmem:[#allocation3 + $0x120] ss:$8 sps:$4 sm:$0xff]   ;;  %v12830_v57 = vld [vmem:[#allocation3 + $0x134] ss:$8 sps:$4 sm:$0xff]   ;;  %v45_v58 = vld [vmem:[%s17457_s0 + $0x12] sm:$0x1] }
  0x27   :  { %v12828_v59 = vld [vmem:[#allocation3 + $0x130] ss:$8 sps:$4 sm:$0xff]   ;;  %v12833_v61 = vld [vmem:[#allocation3 + $0x144] ss:$8 sps:$4 sm:$0xff]   ;;  %v12831_v62 = vld [vmem:[#allocation3 + $0x140] ss:$8 sps:$4 sm:$0xff]  }
  0x28   :  { %v46_v60 = vld [vmem:[%s17457_s0 + $0x13] sm:$0x1]  ;;  %v12836_v63 = vld [vmem:[#allocation3 + $0x154] ss:$8 sps:$4 sm:$0xff]   ;;  %v12839_v4 = vld [vmem:[#allocation3 + $0x164] ss:$8 sps:$4 sm:$0xff]  }
  0x29   :  { %12032 = vmatmul.mubr.msk.bf16.vlgmr.msra.gmra.mrb[8].mxu0 %vm145_vm0, %v31_v19  ;;  %12035 = vmatmul.mubr.msk.bf16.vlgmr.msra.gmra.mrb[8].mxu1 %vm145_vm0, %v32_v20  ;;  %v47_v1 = vld [vmem:[%s17457_s0 + $0x14] sm:$0x1]  ;;  %v12834_v2 = vld [vmem:[#allocation3 + $0x150] ss:$8 sps:$4 sm:$0xff]   ;;  %v48_v3 = vld [vmem:[%s17457_s0 + $0x15] sm:$0x1] }
  0x2a   :  { %474 = vmatpush1.bf16.msra.mxu0 %v12789_v21  ;;  %505 = vmatprep.mubr.bf16.mxu0 %v12930_v0  ;;  %v12837_v5 = vld [vmem:[#allocation3 + $0x160] ss:$8 sps:$4 sm:$0xff]   ;;  %v12842_v6 = vld [vmem:[#allocation3 + $0x174] ss:$8 sps:$4 sm:$0xff]   ;;  %v12840_v8 = vld [vmem:[#allocation3 + $0x170] ss:$8 sps:$4 sm:$0xff]  }
  0x2b   :  { %528 = vmatpush1.bf16.msra.mxu1 %v12792_v22  ;;  %559 = vmatprep.mubr.bf16.mxu1 %v12930_v0  ;;  %v49_v7 = vld [vmem:[%s17457_s0 + $0x16] sm:$0x1]  ;;  %v50_v9 = vld [vmem:[%s17457_s0 + $0x17] sm:$0x1]  ;;  %v12845_v10 = vld [vmem:[#allocation3 + $0x184] ss:$8 sps:$4 sm:$0xff]  }
  0x2c   :  { %581 = vmatprep.subr.bf16.mxu0 %v12797_v23  ;;  %635 = vmatprep.subr.bf16.mxu1 %v12800_v24  ;;  %v12843_v11 = vld [vmem:[#allocation3 + $0x180] ss:$8 sps:$4 sm:$0xff]   ;;  %v12848_v12 = vld [vmem:[#allocation3 + $0x194] ss:$8 sps:$4 sm:$0xff]   ;;  %v51_v13 = vld [vmem:[%s17457_s0 + $0x18] sm:$0x1] }
  0x2d   :  { %v12846_v14 = vld [vmem:[#allocation3 + $0x190] ss:$8 sps:$4 sm:$0xff]   ;;  %v12851_v16 = vld [vmem:[#allocation3 + $0x1a4] ss:$8 sps:$4 sm:$0xff]   ;;  %v12849_v17 = vld [vmem:[#allocation3 + $0x1a0] ss:$8 sps:$4 sm:$0xff]  }
  0x2e   :  { %v52_v15 = vld [vmem:[%s17457_s0 + $0x19] sm:$0x1]  ;;  %v12854_v18 = vld [vmem:[#allocation3 + $0x1b4] ss:$8 sps:$4 sm:$0xff]   ;;  %v53_v19 = vld [vmem:[%s17457_s0 + $0x1a] sm:$0x1] }
  0x2f   :  { %v12852_v20 = vld [vmem:[#allocation3 + $0x1b0] ss:$8 sps:$4 sm:$0xff]   ;;  %v12857_v22 = vld [vmem:[#allocation3 + $0x1c4] ss:$8 sps:$4 sm:$0xff]   ;;  %v12855_v23 = vld [vmem:[#allocation3 + $0x1c0] ss:$8 sps:$4 sm:$0xff]  }
  0x30   :  { %v54_v21 = vld [vmem:[%s17457_s0 + $0x1b] sm:$0x1]  ;;  %v12860_v24 = vld [vmem:[#allocation3 + $0x1d4] ss:$8 sps:$4 sm:$0xff]   ;;  %vm2980_vm1 = vcmask 122880   ;;  %s12932_s4 = smov 112  }
  0x31   :  { %12038 = vmatmul.mubr.msk.bf16.vlgmr.msra.gmra.mrb[12].mxu0 %vm145_vm0, %v33_v25  ;;  %12041 = vmatmul.mubr.msk.bf16.vlgmr.msra.gmra.mrb[12].mxu1 %vm145_vm0, %v34_v26  ;;  %v55_v25 = vld [vmem:[%s17457_s0 + $0x1c] sm:$0x1]  ;;  %v12858_v26 = vld [vmem:[#allocation3 + $0x1d0] ss:$8 sps:$4 sm:$0xff]   ;;  %s12933_s5 = smov 96   ;;  %s12935_s10 = smov 64  }
  0x32   :  { %582 = vmatpush1.bf16.msra.mxu0 %v12795_v27  ;;  %613 = vmatprep.mubr.bf16.mxu0 %v12930_v0  ;;  %v56_v27 = vld [vmem:[%s17457_s0 + $0x1d] sm:$0x1]  ;;  %s12936_s11 = smov 48   ;;  %s12937_s12 = smov 32   ;;  %vm12940_vm2 = vmmov 0   ;;  %vm11998_vm3 = vcmask 1041409  }
  0x33   :  { %636 = vmatpush1.bf16.msra.mxu1 %v12798_v28  ;;  %667 = vmatprep.mubr.bf16.mxu1 %v12930_v0  ;;  %v12863_v28 = vld [vmem:[#allocation3 + $0x1e4] ss:$8 sps:$4 sm:$0xff]   ;;  %s12938_s13 = smov 16   ;;  %s12941_s14 = smov [#allocation6]   ;;  %vm12001_vm4 = vcmask 123904  }
  0x34   :  { %689 = vmatprep.subr.bf16.mxu0 %v12803_v29  ;;  %743 = vmatprep.subr.bf16.mxu1 %v12806_v30  ;;  %v12861_v29 = vld [vmem:[#allocation3 + $0x1e0] ss:$8 sps:$4 sm:$0xff]   ;;  %v12866_v30 = vld [vmem:[#allocation3 + $0x1f4] ss:$8 sps:$4 sm:$0xff]   ;;  %s12009_s15 = sshll.u32 %s12941_s14, 4  ;;  %s12010_s15 = int_to_ptr.vmem [resolvable:$true] %s12009_s15 }
  0x35   :  { %s12901_s16 = scalar_lea.vmem %s12010_s15, 32  ;;  %p12906_p9 = scmp.lt.s32.totalorder %s12010_s15, %s12010_s15 }
  0x36   :  { %p12902_p8 = scmp.ne.s32.totalorder %s12010_s15, %s12901_s16  ;;  %p12907_p10 = scmp.lt.s32.totalorder %s12901_s16, %s12901_s16 }
  0x38   :  { %p12908_p11 = por %p12907_p10, %p12906_p9 }
  0x39   :  { %12044 = vmatmul.mubr.msk.bf16.vlgmr.msra.gmra.mrb[16].mxu0 %vm145_vm0, %v35_v31  ;;  %12047 = vmatmul.mubr.msk.bf16.vlgmr.msra.gmra.mrb[16].mxu1 %vm145_vm0, %v36_v32  ;;  %v57_v31 = vld [vmem:[%s17457_s0 + $0x1e] sm:$0x1]  ;;  %v12864_v32 = vld [vmem:[#allocation3 + $0x1f0] ss:$8 sps:$4 sm:$0xff]  }
  0x3a   :  { %690 = vmatpush1.bf16.msra.mxu0 %v12801_v33  ;;  %721 = vmatprep.mubr.bf16.mxu0 %v12930_v0  ;;  %v58_v33 = vld [vmem:[%s17457_s0 + $0x1f] sm:$0x1]  ;;  %p12909_p12 = pnand %p12908_p11, %p12902_p8 }
  0x3b   :  { %744 = vmatpush1.bf16.msra.mxu1 %v12804_v34  ;;  %775 = vmatprep.mubr.bf16.mxu1 %v12930_v0  ;;  %v12931_v34 = vmov 1966171168  }
  0x3c   :  { %797 = vmatprep.subr.bf16.mxu0 %v12809_v35  ;;  %851 = vmatprep.subr.bf16.mxu1 %v12812_v36  ;;  %v2117_v35 = vunpack.c.l.s4 %v12931_v34  ;;  %v2119_v36 = vlaneseq }
  0x41   :  { %12050 = vmatmul.mubr.msk.bf16.vlgmr.msra.gmra.mrb[20].mxu0 %vm145_vm0, %v37_v37  ;;  %12053 = vmatmul.mubr.msk.bf16.vlgmr.msra.gmra.mrb[20].mxu1 %vm145_vm0, %v38_v38  ;;  %v12869_v37 = vld [vmem:[#allocation3 + $0x204] ss:$8 sps:$4 sm:$0xff]   ;;  %v12867_v38 = vld [vmem:[#allocation3 + $0x200] ss:$8 sps:$4 sm:$0xff]  }
  0x42   :  { %798 = vmatpush1.bf16.msra.mxu0 %v12807_v39  ;;  %829 = vmatprep.mubr.bf16.mxu0 %v12930_v0  ;;  %v2118_v39 = vunpack.c.0.s8 %v2117_v35 }
  0x43   :  { %852 = vmatpush1.bf16.msra.mxu1 %v12810_v40  ;;  %883 = vmatprep.mubr.bf16.mxu1 %v12930_v0  ;;  %v2120_v40 = vshrl.u32 %v2119_v36, 7 }
  0x44   :  { %905 = vmatprep.subr.bf16.mxu0 %v12815_v41  ;;  %959 = vmatprep.subr.bf16.mxu1 %v12818_v42  ;;  %v12872_v41 = vld [vmem:[#allocation3 + $0x214] ss:$8 sps:$4 sm:$0xff]   ;;  %v59_v42 = vld [vmem:[%s17457_s0 + $0x20] sm:$0x1] }
  0x49   :  { %12056 = vmatmul.mubr.msk.bf16.vlgmr.msra.gmra.mrb[24].mxu0 %vm145_vm0, %v39_v43  ;;  %12059 = vmatmul.mubr.msk.bf16.vlgmr.msra.gmra.mrb[24].mxu1 %vm145_vm0, %v40_v44  ;;  %v12870_v43 = vld [vmem:[#allocation3 + $0x210] ss:$8 sps:$4 sm:$0xff]   ;;  %v13135_v44 = vsub.s32 %v2118_v39, %v2120_v40 }
  0x4a   :  { %906 = vmatpush1.bf16.msra.mxu0 %v12813_v45  ;;  %937 = vmatprep.mubr.bf16.mxu0 %v12930_v0  ;;  %v60_v45 = vld [vmem:[%s17457_s0 + $0x21] sm:$0x1] }
  0x4b   :  { %960 = vmatpush1.bf16.msra.mxu1 %v12816_v46  ;;  %991 = vmatprep.mubr.bf16.mxu1 %v12930_v0 }
  0x4c   :  { %1013 = vmatprep.subr.bf16.mxu0 %v12821_v47  ;;  %1067 = vmatprep.subr.bf16.mxu1 %v12824_v48 }
  0x51   :  { %12062 = vmatmul.mubr.msk.bf16.vlgmr.msra.gmra.mrb[28].mxu0 %vm145_vm0, %v41_v49  ;;  %12065 = vmatmul.mubr.msk.bf16.vlgmr.msra.gmra.mrb[28].mxu1 %vm145_vm0, %v42_v50  ;;  %v13143_v49 = vsub.s32 0, %v2120_v40  ;;  %v62_v40 = vld [vmem:[%s17457_s0 + $0x23] sm:$0x1] }
  0x52   :  { %1014 = vmatpush1.bf16.msra.mxu0 %v12819_v51  ;;  %1045 = vmatprep.mubr.bf16.mxu0 %v12930_v0 }
  0x53   :  { %1068 = vmatpush1.bf16.msra.mxu1 %v12822_v52  ;;  %1099 = vmatprep.mubr.bf16.mxu1 %v12930_v0 }
  0x54   :  { %1121 = vmatprep.subr.bf16.mxu0 %v12827_v53  ;;  %1175 = vmatprep.subr.bf16.mxu1 %v12830_v57 }
  0x59   :  { %12068 = vmatmul.mubr.msk.bf16.vlgmr.msra.gmra.mrb[32].mxu0 %vm145_vm0, %v43_v54  ;;  %12071 = vmatmul.mubr.msk.bf16.vlgmr.msra.gmra.mrb[32].mxu1 %vm145_vm0, %v44_v55 }
  0x5a   :  { %1122 = vmatpush1.bf16.msra.mxu0 %v12825_v56  ;;  %1153 = vmatprep.mubr.bf16.mxu0 %v12930_v0 }
  0x5b   :  { %1207 = vmatprep.mubr.bf16.mxu1 %v12930_v0  ;;  %1176 = vmatpush1.bf16.msra.mxu1 %v12828_v59 }
  0x5c   :  { %1229 = vmatprep.subr.bf16.mxu0 %v12833_v61  ;;  %1283 = vmatprep.subr.bf16.mxu1 %v12836_v63 }
  0x61   :  { %12074 = vmatmul.mubr.msk.bf16.vlgmr.msra.gmra.mrb[36].mxu0 %vm145_vm0, %v45_v58  ;;  %12077 = vmatmul.mubr.msk.bf16.vlgmr.msra.gmra.mrb[36].mxu1 %vm145_vm0, %v46_v60 }
  0x62   :  { %1261 = vmatprep.mubr.bf16.mxu0 %v12930_v0  ;;  %1315 = vmatprep.mubr.bf16.mxu1 %v12930_v0 }
  0x63   :  { %1230 = vmatpush1.bf16.msra.mxu0 %v12831_v62  ;;  %1284 = vmatpush1.bf16.msra.mxu1 %v12834_v2 }
  0x64   :  { %1337 = vmatprep.subr.bf16.mxu0 %v12839_v4  ;;  %1391 = vmatprep.subr.bf16.mxu1 %v12842_v6 }
  0x69   :  { %12080 = vmatmul.mubr.msk.bf16.vlgmr.msra.gmra.mrb[40].mxu0 %vm145_vm0, %v47_v1  ;;  %12083 = vmatmul.mubr.msk.bf16.vlgmr.msra.gmra.mrb[40].mxu1 %vm145_vm0, %v48_v3 }
  0x6a   :  { %1369 = vmatprep.mubr.bf16.mxu0 %v12930_v0  ;;  %1423 = vmatprep.mubr.bf16.mxu1 %v12930_v0 }
  0x6b   :  { %1338 = vmatpush1.bf16.msra.mxu0 %v12837_v5  ;;  %1392 = vmatpush1.bf16.msra.mxu1 %v12840_v8 }
  0x6c   :  { %1445 = vmatprep.subr.bf16.mxu0 %v12845_v10  ;;  %1499 = vmatprep.subr.bf16.mxu1 %v12848_v12  ;;  %v12873_v10 = vld [vmem:[#allocation3 + $0x220] ss:$8 sps:$4 sm:$0xff]  }
  0x71   :  { %12086 = vmatmul.mubr.msk.bf16.vlgmr.msra.gmra.mrb[44].mxu0 %vm145_vm0, %v49_v7  ;;  %12089 = vmatmul.mubr.msk.bf16.vlgmr.msra.gmra.mrb[44].mxu1 %vm145_vm0, %v50_v9  ;;  %v12875_v9 = vld [vmem:[#allocation3 + $0x224] ss:$8 sps:$4 sm:$0xff]  }
  0x72   :  { %1477 = vmatprep.mubr.bf16.mxu0 %v12930_v0  ;;  %1531 = vmatprep.mubr.bf16.mxu1 %v12930_v0 }
  0x73   :  { %1446 = vmatpush1.bf16.msra.mxu0 %v12843_v11  ;;  %1500 = vmatpush1.bf16.msra.mxu1 %v12846_v14 }
  0x74   :  { %1553 = vmatprep.subr.bf16.mxu0 %v12851_v16  ;;  %1607 = vmatprep.subr.bf16.mxu1 %v12854_v18 }
  0x79   :  { %12092 = vmatmul.mubr.msk.bf16.vlgmr.msra.gmra.mrb[48].mxu0 %vm145_vm0, %v51_v13  ;;  %12095 = vmatmul.mubr.msk.bf16.vlgmr.msra.gmra.mrb[48].mxu1 %vm145_vm0, %v52_v15 }
  0x7a   :  { %1585 = vmatprep.mubr.bf16.mxu0 %v12930_v0  ;;  %1639 = vmatprep.mubr.bf16.mxu1 %v12930_v0 }
  0x7b   :  { %1554 = vmatpush1.bf16.msra.mxu0 %v12849_v17  ;;  %1608 = vmatpush1.bf16.msra.mxu1 %v12852_v20 }
  0x7c   :  { %1661 = vmatprep.subr.bf16.mxu0 %v12857_v22  ;;  %1715 = vmatprep.subr.bf16.mxu1 %v12860_v24  ;;  %v12878_v22 = vld [vmem:[#allocation3 + $0x234] ss:$8 sps:$4 sm:$0xff]  }
  0x81   :  { %12098 = vmatmul.mubr.msk.bf16.vlgmr.msra.gmra.mrb[52].mxu0 %vm145_vm0, %v53_v19  ;;  %12101 = vmatmul.mubr.msk.bf16.vlgmr.msra.gmra.mrb[52].mxu1 %vm145_vm0, %v54_v21 }
  0x82   :  { %1693 = vmatprep.mubr.bf16.mxu0 %v12930_v0  ;;  %1747 = vmatprep.mubr.bf16.mxu1 %v12930_v0 }
  0x83   :  { %1662 = vmatpush1.bf16.msra.mxu0 %v12855_v23  ;;  %1716 = vmatpush1.bf16.msra.mxu1 %v12858_v26 }
  0x84   :  { %1769 = vmatprep.subr.bf16.mxu0 %v12863_v28  ;;  %1823 = vmatprep.subr.bf16.mxu1 %v12866_v30  ;;  %v61_v28 = vld [vmem:[%s17457_s0 + $0x22] sm:$0x1]  ;;  %s12934_s0 = smov 80  }
  0x89   :  { %12104 = vmatmul.mubr.msk.bf16.vlgmr.msra.gmra.mrb[56].mxu0 %vm145_vm0, %v55_v25  ;;  %12107 = vmatmul.mubr.msk.bf16.vlgmr.msra.gmra.mrb[56].mxu1 %vm145_vm0, %v56_v27 }
  0x8a   :  { %1801 = vmatprep.mubr.bf16.mxu0 %v12930_v0  ;;  %1855 = vmatprep.mubr.bf16.mxu1 %v12930_v0 }
  0x8b   :  { %1770 = vmatpush1.bf16.msra.mxu0 %v12861_v29  ;;  %1824 = vmatpush1.bf16.msra.mxu1 %v12864_v32  ;;  %v12876_v29 = vld [vmem:[#allocation3 + $0x230] ss:$8 sps:$4 sm:$0xff]  }
  0x8c   :  { %1877 = vmatprep.subr.bf16.mxu0 %v12869_v37  ;;  %1931 = vmatprep.subr.bf16.mxu1 %v12872_v41 }
  0x91   :  { %12110 = vmatmul.mubr.msk.bf16.vlgmr.msra.gmra.mrb[60].mxu0 %vm145_vm0, %v57_v31  ;;  %12113 = vmatmul.mubr.msk.bf16.vlgmr.msra.gmra.mrb[60].mxu1 %vm145_vm0, %v58_v33 }
  0x92   :  { %1909 = vmatprep.mubr.bf16.mxu0 %v12930_v0  ;;  %1963 = vmatprep.mubr.bf16.mxu1 %v12930_v0 }
  0x93   :  { %1878 = vmatpush1.bf16.msra.mxu0 %v12867_v38  ;;  %1932 = vmatpush1.bf16.msra.mxu1 %v12870_v43 }
  0x94   :  { %1985 = vmatprep.subr.bf16.mxu0 %v12875_v9  ;;  %2039 = vmatprep.subr.bf16.mxu1 %v12878_v22 }
  0x99   :  { %12116 = vmatmul.mubr.msk.bf16.vlgmr.msra.gmra.mrb[64].mxu0 %vm145_vm0, %v59_v42  ;;  %12119 = vmatmul.mubr.msk.bf16.vlgmr.msra.gmra.mrb[64].mxu1 %vm145_vm0, %v60_v45 }
  0x9a   :  { %2017 = vmatprep.mubr.bf16.mxu0 %v12930_v0  ;;  %2071 = vmatprep.mubr.bf16.mxu1 %v12930_v0 }
  0x9b   :  { %1986 = vmatpush1.bf16.msra.mxu0 %v12873_v10  ;;  %2040 = vmatpush1.bf16.msra.mxu1 %v12876_v29 }
  0xa1   :  { %12122 = vmatmul.mubr.msk.bf16.vlgmr.msra.gmra.mrb[68].mxu0 %vm145_vm0, %v61_v28  ;;  %12125 = vmatmul.mubr.msk.bf16.vlgmr.msra.gmra.mrb[68].mxu1 %vm145_vm0, %v62_v40 }
  0xec   :  { %v183_v46 = vpop.f32.mrb[0].mxu0  ;;  %v237_v47 = vpop.f32.mrb[0].mxu1 }
  0xed   :  { %v2122_v48 = vrot.slane %v183_v46, %v13135_v44  ;;  %v2144_v50 = vrot.slane %v237_v47, %v13135_v44  ;;  %v185_v51 = vpop.f32.mrb[1].mxu0  ;;  %v239_v52 = vpop.f32.mrb[1].mxu1 }
  0xee   :  { %v5399_v53 = vrot.slane %v185_v51, %v13135_v44  ;;  %v5421_v54 = vrot.slane %v239_v52, %v13135_v44  ;;  %v187_v55 = vpop.f32.mrb[2].mxu0  ;;  %v241_v56 = vpop.f32.mrb[2].mxu1 }
  0xef   :  { %v2123_v57 = vcombine.high %v2122_v48, %v2122_v48  ;;  %v2130_v58 = vrot.slane %v2122_v48, %v13135_v44  ;;  %v2145_v59 = vcombine.high %v2144_v50, %v2144_v50  ;;  %v2152_v60 = vrot.slane %v2144_v50, %v13135_v44  ;;  %v188_v61 = vpop.f32.mrb[3].mxu0  ;;  %v242_v62 = vpop.f32.mrb[3].mxu1 }
  0xf0   :  { %v5400_v63 = vcombine.high %v5399_v53, %v5399_v53  ;;  %v13152_v1 = vrot.slane %v5399_v53, %v13135_v44  ;;  %v5422_v0 = vcombine.high %v5421_v54, %v5421_v54  ;;  %v13155_v2 = vrot.slane %v5421_v54, %v13135_v44 }
  0xf1   :  { %v2137_v3 = vrot.slane %v2123_v57, %v13135_v44  ;;  %2981 = vst.msk [vmem:[#allocation2] sm:$0x1] %vm2980_vm1, %v2130_v58  ;;  %v13160_v4 = vrot.slane %v2130_v58, %v13143_v49  ;;  %v2159_v5 = vrot.slane %v2145_v59, %v13135_v44  ;;  %2983 = vst.msk [vmem:[#allocation2 + $0x20] sm:$0x1] %vm2980_vm1, %v2152_v60 }
  0xf2   :  { %17609 = vst [vmem:[#allocation9_spill] sm:$0xff] %v13152_v1  ;;  %17610 = vst [vmem:[#allocation10_spill] sm:$0xff] %v13155_v2  ;;  %v13165_v6 = vrot.slane %v2152_v60, %v13143_v49  ;;  %v13168_v7 = vrot.slane %v5400_v63, %v13135_v44  ;;  %v13173_v8 = vrot.slane %v5422_v0, %v13135_v44 }
  0xf3   :  { %6257 = vst.msk [vmem:[#allocation2 + $0x8] sm:$0x1] %vm2980_vm1, %v13152_v1  ;;  %6259 = vst.msk [vmem:[#allocation2 + $0x28] sm:$0x1] %vm2980_vm1, %v13155_v2  ;;  %3341 = vrot.lane.b32.xlu0 %v13160_v4, %s12932_s4  ;;  %v13188_v13 = vrot.slane %v2159_v5, %v13143_v49  ;;  %v13212_v34 = vrot.slane %v2137_v3, %v13143_v49 }
  0xf4   :  { %17611 = vst [vmem:[#allocation11_spill] sm:$0xff] %v13168_v7  ;;  %17612 = vst [vmem:[#allocation12_spill] sm:$0xff] %v13173_v8  ;;  %3345 = vrot.lane.b32.xlu1 %v13165_v6, %s12932_s4  ;;  %v291_v11 = vpop.f32.mrb[4].mxu0  ;;  %v345_v12 = vpop.f32.mrb[4].mxu1 }
  0xf5   :  { %2982 = vst.msk [vmem:[#allocation2 + $0x10] sm:$0x1] %vm2980_vm1, %v2137_v3  ;;  %2984 = vst.msk [vmem:[#allocation2 + $0x30] sm:$0x1] %vm2980_vm1, %v2159_v5  ;;  %v2166_v14 = vrot.slane %v291_v11, %v13135_v44  ;;  %v293_v15 = vpop.f32.mrb[5].mxu0  ;;  %v2188_v16 = vrot.slane %v345_v12, %v13135_v44  ;;  %v347_v17 = vpop.f32.mrb[5].mxu1 }
  0xf6   :  { %6258 = vst.msk [vmem:[#allocation2 + $0x18] sm:$0x1] %vm2980_vm1, %v13168_v7  ;;  %6260 = vst.msk [vmem:[#allocation2 + $0x38] sm:$0x1] %vm2980_vm1, %v13173_v8  ;;  %v5443_v18 = vrot.slane %v293_v15, %v13135_v44  ;;  %v295_v19 = vpop.f32.mrb[6].mxu0  ;;  %v5465_v20 = vrot.slane %v347_v17, %v13135_v44  ;;  %v349_v21 = vpop.f32.mrb[6].mxu1 }
  0xf7   :  { %3629 = vrot.lane.b32.xlu0 %v13160_v4, %s12933_s5  ;;  %v2167_v23 = vcombine.high %v2166_v14, %v2166_v14  ;;  %v13199_v24 = vrot.slane %v2166_v14, %v13135_v44  ;;  %v296_v25 = vpop.f32.mrb[7].mxu0  ;;  %v2189_v26 = vcombine.high %v2188_v16, %v2188_v16  ;;  %v350_v27 = vpop.f32.mrb[7].mxu1  ;;  %v13208_v32 = vrot.slane %v2188_v16, %v13135_v44 }
  0xf8   :  { %3347 = vrot.lane.b32.xlu1 %v13188_v13, %s12932_s4  ;;  %v5444_v30 = vcombine.high %v5443_v18, %v5443_v18  ;;  %v13205_v31 = vrot.slane %v5443_v18, %v13135_v44  ;;  %v5466_v33 = vcombine.high %v5465_v20, %v5465_v20  ;;  %v13221_v37 = vrot.slane %v5465_v20, %v13135_v44 }
  0xf9   :  { %v2181_v35 = vrot.slane %v2167_v23, %v13135_v44  ;;  %2985 = vst.msk [vmem:[#allocation2 + $0x40] sm:$0x1] %vm2980_vm1, %v13199_v24  ;;  %v13218_v36 = vrot.slane %v2189_v26, %v13135_v44  ;;  %2987 = vst.msk [vmem:[#allocation2 + $0x60] sm:$0x1] %vm2980_vm1, %v13208_v32 }
  0xfa   :  { %17613 = vst [vmem:[#allocation13_spill] sm:$0xff] %v13205_v31  ;;  %17614 = vst [vmem:[#allocation14_spill] sm:$0xff] %v13221_v37  ;;  %v13224_v38 = vrot.slane %v5444_v30, %v13135_v44  ;;  %v13231_v39 = vrot.slane %v5466_v33, %v13135_v44  ;;  %v13324_v33 = vrot.slane %v13199_v24, %v13143_v49 }
  0xfb   :  { %6261 = vst.msk [vmem:[#allocation2 + $0x48] sm:$0x1] %vm2980_vm1, %v13205_v31  ;;  %3633 = vrot.lane.b32.xlu0 %v13165_v6, %s12933_s5  ;;  %2986 = vst.msk [vmem:[#allocation2 + $0x50] sm:$0x1] %vm2980_vm1, %v2181_v35  ;;  %v13305_v16 = vrot.slane %v2181_v35, %v13143_v49 }
  0xfc   :  { %17615 = vst [vmem:[#allocation15_spill] sm:$0xff] %v13224_v38  ;;  %17616 = vst [vmem:[#allocation16_spill] sm:$0xff] %v13231_v39  ;;  %3631 = vrot.lane.b32.xlu1 %v13212_v34, %s12933_s5  ;;  %v399_v41 = vpop.f32.mrb[8].mxu0  ;;  %v453_v42 = vpop.f32.mrb[8].mxu1 }
  0xfd   :  { %2988 = vst.msk [vmem:[#allocation2 + $0x70] sm:$0x1] %vm2980_vm1, %v13218_v36  ;;  %6263 = vst.msk [vmem:[#allocation2 + $0x68] sm:$0x1] %vm2980_vm1, %v13221_v37  ;;  %v2210_v43 = vrot.slane %v399_v41, %v13135_v44  ;;  %v401_v45 = vpop.f32.mrb[9].mxu0  ;;  %v2232_v46 = vrot.slane %v453_v42, %v13135_v44  ;;  %v455_v47 = vpop.f32.mrb[9].mxu1 }
  0xfe   :  { %6262 = vst.msk [vmem:[#allocation2 + $0x58] sm:$0x1] %vm2980_vm1, %v13224_v38  ;;  %6264 = vst.msk [vmem:[#allocation2 + $0x78] sm:$0x1] %vm2980_vm1, %v13231_v39  ;;  %v5487_v48 = vrot.slane %v401_v45, %v13135_v44  ;;  %v403_v50 = vpop.f32.mrb[10].mxu0  ;;  %v5509_v51 = vrot.slane %v455_v47, %v13135_v44  ;;  %v457_v52 = vpop.f32.mrb[10].mxu1 }
  0xff   :  { %3917 = vrot.lane.b32.xlu0 %v13160_v4, %s12934_s0  ;;  %v2211_v53 = vcombine.high %v2210_v43, %v2210_v43  ;;  %v13259_v54 = vrot.slane %v2210_v43, %v13135_v44  ;;  %v404_v55 = vpop.f32.mrb[11].mxu0  ;;  %v2233_v56 = vcombine.high %v2232_v46, %v2232_v46  ;;  %v458_v57 = vpop.f32.mrb[11].mxu1  ;;  %v13265_v60 = vrot.slane %v2232_v46, %v13135_v44 }
 0x100   :  { %3635 = vrot.lane.b32.xlu1 %v13188_v13, %s12933_s5  ;;  %v5488_v58 = vcombine.high %v5487_v48, %v5487_v48  ;;  %v13262_v59 = vrot.slane %v5487_v48, %v13135_v44  ;;  %v5510_v61 = vcombine.high %v5509_v51, %v5509_v51  ;;  %v13276_v0 = vrot.slane %v5509_v51, %v13135_v44 }
 0x101   :  { %v13268_v62 = vrot.slane %v2211_v53, %v13135_v44  ;;  %2989 = vst.msk [vmem:[#allocation2 + $0x80] sm:$0x1] %vm2980_vm1, %v13259_v54  ;;  %v13273_v63 = vrot.slane %v2233_v56, %v13135_v44  ;;  %2991 = vst.msk [vmem:[#allocation2 + $0xa0] sm:$0x1] %vm2980_vm1, %v13265_v60  ;;  %v13349_v43 = vrot.slane %v13218_v36, %v13143_v49 }
 0x102   :  { %17617 = vst [vmem:[#allocation17_spill] sm:$0xff] %v13262_v59  ;;  %17618 = vst [vmem:[#allocation18_spill] sm:$0xff] %v13276_v0  ;;  %v13279_v3 = vrot.slane %v5488_v58, %v13135_v44  ;;  %v13286_v5 = vrot.slane %v5510_v61, %v13135_v44  ;;  %v13367_v46 = vrot.slane %v13208_v32, %v13143_v49 }
 0x103   :  { %6265 = vst.msk [vmem:[#allocation2 + $0x88] sm:$0x1] %vm2980_vm1, %v13262_v59  ;;  %3921 = vrot.lane.b32.xlu0 %v13165_v6, %s12934_s0  ;;  %2990 = vst.msk [vmem:[#allocation2 + $0x90] sm:$0x1] %vm2980_vm1, %v13268_v62 }
 0x104   :  { %17619 = vst [vmem:[#allocation19_spill] sm:$0xff] %v13279_v3  ;;  %17620 = vst [vmem:[#allocation20_spill] sm:$0xff] %v13286_v5  ;;  %3919 = vrot.lane.b32.xlu1 %v13212_v34, %s12934_s0  ;;  %v507_v9 = vpop.f32.mrb[12].mxu0  ;;  %v561_v10 = vpop.f32.mrb[12].mxu1 }
 0x105   :  { %2992 = vst.msk [vmem:[#allocation2 + $0xb0] sm:$0x1] %vm2980_vm1, %v13273_v63  ;;  %6267 = vst.msk [vmem:[#allocation2 + $0xa8] sm:$0x1] %vm2980_vm1, %v13276_v0  ;;  %v2254_v11 = vrot.slane %v507_v9, %v13135_v44  ;;  %v509_v12 = vpop.f32.mrb[13].mxu0  ;;  %v2276_v14 = vrot.slane %v561_v10, %v13135_v44  ;;  %v563_v15 = vpop.f32.mrb[13].mxu1 }
 0x106   :  { %6266 = vst.msk [vmem:[#allocation2 + $0x98] sm:$0x1] %vm2980_vm1, %v13279_v3  ;;  %6268 = vst.msk [vmem:[#allocation2 + $0xb8] sm:$0x1] %vm2980_vm1, %v13286_v5  ;;  %v5531_v17 = vrot.slane %v509_v12, %v13135_v44  ;;  %v511_v18 = vpop.f32.mrb[14].mxu0  ;;  %v5553_v19 = vrot.slane %v563_v15, %v13135_v44  ;;  %v565_v20 = vpop.f32.mrb[14].mxu1 }
 0x107   :  { %3343 = vrot.lane.b32.xlu0 %v13212_v34, %s12932_s4  ;;  %v2255_v21 = vcombine.high %v2254_v11, %v2254_v11  ;;  %v13314_v22 = vrot.slane %v2254_v11, %v13135_v44  ;;  %v512_v23 = vpop.f32.mrb[15].mxu0  ;;  %v2277_v25 = vcombine.high %v2276_v14, %v2276_v14  ;;  %v566_v26 = vpop.f32.mrb[15].mxu1  ;;  %v13320_v29 = vrot.slane %v2276_v14, %v13135_v44 }
 0x108   :  { %3923 = vrot.lane.b32.xlu1 %v13188_v13, %s12934_s0  ;;  %v5532_v27 = vcombine.high %v5531_v17, %v5531_v17  ;;  %v13317_v28 = vrot.slane %v5531_v17, %v13135_v44  ;;  %v5554_v30 = vcombine.high %v5553_v19, %v5553_v19  ;;  %v13335_v41 = vrot.slane %v5553_v19, %v13135_v44 }
 0x109   :  { %v13327_v35 = vrot.slane %v2255_v21, %v13135_v44  ;;  %2993 = vst.msk [vmem:[#allocation2 + $0xc0] sm:$0x1] %vm2980_vm1, %v13314_v22  ;;  %v13332_v40 = vrot.slane %v2277_v25, %v13135_v44  ;;  %2995 = vst.msk [vmem:[#allocation2 + $0xe0] sm:$0x1] %vm2980_vm1, %v13320_v29 }
 0x10a   :  { %17621 = vst [vmem:[#allocation21_spill] sm:$0xff] %v13317_v28  ;;  %17622 = vst [vmem:[#allocation22_spill] sm:$0xff] %v13335_v41  ;;  %v13338_v42 = vrot.slane %v5532_v27, %v13135_v44  ;;  %v13345_v24 = vrot.slane %v5554_v30, %v13135_v44 }
 0x10b   :  { %6269 = vst.msk [vmem:[#allocation2 + $0xc8] sm:$0x1] %vm2980_vm1, %v13317_v28  ;;  %3349 = vrot.lane.b32.xlu0 %v13324_v33, %s12932_s4  ;;  %2994 = vst.msk [vmem:[#allocation2 + $0xd0] sm:$0x1] %vm2980_vm1, %v13327_v35 }
 0x10c   :  { %17623 = vst [vmem:[#allocation23_spill] sm:$0xff] %v13338_v42  ;;  %17624 = vst [vmem:[#allocation24_spill] sm:$0xff] %v13345_v24  ;;  %3351 = vrot.lane.b32.xlu1 %v13305_v16, %s12932_s4  ;;  %v615_v36 = vpop.f32.mrb[16].mxu0  ;;  %v669_v45 = vpop.f32.mrb[16].mxu1 }
 0x10d   :  { %2996 = vst.msk [vmem:[#allocation2 + $0xf0] sm:$0x1] %vm2980_vm1, %v13332_v40  ;;  %6271 = vst.msk [vmem:[#allocation2 + $0xe8] sm:$0x1] %vm2980_vm1, %v13335_v41  ;;  %v2298_v47 = vrot.slane %v615_v36, %v13135_v44  ;;  %v617_v48 = vpop.f32.mrb[17].mxu0  ;;  %v2320_v50 = vrot.slane %v669_v45, %v13135_v44  ;;  %v671_v51 = vpop.f32.mrb[17].mxu1 }
 0x10e   :  { %6270 = vst.msk [vmem:[#allocation2 + $0xd8] sm:$0x1] %vm2980_vm1, %v13338_v42  ;;  %6272 = vst.msk [vmem:[#allocation2 + $0xf8] sm:$0x1] %vm2980_vm1, %v13345_v24  ;;  %v5575_v52 = vrot.slane %v617_v48, %v13135_v44  ;;  %v619_v53 = vpop.f32.mrb[18].mxu0  ;;  %v5597_v55 = vrot.slane %v671_v51, %v13135_v44  ;;  %v673_v56 = vpop.f32.mrb[18].mxu1 }
 0x10f   :  { %3353 = vrot.lane.b32.xlu0 %v13367_v46, %s12932_s4  ;;  %v2299_v32 = vcombine.high %v2298_v47, %v2298_v47  ;;  %v13378_v57 = vrot.slane %v2298_v47, %v13135_v44  ;;  %v620_v58 = vpop.f32.mrb[19].mxu0  ;;  %v2321_v61 = vcombine.high %v2320_v50, %v2320_v50  ;;  %v674_v9 = vpop.f32.mrb[19].mxu1  ;;  %v13384_v12 = vrot.slane %v2320_v50, %v13135_v44 }
 0x110   :  { %3355 = vrot.lane.b32.xlu1 %v13349_v43, %s12932_s4  ;;  %v5576_v10 = vcombine.high %v5575_v52, %v5575_v52  ;;  %v13381_v11 = vrot.slane %v5575_v52, %v13135_v44  ;;  %v5598_v14 = vcombine.high %v5597_v55, %v5597_v55  ;;  %v13395_v18 = vrot.slane %v5597_v55, %v13135_v44 }
 0x111   :  { %v13387_v15 = vrot.slane %v2299_v32, %v13135_v44  ;;  %2997 = vst.msk [vmem:[#allocation2 + $0x100] sm:$0x1] %vm2980_vm1, %v13378_v57  ;;  %v13392_v17 = vrot.slane %v2321_v61, %v13135_v44  ;;  %2999 = vst.msk [vmem:[#allocation2 + $0x120] sm:$0x1] %vm2980_vm1, %v13384_v12 }
 0x112   :  { %17625 = vst [vmem:[#allocation25_spill] sm:$0xff] %v13381_v11  ;;  %17626 = vst [vmem:[#allocation26_spill] sm:$0xff] %v13395_v18  ;;  %v13398_v19 = vrot.slane %v5576_v10, %v13135_v44  ;;  %v13405_v20 = vrot.slane %v5598_v14, %v13135_v44 }
 0x113   :  { %6273 = vst.msk [vmem:[#allocation2 + $0x108] sm:$0x1] %vm2980_vm1, %v13381_v11  ;;  %3637 = vrot.lane.b32.xlu0 %v13324_v33, %s12933_s5  ;;  %2998 = vst.msk [vmem:[#allocation2 + $0x110] sm:$0x1] %vm2980_vm1, %v13387_v15 }
 0x114   :  { %17627 = vst [vmem:[#allocation27_spill] sm:$0xff] %v13398_v19  ;;  %17628 = vst [vmem:[#allocation28_spill] sm:$0xff] %v13405_v20  ;;  %3639 = vrot.lane.b32.xlu1 %v13305_v16, %s12933_s5  ;;  %v723_v21 = vpop.f32.mrb[20].mxu0  ;;  %v777_v23 = vpop.f32.mrb[20].mxu1 }
 0x115   :  { %3000 = vst.msk [vmem:[#allocation2 + $0x130] sm:$0x1] %vm2980_vm1, %v13392_v17  ;;  %6275 = vst.msk [vmem:[#allocation2 + $0x128] sm:$0x1] %vm2980_vm1, %v13395_v18  ;;  %v2342_v25 = vrot.slane %v723_v21, %v13135_v44  ;;  %v725_v26 = vpop.f32.mrb[21].mxu0  ;;  %v2364_v27 = vrot.slane %v777_v23, %v13135_v44  ;;  %v779_v30 = vpop.f32.mrb[21].mxu1 }
 0x116   :  { %6274 = vst.msk [vmem:[#allocation2 + $0x118] sm:$0x1] %vm2980_vm1, %v13398_v19  ;;  %6276 = vst.msk [vmem:[#allocation2 + $0x138] sm:$0x1] %vm2980_vm1, %v13405_v20  ;;  %v5619_v36 = vrot.slane %v725_v26, %v13135_v44  ;;  %v727_v45 = vpop.f32.mrb[22].mxu0  ;;  %v5641_v47 = vrot.slane %v779_v30, %v13135_v44  ;;  %v781_v48 = vpop.f32.mrb[22].mxu1 }
 0x117   :  { %3641 = vrot.lane.b32.xlu0 %v13367_v46, %s12933_s5  ;;  %v2343_v50 = vcombine.high %v2342_v25, %v2342_v25  ;;  %v13430_v51 = vrot.slane %v2342_v25, %v13135_v44  ;;  %v728_v52 = vpop.f32.mrb[23].mxu0  ;;  %v2365_v53 = vcombine.high %v2364_v27, %v2364_v27  ;;  %v782_v55 = vpop.f32.mrb[23].mxu1  ;;  %v13436_v58 = vrot.slane %v2364_v27, %v13135_v44 }
 0x118   :  { %3643 = vrot.lane.b32.xlu1 %v13349_v43, %s12933_s5  ;;  %v5620_v56 = vcombine.high %v5619_v36, %v5619_v36  ;;  %v13433_v32 = vrot.slane %v5619_v36, %v13135_v44  ;;  %v5642_v61 = vcombine.high %v5641_v47, %v5641_v47  ;;  %v13447_v14 = vrot.slane %v5641_v47, %v13135_v44 }
 0x119   :  { %v13439_v9 = vrot.slane %v2343_v50, %v13135_v44  ;;  %3001 = vst.msk [vmem:[#allocation2 + $0x140] sm:$0x1] %vm2980_vm1, %v13430_v51  ;;  %v13444_v10 = vrot.slane %v2365_v53, %v13135_v44  ;;  %3003 = vst.msk [vmem:[#allocation2 + $0x160] sm:$0x1] %vm2980_vm1, %v13436_v58  ;;  %v13477_v47 = vrot.slane %v13268_v62, %v13143_v49 }
 0x11a   :  { %17629 = vst [vmem:[#allocation29_spill] sm:$0xff] %v13433_v32  ;;  %17630 = vst [vmem:[#allocation30_spill] sm:$0xff] %v13447_v14  ;;  %v13450_v21 = vrot.slane %v5620_v56, %v13135_v44  ;;  %v13457_v23 = vrot.slane %v5642_v61, %v13135_v44 }
 0x11b   :  { %6277 = vst.msk [vmem:[#allocation2 + $0x148] sm:$0x1] %vm2980_vm1, %v13433_v32  ;;  %3925 = vrot.lane.b32.xlu0 %v13324_v33, %s12934_s0  ;;  %3002 = vst.msk [vmem:[#allocation2 + $0x150] sm:$0x1] %vm2980_vm1, %v13439_v9 }
 0x11c   :  { %17631 = vst [vmem:[#allocation31_spill] sm:$0xff] %v13450_v21  ;;  %17632 = vst [vmem:[#allocation32_spill] sm:$0xff] %v13457_v23  ;;  %3927 = vrot.lane.b32.xlu1 %v13305_v16, %s12934_s0  ;;  %v831_v25 = vpop.f32.mrb[24].mxu0  ;;  %v885_v26 = vpop.f32.mrb[24].mxu1 }
 0x11d   :  { %3004 = vst.msk [vmem:[#allocation2 + $0x170] sm:$0x1] %vm2980_vm1, %v13444_v10  ;;  %6279 = vst.msk [vmem:[#allocation2 + $0x168] sm:$0x1] %vm2980_vm1, %v13447_v14  ;;  %v2386_v27 = vrot.slane %v831_v25, %v13135_v44  ;;  %v833_v30 = vpop.f32.mrb[25].mxu0  ;;  %v2408_v36 = vrot.slane %v885_v26, %v13135_v44  ;;  %v887_v45 = vpop.f32.mrb[25].mxu1 }
 0x11e   :  { %6278 = vst.msk [vmem:[#allocation2 + $0x158] sm:$0x1] %vm2980_vm1, %v13450_v21  ;;  %6280 = vst.msk [vmem:[#allocation2 + $0x178] sm:$0x1] %vm2980_vm1, %v13457_v23  ;;  %v5663_v48 = vrot.slane %v833_v30, %v13135_v44  ;;  %v835_v50 = vpop.f32.mrb[26].mxu0  ;;  %v5685_v52 = vrot.slane %v887_v45, %v13135_v44  ;;  %v889_v53 = vpop.f32.mrb[26].mxu1 }
 0x11f   :  { %3929 = vrot.lane.b32.xlu0 %v13367_v46, %s12934_s0  ;;  %v2387_v55 = vcombine.high %v2386_v27, %v2386_v27  ;;  %v13486_v56 = vrot.slane %v2386_v27, %v13135_v44  ;;  %v836_v61 = vpop.f32.mrb[27].mxu0  ;;  %v2409_v25 = vcombine.high %v2408_v36, %v2408_v36  ;;  %v890_v62 = vpop.f32.mrb[27].mxu1  ;;  %v13492_v45 = vrot.slane %v2408_v36, %v13135_v44 }
 0x120   :  { %3931 = vrot.lane.b32.xlu1 %v13349_v43, %s12934_s0  ;;  %v5664_v26 = vcombine.high %v5663_v48, %v5663_v48  ;;  %v13489_v30 = vrot.slane %v5663_v48, %v13135_v44  ;;  %v5686_v50 = vcombine.high %v5685_v52, %v5685_v52  ;;  %v13496_v53 = vrot.slane %v13259_v54, %v13143_v49 }
 0x121   :  { %v13499_v32 = vrot.slane %v2387_v55, %v13135_v44  ;;  %3005 = vst.msk [vmem:[#allocation2 + $0x180] sm:$0x1] %vm2980_vm1, %v13486_v56  ;;  %v13504_v27 = vrot.slane %v2409_v25, %v13135_v44  ;;  %v13507_v48 = vrot.slane %v5685_v52, %v13135_v44  ;;  %3007 = vst.msk [vmem:[#allocation2 + $0x1a0] sm:$0x1] %vm2980_vm1, %v13492_v45 }
 0x122   :  { %17633 = vst [vmem:[#allocation33_spill] sm:$0xff] %v13489_v30  ;;  %v13510_v36 = vrot.slane %v5664_v26, %v13135_v44  ;;  %6281 = vst.msk [vmem:[#allocation2 + $0x188] sm:$0x1] %vm2980_vm1, %v13489_v30  ;;  %v13517_v54 = vrot.slane %v5686_v50, %v13135_v44  ;;  %v13521_v55 = vrot.slane %v13273_v63, %v13143_v49 }
 0x123   :  { %17634 = vst [vmem:[#allocation34_spill] sm:$0xff] %v13507_v48  ;;  %3357 = vrot.lane.b32.xlu0 %v13496_v53, %s12932_s4  ;;  %3006 = vst.msk [vmem:[#allocation2 + $0x190] sm:$0x1] %vm2980_vm1, %v13499_v32  ;;  %v13539_v61 = vrot.slane %v13265_v60, %v13143_v49  ;;  %v13918_v39 = vrot.slane %v13499_v32, %v13143_v49  ;;  %v13935_v1 = vrot.slane %v13486_v56, %v13143_v49 }
 0x124   :  { %17635 = vst [vmem:[#allocation35_spill] sm:$0xff] %v13510_v36  ;;  %17636 = vst [vmem:[#allocation36_spill] sm:$0xff] %v13517_v54  ;;  %3359 = vrot.lane.b32.xlu1 %v13477_v47, %s12932_s4  ;;  %v939_v63 = vpop.f32.mrb[28].mxu0  ;;  %v993_v52 = vpop.f32.mrb[28].mxu1 }
 0x125   :  { %3008 = vst.msk [vmem:[#allocation2 + $0x1b0] sm:$0x1] %vm2980_vm1, %v13504_v27  ;;  %6283 = vst.msk [vmem:[#allocation2 + $0x1a8] sm:$0x1] %vm2980_vm1, %v13507_v48  ;;  %v2430_v25 = vrot.slane %v939_v63, %v13135_v44  ;;  %v941_v62 = vpop.f32.mrb[29].mxu0  ;;  %v2452_v26 = vrot.slane %v993_v52, %v13135_v44  ;;  %v995_v50 = vpop.f32.mrb[29].mxu1 }
 0x126   :  { %6282 = vst.msk [vmem:[#allocation2 + $0x198] sm:$0x1] %vm2980_vm1, %v13510_v36  ;;  %6284 = vst.msk [vmem:[#allocation2 + $0x1b8] sm:$0x1] %vm2980_vm1, %v13517_v54  ;;  %v5707_v30 = vrot.slane %v941_v62, %v13135_v44  ;;  %v943_v48 = vpop.f32.mrb[30].mxu0  ;;  %v5729_v36 = vrot.slane %v995_v50, %v13135_v44  ;;  %v997_v21 = vpop.f32.mrb[30].mxu1 }
 0x127   :  { %3361 = vrot.lane.b32.xlu0 %v13539_v61, %s12932_s4  ;;  %v2431_v60 = vcombine.high %v2430_v25, %v2430_v25  ;;  %v13550_v54 = vrot.slane %v2430_v25, %v13135_v44  ;;  %v944_v63 = vpop.f32.mrb[31].mxu0  ;;  %v2453_v14 = vcombine.high %v2452_v26, %v2452_v26  ;;  %v998_v52 = vpop.f32.mrb[31].mxu1  ;;  %v13556_v48 = vrot.slane %v2452_v26, %v13135_v44 }
 0x128   :  { %3363 = vrot.lane.b32.xlu1 %v13521_v55, %s12932_s4  ;;  %v5708_v23 = vcombine.high %v5707_v30, %v5707_v30  ;;  %v13553_v62 = vrot.slane %v5707_v30, %v13135_v44  ;;  %v5730_v21 = vcombine.high %v5729_v36, %v5729_v36  ;;  %v13567_v63 = vrot.slane %v5729_v36, %v13135_v44 }
 0x129   :  { %v13559_v50 = vrot.slane %v2431_v60, %v13135_v44  ;;  %3009 = vst.msk [vmem:[#allocation2 + $0x1c0] sm:$0x1] %vm2980_vm1, %v13550_v54  ;;  %v13564_v25 = vrot.slane %v2453_v14, %v13135_v44  ;;  %3011 = vst.msk [vmem:[#allocation2 + $0x1e0] sm:$0x1] %vm2980_vm1, %v13556_v48 }
 0x12a   :  { %17637 = vst [vmem:[#allocation37_spill] sm:$0xff] %v13553_v62  ;;  %17638 = vst [vmem:[#allocation38_spill] sm:$0xff] %v13567_v63  ;;  %v13570_v52 = vrot.slane %v5708_v23, %v13135_v44  ;;  %v13577_v30 = vrot.slane %v5730_v21, %v13135_v44 }
 0x12b   :  { %6285 = vst.msk [vmem:[#allocation2 + $0x1c8] sm:$0x1] %vm2980_vm1, %v13553_v62  ;;  %3645 = vrot.lane.b32.xlu0 %v13496_v53, %s12933_s5  ;;  %3010 = vst.msk [vmem:[#allocation2 + $0x1d0] sm:$0x1] %vm2980_vm1, %v13559_v50 }
 0x12c   :  { %17639 = vst [vmem:[#allocation39_spill] sm:$0xff] %v13570_v52  ;;  %17640 = vst [vmem:[#allocation40_spill] sm:$0xff] %v13577_v30  ;;  %3647 = vrot.lane.b32.xlu1 %v13477_v47, %s12933_s5  ;;  %v1047_v14 = vpop.f32.mrb[32].mxu0  ;;  %v1101_v23 = vpop.f32.mrb[32].mxu1 }
 0x12d   :  { %3012 = vst.msk [vmem:[#allocation2 + $0x1f0] sm:$0x1] %vm2980_vm1, %v13564_v25  ;;  %6287 = vst.msk [vmem:[#allocation2 + $0x1e8] sm:$0x1] %vm2980_vm1, %v13567_v63  ;;  %v2474_v36 = vrot.slane %v1047_v14, %v13135_v44  ;;  %v1049_v26 = vpop.f32.mrb[33].mxu0  ;;  %v2496_v60 = vrot.slane %v1101_v23, %v13135_v44  ;;  %v1103_v21 = vpop.f32.mrb[33].mxu1 }
 0x12e   :  { %6286 = vst.msk [vmem:[#allocation2 + $0x1d8] sm:$0x1] %vm2980_vm1, %v13570_v52  ;;  %6288 = vst.msk [vmem:[#allocation2 + $0x1f8] sm:$0x1] %vm2980_vm1, %v13577_v30  ;;  %v5751_v62 = vrot.slane %v1049_v26, %v13135_v44  ;;  %v1051_v11 = vpop.f32.mrb[34].mxu0  ;;  %v5773_v19 = vrot.slane %v1103_v21, %v13135_v44  ;;  %v1105_v63 = vpop.f32.mrb[34].mxu1 }
 0x12f   :  { %3649 = vrot.lane.b32.xlu0 %v13539_v61, %s12933_s5  ;;  %v2475_v52 = vcombine.high %v2474_v36, %v2474_v36  ;;  %v13602_v30 = vrot.slane %v2474_v36, %v13135_v44  ;;  %v1052_v14 = vpop.f32.mrb[35].mxu0  ;;  %v2497_v18 = vcombine.high %v2496_v60, %v2496_v60  ;;  %v1106_v23 = vpop.f32.mrb[35].mxu1  ;;  %v13608_v11 = vrot.slane %v2496_v60, %v13135_v44 }
 0x130   :  { %3651 = vrot.lane.b32.xlu1 %v13521_v55, %s12933_s5  ;;  %v5752_v20 = vcombine.high %v5751_v62, %v5751_v62  ;;  %v13605_v26 = vrot.slane %v5751_v62, %v13135_v44  ;;  %v5774_v63 = vcombine.high %v5773_v19, %v5773_v19  ;;  %v13619_v14 = vrot.slane %v5773_v19, %v13135_v44 }
 0x131   :  { %v13611_v21 = vrot.slane %v2475_v52, %v13135_v44  ;;  %3013 = vst.msk [vmem:[#allocation2 + $0x200] sm:$0x1] %vm2980_vm1, %v13602_v30  ;;  %v13616_v36 = vrot.slane %v2497_v18, %v13135_v44  ;;  %3015 = vst.msk [vmem:[#allocation2 + $0x220] sm:$0x1] %vm2980_vm1, %v13608_v11  ;;  %v13647_v18 = vrot.slane %v13327_v35, %v13143_v49 }
 0x132   :  { %17641 = vst [vmem:[#allocation41_spill] sm:$0xff] %v13605_v26  ;;  %17642 = vst [vmem:[#allocation42_spill] sm:$0xff] %v13619_v14  ;;  %v13622_v23 = vrot.slane %v5752_v20, %v13135_v44  ;;  %v13629_v62 = vrot.slane %v5774_v63, %v13135_v44  ;;  %v13655_v19 = vrot.slane %v13314_v22, %v13143_v49 }
 0x133   :  { %6289 = vst.msk [vmem:[#allocation2 + $0x208] sm:$0x1] %vm2980_vm1, %v13605_v26  ;;  %3933 = vrot.lane.b32.xlu0 %v13496_v53, %s12934_s0  ;;  %3014 = vst.msk [vmem:[#allocation2 + $0x210] sm:$0x1] %vm2980_vm1, %v13611_v21  ;;  %v13659_v20 = vrot.slane %v13332_v40, %v13143_v49  ;;  %v13667_v35 = vrot.slane %v13320_v29, %v13143_v49 }
 0x134   :  { %17643 = vst [vmem:[#allocation43_spill] sm:$0xff] %v13622_v23  ;;  %17644 = vst [vmem:[#allocation44_spill] sm:$0xff] %v13629_v62  ;;  %3935 = vrot.lane.b32.xlu1 %v13477_v47, %s12934_s0  ;;  %v1155_v22 = vpop.f32.mrb[36].mxu0 }
 0x135   :  { %3016 = vst.msk [vmem:[#allocation2 + $0x230] sm:$0x1] %vm2980_vm1, %v13616_v36  ;;  %6291 = vst.msk [vmem:[#allocation2 + $0x228] sm:$0x1] %vm2980_vm1, %v13619_v14  ;;  %v2518_v40 = vrot.slane %v1155_v22, %v13135_v44  ;;  %v1157_v52 = vpop.f32.mrb[37].mxu0  ;;  %v1209_v22 = vpop.f32.mrb[36].mxu1 }
 0x136   :  { %6290 = vst.msk [vmem:[#allocation2 + $0x218] sm:$0x1] %vm2980_vm1, %v13622_v23  ;;  %6292 = vst.msk [vmem:[#allocation2 + $0x238] sm:$0x1] %vm2980_vm1, %v13629_v62  ;;  %v5795_v60 = vrot.slane %v1157_v52, %v13135_v44  ;;  %v1159_v63 = vpop.f32.mrb[38].mxu0 }
 0x137   :  { %3937 = vrot.lane.b32.xlu0 %v13539_v61, %s12934_s0  ;;  %v2519_v26 = vcombine.high %v2518_v40, %v2518_v40  ;;  %v13676_v23 = vrot.slane %v2518_v40, %v13135_v44  ;;  %v1160_v14 = vpop.f32.mrb[39].mxu0  ;;  %v2540_v40 = vrot.slane %v1209_v22, %v13135_v44  ;;  %17664 = vst [vmem:[#allocation64_spill] sm:$0xff] %v13918_v39  ;;  %17666 = vst [vmem:[#allocation66_spill] sm:$0xff] %v13935_v1 }
 0x138   :  { %3939 = vrot.lane.b32.xlu1 %v13521_v55, %s12934_s0  ;;  %v5796_v29 = vcombine.high %v5795_v60, %v5795_v60  ;;  %v13683_v62 = vrot.slane %v5795_v60, %v13135_v44  ;;  %v1211_v14 = vpop.f32.mrb[37].mxu1 }
 0x139   :  { %v13686_v28 = vrot.slane %v2519_v26, %v13135_v44  ;;  %3017 = vst.msk [vmem:[#allocation2 + $0x240] sm:$0x1] %vm2980_vm1, %v13676_v23  ;;  %v5817_v63 = vrot.slane %v1211_v14, %v13135_v44  ;;  %v1213_v60 = vpop.f32.mrb[38].mxu1  ;;  %v2541_v26 = vcombine.high %v2540_v40, %v2540_v40  ;;  %v13700_v42 = vrot.slane %v2540_v40, %v13135_v44 }
 0x13a   :  { %17645 = vst [vmem:[#allocation45_spill] sm:$0xff] %v13683_v62  ;;  %v13692_v52 = vrot.slane %v5796_v29, %v13135_v44  ;;  %6293 = vst.msk [vmem:[#allocation2 + $0x248] sm:$0x1] %vm2980_vm1, %v13683_v62  ;;  %v1214_v41 = vpop.f32.mrb[39].mxu1  ;;  %v13731_v40 = vrot.slane %v13387_v15, %v13143_v49  ;;  %v13743_v60 = vrot.slane %v13392_v17, %v13143_v49 }
 0x13b   :  { %3365 = vrot.lane.b32.xlu0 %v13655_v19, %s12932_s4  ;;  %3018 = vst.msk [vmem:[#allocation2 + $0x250] sm:$0x1] %vm2980_vm1, %v13686_v28  ;;  %v5818_v29 = vcombine.high %v5817_v63, %v5817_v63  ;;  %v13709_v22 = vrot.slane %v5817_v63, %v13135_v44  ;;  %v13712_v14 = vrot.slane %v2541_v26, %v13135_v44  ;;  %3019 = vst.msk [vmem:[#allocation2 + $0x260] sm:$0x1] %vm2980_vm1, %v13700_v42 }
 0x13c   :  { %3367 = vrot.lane.b32.xlu1 %v13647_v18, %s12932_s4  ;;  %17646 = vst [vmem:[#allocation46_spill] sm:$0xff] %v13692_v52  ;;  %6294 = vst.msk [vmem:[#allocation2 + $0x258] sm:$0x1] %vm2980_vm1, %v13692_v52  ;;  %v13739_v63 = vrot.slane %v13378_v57, %v13143_v49  ;;  %v13751_v15 = vrot.slane %v13384_v12, %v13143_v49  ;;  %v1263_v57 = vpop.f32.mrb[40].mxu0 }
 0x13d   :  { %17647 = vst [vmem:[#allocation47_spill] sm:$0xff] %v13709_v22  ;;  %v13717_v41 = vrot.slane %v5818_v29, %v13135_v44  ;;  %6295 = vst.msk [vmem:[#allocation2 + $0x268] sm:$0x1] %vm2980_vm1, %v13709_v22  ;;  %v2562_v17 = vrot.slane %v1263_v57, %v13135_v44  ;;  %v1265_v26 = vpop.f32.mrb[41].mxu0  ;;  %v1317_v57 = vpop.f32.mrb[40].mxu1 }
 0x13e   :  { %3020 = vst.msk [vmem:[#allocation2 + $0x270] sm:$0x1] %vm2980_vm1, %v13712_v14  ;;  %17649 = vst [vmem:[#allocation49_spill] sm:$0xff] %v13731_v40  ;;  %v5839_v29 = vrot.slane %v1265_v26, %v13135_v44  ;;  %v1267_v62 = vpop.f32.mrb[42].mxu0 }
 0x13f   :  { %3369 = vrot.lane.b32.xlu0 %v13667_v35, %s12932_s4  ;;  %17648 = vst [vmem:[#allocation48_spill] sm:$0xff] %v13717_v41  ;;  %6296 = vst.msk [vmem:[#allocation2 + $0x278] sm:$0x1] %vm2980_vm1, %v13717_v41  ;;  %v2563_v52 = vcombine.high %v2562_v17, %v2562_v17  ;;  %v13760_v22 = vrot.slane %v2562_v17, %v13135_v44  ;;  %v1268_v41 = vpop.f32.mrb[43].mxu0  ;;  %v2584_v62 = vrot.slane %v1317_v57, %v13135_v44 }
 0x140   :  { %3371 = vrot.lane.b32.xlu1 %v13659_v20, %s12932_s4  ;;  %17650 = vst [vmem:[#allocation50_spill] sm:$0xff] %v13743_v60  ;;  %17651 = vst [vmem:[#allocation51_spill] sm:$0xff] %v13751_v15  ;;  %v5840_v12 = vcombine.high %v5839_v29, %v5839_v29  ;;  %v13767_v24 = vrot.slane %v5839_v29, %v13135_v44  ;;  %v1319_v41 = vpop.f32.mrb[41].mxu1 }
 0x141   :  { %v13770_v59 = vrot.slane %v2563_v52, %v13135_v44  ;;  %3021 = vst.msk [vmem:[#allocation2 + $0x280] sm:$0x1] %vm2980_vm1, %v13760_v22  ;;  %v5861_v26 = vrot.slane %v1319_v41, %v13135_v44  ;;  %v1321_v29 = vpop.f32.mrb[42].mxu1  ;;  %v2585_v52 = vcombine.high %v2584_v62, %v2584_v62  ;;  %v13784_v3 = vrot.slane %v2584_v62, %v13135_v44 }
 0x142   :  { %17652 = vst [vmem:[#allocation52_spill] sm:$0xff] %v13767_v24  ;;  %v13776_v17 = vrot.slane %v5840_v12, %v13135_v44  ;;  %6297 = vst.msk [vmem:[#allocation2 + $0x288] sm:$0x1] %vm2980_vm1, %v13767_v24  ;;  %v1322_v0 = vpop.f32.mrb[43].mxu1  ;;  %v13817_v29 = vrot.slane %v13439_v9, %v13143_v49  ;;  %v13831_v9 = vrot.slane %v13444_v10, %v13143_v49 }
 0x143   :  { %3653 = vrot.lane.b32.xlu0 %v13655_v19, %s12933_s5  ;;  %3022 = vst.msk [vmem:[#allocation2 + $0x290] sm:$0x1] %vm2980_vm1, %v13770_v59  ;;  %v5862_v12 = vcombine.high %v5861_v26, %v5861_v26  ;;  %v13793_v57 = vrot.slane %v5861_v26, %v13135_v44  ;;  %v13796_v41 = vrot.slane %v2585_v52, %v13135_v44  ;;  %3023 = vst.msk [vmem:[#allocation2 + $0x2a0] sm:$0x1] %vm2980_vm1, %v13784_v3 }
 0x144   :  { %3655 = vrot.lane.b32.xlu1 %v13647_v18, %s12933_s5  ;;  %17653 = vst [vmem:[#allocation53_spill] sm:$0xff] %v13776_v17  ;;  %6298 = vst.msk [vmem:[#allocation2 + $0x298] sm:$0x1] %vm2980_vm1, %v13776_v17  ;;  %v13825_v52 = vrot.slane %v13430_v51, %v13143_v49  ;;  %v13840_v17 = vrot.slane %v13436_v58, %v13143_v49  ;;  %v1425_v31 = vpop.f32.mrb[44].mxu1 }
 0x145   :  { %17654 = vst [vmem:[#allocation54_spill] sm:$0xff] %v13793_v57  ;;  %v13801_v0 = vrot.slane %v5862_v12, %v13135_v44  ;;  %6299 = vst.msk [vmem:[#allocation2 + $0x2a8] sm:$0x1] %vm2980_vm1, %v13793_v57 }
 0x146   :  { %3024 = vst.msk [vmem:[#allocation2 + $0x2b0] sm:$0x1] %vm2980_vm1, %v13796_v41  ;;  %17656 = vst [vmem:[#allocation56_spill] sm:$0xff] %v13817_v29 }
 0x147   :  { %3657 = vrot.lane.b32.xlu0 %v13667_v35, %s12933_s5  ;;  %17655 = vst [vmem:[#allocation55_spill] sm:$0xff] %v13801_v0  ;;  %6300 = vst.msk [vmem:[#allocation2 + $0x2b8] sm:$0x1] %vm2980_vm1, %v13801_v0 }
 0x148   :  { %3659 = vrot.lane.b32.xlu1 %v13659_v20, %s12933_s5  ;;  %17657 = vst [vmem:[#allocation57_spill] sm:$0xff] %v13825_v52  ;;  %17658 = vst [vmem:[#allocation58_spill] sm:$0xff] %v13831_v9 }
 0x149   :  { %17659 = vst [vmem:[#allocation59_spill] sm:$0xff] %v13840_v17 }
 0x14b   :  { %3941 = vrot.lane.b32.xlu0 %v13655_v19, %s12934_s0 }
 0x14c   :  { %3943 = vrot.lane.b32.xlu1 %v13647_v18, %s12934_s0 }
 0x14f   :  { %3945 = vrot.lane.b32.xlu0 %v13667_v35, %s12934_s0 }
 0x150   :  { %3947 = vrot.lane.b32.xlu1 %v13659_v20, %s12934_s0 }
 0x153   :  { %3373 = vrot.lane.b32.xlu0 %v13739_v63, %s12932_s4 }
 0x154   :  { %3375 = vrot.lane.b32.xlu1 %v13731_v40, %s12932_s4 }
 0x157   :  { %3377 = vrot.lane.b32.xlu0 %v13751_v15, %s12932_s4 }
 0x158   :  { %3379 = vrot.lane.b32.xlu1 %v13743_v60, %s12932_s4 }
 0x15b   :  { %3661 = vrot.lane.b32.xlu0 %v13739_v63, %s12933_s5 }
 0x15c   :  { %3663 = vrot.lane.b32.xlu1 %v13731_v40, %s12933_s5 }
 0x15f   :  { %3665 = vrot.lane.b32.xlu0 %v13751_v15, %s12933_s5 }
 0x160   :  { %3667 = vrot.lane.b32.xlu1 %v13743_v60, %s12933_s5 }
 0x163   :  { %3949 = vrot.lane.b32.xlu0 %v13739_v63, %s12934_s0 }
 0x164   :  { %3951 = vrot.lane.b32.xlu1 %v13731_v40, %s12934_s0 }
 0x165   :  { %v3342_v26 = vpop.permute.xlu0 %3341 }
 0x166   :  { %v3346_v62 = vpop.permute.xlu1 %3345  ;;  %3557 = vst.msk [vmem:[#allocation2 + $0x1] sm:$0x1] %vm2980_vm1, %v3342_v26 }
 0x167   :  { %3559 = vst.msk [vmem:[#allocation2 + $0x21] sm:$0x1] %vm2980_vm1, %v3346_v62  ;;  %3953 = vrot.lane.b32.xlu0 %v13751_v15, %s12934_s0  ;;  %v1371_v62 = vpop.f32.mrb[44].mxu0 }
 0x168   :  { %3955 = vrot.lane.b32.xlu1 %v13743_v60, %s12934_s0  ;;  %v2606_v51 = vrot.slane %v1371_v62, %v13135_v44  ;;  %v1373_v26 = vpop.f32.mrb[45].mxu0 }
 0x169   :  { %v3630_v24 = vpop.permute.xlu0 %3629  ;;  %v5883_v57 = vrot.slane %v1373_v26, %v13135_v44  ;;  %v1375_v5 = vpop.f32.mrb[46].mxu0 }
 0x16a   :  { %v3348_v12 = vpop.permute.xlu1 %3347  ;;  %3845 = vst.msk [vmem:[#allocation2 + $0x2] sm:$0x1] %vm2980_vm1, %v3630_v24  ;;  %v2607_v10 = vcombine.high %v2606_v51, %v2606_v51  ;;  %v13846_v0 = vrot.slane %v2606_v51, %v13135_v44  ;;  %v1376_v26 = vpop.f32.mrb[47].mxu0  ;;  %v2628_v5 = vrot.slane %v1425_v31, %v13135_v44 }
 0x16b   :  { %3560 = vst.msk [vmem:[#allocation2 + $0x31] sm:$0x1] %vm2980_vm1, %v3348_v12  ;;  %3381 = vrot.lane.b32.xlu0 %v13825_v52, %s12932_s4  ;;  %v5884_v58 = vcombine.high %v5883_v57, %v5883_v57  ;;  %v13853_v62 = vrot.slane %v5883_v57, %v13135_v44  ;;  %v1427_v51 = vpop.f32.mrb[45].mxu1 }
 0x16c   :  { %3383 = vrot.lane.b32.xlu1 %v13817_v29, %s12932_s4  ;;  %3025 = vst.msk [vmem:[#allocation2 + $0x2c0] sm:$0x1] %vm2980_vm1, %v13846_v0  ;;  %v5905_v57 = vrot.slane %v1427_v51, %v13135_v44  ;;  %v13872_v31 = vrot.slane %v2628_v5, %v13135_v44  ;;  %v1429_v26 = vpop.f32.mrb[46].mxu1 }
 0x16d   :  { %v3634_v12 = vpop.permute.xlu0 %3633  ;;  %17660 = vst [vmem:[#allocation60_spill] sm:$0xff] %v13853_v62  ;;  %v13862_v37 = vrot.slane %v5884_v58, %v13135_v44  ;;  %6301 = vst.msk [vmem:[#allocation2 + $0x2c8] sm:$0x1] %vm2980_vm1, %v13853_v62  ;;  %v1430_v51 = vpop.f32.mrb[47].mxu1 }
 0x16e   :  { %v3632_v24 = vpop.permute.xlu1 %3631  ;;  %3847 = vst.msk [vmem:[#allocation2 + $0x22] sm:$0x1] %vm2980_vm1, %v3634_v12  ;;  %v13856_v12 = vrot.slane %v2607_v10, %v13135_v44  ;;  %v2629_v10 = vcombine.high %v2628_v5, %v2628_v5  ;;  %v5906_v58 = vcombine.high %v5905_v57, %v5905_v57  ;;  %3027 = vst.msk [vmem:[#allocation2 + $0x2e0] sm:$0x1] %vm2980_vm1, %v13872_v31 }
 0x16f   :  { %3846 = vst.msk [vmem:[#allocation2 + $0x12] sm:$0x1] %vm2980_vm1, %v3632_v24  ;;  %3385 = vrot.lane.b32.xlu0 %v13840_v17, %s12932_s4  ;;  %17661 = vst [vmem:[#allocation61_spill] sm:$0xff] %v13862_v37 }
 0x170   :  { %3387 = vrot.lane.b32.xlu1 %v13831_v9, %s12932_s4  ;;  %3026 = vst.msk [vmem:[#allocation2 + $0x2d0] sm:$0x1] %vm2980_vm1, %v13856_v12  ;;  %6302 = vst.msk [vmem:[#allocation2 + $0x2d8] sm:$0x1] %vm2980_vm1, %v13862_v37  ;;  %v13889_v62 = vrot.slane %v5906_v58, %v13135_v44  ;;  %v1479_v58 = vpop.f32.mrb[48].mxu0 }
 0x171   :  { %v3918_v24 = vpop.permute.xlu0 %3917  ;;  %v2650_v51 = vrot.slane %v1479_v58, %v13135_v44 }
 0x172   :  { %v3636_v38 = vpop.permute.xlu1 %3635  ;;  %4133 = vst.msk [vmem:[#allocation2 + $0x3] sm:$0x1] %vm2980_vm1, %v3918_v24  ;;  %v13884_v24 = vrot.slane %v2629_v10, %v13135_v44  ;;  %17663 = vst [vmem:[#allocation63_spill] sm:$0xff] %v13889_v62 }
 0x173   :  { %3848 = vst.msk [vmem:[#allocation2 + $0x32] sm:$0x1] %vm2980_vm1, %v3636_v38  ;;  %3669 = vrot.lane.b32.xlu0 %v13825_v52, %s12933_s5  ;;  %v13881_v38 = vrot.slane %v5905_v57, %v13135_v44  ;;  %6304 = vst.msk [vmem:[#allocation2 + $0x2f8] sm:$0x1] %vm2980_vm1, %v13889_v62 }
 0x174   :  { %3671 = vrot.lane.b32.xlu1 %v13817_v29, %s12933_s5  ;;  %3028 = vst.msk [vmem:[#allocation2 + $0x2f0] sm:$0x1] %vm2980_vm1, %v13884_v24 }
 0x175   :  { %17662 = vst [vmem:[#allocation62_spill] sm:$0xff] %v13881_v38  ;;  %v3922_v5 = vpop.permute.xlu0 %3921  ;;  %6303 = vst.msk [vmem:[#allocation2 + $0x2e8] sm:$0x1] %vm2980_vm1, %v13881_v38 }
 0x176   :  { %v3920_v26 = vpop.permute.xlu1 %3919  ;;  %4135 = vst.msk [vmem:[#allocation2 + $0x23] sm:$0x1] %vm2980_vm1, %v3922_v5  ;;  %v1481_v5 = vpop.f32.mrb[49].mxu0 }
 0x177   :  { %4134 = vst.msk [vmem:[#allocation2 + $0x13] sm:$0x1] %vm2980_vm1, %v3920_v26  ;;  %3673 = vrot.lane.b32.xlu0 %v13840_v17, %s12933_s5  ;;  %v5927_v38 = vrot.slane %v1481_v5, %v13135_v44  ;;  %v1483_v62 = vpop.f32.mrb[50].mxu0 }
 0x178   :  { %3675 = vrot.lane.b32.xlu1 %v13831_v9, %s12933_s5 }
 0x179   :  { %v3344_v10 = vpop.permute.xlu0 %3343  ;;  %v5928_v58 = vcombine.high %v5927_v38, %v5927_v38  ;;  %v13925_v5 = vrot.slane %v5927_v38, %v13135_v44 }
 0x17a   :  { %v3924_v57 = vpop.permute.xlu1 %3923  ;;  %3558 = vst.msk [vmem:[#allocation2 + $0x11] sm:$0x1] %vm2980_vm1, %v3344_v10  ;;  %v13914_v10 = vrot.slane %v2650_v51, %v13135_v44 }
 0x17b   :  { %4136 = vst.msk [vmem:[#allocation2 + $0x33] sm:$0x1] %vm2980_vm1, %v3924_v57  ;;  %3957 = vrot.lane.b32.xlu0 %v13825_v52, %s12934_s0  ;;  %v2651_v57 = vcombine.high %v2650_v51, %v2650_v51  ;;  %17665 = vst [vmem:[#allocation65_spill] sm:$0xff] %v13925_v5  ;;  %v13938_v38 = vrot.slane %v5928_v58, %v13135_v44  ;;  %v13952_v58 = vrot.slane %v13504_v27, %v13143_v49 }
 0x17c   :  { %3959 = vrot.lane.b32.xlu1 %v13817_v29, %s12934_s0  ;;  %3029 = vst.msk [vmem:[#allocation2 + $0x300] sm:$0x1] %vm2980_vm1, %v13914_v10  ;;  %6305 = vst.msk [vmem:[#allocation2 + $0x308] sm:$0x1] %vm2980_vm1, %v13925_v5  ;;  %v13970_v27 = vrot.slane %v13492_v45, %v13143_v49 }
 0x17d   :  { %v3350_v26 = vpop.permute.xlu0 %3349  ;;  %v13928_v51 = vrot.slane %v2651_v57, %v13135_v44  ;;  %17667 = vst [vmem:[#allocation67_spill] sm:$0xff] %v13938_v38  ;;  %17668 = vst [vmem:[#allocation68_spill] sm:$0xff] %v13952_v58 }
 0x17e   :  { %v3352_v37 = vpop.permute.xlu1 %3351  ;;  %3561 = vst.msk [vmem:[#allocation2 + $0x41] sm:$0x1] %vm2980_vm1, %v3350_v26  ;;  %v1533_v26 = vpop.f32.mrb[48].mxu1  ;;  %6306 = vst.msk [vmem:[#allocation2 + $0x318] sm:$0x1] %vm2980_vm1, %v13938_v38 }
 0x17f   :  { %3562 = vst.msk [vmem:[#allocation2 + $0x51] sm:$0x1] %vm2980_vm1, %v3352_v37  ;;  %3961 = vrot.lane.b32.xlu0 %v13840_v17, %s12934_s0  ;;  %v1484_v37 = vpop.f32.mrb[51].mxu0  ;;  %v2672_v32 = vrot.slane %v1533_v26, %v13135_v44  ;;  %v1535_v62 = vpop.f32.mrb[49].mxu1  ;;  %3030 = vst.msk [vmem:[#allocation2 + $0x310] sm:$0x1] %vm2980_vm1, %v13928_v51 }
 0x180   :  { %3963 = vrot.lane.b32.xlu1 %v13831_v9, %s12934_s0  ;;  %v5949_v57 = vrot.slane %v1535_v62, %v13135_v44  ;;  %v1537_v26 = vpop.f32.mrb[50].mxu1  ;;  %17670 = vst [vmem:[#allocation70_spill] sm:$0xff] %v13970_v27 }
 0x181   :  { %v3354_v7 = vpop.permute.xlu0 %3353  ;;  %v2673_v37 = vcombine.high %v2672_v32, %v2672_v32  ;;  %v13948_v56 = vrot.slane %v2672_v32, %v13135_v44  ;;  %v1538_v32 = vpop.f32.mrb[51].mxu1 }
 0x182   :  { %v3356_v2 = vpop.permute.xlu1 %3355  ;;  %3563 = vst.msk [vmem:[#allocation2 + $0x61] sm:$0x1] %vm2980_vm1, %v3354_v7  ;;  %v13961_v7 = vrot.slane %v5949_v57, %v13135_v44  ;;  %v1641_v9 = vpop.f32.mrb[52].mxu1 }
 0x183   :  { %3564 = vst.msk [vmem:[#allocation2 + $0x71] sm:$0x1] %vm2980_vm1, %v3356_v2  ;;  %3389 = vrot.lane.b32.xlu0 %v13935_v1, %s12932_s4  ;;  %v5950_v2 = vcombine.high %v5949_v57, %v5949_v57  ;;  %v13964_v62 = vrot.slane %v2673_v37, %v13135_v44  ;;  %3031 = vst.msk [vmem:[#allocation2 + $0x320] sm:$0x1] %vm2980_vm1, %v13948_v56 }
 0x184   :  { %3391 = vrot.lane.b32.xlu1 %v13918_v39, %s12932_s4  ;;  %17669 = vst [vmem:[#allocation69_spill] sm:$0xff] %v13961_v7  ;;  %6307 = vst.msk [vmem:[#allocation2 + $0x328] sm:$0x1] %vm2980_vm1, %v13961_v7 }
 0x185   :  { %v3638_v26 = vpop.permute.xlu0 %3637  ;;  %v13973_v8 = vrot.slane %v5950_v2, %v13135_v44  ;;  %3032 = vst.msk [vmem:[#allocation2 + $0x330] sm:$0x1] %vm2980_vm1, %v13964_v62 }
 0x186   :  { %v3640_v5 = vpop.permute.xlu1 %3639  ;;  %3849 = vst.msk [vmem:[#allocation2 + $0x42] sm:$0x1] %vm2980_vm1, %v3638_v26 }
 0x187   :  { %17671 = vst [vmem:[#allocation71_spill] sm:$0xff] %v13973_v8  ;;  %3850 = vst.msk [vmem:[#allocation2 + $0x52] sm:$0x1] %vm2980_vm1, %v3640_v5  ;;  %3393 = vrot.lane.b32.xlu0 %v13970_v27, %s12932_s4  ;;  %v1587_v5 = vpop.f32.mrb[52].mxu0 }
 0x188   :  { %3395 = vrot.lane.b32.xlu1 %v13952_v58, %s12932_s4  ;;  %6308 = vst.msk [vmem:[#allocation2 + $0x338] sm:$0x1] %vm2980_vm1, %v13973_v8  ;;  %v2694_v37 = vrot.slane %v1587_v5, %v13135_v44  ;;  %v1589_v2 = vpop.f32.mrb[53].mxu0 }
 0x189   :  { %v3642_v45 = vpop.permute.xlu0 %3641  ;;  %v5971_v38 = vrot.slane %v1589_v2, %v13135_v44  ;;  %v1591_v7 = vpop.f32.mrb[54].mxu0 }
 0x18a   :  { %v3644_v57 = vpop.permute.xlu1 %3643  ;;  %3851 = vst.msk [vmem:[#allocation2 + $0x62] sm:$0x1] %vm2980_vm1, %v3642_v45  ;;  %v2695_v45 = vcombine.high %v2694_v37, %v2694_v37  ;;  %v1592_v2 = vpop.f32.mrb[55].mxu0  ;;  %v2716_v7 = vrot.slane %v1641_v9, %v13135_v44 }
 0x18b   :  { %3852 = vst.msk [vmem:[#allocation2 + $0x72] sm:$0x1] %vm2980_vm1, %v3644_v57  ;;  %3677 = vrot.lane.b32.xlu0 %v13935_v1, %s12933_s5  ;;  %v13998_v57 = vrot.slane %v2694_v37, %v13135_v44  ;;  %v5972_v5 = vcombine.high %v5971_v38, %v5971_v38  ;;  %v14005_v8 = vrot.slane %v5971_v38, %v13135_v44  ;;  %v1643_v37 = vpop.f32.mrb[53].mxu1 }
 0x18c   :  { %3679 = vrot.lane.b32.xlu1 %v13918_v39, %s12933_s5  ;;  %v5993_v38 = vrot.slane %v1643_v37, %v13135_v44  ;;  %v14024_v9 = vrot.slane %v2716_v7, %v13135_v44  ;;  %v1645_v2 = vpop.f32.mrb[54].mxu1 }
 0x18d   :  { %v3926_v32 = vpop.permute.xlu0 %3925  ;;  %17672 = vst [vmem:[#allocation72_spill] sm:$0xff] %v14005_v8  ;;  %3033 = vst.msk [vmem:[#allocation2 + $0x340] sm:$0x1] %vm2980_vm1, %v13998_v57  ;;  %v14014_v29 = vrot.slane %v5972_v5, %v13135_v44  ;;  %v1646_v37 = vpop.f32.mrb[55].mxu1 }
 0x18e   :  { %v3928_v26 = vpop.permute.xlu1 %3927  ;;  %4137 = vst.msk [vmem:[#allocation2 + $0x43] sm:$0x1] %vm2980_vm1, %v3926_v32  ;;  %v14008_v32 = vrot.slane %v2695_v45, %v13135_v44  ;;  %6309 = vst.msk [vmem:[#allocation2 + $0x348] sm:$0x1] %vm2980_vm1, %v14005_v8  ;;  %v2717_v45 = vcombine.high %v2716_v7, %v2716_v7  ;;  %v5994_v5 = vcombine.high %v5993_v38, %v5993_v38 }
 0x18f   :  { %4138 = vst.msk [vmem:[#allocation2 + $0x53] sm:$0x1] %vm2980_vm1, %v3928_v26  ;;  %3681 = vrot.lane.b32.xlu0 %v13970_v27, %s12933_s5  ;;  %17673 = vst [vmem:[#allocation73_spill] sm:$0xff] %v14014_v29 }
 0x190   :  { %3683 = vrot.lane.b32.xlu1 %v13952_v58, %s12933_s5  ;;  %3034 = vst.msk [vmem:[#allocation2 + $0x350] sm:$0x1] %vm2980_vm1, %v14008_v32  ;;  %6310 = vst.msk [vmem:[#allocation2 + $0x358] sm:$0x1] %vm2980_vm1, %v14014_v29  ;;  %v14041_v8 = vrot.slane %v5994_v5, %v13135_v44  ;;  %v14076_v29 = vrot.slane %v13556_v48, %v13143_v49 }
 0x191   :  { %v3930_v26 = vpop.permute.xlu0 %3929  ;;  %3035 = vst.msk [vmem:[#allocation2 + $0x360] sm:$0x1] %vm2980_vm1, %v14024_v9 }
 0x192   :  { %v3932_v17 = vpop.permute.xlu1 %3931  ;;  %4139 = vst.msk [vmem:[#allocation2 + $0x63] sm:$0x1] %vm2980_vm1, %v3930_v26  ;;  %v14036_v26 = vrot.slane %v2717_v45, %v13135_v44  ;;  %17675 = vst [vmem:[#allocation75_spill] sm:$0xff] %v14041_v8  ;;  %v14061_v45 = vrot.slane %v13550_v54, %v13143_v49 }
 0x193   :  { %4140 = vst.msk [vmem:[#allocation2 + $0x73] sm:$0x1] %vm2980_vm1, %v3932_v17  ;;  %3965 = vrot.lane.b32.xlu0 %v13935_v1, %s12934_s0  ;;  %v14033_v17 = vrot.slane %v5993_v38, %v13135_v44  ;;  %v14051_v38 = vrot.slane %v13559_v50, %v13143_v49  ;;  %6312 = vst.msk [vmem:[#allocation2 + $0x378] sm:$0x1] %vm2980_vm1, %v14041_v8  ;;  %v14067_v50 = vrot.slane %v13564_v25, %v13143_v49 }
 0x194   :  { %3967 = vrot.lane.b32.xlu1 %v13918_v39, %s12934_s0  ;;  %3036 = vst.msk [vmem:[#allocation2 + $0x370] sm:$0x1] %vm2980_vm1, %v14036_v26  ;;  %17677 = vst [vmem:[#allocation77_spill] sm:$0xff] %v14061_v45 }
 0x195   :  { %17674 = vst [vmem:[#allocation74_spill] sm:$0xff] %v14033_v17  ;;  %v3358_v7 = vpop.permute.xlu0 %3357  ;;  %6311 = vst.msk [vmem:[#allocation2 + $0x368] sm:$0x1] %vm2980_vm1, %v14033_v17 }
 0x196   :  { %v3360_v2 = vpop.permute.xlu1 %3359  ;;  %3565 = vst.msk [vmem:[#allocation2 + $0x81] sm:$0x1] %vm2980_vm1, %v3358_v7  ;;  %17676 = vst [vmem:[#allocation76_spill] sm:$0xff] %v14051_v38  ;;  %v1695_v7 = vpop.f32.mrb[56].mxu0 }
 0x197   :  { %3566 = vst.msk [vmem:[#allocation2 + $0x91] sm:$0x1] %vm2980_vm1, %v3360_v2  ;;  %3969 = vrot.lane.b32.xlu0 %v13970_v27, %s12934_s0  ;;  %17678 = vst [vmem:[#allocation78_spill] sm:$0xff] %v14067_v50  ;;  %v2738_v54 = vrot.slane %v1695_v7, %v13135_v44  ;;  %v1697_v2 = vpop.f32.mrb[57].mxu0  ;;  %v1749_v27 = vpop.f32.mrb[56].mxu1 }
 0x198   :  { %3971 = vrot.lane.b32.xlu1 %v13952_v58, %s12934_s0  ;;  %17679 = vst [vmem:[#allocation79_spill] sm:$0xff] %v14076_v29  ;;  %v6015_v17 = vrot.slane %v1697_v2, %v13135_v44  ;;  %v1699_v58 = vpop.f32.mrb[58].mxu0 }
 0x199   :  { %v3362_v5 = vpop.permute.xlu0 %3361  ;;  %v2739_v25 = vcombine.high %v2738_v54, %v2738_v54  ;;  %v14082_v8 = vrot.slane %v2738_v54, %v13135_v44  ;;  %v1700_v2 = vpop.f32.mrb[59].mxu0  ;;  %v2760_v58 = vrot.slane %v1749_v27, %v13135_v44 }
 0x19a   :  { %v3364_v37 = vpop.permute.xlu1 %3363  ;;  %3567 = vst.msk [vmem:[#allocation2 + $0xa1] sm:$0x1] %vm2980_vm1, %v3362_v5  ;;  %v6016_v48 = vcombine.high %v6015_v17, %v6015_v17  ;;  %v14089_v7 = vrot.slane %v6015_v17, %v13135_v44  ;;  %v1751_v54 = vpop.f32.mrb[57].mxu1 }
 0x19b   :  { %3568 = vst.msk [vmem:[#allocation2 + $0xb1] sm:$0x1] %vm2980_vm1, %v3364_v37  ;;  %3397 = vrot.lane.b32.xlu0 %v14061_v45, %s12932_s4  ;;  %3037 = vst.msk [vmem:[#allocation2 + $0x380] sm:$0x1] %vm2980_vm1, %v14082_v8  ;;  %v6037_v17 = vrot.slane %v1751_v54, %v13135_v44  ;;  %v14108_v27 = vrot.slane %v2760_v58, %v13135_v44  ;;  %v1753_v2 = vpop.f32.mrb[58].mxu1 }
 0x19c   :  { %3399 = vrot.lane.b32.xlu1 %v14051_v38, %s12932_s4  ;;  %17680 = vst [vmem:[#allocation80_spill] sm:$0xff] %v14089_v7  ;;  %v14098_v1 = vrot.slane %v6016_v48, %v13135_v44  ;;  %6313 = vst.msk [vmem:[#allocation2 + $0x388] sm:$0x1] %vm2980_vm1, %v14089_v7  ;;  %v1754_v54 = vpop.f32.mrb[59].mxu1 }
 0x19d   :  { %v3646_v5 = vpop.permute.xlu0 %3645  ;;  %v6038_v48 = vcombine.high %v6037_v17, %v6037_v17  ;;  %3039 = vst.msk [vmem:[#allocation2 + $0x3a0] sm:$0x1] %vm2980_vm1, %v14108_v27 }
 0x19e   :  { %v3648_v37 = vpop.permute.xlu1 %3647  ;;  %3853 = vst.msk [vmem:[#allocation2 + $0x82] sm:$0x1] %vm2980_vm1, %v3646_v5  ;;  %v14092_v5 = vrot.slane %v2739_v25, %v13135_v44  ;;  %17681 = vst [vmem:[#allocation81_spill] sm:$0xff] %v14098_v1  ;;  %v2761_v25 = vcombine.high %v2760_v58, %v2760_v58 }
 0x19f   :  { %3854 = vst.msk [vmem:[#allocation2 + $0x92] sm:$0x1] %vm2980_vm1, %v3648_v37  ;;  %3401 = vrot.lane.b32.xlu0 %v14076_v29, %s12932_s4  ;;  %6314 = vst.msk [vmem:[#allocation2 + $0x398] sm:$0x1] %vm2980_vm1, %v14098_v1  ;;  %v14125_v7 = vrot.slane %v6038_v48, %v13135_v44  ;;  %v1803_v48 = vpop.f32.mrb[60].mxu0 }
 0x1a0   :  { %3403 = vrot.lane.b32.xlu1 %v14067_v50, %s12932_s4  ;;  %3038 = vst.msk [vmem:[#allocation2 + $0x390] sm:$0x1] %vm2980_vm1, %v14092_v5  ;;  %v2782_v54 = vrot.slane %v1803_v48, %v13135_v44 }
 0x1a1   :  { %v3650_v37 = vpop.permute.xlu0 %3649  ;;  %17683 = vst [vmem:[#allocation83_spill] sm:$0xff] %v14125_v7  ;;  %6316 = vst.msk [vmem:[#allocation2 + $0x3b8] sm:$0x1] %vm2980_vm1, %v14125_v7 }
 0x1a2   :  { %v3652_v39 = vpop.permute.xlu1 %3651  ;;  %3855 = vst.msk [vmem:[#allocation2 + $0xa2] sm:$0x1] %vm2980_vm1, %v3650_v37  ;;  %v14120_v37 = vrot.slane %v2761_v25, %v13135_v44 }
 0x1a3   :  { %3856 = vst.msk [vmem:[#allocation2 + $0xb2] sm:$0x1] %vm2980_vm1, %v3652_v39  ;;  %3685 = vrot.lane.b32.xlu0 %v14061_v45, %s12933_s5  ;;  %v14117_v39 = vrot.slane %v6037_v17, %v13135_v44 }
 0x1a4   :  { %3687 = vrot.lane.b32.xlu1 %v14051_v38, %s12933_s5  ;;  %3040 = vst.msk [vmem:[#allocation2 + $0x3b0] sm:$0x1] %vm2980_vm1, %v14120_v37 }
 0x1a5   :  { %17682 = vst [vmem:[#allocation82_spill] sm:$0xff] %v14117_v39  ;;  %v3934_v58 = vpop.permute.xlu0 %3933  ;;  %6315 = vst.msk [vmem:[#allocation2 + $0x3a8] sm:$0x1] %vm2980_vm1, %v14117_v39 }
 0x1a6   :  { %v3936_v2 = vpop.permute.xlu1 %3935  ;;  %4141 = vst.msk [vmem:[#allocation2 + $0x83] sm:$0x1] %vm2980_vm1, %v3934_v58  ;;  %v1805_v58 = vpop.f32.mrb[61].mxu0 }
 0x1a7   :  { %4142 = vst.msk [vmem:[#allocation2 + $0x93] sm:$0x1] %vm2980_vm1, %v3936_v2  ;;  %3689 = vrot.lane.b32.xlu0 %v14076_v29, %s12933_s5  ;;  %v6059_v39 = vrot.slane %v1805_v58, %v13135_v44  ;;  %v1807_v7 = vpop.f32.mrb[62].mxu0 }
 0x1a8   :  { %3691 = vrot.lane.b32.xlu1 %v14067_v50, %s12933_s5 }
 0x1a9   :  { %v3938_v17 = vpop.permute.xlu0 %3937  ;;  %v6060_v48 = vcombine.high %v6059_v39, %v6059_v39  ;;  %v14161_v58 = vrot.slane %v6059_v39, %v13135_v44 }
 0x1aa   :  { %v3940_v25 = vpop.permute.xlu1 %3939  ;;  %4143 = vst.msk [vmem:[#allocation2 + $0xa3] sm:$0x1] %vm2980_vm1, %v3938_v17  ;;  %v2783_v17 = vcombine.high %v2782_v54, %v2782_v54 }
 0x1ab   :  { %4144 = vst.msk [vmem:[#allocation2 + $0xb3] sm:$0x1] %vm2980_vm1, %v3940_v25  ;;  %3973 = vrot.lane.b32.xlu0 %v14061_v45, %s12934_s0  ;;  %v14150_v25 = vrot.slane %v2782_v54, %v13135_v44  ;;  %17685 = vst [vmem:[#allocation85_spill] sm:$0xff] %v14161_v58  ;;  %v14174_v39 = vrot.slane %v6060_v48, %v13135_v44  ;;  %v14188_v48 = vrot.slane %v13616_v36, %v13143_v49 }
 0x1ac   :  { %3975 = vrot.lane.b32.xlu1 %v14051_v38, %s12934_s0  ;;  %v14154_v38 = vrot.slane %v13611_v21, %v13143_v49  ;;  %v14164_v54 = vrot.slane %v2783_v17, %v13135_v44  ;;  %6317 = vst.msk [vmem:[#allocation2 + $0x3c8] sm:$0x1] %vm2980_vm1, %v14161_v58  ;;  %v14206_v36 = vrot.slane %v13608_v11, %v13143_v49 }
 0x1ad   :  { %v3366_v2 = vpop.permute.xlu0 %3365  ;;  %3041 = vst.msk [vmem:[#allocation2 + $0x3c0] sm:$0x1] %vm2980_vm1, %v14150_v25  ;;  %17687 = vst [vmem:[#allocation87_spill] sm:$0xff] %v14174_v39 }
 0x1ae   :  { %v3368_v1 = vpop.permute.xlu1 %3367  ;;  %3569 = vst.msk [vmem:[#allocation2 + $0xc1] sm:$0x1] %vm2980_vm1, %v3366_v2  ;;  %17684 = vst [vmem:[#allocation84_spill] sm:$0xff] %v14154_v38  ;;  %v1857_v2 = vpop.f32.mrb[60].mxu1 }
 0x1af   :  { %3570 = vst.msk [vmem:[#allocation2 + $0xd1] sm:$0x1] %vm2980_vm1, %v3368_v1  ;;  %3977 = vrot.lane.b32.xlu0 %v14076_v29, %s12934_s0  ;;  %v1808_v1 = vpop.f32.mrb[63].mxu0  ;;  %v2804_v21 = vrot.slane %v1857_v2, %v13135_v44  ;;  %v1859_v7 = vpop.f32.mrb[61].mxu1  ;;  %v14171_v29 = vrot.slane %v13602_v30, %v13143_v49  ;;  %3042 = vst.msk [vmem:[#allocation2 + $0x3d0] sm:$0x1] %vm2980_vm1, %v14164_v54 }
 0x1b0   :  { %3979 = vrot.lane.b32.xlu1 %v14067_v50, %s12934_s0  ;;  %v6081_v17 = vrot.slane %v1859_v7, %v13135_v44  ;;  %v1861_v2 = vpop.f32.mrb[62].mxu1  ;;  %17688 = vst [vmem:[#allocation88_spill] sm:$0xff] %v14188_v48  ;;  %6318 = vst.msk [vmem:[#allocation2 + $0x3d8] sm:$0x1] %vm2980_vm1, %v14174_v39 }
 0x1b1   :  { %17686 = vst [vmem:[#allocation86_spill] sm:$0xff] %v14171_v29  ;;  %v3370_v50 = vpop.permute.xlu0 %3369  ;;  %v2805_v1 = vcombine.high %v2804_v21, %v2804_v21  ;;  %v14184_v30 = vrot.slane %v2804_v21, %v13135_v44  ;;  %v1862_v21 = vpop.f32.mrb[63].mxu1  ;;  %17690 = vst [vmem:[#allocation90_spill] sm:$0xff] %v14206_v36 }
 0x1b2   :  { %v3372_v45 = vpop.permute.xlu1 %3371  ;;  %3571 = vst.msk [vmem:[#allocation2 + $0xe1] sm:$0x1] %vm2980_vm1, %v3370_v50  ;;  %v14197_v50 = vrot.slane %v6081_v17, %v13135_v44  ;;  %v1965_v60 = vpop.f32.mrb[64].mxu1 }
 0x1b3   :  { %3572 = vst.msk [vmem:[#allocation2 + $0xf1] sm:$0x1] %vm2980_vm1, %v3372_v45  ;;  %3405 = vrot.lane.b32.xlu0 %v14171_v29, %s12932_s4  ;;  %v6082_v45 = vcombine.high %v6081_v17, %v6081_v17  ;;  %v14200_v7 = vrot.slane %v2805_v1, %v13135_v44  ;;  %3043 = vst.msk [vmem:[#allocation2 + $0x3e0] sm:$0x1] %vm2980_vm1, %v14184_v30 }
 0x1b4   :  { %3407 = vrot.lane.b32.xlu1 %v14154_v38, %s12932_s4  ;;  %17689 = vst [vmem:[#allocation89_spill] sm:$0xff] %v14197_v50  ;;  %6319 = vst.msk [vmem:[#allocation2 + $0x3e8] sm:$0x1] %vm2980_vm1, %v14197_v50 }
 0x1b5   :  { %v3654_v2 = vpop.permute.xlu0 %3653  ;;  %v14209_v52 = vrot.slane %v6082_v45, %v13135_v44  ;;  %3044 = vst.msk [vmem:[#allocation2 + $0x3f0] sm:$0x1] %vm2980_vm1, %v14200_v7 }
 0x1b6   :  { %v3656_v58 = vpop.permute.xlu1 %3655  ;;  %3857 = vst.msk [vmem:[#allocation2 + $0xc2] sm:$0x1] %vm2980_vm1, %v3654_v2 }
 0x1b7   :  { %17691 = vst [vmem:[#allocation91_spill] sm:$0xff] %v14209_v52  ;;  %3858 = vst.msk [vmem:[#allocation2 + $0xd2] sm:$0x1] %vm2980_vm1, %v3656_v58  ;;  %3409 = vrot.lane.b32.xlu0 %v14206_v36, %s12932_s4  ;;  %v1911_v58 = vpop.f32.mrb[64].mxu0 }
 0x1b8   :  { %3411 = vrot.lane.b32.xlu1 %v14188_v48, %s12932_s4  ;;  %6320 = vst.msk [vmem:[#allocation2 + $0x3f8] sm:$0x1] %vm2980_vm1, %v14209_v52  ;;  %v2826_v1 = vrot.slane %v1911_v58, %v13135_v44  ;;  %v1913_v45 = vpop.f32.mrb[65].mxu0 }
 0x1b9   :  { %v3658_v11 = vpop.permute.xlu0 %3657  ;;  %v6103_v39 = vrot.slane %v1913_v45, %v13135_v44  ;;  %v1915_v50 = vpop.f32.mrb[66].mxu0 }
 0x1ba   :  { %v3660_v17 = vpop.permute.xlu1 %3659  ;;  %3859 = vst.msk [vmem:[#allocation2 + $0xe2] sm:$0x1] %vm2980_vm1, %v3658_v11  ;;  %v2827_v11 = vcombine.high %v2826_v1, %v2826_v1  ;;  %v1916_v45 = vpop.f32.mrb[67].mxu0  ;;  %v2848_v50 = vrot.slane %v1965_v60, %v13135_v44 }
 0x1bb   :  { %3860 = vst.msk [vmem:[#allocation2 + $0xf2] sm:$0x1] %vm2980_vm1, %v3660_v17  ;;  %3693 = vrot.lane.b32.xlu0 %v14171_v29, %s12933_s5  ;;  %v14234_v17 = vrot.slane %v2826_v1, %v13135_v44  ;;  %v6104_v58 = vcombine.high %v6103_v39, %v6103_v39  ;;  %v14241_v52 = vrot.slane %v6103_v39, %v13135_v44  ;;  %v1967_v1 = vpop.f32.mrb[65].mxu1 }
 0x1bc   :  { %3695 = vrot.lane.b32.xlu1 %v14154_v38, %s12933_s5  ;;  %v6125_v39 = vrot.slane %v1967_v1, %v13135_v44  ;;  %v14260_v60 = vrot.slane %v2848_v50, %v13135_v44  ;;  %v1969_v45 = vpop.f32.mrb[66].mxu1 }
 0x1bd   :  { %v3942_v21 = vpop.permute.xlu0 %3941  ;;  %17692 = vst [vmem:[#allocation92_spill] sm:$0xff] %v14241_v52  ;;  %3045 = vst.msk [vmem:[#allocation2 + $0x400] sm:$0x1] %vm2980_vm1, %v14234_v17  ;;  %v14250_v40 = vrot.slane %v6104_v58, %v13135_v44  ;;  %v1970_v1 = vpop.f32.mrb[67].mxu1 }
 0x1be   :  { %v3944_v2 = vpop.permute.xlu1 %3943  ;;  %4145 = vst.msk [vmem:[#allocation2 + $0xc3] sm:$0x1] %vm2980_vm1, %v3942_v21  ;;  %v14244_v21 = vrot.slane %v2827_v11, %v13135_v44  ;;  %6321 = vst.msk [vmem:[#allocation2 + $0x408] sm:$0x1] %vm2980_vm1, %v14241_v52  ;;  %v2849_v11 = vcombine.high %v2848_v50, %v2848_v50  ;;  %v6126_v58 = vcombine.high %v6125_v39, %v6125_v39 }
 0x1bf   :  { %4146 = vst.msk [vmem:[#allocation2 + $0xd3] sm:$0x1] %vm2980_vm1, %v3944_v2  ;;  %3697 = vrot.lane.b32.xlu0 %v14206_v36, %s12933_s5  ;;  %17693 = vst [vmem:[#allocation93_spill] sm:$0xff] %v14250_v40 }
 0x1c0   :  { %3699 = vrot.lane.b32.xlu1 %v14188_v48, %s12933_s5  ;;  %3046 = vst.msk [vmem:[#allocation2 + $0x410] sm:$0x1] %vm2980_vm1, %v14244_v21  ;;  %6322 = vst.msk [vmem:[#allocation2 + $0x418] sm:$0x1] %vm2980_vm1, %v14250_v40  ;;  %v14277_v52 = vrot.slane %v6126_v58, %v13135_v44  ;;  %v14312_v40 = vrot.slane %v13700_v42, %v13143_v49 }
 0x1c1   :  { %v3946_v2 = vpop.permute.xlu0 %3945  ;;  %3047 = vst.msk [vmem:[#allocation2 + $0x420] sm:$0x1] %vm2980_vm1, %v14260_v60 }
 0x1c2   :  { %v3948_v15 = vpop.permute.xlu1 %3947  ;;  %4147 = vst.msk [vmem:[#allocation2 + $0xe3] sm:$0x1] %vm2980_vm1, %v3946_v2  ;;  %v14272_v2 = vrot.slane %v2849_v11, %v13135_v44  ;;  %17695 = vst [vmem:[#allocation95_spill] sm:$0xff] %v14277_v52  ;;  %v14297_v11 = vrot.slane %v13676_v23, %v13143_v49 }
 0x1c3   :  { %4148 = vst.msk [vmem:[#allocation2 + $0xf3] sm:$0x1] %vm2980_vm1, %v3948_v15  ;;  %3981 = vrot.lane.b32.xlu0 %v14171_v29, %s12934_s0  ;;  %v14269_v15 = vrot.slane %v6125_v39, %v13135_v44  ;;  %v14287_v39 = vrot.slane %v13686_v28, %v13143_v49  ;;  %6324 = vst.msk [vmem:[#allocation2 + $0x438] sm:$0x1] %vm2980_vm1, %v14277_v52  ;;  %v14303_v28 = vrot.slane %v13712_v14, %v13143_v49 }
 0x1c4   :  { %3983 = vrot.lane.b32.xlu1 %v14154_v38, %s12934_s0  ;;  %3048 = vst.msk [vmem:[#allocation2 + $0x430] sm:$0x1] %vm2980_vm1, %v14272_v2 }
 0x1c5   :  { %17694 = vst [vmem:[#allocation94_spill] sm:$0xff] %v14269_v15  ;;  %v3374_v50 = vpop.permute.xlu0 %3373  ;;  %6323 = vst.msk [vmem:[#allocation2 + $0x428] sm:$0x1] %vm2980_vm1, %v14269_v15 }
 0x1c6   :  { %v3376_v45 = vpop.permute.xlu1 %3375  ;;  %3573 = vst.msk [vmem:[#allocation2 + $0x101] sm:$0x1] %vm2980_vm1, %v3374_v50  ;;  %v2019_v50 = vpop.f32.mrb[68].mxu0 }
 0x1c7   :  { %3574 = vst.msk [vmem:[#allocation2 + $0x111] sm:$0x1] %vm2980_vm1, %v3376_v45  ;;  %3985 = vrot.lane.b32.xlu0 %v14206_v36, %s12934_s0  ;;  %v2870_v23 = vrot.slane %v2019_v50, %v13135_v44  ;;  %v2021_v45 = vpop.f32.mrb[69].mxu0 }
 0x1c8   :  { %3987 = vrot.lane.b32.xlu1 %v14188_v48, %s12934_s0  ;;  %v6147_v15 = vrot.slane %v2021_v45, %v13135_v44  ;;  %v2023_v48 = vpop.f32.mrb[70].mxu0 }
 0x1c9   :  { %v3378_v58 = vpop.permute.xlu0 %3377  ;;  %v2871_v14 = vcombine.high %v2870_v23, %v2870_v23  ;;  %v14318_v52 = vrot.slane %v2870_v23, %v13135_v44  ;;  %v2024_v45 = vpop.f32.mrb[71].mxu0 }
 0x1ca   :  { %v3380_v1 = vpop.permute.xlu1 %3379  ;;  %3575 = vst.msk [vmem:[#allocation2 + $0x121] sm:$0x1] %vm2980_vm1, %v3378_v58  ;;  %v6148_v42 = vcombine.high %v6147_v15, %v6147_v15  ;;  %v14325_v50 = vrot.slane %v6147_v15, %v13135_v44  ;;  %v2073_v23 = vpop.f32.mrb[68].mxu1 }
 0x1cb   :  { %3576 = vst.msk [vmem:[#allocation2 + $0x131] sm:$0x1] %vm2980_vm1, %v3380_v1  ;;  %3413 = vrot.lane.b32.xlu0 %v14297_v11, %s12932_s4  ;;  %3049 = vst.msk [vmem:[#allocation2 + $0x440] sm:$0x1] %vm2980_vm1, %v14318_v52  ;;  %v2892_v38 = vrot.slane %v2073_v23, %v13135_v44  ;;  %v2075_v15 = vpop.f32.mrb[69].mxu1 }
 0x1cc   :  { %3415 = vrot.lane.b32.xlu1 %v14287_v39, %s12932_s4  ;;  %17696 = vst [vmem:[#allocation96_spill] sm:$0xff] %v14325_v50  ;;  %v14333_v36 = vrot.slane %v6148_v42, %v13135_v44  ;;  %6325 = vst.msk [vmem:[#allocation2 + $0x448] sm:$0x1] %vm2980_vm1, %v14325_v50  ;;  %v2077_v45 = vpop.f32.mrb[70].mxu1  ;;  %v6169_v23 = vrot.slane %v2075_v15, %v13135_v44 }
 0x1cd   :  { %v3662_v58 = vpop.permute.xlu0 %3661  ;;  %v14349_v42 = vrot.slane %v2892_v38, %v13135_v44  ;;  %v14385_v45 = vrot.slane %v13770_v59, %v13143_v49  ;;  %v14399_v59 = vrot.slane %v13796_v41, %v13143_v49 }
 0x1ce   :  { %v3664_v1 = vpop.permute.xlu1 %3663  ;;  %3861 = vst.msk [vmem:[#allocation2 + $0x102] sm:$0x1] %vm2980_vm1, %v3662_v58  ;;  %v14328_v58 = vrot.slane %v2871_v14, %v13135_v44  ;;  %17697 = vst [vmem:[#allocation97_spill] sm:$0xff] %v14333_v36  ;;  %v2893_v14 = vcombine.high %v2892_v38, %v2892_v38  ;;  %v14360_v38 = vrot.slane %v6169_v23, %v13135_v44 }
 0x1cf   :  { %3862 = vst.msk [vmem:[#allocation2 + $0x112] sm:$0x1] %vm2980_vm1, %v3664_v1  ;;  %3417 = vrot.lane.b32.xlu0 %v14312_v40, %s12932_s4  ;;  %6326 = vst.msk [vmem:[#allocation2 + $0x458] sm:$0x1] %vm2980_vm1, %v14333_v36  ;;  %v6170_v36 = vcombine.high %v6169_v23, %v6169_v23  ;;  %v14393_v23 = vrot.slane %v13760_v22, %v13143_v49  ;;  %v14407_v22 = vrot.slane %v13784_v3, %v13143_v49 }
 0x1d0   :  { %3419 = vrot.lane.b32.xlu1 %v14303_v28, %s12932_s4  ;;  %3050 = vst.msk [vmem:[#allocation2 + $0x450] sm:$0x1] %vm2980_vm1, %v14328_v58  ;;  %v14353_v29 = vrot.slane %v2893_v14, %v13135_v44  ;;  %3051 = vst.msk [vmem:[#allocation2 + $0x460] sm:$0x1] %vm2980_vm1, %v14349_v42 }
 0x1d1   :  { %v3666_v1 = vpop.permute.xlu0 %3665  ;;  %17698 = vst [vmem:[#allocation98_spill] sm:$0xff] %v14360_v38  ;;  %v14369_v15 = vrot.slane %v6170_v36, %v13135_v44  ;;  %6327 = vst.msk [vmem:[#allocation2 + $0x468] sm:$0x1] %vm2980_vm1, %v14360_v38  ;;  %v17721_v38 = vld [vmem:[#allocation58_spill] sm:$0xff] }
 0x1d2   :  { %v3668_v48 = vpop.permute.xlu1 %3667  ;;  %3863 = vst.msk [vmem:[#allocation2 + $0x122] sm:$0x1] %vm2980_vm1, %v3666_v1  ;;  %v2078_v1 = vpop.f32.mrb[71].mxu1  ;;  %3052 = vst.msk [vmem:[#allocation2 + $0x470] sm:$0x1] %vm2980_vm1, %v14353_v29 }
 0x1d3   :  { %3864 = vst.msk [vmem:[#allocation2 + $0x132] sm:$0x1] %vm2980_vm1, %v3668_v48  ;;  %3701 = vrot.lane.b32.xlu0 %v14297_v11, %s12933_s5  ;;  %17699 = vst [vmem:[#allocation99_spill] sm:$0xff] %v14369_v15 }
 0x1d4   :  { %3703 = vrot.lane.b32.xlu1 %v14287_v39, %s12933_s5  ;;  %6328 = vst.msk [vmem:[#allocation2 + $0x478] sm:$0x1] %vm2980_vm1, %v14369_v15  ;;  %v17723_v15 = vld [vmem:[#allocation64_spill] sm:$0xff] }
 0x1d5   :  { %v3950_v48 = vpop.permute.xlu0 %3949 }
 0x1d6   :  { %v3952_v50 = vpop.permute.xlu1 %3951  ;;  %4149 = vst.msk [vmem:[#allocation2 + $0x103] sm:$0x1] %vm2980_vm1, %v3950_v48 }
 0x1d7   :  { %4150 = vst.msk [vmem:[#allocation2 + $0x113] sm:$0x1] %vm2980_vm1, %v3952_v50  ;;  %3705 = vrot.lane.b32.xlu0 %v14312_v40, %s12933_s5 }
 0x1d8   :  { %3707 = vrot.lane.b32.xlu1 %v14303_v28, %s12933_s5 }
 0x1d9   :  { %v3954_v50 = vpop.permute.xlu0 %3953 }
 0x1da   :  { %v3956_v14 = vpop.permute.xlu1 %3955  ;;  %4151 = vst.msk [vmem:[#allocation2 + $0x123] sm:$0x1] %vm2980_vm1, %v3954_v50 }
 0x1db   :  { %4152 = vst.msk [vmem:[#allocation2 + $0x133] sm:$0x1] %vm2980_vm1, %v3956_v14  ;;  %3989 = vrot.lane.b32.xlu0 %v14297_v11, %s12934_s0 }
 0x1dc   :  { %3991 = vrot.lane.b32.xlu1 %v14287_v39, %s12934_s0 }
 0x1dd   :  { %v3382_v44 = vpop.permute.xlu0 %3381 }
 0x1de   :  { %v3384_v36 = vpop.permute.xlu1 %3383  ;;  %3577 = vst.msk [vmem:[#allocation2 + $0x141] sm:$0x1] %vm2980_vm1, %v3382_v44 }
 0x1df   :  { %3578 = vst.msk [vmem:[#allocation2 + $0x151] sm:$0x1] %vm2980_vm1, %v3384_v36  ;;  %3993 = vrot.lane.b32.xlu0 %v14312_v40, %s12934_s0 }
 0x1e0   :  { %3995 = vrot.lane.b32.xlu1 %v14303_v28, %s12934_s0 }
 0x1e1   :  { %v3386_v1 = vpop.permute.xlu0 %3385 }
 0x1e2   :  { %v3388_v48 = vpop.permute.xlu1 %3387  ;;  %3579 = vst.msk [vmem:[#allocation2 + $0x161] sm:$0x1] %vm2980_vm1, %v3386_v1 }
 0x1e3   :  { %3580 = vst.msk [vmem:[#allocation2 + $0x171] sm:$0x1] %vm2980_vm1, %v3388_v48  ;;  %3421 = vrot.lane.b32.xlu0 %v14393_v23, %s12932_s4 }
 0x1e4   :  { %3423 = vrot.lane.b32.xlu1 %v14385_v45, %s12932_s4 }
 0x1e5   :  { %v3670_v50 = vpop.permute.xlu0 %3669 }
 0x1e6   :  { %v3672_v14 = vpop.permute.xlu1 %3671  ;;  %3865 = vst.msk [vmem:[#allocation2 + $0x142] sm:$0x1] %vm2980_vm1, %v3670_v50  ;;  %v14431_v50 = vrot.slane %v13856_v12, %v13143_v49  ;;  %v14445_v12 = vrot.slane %v13884_v24, %v13143_v49 }
 0x1e7   :  { %3866 = vst.msk [vmem:[#allocation2 + $0x152] sm:$0x1] %vm2980_vm1, %v3672_v14  ;;  %3425 = vrot.lane.b32.xlu0 %v14407_v22, %s12932_s4  ;;  %v14439_v14 = vrot.slane %v13846_v0, %v13143_v49  ;;  %v14453_v0 = vrot.slane %v13872_v31, %v13143_v49 }
 0x1e8   :  { %3427 = vrot.lane.b32.xlu1 %v14399_v59, %s12932_s4 }
 0x1e9   :  { %v3674_v41 = vpop.permute.xlu0 %3673 }
 0x1ea   :  { %v3676_v44 = vpop.permute.xlu1 %3675  ;;  %3867 = vst.msk [vmem:[#allocation2 + $0x162] sm:$0x1] %vm2980_vm1, %v3674_v41 }
 0x1eb   :  { %3868 = vst.msk [vmem:[#allocation2 + $0x172] sm:$0x1] %vm2980_vm1, %v3676_v44  ;;  %3709 = vrot.lane.b32.xlu0 %v14393_v23, %s12933_s5 }
 0x1ec   :  { %3711 = vrot.lane.b32.xlu1 %v14385_v45, %s12933_s5 }
 0x1ed   :  { %v3958_v3 = vpop.permute.xlu0 %3957 }
 0x1ee   :  { %v3960_v36 = vpop.permute.xlu1 %3959  ;;  %4153 = vst.msk [vmem:[#allocation2 + $0x143] sm:$0x1] %vm2980_vm1, %v3958_v3 }
 0x1ef   :  { %4154 = vst.msk [vmem:[#allocation2 + $0x153] sm:$0x1] %vm2980_vm1, %v3960_v36  ;;  %3713 = vrot.lane.b32.xlu0 %v14407_v22, %s12933_s5 }
 0x1f0   :  { %3715 = vrot.lane.b32.xlu1 %v14399_v59, %s12933_s5 }
 0x1f1   :  { %v3962_v1 = vpop.permute.xlu0 %3961 }
 0x1f2   :  { %v3964_v48 = vpop.permute.xlu1 %3963  ;;  %4155 = vst.msk [vmem:[#allocation2 + $0x163] sm:$0x1] %vm2980_vm1, %v3962_v1 }
 0x1f3   :  { %4156 = vst.msk [vmem:[#allocation2 + $0x173] sm:$0x1] %vm2980_vm1, %v3964_v48  ;;  %3997 = vrot.lane.b32.xlu0 %v14393_v23, %s12934_s0 }
 0x1f4   :  { %3999 = vrot.lane.b32.xlu1 %v14385_v45, %s12934_s0 }
 0x1f5   :  { %v3390_v41 = vpop.permute.xlu0 %3389 }
 0x1f6   :  { %v3392_v44 = vpop.permute.xlu1 %3391  ;;  %3581 = vst.msk [vmem:[#allocation2 + $0x181] sm:$0x1] %vm2980_vm1, %v3390_v41  ;;  %v14471_v41 = vrot.slane %v13928_v51, %v13143_v49  ;;  %v14485_v51 = vrot.slane %v13964_v62, %v13143_v49 }
 0x1f7   :  { %3582 = vst.msk [vmem:[#allocation2 + $0x191] sm:$0x1] %vm2980_vm1, %v3392_v44  ;;  %3429 = vrot.lane.b32.xlu0 %v14439_v14, %s12932_s4  ;;  %v14479_v44 = vrot.slane %v13914_v10, %v13143_v49  ;;  %v14493_v10 = vrot.slane %v13948_v56, %v13143_v49 }
 0x1f8   :  { %3431 = vrot.lane.b32.xlu1 %v14431_v50, %s12932_s4 }
 0x1f9   :  { %v3394_v3 = vpop.permute.xlu0 %3393 }
 0x1fa   :  { %v3396_v36 = vpop.permute.xlu1 %3395  ;;  %3583 = vst.msk [vmem:[#allocation2 + $0x1a1] sm:$0x1] %vm2980_vm1, %v3394_v3 }
 0x1fb   :  { %3584 = vst.msk [vmem:[#allocation2 + $0x1b1] sm:$0x1] %vm2980_vm1, %v3396_v36  ;;  %3433 = vrot.lane.b32.xlu0 %v14453_v0, %s12932_s4 }
 0x1fc   :  { %3435 = vrot.lane.b32.xlu1 %v14445_v12, %s12932_s4 }
 0x1fd   :  { %v3678_v24 = vpop.permute.xlu0 %3677 }
 0x1fe   :  { %v3680_v1 = vpop.permute.xlu1 %3679  ;;  %3869 = vst.msk [vmem:[#allocation2 + $0x182] sm:$0x1] %vm2980_vm1, %v3678_v24 }
 0x1ff   :  { %3870 = vst.msk [vmem:[#allocation2 + $0x192] sm:$0x1] %vm2980_vm1, %v3680_v1  ;;  %3717 = vrot.lane.b32.xlu0 %v14439_v14, %s12933_s5 }
 0x200   :  { %3719 = vrot.lane.b32.xlu1 %v14431_v50, %s12933_s5 }
 0x201   :  { %v3682_v31 = vpop.permute.xlu0 %3681 }
 0x202   :  { %v3684_v48 = vpop.permute.xlu1 %3683  ;;  %3871 = vst.msk [vmem:[#allocation2 + $0x1a2] sm:$0x1] %vm2980_vm1, %v3682_v31 }
 0x203   :  { %3872 = vst.msk [vmem:[#allocation2 + $0x1b2] sm:$0x1] %vm2980_vm1, %v3684_v48  ;;  %3721 = vrot.lane.b32.xlu0 %v14453_v0, %s12933_s5 }
 0x204   :  { %3723 = vrot.lane.b32.xlu1 %v14445_v12, %s12933_s5 }
 0x205   :  { %v3966_v3 = vpop.permute.xlu0 %3965 }
 0x206   :  { %v3968_v36 = vpop.permute.xlu1 %3967  ;;  %4157 = vst.msk [vmem:[#allocation2 + $0x183] sm:$0x1] %vm2980_vm1, %v3966_v3  ;;  %v14511_v3 = vrot.slane %v14008_v32, %v13143_v49  ;;  %v14525_v32 = vrot.slane %v14036_v26, %v13143_v49 }
 0x207   :  { %4158 = vst.msk [vmem:[#allocation2 + $0x193] sm:$0x1] %vm2980_vm1, %v3968_v36  ;;  %3437 = vrot.lane.b32.xlu0 %v14479_v44, %s12932_s4  ;;  %v14519_v36 = vrot.slane %v13998_v57, %v13143_v49  ;;  %v14533_v57 = vrot.slane %v14024_v9, %v13143_v49 }
 0x208   :  { %3439 = vrot.lane.b32.xlu1 %v14471_v41, %s12932_s4 }
 0x209   :  { %v3970_v24 = vpop.permute.xlu0 %3969 }
 0x20a   :  { %v3972_v1 = vpop.permute.xlu1 %3971  ;;  %4159 = vst.msk [vmem:[#allocation2 + $0x1a3] sm:$0x1] %vm2980_vm1, %v3970_v24 }
 0x20b   :  { %4160 = vst.msk [vmem:[#allocation2 + $0x1b3] sm:$0x1] %vm2980_vm1, %v3972_v1  ;;  %3441 = vrot.lane.b32.xlu0 %v14493_v10, %s12932_s4 }
 0x20c   :  { %3443 = vrot.lane.b32.xlu1 %v14485_v51, %s12932_s4 }
 0x20d   :  { %v3398_v62 = vpop.permute.xlu0 %3397 }
 0x20e   :  { %v3400_v31 = vpop.permute.xlu1 %3399  ;;  %3585 = vst.msk [vmem:[#allocation2 + $0x1c1] sm:$0x1] %vm2980_vm1, %v3398_v62 }
 0x20f   :  { %3586 = vst.msk [vmem:[#allocation2 + $0x1d1] sm:$0x1] %vm2980_vm1, %v3400_v31  ;;  %3725 = vrot.lane.b32.xlu0 %v14479_v44, %s12933_s5 }
 0x210   :  { %3727 = vrot.lane.b32.xlu1 %v14471_v41, %s12933_s5 }
 0x211   :  { %v3402_v56 = vpop.permute.xlu0 %3401 }
 0x212   :  { %v3404_v48 = vpop.permute.xlu1 %3403  ;;  %3587 = vst.msk [vmem:[#allocation2 + $0x1e1] sm:$0x1] %vm2980_vm1, %v3402_v56 }
 0x213   :  { %3588 = vst.msk [vmem:[#allocation2 + $0x1f1] sm:$0x1] %vm2980_vm1, %v3404_v48  ;;  %3729 = vrot.lane.b32.xlu0 %v14493_v10, %s12933_s5 }
 0x214   :  { %3731 = vrot.lane.b32.xlu1 %v14485_v51, %s12933_s5 }
 0x215   :  { %v3686_v24 = vpop.permute.xlu0 %3685 }
 0x216   :  { %v3688_v1 = vpop.permute.xlu1 %3687  ;;  %3873 = vst.msk [vmem:[#allocation2 + $0x1c2] sm:$0x1] %vm2980_vm1, %v3686_v24  ;;  %v14551_v24 = vrot.slane %v14092_v5, %v13143_v49  ;;  %v14565_v5 = vrot.slane %v14120_v37, %v13143_v49 }
 0x217   :  { %3874 = vst.msk [vmem:[#allocation2 + $0x1d2] sm:$0x1] %vm2980_vm1, %v3688_v1  ;;  %3445 = vrot.lane.b32.xlu0 %v14519_v36, %s12932_s4  ;;  %v14559_v1 = vrot.slane %v14082_v8, %v13143_v49  ;;  %v14573_v8 = vrot.slane %v14108_v27, %v13143_v49 }
 0x218   :  { %3447 = vrot.lane.b32.xlu1 %v14511_v3, %s12932_s4  ;;  %17700 = vst [vmem:[#allocation100_spill] sm:$0xff] %v14551_v24 }
 0x219   :  { %v3690_v62 = vpop.permute.xlu0 %3689  ;;  %17701 = vst [vmem:[#allocation101_spill] sm:$0xff] %v14559_v1  ;;  %17702 = vst [vmem:[#allocation102_spill] sm:$0xff] %v14573_v8 }
 0x21a   :  { %v3692_v31 = vpop.permute.xlu1 %3691  ;;  %3875 = vst.msk [vmem:[#allocation2 + $0x1e2] sm:$0x1] %vm2980_vm1, %v3690_v62 }
 0x21b   :  { %3876 = vst.msk [vmem:[#allocation2 + $0x1f2] sm:$0x1] %vm2980_vm1, %v3692_v31  ;;  %3449 = vrot.lane.b32.xlu0 %v14533_v57, %s12932_s4 }
 0x21c   :  { %3451 = vrot.lane.b32.xlu1 %v14525_v32, %s12932_s4 }
 0x21d   :  { %v3974_v26 = vpop.permute.xlu0 %3973 }
 0x21e   :  { %v3976_v56 = vpop.permute.xlu1 %3975  ;;  %4161 = vst.msk [vmem:[#allocation2 + $0x1c3] sm:$0x1] %vm2980_vm1, %v3974_v26 }
 0x21f   :  { %4162 = vst.msk [vmem:[#allocation2 + $0x1d3] sm:$0x1] %vm2980_vm1, %v3976_v56  ;;  %3733 = vrot.lane.b32.xlu0 %v14519_v36, %s12933_s5 }
 0x220   :  { %3735 = vrot.lane.b32.xlu1 %v14511_v3, %s12933_s5 }
 0x221   :  { %v3978_v9 = vpop.permute.xlu0 %3977 }
 0x222   :  { %v3980_v48 = vpop.permute.xlu1 %3979  ;;  %4163 = vst.msk [vmem:[#allocation2 + $0x1e3] sm:$0x1] %vm2980_vm1, %v3978_v9 }
 0x223   :  { %4164 = vst.msk [vmem:[#allocation2 + $0x1f3] sm:$0x1] %vm2980_vm1, %v3980_v48  ;;  %3737 = vrot.lane.b32.xlu0 %v14533_v57, %s12933_s5 }
 0x224   :  { %3739 = vrot.lane.b32.xlu1 %v14525_v32, %s12933_s5 }
 0x225   :  { %v3406_v62 = vpop.permute.xlu0 %3405 }
 0x226   :  { %v3408_v31 = vpop.permute.xlu1 %3407  ;;  %3589 = vst.msk [vmem:[#allocation2 + $0x201] sm:$0x1] %vm2980_vm1, %v3406_v62  ;;  %v14591_v62 = vrot.slane %v14164_v54, %v13143_v49  ;;  %v14605_v54 = vrot.slane %v14200_v7, %v13143_v49 }
 0x227   :  { %3590 = vst.msk [vmem:[#allocation2 + $0x211] sm:$0x1] %vm2980_vm1, %v3408_v31  ;;  %3453 = vrot.lane.b32.xlu0 %v14559_v1, %s12932_s4  ;;  %v14599_v31 = vrot.slane %v14150_v25, %v13143_v49  ;;  %v14613_v25 = vrot.slane %v14184_v30, %v13143_v49 }
 0x228   :  { %3455 = vrot.lane.b32.xlu1 %v14551_v24, %s12932_s4  ;;  %17703 = vst [vmem:[#allocation103_spill] sm:$0xff] %v14591_v62  ;;  %17705 = vst [vmem:[#allocation105_spill] sm:$0xff] %v14605_v54 }
 0x229   :  { %v3410_v26 = vpop.permute.xlu0 %3409  ;;  %17704 = vst [vmem:[#allocation104_spill] sm:$0xff] %v14599_v31  ;;  %17706 = vst [vmem:[#allocation106_spill] sm:$0xff] %v14613_v25 }
 0x22a   :  { %v3412_v56 = vpop.permute.xlu1 %3411  ;;  %3591 = vst.msk [vmem:[#allocation2 + $0x221] sm:$0x1] %vm2980_vm1, %v3410_v26 }
 0x22b   :  { %3592 = vst.msk [vmem:[#allocation2 + $0x231] sm:$0x1] %vm2980_vm1, %v3412_v56  ;;  %3457 = vrot.lane.b32.xlu0 %v14573_v8, %s12932_s4 }
 0x22c   :  { %3459 = vrot.lane.b32.xlu1 %v14565_v5, %s12932_s4 }
 0x22d   :  { %v3694_v37 = vpop.permute.xlu0 %3693 }
 0x22e   :  { %v3696_v9 = vpop.permute.xlu1 %3695  ;;  %3877 = vst.msk [vmem:[#allocation2 + $0x202] sm:$0x1] %vm2980_vm1, %v3694_v37 }
 0x22f   :  { %3878 = vst.msk [vmem:[#allocation2 + $0x212] sm:$0x1] %vm2980_vm1, %v3696_v9  ;;  %3741 = vrot.lane.b32.xlu0 %v14559_v1, %s12933_s5 }
 0x230   :  { %3743 = vrot.lane.b32.xlu1 %v14551_v24, %s12933_s5 }
 0x231   :  { %v3698_v27 = vpop.permute.xlu0 %3697 }
 0x232   :  { %v3700_v48 = vpop.permute.xlu1 %3699  ;;  %3879 = vst.msk [vmem:[#allocation2 + $0x222] sm:$0x1] %vm2980_vm1, %v3698_v27 }
 0x233   :  { %3880 = vst.msk [vmem:[#allocation2 + $0x232] sm:$0x1] %vm2980_vm1, %v3700_v48  ;;  %3745 = vrot.lane.b32.xlu0 %v14573_v8, %s12933_s5 }
 0x234   :  { %3747 = vrot.lane.b32.xlu1 %v14565_v5, %s12933_s5 }
 0x235   :  { %v3982_v26 = vpop.permute.xlu0 %3981 }
 0x236   :  { %v3984_v56 = vpop.permute.xlu1 %3983  ;;  %4165 = vst.msk [vmem:[#allocation2 + $0x203] sm:$0x1] %vm2980_vm1, %v3982_v26  ;;  %v14631_v26 = vrot.slane %v14244_v21, %v13143_v49  ;;  %v14645_v21 = vrot.slane %v14272_v2, %v13143_v49 }
 0x237   :  { %4166 = vst.msk [vmem:[#allocation2 + $0x213] sm:$0x1] %vm2980_vm1, %v3984_v56  ;;  %3461 = vrot.lane.b32.xlu0 %v14599_v31, %s12932_s4  ;;  %v14639_v56 = vrot.slane %v14234_v17, %v13143_v49  ;;  %v14653_v17 = vrot.slane %v14260_v60, %v13143_v49 }
 0x238   :  { %3463 = vrot.lane.b32.xlu1 %v14591_v62, %s12932_s4  ;;  %17707 = vst [vmem:[#allocation107_spill] sm:$0xff] %v14631_v26  ;;  %17709 = vst [vmem:[#allocation109_spill] sm:$0xff] %v14645_v21 }
 0x239   :  { %v3986_v37 = vpop.permute.xlu0 %3985  ;;  %17708 = vst [vmem:[#allocation108_spill] sm:$0xff] %v14639_v56  ;;  %17710 = vst [vmem:[#allocation110_spill] sm:$0xff] %v14653_v17 }
 0x23a   :  { %v3988_v9 = vpop.permute.xlu1 %3987  ;;  %4167 = vst.msk [vmem:[#allocation2 + $0x223] sm:$0x1] %vm2980_vm1, %v3986_v37 }
 0x23b   :  { %4168 = vst.msk [vmem:[#allocation2 + $0x233] sm:$0x1] %vm2980_vm1, %v3988_v9  ;;  %3465 = vrot.lane.b32.xlu0 %v14613_v25, %s12932_s4 }
 0x23c   :  { %3467 = vrot.lane.b32.xlu1 %v14605_v54, %s12932_s4 }
 0x23d   :  { %v3414_v7 = vpop.permute.xlu0 %3413 }
 0x23e   :  { %v3416_v27 = vpop.permute.xlu1 %3415  ;;  %3593 = vst.msk [vmem:[#allocation2 + $0x241] sm:$0x1] %vm2980_vm1, %v3414_v7 }
 0x23f   :  { %3594 = vst.msk [vmem:[#allocation2 + $0x251] sm:$0x1] %vm2980_vm1, %v3416_v27  ;;  %3749 = vrot.lane.b32.xlu0 %v14599_v31, %s12933_s5 }
 0x240   :  { %3751 = vrot.lane.b32.xlu1 %v14591_v62, %s12933_s5 }
 0x241   :  { %v3418_v30 = vpop.permute.xlu0 %3417 }
 0x242   :  { %v3420_v48 = vpop.permute.xlu1 %3419  ;;  %3595 = vst.msk [vmem:[#allocation2 + $0x261] sm:$0x1] %vm2980_vm1, %v3418_v30 }
 0x243   :  { %3596 = vst.msk [vmem:[#allocation2 + $0x271] sm:$0x1] %vm2980_vm1, %v3420_v48  ;;  %3753 = vrot.lane.b32.xlu0 %v14613_v25, %s12933_s5 }
 0x244   :  { %3755 = vrot.lane.b32.xlu1 %v14605_v54, %s12933_s5 }
 0x245   :  { %v3702_v37 = vpop.permute.xlu0 %3701 }
 0x246   :  { %v3704_v9 = vpop.permute.xlu1 %3703  ;;  %3881 = vst.msk [vmem:[#allocation2 + $0x242] sm:$0x1] %vm2980_vm1, %v3702_v37  ;;  %v14671_v37 = vrot.slane %v14328_v58, %v13143_v49  ;;  %v14685_v58 = vrot.slane %v14353_v29, %v13143_v49 }
 0x247   :  { %3882 = vst.msk [vmem:[#allocation2 + $0x252] sm:$0x1] %vm2980_vm1, %v3704_v9  ;;  %3469 = vrot.lane.b32.xlu0 %v14639_v56, %s12932_s4  ;;  %v14679_v9 = vrot.slane %v14318_v52, %v13143_v49  ;;  %v14693_v52 = vrot.slane %v14349_v42, %v13143_v49 }
 0x248   :  { %3471 = vrot.lane.b32.xlu1 %v14631_v26, %s12932_s4  ;;  %17711 = vst [vmem:[#allocation111_spill] sm:$0xff] %v14671_v37  ;;  %17713 = vst [vmem:[#allocation113_spill] sm:$0xff] %v14685_v58 }
 0x249   :  { %v3706_v7 = vpop.permute.xlu0 %3705  ;;  %17712 = vst [vmem:[#allocation112_spill] sm:$0xff] %v14679_v9  ;;  %17714 = vst [vmem:[#allocation114_spill] sm:$0xff] %v14693_v52 }
 0x24a   :  { %v3708_v27 = vpop.permute.xlu1 %3707  ;;  %3883 = vst.msk [vmem:[#allocation2 + $0x262] sm:$0x1] %vm2980_vm1, %v3706_v7 }
 0x24b   :  { %3884 = vst.msk [vmem:[#allocation2 + $0x272] sm:$0x1] %vm2980_vm1, %v3708_v27  ;;  %3473 = vrot.lane.b32.xlu0 %v14653_v17, %s12932_s4 }
 0x24c   :  { %3475 = vrot.lane.b32.xlu1 %v14645_v21, %s12932_s4 }
 0x24d   :  { %v3990_v2 = vpop.permute.xlu0 %3989 }
 0x24e   :  { %v3992_v30 = vpop.permute.xlu1 %3991  ;;  %4169 = vst.msk [vmem:[#allocation2 + $0x243] sm:$0x1] %vm2980_vm1, %v3990_v2 }
 0x24f   :  { %4170 = vst.msk [vmem:[#allocation2 + $0x253] sm:$0x1] %vm2980_vm1, %v3992_v30  ;;  %3757 = vrot.lane.b32.xlu0 %v14639_v56, %s12933_s5 }
 0x250   :  { %3759 = vrot.lane.b32.xlu1 %v14631_v26, %s12933_s5 }
 0x251   :  { %v3994_v60 = vpop.permute.xlu0 %3993 }
 0x252   :  { %v3996_v48 = vpop.permute.xlu1 %3995  ;;  %4171 = vst.msk [vmem:[#allocation2 + $0x263] sm:$0x1] %vm2980_vm1, %v3994_v60 }
 0x253   :  { %4172 = vst.msk [vmem:[#allocation2 + $0x273] sm:$0x1] %vm2980_vm1, %v3996_v48  ;;  %3761 = vrot.lane.b32.xlu0 %v14653_v17, %s12933_s5 }
 0x254   :  { %3763 = vrot.lane.b32.xlu1 %v14645_v21, %s12933_s5 }
 0x255   :  { %v3422_v7 = vpop.permute.xlu0 %3421 }
 0x256   :  { %v3424_v27 = vpop.permute.xlu1 %3423  ;;  %3597 = vst.msk [vmem:[#allocation2 + $0x281] sm:$0x1] %vm2980_vm1, %v3422_v7 }
 0x257   :  { %3598 = vst.msk [vmem:[#allocation2 + $0x291] sm:$0x1] %vm2980_vm1, %v3424_v27  ;;  %3477 = vrot.lane.b32.xlu0 %v14679_v9, %s12932_s4 }
 0x258   :  { %3479 = vrot.lane.b32.xlu1 %v14671_v37, %s12932_s4 }
 0x259   :  { %v3426_v2 = vpop.permute.xlu0 %3425 }
 0x25a   :  { %v3428_v30 = vpop.permute.xlu1 %3427  ;;  %3599 = vst.msk [vmem:[#allocation2 + $0x2a1] sm:$0x1] %vm2980_vm1, %v3426_v2 }
 0x25b   :  { %3600 = vst.msk [vmem:[#allocation2 + $0x2b1] sm:$0x1] %vm2980_vm1, %v3428_v30  ;;  %3481 = vrot.lane.b32.xlu0 %v14693_v52, %s12932_s4 }
 0x25c   :  { %3483 = vrot.lane.b32.xlu1 %v14685_v58, %s12932_s4 }
 0x25d   :  { %v3710_v29 = vpop.permute.xlu0 %3709 }
 0x25e   :  { %v3712_v60 = vpop.permute.xlu1 %3711  ;;  %3885 = vst.msk [vmem:[#allocation2 + $0x282] sm:$0x1] %vm2980_vm1, %v3710_v29 }
 0x25f   :  { %3886 = vst.msk [vmem:[#allocation2 + $0x292] sm:$0x1] %vm2980_vm1, %v3712_v60  ;;  %3765 = vrot.lane.b32.xlu0 %v14679_v9, %s12933_s5 }
 0x260   :  { %3767 = vrot.lane.b32.xlu1 %v14671_v37, %s12933_s5 }
 0x261   :  { %v3714_v42 = vpop.permute.xlu0 %3713 }
 0x262   :  { %v3716_v48 = vpop.permute.xlu1 %3715  ;;  %3887 = vst.msk [vmem:[#allocation2 + $0x2a2] sm:$0x1] %vm2980_vm1, %v3714_v42 }
 0x263   :  { %3888 = vst.msk [vmem:[#allocation2 + $0x2b2] sm:$0x1] %vm2980_vm1, %v3716_v48  ;;  %3769 = vrot.lane.b32.xlu0 %v14693_v52, %s12933_s5 }
 0x264   :  { %3771 = vrot.lane.b32.xlu1 %v14685_v58, %s12933_s5 }
 0x265   :  { %v3998_v7 = vpop.permute.xlu0 %3997 }
 0x266   :  { %v4000_v27 = vpop.permute.xlu1 %3999  ;;  %4173 = vst.msk [vmem:[#allocation2 + $0x283] sm:$0x1] %vm2980_vm1, %v3998_v7 }
 0x267   :  { %4174 = vst.msk [vmem:[#allocation2 + $0x293] sm:$0x1] %vm2980_vm1, %v4000_v27  ;;  %4001 = vrot.lane.b32.xlu0 %v14407_v22, %s12934_s0 }
 0x268   :  { %4003 = vrot.lane.b32.xlu1 %v14399_v59, %s12934_s0 }
 0x269   :  { %v3430_v2 = vpop.permute.xlu0 %3429 }
 0x26a   :  { %v3432_v30 = vpop.permute.xlu1 %3431  ;;  %3601 = vst.msk [vmem:[#allocation2 + $0x2c1] sm:$0x1] %vm2980_vm1, %v3430_v2 }
 0x26b   :  { %3602 = vst.msk [vmem:[#allocation2 + $0x2d1] sm:$0x1] %vm2980_vm1, %v3432_v30  ;;  %4005 = vrot.lane.b32.xlu0 %v14439_v14, %s12934_s0 }
 0x26c   :  { %4007 = vrot.lane.b32.xlu1 %v14431_v50, %s12934_s0 }
 0x26d   :  { %v3434_v29 = vpop.permute.xlu0 %3433 }
 0x26e   :  { %v3436_v60 = vpop.permute.xlu1 %3435  ;;  %3603 = vst.msk [vmem:[#allocation2 + $0x2e1] sm:$0x1] %vm2980_vm1, %v3434_v29 }
 0x26f   :  { %3604 = vst.msk [vmem:[#allocation2 + $0x2f1] sm:$0x1] %vm2980_vm1, %v3436_v60  ;;  %4009 = vrot.lane.b32.xlu0 %v14453_v0, %s12934_s0 }
 0x270   :  { %4011 = vrot.lane.b32.xlu1 %v14445_v12, %s12934_s0 }
 0x271   :  { %v3718_v42 = vpop.permute.xlu0 %3717 }
 0x272   :  { %v3720_v48 = vpop.permute.xlu1 %3719  ;;  %3889 = vst.msk [vmem:[#allocation2 + $0x2c2] sm:$0x1] %vm2980_vm1, %v3718_v42 }
 0x273   :  { %3890 = vst.msk [vmem:[#allocation2 + $0x2d2] sm:$0x1] %vm2980_vm1, %v3720_v48  ;;  %4013 = vrot.lane.b32.xlu0 %v14479_v44, %s12934_s0 }
 0x274   :  { %4015 = vrot.lane.b32.xlu1 %v14471_v41, %s12934_s0 }
 0x275   :  { %v3722_v7 = vpop.permute.xlu0 %3721 }
 0x276   :  { %v3724_v27 = vpop.permute.xlu1 %3723  ;;  %3891 = vst.msk [vmem:[#allocation2 + $0x2e2] sm:$0x1] %vm2980_vm1, %v3722_v7 }
 0x277   :  { %3892 = vst.msk [vmem:[#allocation2 + $0x2f2] sm:$0x1] %vm2980_vm1, %v3724_v27  ;;  %4017 = vrot.lane.b32.xlu0 %v14493_v10, %s12934_s0 }
 0x278   :  { %4019 = vrot.lane.b32.xlu1 %v14485_v51, %s12934_s0 }
 0x279   :  { %v3438_v2 = vpop.permute.xlu0 %3437 }
 0x27a   :  { %v3440_v30 = vpop.permute.xlu1 %3439  ;;  %3605 = vst.msk [vmem:[#allocation2 + $0x301] sm:$0x1] %vm2980_vm1, %v3438_v2 }
 0x27b   :  { %3606 = vst.msk [vmem:[#allocation2 + $0x311] sm:$0x1] %vm2980_vm1, %v3440_v30  ;;  %4021 = vrot.lane.b32.xlu0 %v14519_v36, %s12934_s0 }
 0x27c   :  { %4023 = vrot.lane.b32.xlu1 %v14511_v3, %s12934_s0 }
 0x27d   :  { %v3442_v29 = vpop.permute.xlu0 %3441 }
 0x27e   :  { %v3444_v60 = vpop.permute.xlu1 %3443  ;;  %3607 = vst.msk [vmem:[#allocation2 + $0x321] sm:$0x1] %vm2980_vm1, %v3442_v29 }
 0x27f   :  { %3608 = vst.msk [vmem:[#allocation2 + $0x331] sm:$0x1] %vm2980_vm1, %v3444_v60  ;;  %4025 = vrot.lane.b32.xlu0 %v14533_v57, %s12934_s0 }
 0x280   :  { %4027 = vrot.lane.b32.xlu1 %v14525_v32, %s12934_s0 }
 0x281   :  { %v3726_v42 = vpop.permute.xlu0 %3725 }
 0x282   :  { %v3728_v48 = vpop.permute.xlu1 %3727  ;;  %3893 = vst.msk [vmem:[#allocation2 + $0x302] sm:$0x1] %vm2980_vm1, %v3726_v42 }
 0x283   :  { %3894 = vst.msk [vmem:[#allocation2 + $0x312] sm:$0x1] %vm2980_vm1, %v3728_v48  ;;  %4029 = vrot.lane.b32.xlu0 %v14559_v1, %s12934_s0  ;;  %v17733_v1 = vld [vmem:[#allocation88_spill] sm:$0xff] }
 0x284   :  { %4031 = vrot.lane.b32.xlu1 %v14551_v24, %s12934_s0 }
 0x285   :  { %v3730_v7 = vpop.permute.xlu0 %3729 }
 0x286   :  { %v3732_v27 = vpop.permute.xlu1 %3731  ;;  %3895 = vst.msk [vmem:[#allocation2 + $0x322] sm:$0x1] %vm2980_vm1, %v3730_v7 }
 0x287   :  { %3896 = vst.msk [vmem:[#allocation2 + $0x332] sm:$0x1] %vm2980_vm1, %v3732_v27  ;;  %4033 = vrot.lane.b32.xlu0 %v14573_v8, %s12934_s0 }
 0x288   :  { %4035 = vrot.lane.b32.xlu1 %v14565_v5, %s12934_s0 }
 0x289   :  { %v3446_v2 = vpop.permute.xlu0 %3445 }
 0x28a   :  { %v3448_v30 = vpop.permute.xlu1 %3447  ;;  %3609 = vst.msk [vmem:[#allocation2 + $0x341] sm:$0x1] %vm2980_vm1, %v3446_v2 }
 0x28b   :  { %3610 = vst.msk [vmem:[#allocation2 + $0x351] sm:$0x1] %vm2980_vm1, %v3448_v30  ;;  %4037 = vrot.lane.b32.xlu0 %v14599_v31, %s12934_s0  ;;  %v17729_v31 = vld [vmem:[#allocation78_spill] sm:$0xff] }
 0x28c   :  { %4039 = vrot.lane.b32.xlu1 %v14591_v62, %s12934_s0  ;;  %v17730_v62 = vld [vmem:[#allocation86_spill] sm:$0xff] }
 0x28d   :  { %v3450_v29 = vpop.permute.xlu0 %3449 }
 0x28e   :  { %v3452_v60 = vpop.permute.xlu1 %3451  ;;  %3611 = vst.msk [vmem:[#allocation2 + $0x361] sm:$0x1] %vm2980_vm1, %v3450_v29 }
 0x28f   :  { %3612 = vst.msk [vmem:[#allocation2 + $0x371] sm:$0x1] %vm2980_vm1, %v3452_v60  ;;  %4041 = vrot.lane.b32.xlu0 %v14613_v25, %s12934_s0  ;;  %v17731_v25 = vld [vmem:[#allocation84_spill] sm:$0xff] }
 0x290   :  { %4043 = vrot.lane.b32.xlu1 %v14605_v54, %s12934_s0  ;;  %v17732_v54 = vld [vmem:[#allocation90_spill] sm:$0xff] }
 0x291   :  { %v3734_v42 = vpop.permute.xlu0 %3733 }
 0x292   :  { %v3736_v48 = vpop.permute.xlu1 %3735  ;;  %3897 = vst.msk [vmem:[#allocation2 + $0x342] sm:$0x1] %vm2980_vm1, %v3734_v42 }
 0x293   :  { %3898 = vst.msk [vmem:[#allocation2 + $0x352] sm:$0x1] %vm2980_vm1, %v3736_v48  ;;  %4045 = vrot.lane.b32.xlu0 %v14639_v56, %s12934_s0  ;;  %v17725_v56 = vld [vmem:[#allocation68_spill] sm:$0xff] }
 0x294   :  { %4047 = vrot.lane.b32.xlu1 %v14631_v26, %s12934_s0  ;;  %v17726_v26 = vld [vmem:[#allocation77_spill] sm:$0xff] }
 0x295   :  { %v3738_v7 = vpop.permute.xlu0 %3737 }
 0x296   :  { %v3740_v27 = vpop.permute.xlu1 %3739  ;;  %3899 = vst.msk [vmem:[#allocation2 + $0x362] sm:$0x1] %vm2980_vm1, %v3738_v7 }
 0x297   :  { %3900 = vst.msk [vmem:[#allocation2 + $0x372] sm:$0x1] %vm2980_vm1, %v3740_v27  ;;  %4049 = vrot.lane.b32.xlu0 %v14653_v17, %s12934_s0  ;;  %v17727_v17 = vld [vmem:[#allocation76_spill] sm:$0xff] }
 0x298   :  { %4051 = vrot.lane.b32.xlu1 %v14645_v21, %s12934_s0  ;;  %v17728_v21 = vld [vmem:[#allocation79_spill] sm:$0xff] }
 0x299   :  { %v3454_v2 = vpop.permute.xlu0 %3453 }
 0x29a   :  { %v3456_v30 = vpop.permute.xlu1 %3455  ;;  %3613 = vst.msk [vmem:[#allocation2 + $0x381] sm:$0x1] %vm2980_vm1, %v3454_v2 }
 0x29b   :  { %3614 = vst.msk [vmem:[#allocation2 + $0x391] sm:$0x1] %vm2980_vm1, %v3456_v30  ;;  %4053 = vrot.lane.b32.xlu0 %v14679_v9, %s12934_s0  ;;  %v17719_v9 = vld [vmem:[#allocation56_spill] sm:$0xff] }
 0x29c   :  { %4055 = vrot.lane.b32.xlu1 %v14671_v37, %s12934_s0  ;;  %v17720_v37 = vld [vmem:[#allocation59_spill] sm:$0xff] }
 0x29d   :  { %v3458_v29 = vpop.permute.xlu0 %3457 }
 0x29e   :  { %v3460_v60 = vpop.permute.xlu1 %3459  ;;  %3615 = vst.msk [vmem:[#allocation2 + $0x3a1] sm:$0x1] %vm2980_vm1, %v3458_v29 }
 0x29f   :  { %3616 = vst.msk [vmem:[#allocation2 + $0x3b1] sm:$0x1] %vm2980_vm1, %v3460_v60  ;;  %4057 = vrot.lane.b32.xlu0 %v14693_v52, %s12934_s0  ;;  %v17722_v52 = vld [vmem:[#allocation66_spill] sm:$0xff] }
 0x2a0   :  { %4059 = vrot.lane.b32.xlu1 %v14685_v58, %s12934_s0  ;;  %v17724_v58 = vld [vmem:[#allocation70_spill] sm:$0xff] }
 0x2a1   :  { %v3742_v42 = vpop.permute.xlu0 %3741 }
 0x2a2   :  { %v3744_v48 = vpop.permute.xlu1 %3743  ;;  %3901 = vst.msk [vmem:[#allocation2 + $0x382] sm:$0x1] %vm2980_vm1, %v3742_v42 }
 0x2a3   :  { %3902 = vst.msk [vmem:[#allocation2 + $0x392] sm:$0x1] %vm2980_vm1, %v3744_v48  ;;  %4205 = vrot.lane.b32.xlu0 %v13160_v4, %s12935_s10 }
 0x2a4   :  { %4207 = vrot.lane.b32.xlu1 %v13212_v34, %s12935_s10 }
 0x2a5   :  { %v3746_v7 = vpop.permute.xlu0 %3745 }
 0x2a6   :  { %v3748_v27 = vpop.permute.xlu1 %3747  ;;  %3903 = vst.msk [vmem:[#allocation2 + $0x3a2] sm:$0x1] %vm2980_vm1, %v3746_v7 }
 0x2a7   :  { %3904 = vst.msk [vmem:[#allocation2 + $0x3b2] sm:$0x1] %vm2980_vm1, %v3748_v27  ;;  %4209 = vrot.lane.b32.xlu0 %v13165_v6, %s12935_s10 }
 0x2a8   :  { %4211 = vrot.lane.b32.xlu1 %v13188_v13, %s12935_s10 }
 0x2a9   :  { %v3462_v2 = vpop.permute.xlu0 %3461 }
 0x2aa   :  { %v3464_v30 = vpop.permute.xlu1 %3463  ;;  %3617 = vst.msk [vmem:[#allocation2 + $0x3c1] sm:$0x1] %vm2980_vm1, %v3462_v2 }
 0x2ab   :  { %3618 = vst.msk [vmem:[#allocation2 + $0x3d1] sm:$0x1] %vm2980_vm1, %v3464_v30  ;;  %4213 = vrot.lane.b32.xlu0 %v13324_v33, %s12935_s10 }
 0x2ac   :  { %4215 = vrot.lane.b32.xlu1 %v13305_v16, %s12935_s10 }
 0x2ad   :  { %v3466_v29 = vpop.permute.xlu0 %3465 }
 0x2ae   :  { %v3468_v60 = vpop.permute.xlu1 %3467  ;;  %3619 = vst.msk [vmem:[#allocation2 + $0x3e1] sm:$0x1] %vm2980_vm1, %v3466_v29 }
 0x2af   :  { %3620 = vst.msk [vmem:[#allocation2 + $0x3f1] sm:$0x1] %vm2980_vm1, %v3468_v60  ;;  %4217 = vrot.lane.b32.xlu0 %v13367_v46, %s12935_s10 }
 0x2b0   :  { %4219 = vrot.lane.b32.xlu1 %v13349_v43, %s12935_s10 }
 0x2b1   :  { %v3750_v42 = vpop.permute.xlu0 %3749 }
 0x2b2   :  { %v3752_v48 = vpop.permute.xlu1 %3751  ;;  %3905 = vst.msk [vmem:[#allocation2 + $0x3c2] sm:$0x1] %vm2980_vm1, %v3750_v42 }
 0x2b3   :  { %3906 = vst.msk [vmem:[#allocation2 + $0x3d2] sm:$0x1] %vm2980_vm1, %v3752_v48  ;;  %4221 = vrot.lane.b32.xlu0 %v13496_v53, %s12935_s10 }
 0x2b4   :  { %4223 = vrot.lane.b32.xlu1 %v13477_v47, %s12935_s10 }
 0x2b5   :  { %v3754_v7 = vpop.permute.xlu0 %3753 }
 0x2b6   :  { %v3756_v27 = vpop.permute.xlu1 %3755  ;;  %3907 = vst.msk [vmem:[#allocation2 + $0x3e2] sm:$0x1] %vm2980_vm1, %v3754_v7  ;;  %v17715_v7 = vld [vmem:[#allocation49_spill] sm:$0xff] }
 0x2b7   :  { %3908 = vst.msk [vmem:[#allocation2 + $0x3f2] sm:$0x1] %vm2980_vm1, %v3756_v27  ;;  %4225 = vrot.lane.b32.xlu0 %v13539_v61, %s12935_s10 }
 0x2b8   :  { %4227 = vrot.lane.b32.xlu1 %v13521_v55, %s12935_s10 }
 0x2b9   :  { %v3470_v2 = vpop.permute.xlu0 %3469 }
 0x2ba   :  { %v3472_v30 = vpop.permute.xlu1 %3471  ;;  %3621 = vst.msk [vmem:[#allocation2 + $0x401] sm:$0x1] %vm2980_vm1, %v3470_v2 }
 0x2bb   :  { %3622 = vst.msk [vmem:[#allocation2 + $0x411] sm:$0x1] %vm2980_vm1, %v3472_v30  ;;  %4229 = vrot.lane.b32.xlu0 %v13655_v19, %s12935_s10  ;;  %v17716_v30 = vld [vmem:[#allocation51_spill] sm:$0xff] }
 0x2bc   :  { %4231 = vrot.lane.b32.xlu1 %v13647_v18, %s12935_s10 }
 0x2bd   :  { %v3474_v29 = vpop.permute.xlu0 %3473 }
 0x2be   :  { %v3476_v60 = vpop.permute.xlu1 %3475  ;;  %3623 = vst.msk [vmem:[#allocation2 + $0x421] sm:$0x1] %vm2980_vm1, %v3474_v29  ;;  %v17717_v29 = vld [vmem:[#allocation50_spill] sm:$0xff] }
 0x2bf   :  { %3624 = vst.msk [vmem:[#allocation2 + $0x431] sm:$0x1] %vm2980_vm1, %v3476_v60  ;;  %4233 = vrot.lane.b32.xlu0 %v13667_v35, %s12935_s10 }
 0x2c0   :  { %4235 = vrot.lane.b32.xlu1 %v13659_v20, %s12935_s10 }
 0x2c1   :  { %v3758_v42 = vpop.permute.xlu0 %3757 }
 0x2c2   :  { %v3760_v48 = vpop.permute.xlu1 %3759  ;;  %3909 = vst.msk [vmem:[#allocation2 + $0x402] sm:$0x1] %vm2980_vm1, %v3758_v42 }
 0x2c3   :  { %3910 = vst.msk [vmem:[#allocation2 + $0x412] sm:$0x1] %vm2980_vm1, %v3760_v48  ;;  %4237 = vrot.lane.b32.xlu0 %v13739_v63, %s12935_s10  ;;  %v17718_v48 = vld [vmem:[#allocation57_spill] sm:$0xff] }
 0x2c4   :  { %4239 = vrot.lane.b32.xlu1 %v17715_v7, %s12935_s10 }
 0x2c5   :  { %v3762_v27 = vpop.permute.xlu0 %3761 }
 0x2c6   :  { %v3764_v2 = vpop.permute.xlu1 %3763  ;;  %3911 = vst.msk [vmem:[#allocation2 + $0x422] sm:$0x1] %vm2980_vm1, %v3762_v27 }
 0x2c7   :  { %3912 = vst.msk [vmem:[#allocation2 + $0x432] sm:$0x1] %vm2980_vm1, %v3764_v2  ;;  %4241 = vrot.lane.b32.xlu0 %v17716_v30, %s12935_s10 }
 0x2c8   :  { %4243 = vrot.lane.b32.xlu1 %v17717_v29, %s12935_s10 }
 0x2c9   :  { %v3478_v60 = vpop.permute.xlu0 %3477 }
 0x2ca   :  { %v3480_v42 = vpop.permute.xlu1 %3479  ;;  %3625 = vst.msk [vmem:[#allocation2 + $0x441] sm:$0x1] %vm2980_vm1, %v3478_v60 }
 0x2cb   :  { %3626 = vst.msk [vmem:[#allocation2 + $0x451] sm:$0x1] %vm2980_vm1, %v3480_v42  ;;  %4245 = vrot.lane.b32.xlu0 %v17718_v48, %s12935_s10 }
 0x2cc   :  { %4247 = vrot.lane.b32.xlu1 %v17719_v9, %s12935_s10 }
 0x2cd   :  { %v3482_v27 = vpop.permute.xlu0 %3481 }
 0x2ce   :  { %v3484_v2 = vpop.permute.xlu1 %3483  ;;  %3627 = vst.msk [vmem:[#allocation2 + $0x461] sm:$0x1] %vm2980_vm1, %v3482_v27 }
 0x2cf   :  { %3628 = vst.msk [vmem:[#allocation2 + $0x471] sm:$0x1] %vm2980_vm1, %v3484_v2  ;;  %4249 = vrot.lane.b32.xlu0 %v17720_v37, %s12935_s10 }
 0x2d0   :  { %4251 = vrot.lane.b32.xlu1 %v17721_v38, %s12935_s10 }
 0x2d1   :  { %v3766_v60 = vpop.permute.xlu0 %3765 }
 0x2d2   :  { %v3768_v42 = vpop.permute.xlu1 %3767  ;;  %3913 = vst.msk [vmem:[#allocation2 + $0x442] sm:$0x1] %vm2980_vm1, %v3766_v60 }
 0x2d3   :  { %3914 = vst.msk [vmem:[#allocation2 + $0x452] sm:$0x1] %vm2980_vm1, %v3768_v42  ;;  %4253 = vrot.lane.b32.xlu0 %v17722_v52, %s12935_s10 }
 0x2d4   :  { %4255 = vrot.lane.b32.xlu1 %v17723_v15, %s12935_s10 }
 0x2d5   :  { %v3770_v27 = vpop.permute.xlu0 %3769 }
 0x2d6   :  { %v3772_v2 = vpop.permute.xlu1 %3771  ;;  %3915 = vst.msk [vmem:[#allocation2 + $0x462] sm:$0x1] %vm2980_vm1, %v3770_v27 }
 0x2d7   :  { %3916 = vst.msk [vmem:[#allocation2 + $0x472] sm:$0x1] %vm2980_vm1, %v3772_v2  ;;  %4257 = vrot.lane.b32.xlu0 %v17724_v58, %s12935_s10 }
 0x2d8   :  { %4259 = vrot.lane.b32.xlu1 %v17725_v56, %s12935_s10 }
 0x2d9   :  { %v4002_v60 = vpop.permute.xlu0 %4001 }
 0x2da   :  { %v4004_v42 = vpop.permute.xlu1 %4003  ;;  %4175 = vst.msk [vmem:[#allocation2 + $0x2a3] sm:$0x1] %vm2980_vm1, %v4002_v60 }
 0x2db   :  { %4176 = vst.msk [vmem:[#allocation2 + $0x2b3] sm:$0x1] %vm2980_vm1, %v4004_v42  ;;  %4261 = vrot.lane.b32.xlu0 %v17726_v26, %s12935_s10 }
 0x2dc   :  { %4263 = vrot.lane.b32.xlu1 %v17727_v17, %s12935_s10 }
 0x2dd   :  { %v4006_v27 = vpop.permute.xlu0 %4005 }
 0x2de   :  { %v4008_v2 = vpop.permute.xlu1 %4007  ;;  %4177 = vst.msk [vmem:[#allocation2 + $0x2c3] sm:$0x1] %vm2980_vm1, %v4006_v27 }
 0x2df   :  { %4178 = vst.msk [vmem:[#allocation2 + $0x2d3] sm:$0x1] %vm2980_vm1, %v4008_v2  ;;  %4265 = vrot.lane.b32.xlu0 %v17728_v21, %s12935_s10 }
 0x2e0   :  { %4267 = vrot.lane.b32.xlu1 %v17729_v31, %s12935_s10 }
 0x2e1   :  { %v4010_v60 = vpop.permute.xlu0 %4009 }
 0x2e2   :  { %v4012_v42 = vpop.permute.xlu1 %4011  ;;  %4179 = vst.msk [vmem:[#allocation2 + $0x2e3] sm:$0x1] %vm2980_vm1, %v4010_v60 }
 0x2e3   :  { %4180 = vst.msk [vmem:[#allocation2 + $0x2f3] sm:$0x1] %vm2980_vm1, %v4012_v42  ;;  %4269 = vrot.lane.b32.xlu0 %v17730_v62, %s12935_s10 }
 0x2e4   :  { %4271 = vrot.lane.b32.xlu1 %v17731_v25, %s12935_s10 }
 0x2e5   :  { %v4014_v27 = vpop.permute.xlu0 %4013 }
 0x2e6   :  { %v4016_v2 = vpop.permute.xlu1 %4015  ;;  %4181 = vst.msk [vmem:[#allocation2 + $0x303] sm:$0x1] %vm2980_vm1, %v4014_v27 }
 0x2e7   :  { %4182 = vst.msk [vmem:[#allocation2 + $0x313] sm:$0x1] %vm2980_vm1, %v4016_v2  ;;  %4273 = vrot.lane.b32.xlu0 %v17732_v54, %s12935_s10 }
 0x2e8   :  { %4275 = vrot.lane.b32.xlu1 %v17733_v1, %s12935_s10 }
 0x2e9   :  { %v4018_v60 = vpop.permute.xlu0 %4017 }
 0x2ea   :  { %v4020_v42 = vpop.permute.xlu1 %4019  ;;  %4183 = vst.msk [vmem:[#allocation2 + $0x323] sm:$0x1] %vm2980_vm1, %v4018_v60 }
 0x2eb   :  { %4184 = vst.msk [vmem:[#allocation2 + $0x333] sm:$0x1] %vm2980_vm1, %v4020_v42  ;;  %4277 = vrot.lane.b32.xlu0 %v14297_v11, %s12935_s10 }
 0x2ec   :  { %4279 = vrot.lane.b32.xlu1 %v14287_v39, %s12935_s10 }
 0x2ed   :  { %v4022_v27 = vpop.permute.xlu0 %4021 }
 0x2ee   :  { %v4024_v2 = vpop.permute.xlu1 %4023  ;;  %4185 = vst.msk [vmem:[#allocation2 + $0x343] sm:$0x1] %vm2980_vm1, %v4022_v27 }
 0x2ef   :  { %4186 = vst.msk [vmem:[#allocation2 + $0x353] sm:$0x1] %vm2980_vm1, %v4024_v2  ;;  %4281 = vrot.lane.b32.xlu0 %v14312_v40, %s12935_s10 }
 0x2f0   :  { %4283 = vrot.lane.b32.xlu1 %v14303_v28, %s12935_s10 }
 0x2f1   :  { %v4026_v60 = vpop.permute.xlu0 %4025 }
 0x2f2   :  { %v4028_v42 = vpop.permute.xlu1 %4027  ;;  %4187 = vst.msk [vmem:[#allocation2 + $0x363] sm:$0x1] %vm2980_vm1, %v4026_v60 }
 0x2f3   :  { %4188 = vst.msk [vmem:[#allocation2 + $0x373] sm:$0x1] %vm2980_vm1, %v4028_v42  ;;  %4285 = vrot.lane.b32.xlu0 %v14393_v23, %s12935_s10 }
 0x2f4   :  { %4287 = vrot.lane.b32.xlu1 %v14385_v45, %s12935_s10 }
 0x2f5   :  { %v4030_v27 = vpop.permute.xlu0 %4029 }
 0x2f6   :  { %v4032_v2 = vpop.permute.xlu1 %4031  ;;  %4189 = vst.msk [vmem:[#allocation2 + $0x383] sm:$0x1] %vm2980_vm1, %v4030_v27  ;;  %v17734_v27 = vld [vmem:[#allocation12_spill] sm:$0xff] }
 0x2f7   :  { %4190 = vst.msk [vmem:[#allocation2 + $0x393] sm:$0x1] %vm2980_vm1, %v4032_v2  ;;  %4289 = vrot.lane.b32.xlu0 %v14407_v22, %s12935_s10  ;;  %v6344_v2 = vrot.slane %v17734_v27, %v13143_v49 }
 0x2f8   :  { %4499 = vrot.lane.b32.xlu1 %v13188_v13, %s12936_s11 }
 0x2f9   :  { %v4034_v60 = vpop.permute.xlu0 %4033 }
 0x2fa   :  { %v4036_v42 = vpop.permute.xlu1 %4035  ;;  %4191 = vst.msk [vmem:[#allocation2 + $0x3a3] sm:$0x1] %vm2980_vm1, %v4034_v60 }
 0x2fb   :  { %4192 = vst.msk [vmem:[#allocation2 + $0x3b3] sm:$0x1] %vm2980_vm1, %v4036_v42  ;;  %4787 = vrot.lane.b32.xlu0 %v13188_v13, %s12937_s12 }
 0x2fc   :  { %5075 = vrot.lane.b32.xlu1 %v13188_v13, %s12938_s13 }
 0x2fd   :  { %v4038_v24 = vpop.permute.xlu0 %4037 }
 0x2fe   :  { %v4040_v8 = vpop.permute.xlu1 %4039  ;;  %4193 = vst.msk [vmem:[#allocation2 + $0x3c3] sm:$0x1] %vm2980_vm1, %v4038_v24  ;;  %v17600_v24 = vmov 0.0  }
 0x2ff   :  { %4194 = vst.msk [vmem:[#allocation2 + $0x3d3] sm:$0x1] %vm2980_vm1, %v4040_v8  ;;  %6623 = vrot.lane.b32.xlu0 %v6344_v2, %s12932_s4  ;;  %12342 = vmatprep.subr.bf16.mxu1 %v17600_v24 }
 0x300   :  { %6911 = vrot.lane.b32.xlu1 %v6344_v2, %s12933_s5  ;;  %12336 = vmatprep.subr.bf16.mxu0 %v17600_v24 }
 0x301   :  { %v4042_v60 = vpop.permute.xlu0 %4041  ;;  %12344 = vmatprep.mubr.msk.bf16.mxu1 %vm12940_vm2, %v17600_v24  ;;  %12338 = vmatprep.mubr.msk.bf16.mxu0 %vm12940_vm2, %v17600_v24 }
 0x302   :  { %v4044_v42 = vpop.permute.xlu1 %4043  ;;  %4195 = vst.msk [vmem:[#allocation2 + $0x3e3] sm:$0x1] %vm2980_vm1, %v4042_v60 }
 0x303   :  { %4196 = vst.msk [vmem:[#allocation2 + $0x3f3] sm:$0x1] %vm2980_vm1, %v4044_v42  ;;  %7199 = vrot.lane.b32.xlu0 %v6344_v2, %s12934_s0 }
 0x304   :  { %7487 = vrot.lane.b32.xlu1 %v6344_v2, %s12935_s10 }
 0x305   :  { %v4046_v13 = vpop.permute.xlu0 %4045 }
 0x306   :  { %v4048_v27 = vpop.permute.xlu1 %4047  ;;  %4197 = vst.msk [vmem:[#allocation2 + $0x403] sm:$0x1] %vm2980_vm1, %v4046_v13 }
 0x307   :  { %4198 = vst.msk [vmem:[#allocation2 + $0x413] sm:$0x1] %vm2980_vm1, %v4048_v27  ;;  %7775 = vrot.lane.b32.xlu0 %v6344_v2, %s12936_s11  ;;  %v17735_v27 = vld [vmem:[#allocation10_spill] sm:$0xff] }
 0x308   :  { %8063 = vrot.lane.b32.xlu1 %v6344_v2, %s12937_s12 }
 0x309   :  { %v4050_v8 = vpop.permute.xlu0 %4049 }
 0x30a   :  { %v4052_v60 = vpop.permute.xlu1 %4051  ;;  %4199 = vst.msk [vmem:[#allocation2 + $0x423] sm:$0x1] %vm2980_vm1, %v4050_v8  ;;  %v6340_v8 = vrot.slane %v17735_v27, %v13143_v49 }
 0x30b   :  { %4200 = vst.msk [vmem:[#allocation2 + $0x433] sm:$0x1] %vm2980_vm1, %v4052_v60  ;;  %8351 = vrot.lane.b32.xlu0 %v6344_v2, %s12938_s13 }
 0x30c   :  { %4497 = vrot.lane.b32.xlu1 %v13165_v6, %s12936_s11 }
 0x30d   :  { %v4054_v42 = vpop.permute.xlu0 %4053 }
 0x30e   :  { %v4056_v13 = vpop.permute.xlu1 %4055  ;;  %4201 = vst.msk [vmem:[#allocation2 + $0x443] sm:$0x1] %vm2980_vm1, %v4054_v42 }
 0x30f   :  { %4202 = vst.msk [vmem:[#allocation2 + $0x453] sm:$0x1] %vm2980_vm1, %v4056_v13  ;;  %4785 = vrot.lane.b32.xlu0 %v13165_v6, %s12937_s12 }
 0x310   :  { %5073 = vrot.lane.b32.xlu1 %v13165_v6, %s12938_s13 }
 0x311   :  { %v4058_v60 = vpop.permute.xlu0 %4057 }
 0x312   :  { %v4060_v2 = vpop.permute.xlu1 %4059  ;;  %4203 = vst.msk [vmem:[#allocation2 + $0x463] sm:$0x1] %vm2980_vm1, %v4058_v60 }
 0x313   :  { %4204 = vst.msk [vmem:[#allocation2 + $0x473] sm:$0x1] %vm2980_vm1, %v4060_v2  ;;  %6621 = vrot.lane.b32.xlu0 %v6340_v8, %s12932_s4 }
 0x314   :  { %6909 = vrot.lane.b32.xlu1 %v6340_v8, %s12933_s5 }
 0x315   :  { %v4206_v42 = vpop.permute.xlu0 %4205 }
 0x316   :  { %v4208_v13 = vpop.permute.xlu1 %4207  ;;  %4421 = vst.msk [vmem:[#allocation2 + $0x4] sm:$0x1] %vm2980_vm1, %v4206_v42 }
 0x317   :  { %4422 = vst.msk [vmem:[#allocation2 + $0x14] sm:$0x1] %vm2980_vm1, %v4208_v13  ;;  %7197 = vrot.lane.b32.xlu0 %v6340_v8, %s12934_s0 }
 0x318   :  { %7485 = vrot.lane.b32.xlu1 %v6340_v8, %s12935_s10 }
 0x319   :  { %v4210_v6 = vpop.permute.xlu0 %4209 }
 0x31a   :  { %v4212_v27 = vpop.permute.xlu1 %4211  ;;  %4423 = vst.msk [vmem:[#allocation2 + $0x24] sm:$0x1] %vm2980_vm1, %v4210_v6  ;;  %v17736_v6 = vld [vmem:[#allocation11_spill] sm:$0xff] }
 0x31b   :  { %4424 = vst.msk [vmem:[#allocation2 + $0x34] sm:$0x1] %vm2980_vm1, %v4212_v27  ;;  %7773 = vrot.lane.b32.xlu0 %v6340_v8, %s12936_s11  ;;  %v6336_v27 = vrot.slane %v17736_v6, %v13143_v49 }
 0x31c   :  { %8061 = vrot.lane.b32.xlu1 %v6340_v8, %s12937_s12 }
 0x31d   :  { %v4214_v60 = vpop.permute.xlu0 %4213 }
 0x31e   :  { %v4216_v2 = vpop.permute.xlu1 %4215  ;;  %4425 = vst.msk [vmem:[#allocation2 + $0x44] sm:$0x1] %vm2980_vm1, %v4214_v60 }
 0x31f   :  { %4426 = vst.msk [vmem:[#allocation2 + $0x54] sm:$0x1] %vm2980_vm1, %v4216_v2  ;;  %8349 = vrot.lane.b32.xlu0 %v6340_v8, %s12938_s13 }
 0x320   :  { %4495 = vrot.lane.b32.xlu1 %v13212_v34, %s12936_s11 }
 0x321   :  { %v4218_v42 = vpop.permute.xlu0 %4217 }
 0x322   :  { %v4220_v13 = vpop.permute.xlu1 %4219  ;;  %4427 = vst.msk [vmem:[#allocation2 + $0x64] sm:$0x1] %vm2980_vm1, %v4218_v42 }
 0x323   :  { %4428 = vst.msk [vmem:[#allocation2 + $0x74] sm:$0x1] %vm2980_vm1, %v4220_v13  ;;  %4783 = vrot.lane.b32.xlu0 %v13212_v34, %s12937_s12 }
 0x324   :  { %5071 = vrot.lane.b32.xlu1 %v13212_v34, %s12938_s13 }
 0x325   :  { %v4222_v60 = vpop.permute.xlu0 %4221 }
 0x326   :  { %v4224_v8 = vpop.permute.xlu1 %4223  ;;  %4429 = vst.msk [vmem:[#allocation2 + $0x84] sm:$0x1] %vm2980_vm1, %v4222_v60 }
 0x327   :  { %4430 = vst.msk [vmem:[#allocation2 + $0x94] sm:$0x1] %vm2980_vm1, %v4224_v8  ;;  %6619 = vrot.lane.b32.xlu0 %v6336_v27, %s12932_s4 }
 0x328   :  { %6907 = vrot.lane.b32.xlu1 %v6336_v27, %s12933_s5 }
 0x329   :  { %v4226_v2 = vpop.permute.xlu0 %4225 }
 0x32a   :  { %v4228_v42 = vpop.permute.xlu1 %4227  ;;  %4431 = vst.msk [vmem:[#allocation2 + $0xa4] sm:$0x1] %vm2980_vm1, %v4226_v2 }
 0x32b   :  { %4432 = vst.msk [vmem:[#allocation2 + $0xb4] sm:$0x1] %vm2980_vm1, %v4228_v42  ;;  %7195 = vrot.lane.b32.xlu0 %v6336_v27, %s12934_s0  ;;  %v17737_v42 = vld [vmem:[#allocation9_spill] sm:$0xff] }
 0x32c   :  { %7483 = vrot.lane.b32.xlu1 %v6336_v27, %s12935_s10 }
 0x32d   :  { %v4230_v34 = vpop.permute.xlu0 %4229 }
 0x32e   :  { %v4232_v13 = vpop.permute.xlu1 %4231  ;;  %4433 = vst.msk [vmem:[#allocation2 + $0xc4] sm:$0x1] %vm2980_vm1, %v4230_v34  ;;  %v6332_v34 = vrot.slane %v17737_v42, %v13143_v49 }
 0x32f   :  { %4434 = vst.msk [vmem:[#allocation2 + $0xd4] sm:$0x1] %vm2980_vm1, %v4232_v13  ;;  %7771 = vrot.lane.b32.xlu0 %v6336_v27, %s12936_s11 }
 0x330   :  { %8059 = vrot.lane.b32.xlu1 %v6336_v27, %s12937_s12 }
 0x331   :  { %v4234_v6 = vpop.permute.xlu0 %4233 }
 0x332   :  { %v4236_v60 = vpop.permute.xlu1 %4235  ;;  %4435 = vst.msk [vmem:[#allocation2 + $0xe4] sm:$0x1] %vm2980_vm1, %v4234_v6 }
 0x333   :  { %4436 = vst.msk [vmem:[#allocation2 + $0xf4] sm:$0x1] %vm2980_vm1, %v4236_v60  ;;  %8347 = vrot.lane.b32.xlu0 %v6336_v27, %s12938_s13 }
 0x334   :  { %4493 = vrot.lane.b32.xlu1 %v13160_v4, %s12936_s11 }
 0x335   :  { %v4238_v8 = vpop.permute.xlu0 %4237 }
 0x336   :  { %v4240_v2 = vpop.permute.xlu1 %4239  ;;  %4437 = vst.msk [vmem:[#allocation2 + $0x104] sm:$0x1] %vm2980_vm1, %v4238_v8 }
 0x337   :  { %4438 = vst.msk [vmem:[#allocation2 + $0x114] sm:$0x1] %vm2980_vm1, %v4240_v2  ;;  %4781 = vrot.lane.b32.xlu0 %v13160_v4, %s12937_s12 }
 0x338   :  { %5069 = vrot.lane.b32.xlu1 %v13160_v4, %s12938_s13 }
 0x339   :  { %v4242_v13 = vpop.permute.xlu0 %4241 }
 0x33a   :  { %v4244_v27 = vpop.permute.xlu1 %4243  ;;  %4439 = vst.msk [vmem:[#allocation2 + $0x124] sm:$0x1] %vm2980_vm1, %v4242_v13 }
 0x33b   :  { %4440 = vst.msk [vmem:[#allocation2 + $0x134] sm:$0x1] %vm2980_vm1, %v4244_v27  ;;  %6617 = vrot.lane.b32.xlu0 %v6332_v34, %s12932_s4 }
 0x33c   :  { %6905 = vrot.lane.b32.xlu1 %v6332_v34, %s12933_s5 }
 0x33d   :  { %v4246_v6 = vpop.permute.xlu0 %4245 }
 0x33e   :  { %v4248_v60 = vpop.permute.xlu1 %4247  ;;  %4441 = vst.msk [vmem:[#allocation2 + $0x144] sm:$0x1] %vm2980_vm1, %v4246_v6  ;;  %v17738_v6 = vld [vmem:[#allocation16_spill] sm:$0xff] }
 0x33f   :  { %4442 = vst.msk [vmem:[#allocation2 + $0x154] sm:$0x1] %vm2980_vm1, %v4248_v60  ;;  %7193 = vrot.lane.b32.xlu0 %v6332_v34, %s12934_s0  ;;  %v6360_v60 = vrot.slane %v17738_v6, %v13143_v49 }
 0x340   :  { %7481 = vrot.lane.b32.xlu1 %v6332_v34, %s12935_s10 }
 0x341   :  { %v4250_v4 = vpop.permute.xlu0 %4249 }
 0x342   :  { %v4252_v8 = vpop.permute.xlu1 %4251  ;;  %4443 = vst.msk [vmem:[#allocation2 + $0x164] sm:$0x1] %vm2980_vm1, %v4250_v4 }
 0x343   :  { %4444 = vst.msk [vmem:[#allocation2 + $0x174] sm:$0x1] %vm2980_vm1, %v4252_v8  ;;  %7769 = vrot.lane.b32.xlu0 %v6332_v34, %s12936_s11 }
 0x344   :  { %8057 = vrot.lane.b32.xlu1 %v6332_v34, %s12937_s12 }
 0x345   :  { %v4254_v2 = vpop.permute.xlu0 %4253 }
 0x346   :  { %v4256_v42 = vpop.permute.xlu1 %4255  ;;  %4445 = vst.msk [vmem:[#allocation2 + $0x184] sm:$0x1] %vm2980_vm1, %v4254_v2 }
 0x347   :  { %4446 = vst.msk [vmem:[#allocation2 + $0x194] sm:$0x1] %vm2980_vm1, %v4256_v42  ;;  %8345 = vrot.lane.b32.xlu0 %v6332_v34, %s12938_s13 }
 0x348   :  { %4507 = vrot.lane.b32.xlu1 %v13349_v43, %s12936_s11 }
 0x349   :  { %v4258_v13 = vpop.permute.xlu0 %4257 }
 0x34a   :  { %v4260_v27 = vpop.permute.xlu1 %4259  ;;  %4447 = vst.msk [vmem:[#allocation2 + $0x1a4] sm:$0x1] %vm2980_vm1, %v4258_v13 }
 0x34b   :  { %4448 = vst.msk [vmem:[#allocation2 + $0x1b4] sm:$0x1] %vm2980_vm1, %v4260_v27  ;;  %4795 = vrot.lane.b32.xlu0 %v13349_v43, %s12937_s12 }
 0x34c   :  { %5083 = vrot.lane.b32.xlu1 %v13349_v43, %s12938_s13 }
 0x34d   :  { %v4262_v4 = vpop.permute.xlu0 %4261 }
 0x34e   :  { %v4264_v34 = vpop.permute.xlu1 %4263  ;;  %4449 = vst.msk [vmem:[#allocation2 + $0x1c4] sm:$0x1] %vm2980_vm1, %v4262_v4 }
 0x34f   :  { %4450 = vst.msk [vmem:[#allocation2 + $0x1d4] sm:$0x1] %vm2980_vm1, %v4264_v34  ;;  %6631 = vrot.lane.b32.xlu0 %v6360_v60, %s12932_s4  ;;  %v17739_v34 = vld [vmem:[#allocation14_spill] sm:$0xff] }
 0x350   :  { %6919 = vrot.lane.b32.xlu1 %v6360_v60, %s12933_s5 }
 0x351   :  { %v4266_v8 = vpop.permute.xlu0 %4265 }
 0x352   :  { %v4268_v2 = vpop.permute.xlu1 %4267  ;;  %4451 = vst.msk [vmem:[#allocation2 + $0x1e4] sm:$0x1] %vm2980_vm1, %v4266_v8  ;;  %v6356_v8 = vrot.slane %v17739_v34, %v13143_v49 }
 0x353   :  { %4452 = vst.msk [vmem:[#allocation2 + $0x1f4] sm:$0x1] %vm2980_vm1, %v4268_v2  ;;  %7207 = vrot.lane.b32.xlu0 %v6360_v60, %s12934_s0 }
 0x354   :  { %7495 = vrot.lane.b32.xlu1 %v6360_v60, %s12935_s10 }
 0x355   :  { %v4270_v43 = vpop.permute.xlu0 %4269 }
 0x356   :  { %v4272_v42 = vpop.permute.xlu1 %4271  ;;  %4453 = vst.msk [vmem:[#allocation2 + $0x204] sm:$0x1] %vm2980_vm1, %v4270_v43 }
 0x357   :  { %4454 = vst.msk [vmem:[#allocation2 + $0x214] sm:$0x1] %vm2980_vm1, %v4272_v42  ;;  %7783 = vrot.lane.b32.xlu0 %v6360_v60, %s12936_s11 }
 0x358   :  { %8071 = vrot.lane.b32.xlu1 %v6360_v60, %s12937_s12 }
 0x359   :  { %v4274_v13 = vpop.permute.xlu0 %4273 }
 0x35a   :  { %v4276_v27 = vpop.permute.xlu1 %4275  ;;  %4455 = vst.msk [vmem:[#allocation2 + $0x224] sm:$0x1] %vm2980_vm1, %v4274_v13 }
 0x35b   :  { %4456 = vst.msk [vmem:[#allocation2 + $0x234] sm:$0x1] %vm2980_vm1, %v4276_v27  ;;  %8359 = vrot.lane.b32.xlu0 %v6360_v60, %s12938_s13 }
 0x35c   :  { %4505 = vrot.lane.b32.xlu1 %v13367_v46, %s12936_s11 }
 0x35d   :  { %v4278_v6 = vpop.permute.xlu0 %4277 }
 0x35e   :  { %v4280_v4 = vpop.permute.xlu1 %4279  ;;  %4457 = vst.msk [vmem:[#allocation2 + $0x244] sm:$0x1] %vm2980_vm1, %v4278_v6 }
 0x35f   :  { %4458 = vst.msk [vmem:[#allocation2 + $0x254] sm:$0x1] %vm2980_vm1, %v4280_v4  ;;  %4793 = vrot.lane.b32.xlu0 %v13367_v46, %s12937_s12 }
 0x360   :  { %5081 = vrot.lane.b32.xlu1 %v13367_v46, %s12938_s13 }
 0x361   :  { %v4282_v2 = vpop.permute.xlu0 %4281 }
 0x362   :  { %v4284_v60 = vpop.permute.xlu1 %4283  ;;  %4459 = vst.msk [vmem:[#allocation2 + $0x264] sm:$0x1] %vm2980_vm1, %v4282_v2  ;;  %v17740_v2 = vld [vmem:[#allocation15_spill] sm:$0xff] }
 0x363   :  { %4460 = vst.msk [vmem:[#allocation2 + $0x274] sm:$0x1] %vm2980_vm1, %v4284_v60  ;;  %6629 = vrot.lane.b32.xlu0 %v6356_v8, %s12932_s4  ;;  %v6352_v60 = vrot.slane %v17740_v2, %v13143_v49 }
 0x364   :  { %6917 = vrot.lane.b32.xlu1 %v6356_v8, %s12933_s5 }
 0x365   :  { %v4286_v43 = vpop.permute.xlu0 %4285 }
 0x366   :  { %v4288_v42 = vpop.permute.xlu1 %4287  ;;  %4461 = vst.msk [vmem:[#allocation2 + $0x284] sm:$0x1] %vm2980_vm1, %v4286_v43 }
 0x367   :  { %4462 = vst.msk [vmem:[#allocation2 + $0x294] sm:$0x1] %vm2980_vm1, %v4288_v42  ;;  %7205 = vrot.lane.b32.xlu0 %v6356_v8, %s12934_s0 }
 0x368   :  { %7493 = vrot.lane.b32.xlu1 %v6356_v8, %s12935_s10 }
 0x369   :  { %v4290_v46 = vpop.permute.xlu0 %4289 }
 0x36a   :  { %v4500_v13 = vpop.permute.xlu1 %4499  ;;  %4463 = vst.msk [vmem:[#allocation2 + $0x2a4] sm:$0x1] %vm2980_vm1, %v4290_v46 }
 0x36b   :  { %4712 = vst.msk [vmem:[#allocation2 + $0x35] sm:$0x1] %vm2980_vm1, %v4500_v13  ;;  %7781 = vrot.lane.b32.xlu0 %v6356_v8, %s12936_s11 }
 0x36c   :  { %8069 = vrot.lane.b32.xlu1 %v6356_v8, %s12937_s12 }
 0x36d   :  { %v4788_v27 = vpop.permute.xlu0 %4787 }
 0x36e   :  { %v5076_v6 = vpop.permute.xlu1 %5075  ;;  %5000 = vst.msk [vmem:[#allocation2 + $0x36] sm:$0x1] %vm2980_vm1, %v4788_v27 }
 0x36f   :  { %5288 = vst.msk [vmem:[#allocation2 + $0x37] sm:$0x1] %vm2980_vm1, %v5076_v6  ;;  %8357 = vrot.lane.b32.xlu0 %v6356_v8, %s12938_s13 }
 0x370   :  { %4503 = vrot.lane.b32.xlu1 %v13305_v16, %s12936_s11 }
 0x371   :  { %v6624_v4 = vpop.permute.xlu0 %6623 }
 0x372   :  { %v6912_v34 = vpop.permute.xlu1 %6911  ;;  %6836 = vst.msk [vmem:[#allocation2 + $0x39] sm:$0x1] %vm2980_vm1, %v6624_v4 }
 0x373   :  { %7124 = vst.msk [vmem:[#allocation2 + $0x3a] sm:$0x1] %vm2980_vm1, %v6912_v34  ;;  %4791 = vrot.lane.b32.xlu0 %v13305_v16, %s12937_s12 }
 0x374   :  { %5079 = vrot.lane.b32.xlu1 %v13305_v16, %s12938_s13 }
 0x375   :  { %v7200_v43 = vpop.permute.xlu0 %7199 }
 0x376   :  { %v7488_v8 = vpop.permute.xlu1 %7487  ;;  %7412 = vst.msk [vmem:[#allocation2 + $0x3b] sm:$0x1] %vm2980_vm1, %v7200_v43  ;;  %v8639_v2 = vld [vmem:[#allocation2 + $0x30] sm:$0xff] }
 0x377   :  { %7700 = vst.msk [vmem:[#allocation2 + $0x3c] sm:$0x1] %vm2980_vm1, %v7488_v8  ;;  %6627 = vrot.lane.b32.xlu0 %v6352_v60, %s12932_s4 }
 0x378   :  { %6915 = vrot.lane.b32.xlu1 %v6352_v60, %s12933_s5 }
 0x379   :  { %v7776_v42 = vpop.permute.xlu0 %7775 }
 0x37a   :  { %v8064_v46 = vpop.permute.xlu1 %8063  ;;  %7988 = vst.msk [vmem:[#allocation2 + $0x3d] sm:$0x1] %vm2980_vm1, %v7776_v42 }
 0x37b   :  { %8276 = vst.msk [vmem:[#allocation2 + $0x3e] sm:$0x1] %vm2980_vm1, %v8064_v46  ;;  %7203 = vrot.lane.b32.xlu0 %v6352_v60, %s12934_s0 }
 0x37c   :  { %7491 = vrot.lane.b32.xlu1 %v6352_v60, %s12935_s10 }
 0x37d   :  { %v8352_v16 = vpop.permute.xlu0 %8351 }
 0x37e   :  { %v4498_v13 = vpop.permute.xlu1 %4497  ;;  %8564 = vst.msk [vmem:[#allocation2 + $0x3f] sm:$0x1] %vm2980_vm1, %v8352_v16 }
 0x37f   :  { %4711 = vst.msk [vmem:[#allocation2 + $0x25] sm:$0x1] %vm2980_vm1, %v4498_v13  ;;  %7779 = vrot.lane.b32.xlu0 %v6352_v60, %s12936_s11 }
 0x380   :  { %8067 = vrot.lane.b32.xlu1 %v6352_v60, %s12937_s12 }
 0x381   :  { %v4786_v27 = vpop.permute.xlu0 %4785 }
 0x382   :  { %v5074_v6 = vpop.permute.xlu1 %5073  ;;  %4999 = vst.msk [vmem:[#allocation2 + $0x26] sm:$0x1] %vm2980_vm1, %v4786_v27 }
 0x383   :  { %5287 = vst.msk [vmem:[#allocation2 + $0x27] sm:$0x1] %vm2980_vm1, %v5074_v6  ;;  %8355 = vrot.lane.b32.xlu0 %v6352_v60, %s12938_s13  ;;  %v17741_v60 = vld [vmem:[#allocation13_spill] sm:$0xff] }
 0x384   :  { %4501 = vrot.lane.b32.xlu1 %v13324_v33, %s12936_s11  ;;  %v6348_v42 = vrot.slane %v17741_v60, %v13143_v49 }
 0x385   :  { %v6622_v4 = vpop.permute.xlu0 %6621  ;;  %v8640_v43 = vld [vmem:[#allocation2 + $0x38] sm:$0xff] }
 0x386   :  { %v6910_v34 = vpop.permute.xlu1 %6909  ;;  %6835 = vst.msk [vmem:[#allocation2 + $0x29] sm:$0x1] %vm2980_vm1, %v6622_v4  ;;  %v8814_v8 = vpack.c.bf16 %v8640_v43, %v8639_v2 }
 0x387   :  { %7123 = vst.msk [vmem:[#allocation2 + $0x2a] sm:$0x1] %vm2980_vm1, %v6910_v34  ;;  %4789 = vrot.lane.b32.xlu0 %v13324_v33, %s12937_s12 }
 0x388   :  { %5077 = vrot.lane.b32.xlu1 %v13324_v33, %s12938_s13  ;;  %12343 = vmatpush3.bf16.msra.mxu1 %v8814_v8 }
 0x389   :  { %v7198_v46 = vpop.permute.xlu0 %7197  ;;  %12354 = vmatprep.subr.bf16.mxu1 %v17600_v24 }
 0x38a   :  { %v7486_v16 = vpop.permute.xlu1 %7485  ;;  %7411 = vst.msk [vmem:[#allocation2 + $0x2b] sm:$0x1] %vm2980_vm1, %v7198_v46  ;;  %v8637_v8 = vld [vmem:[#allocation2 + $0x20] sm:$0xff] }
 0x38b   :  { %7699 = vst.msk [vmem:[#allocation2 + $0x2c] sm:$0x1] %vm2980_vm1, %v7486_v16  ;;  %6625 = vrot.lane.b32.xlu0 %v6348_v42, %s12932_s4 }
 0x38c   :  { %6913 = vrot.lane.b32.xlu1 %v6348_v42, %s12933_s5 }
 0x38d   :  { %v7774_v13 = vpop.permute.xlu0 %7773 }
 0x38e   :  { %v8062_v27 = vpop.permute.xlu1 %8061  ;;  %7987 = vst.msk [vmem:[#allocation2 + $0x2d] sm:$0x1] %vm2980_vm1, %v7774_v13 }
 0x38f   :  { %8275 = vst.msk [vmem:[#allocation2 + $0x2e] sm:$0x1] %vm2980_vm1, %v8062_v27  ;;  %7201 = vrot.lane.b32.xlu0 %v6348_v42, %s12934_s0 }
 0x390   :  { %7489 = vrot.lane.b32.xlu1 %v6348_v42, %s12935_s10 }
 0x391   :  { %v8350_v33 = vpop.permute.xlu0 %8349 }
 0x392   :  { %v4496_v6 = vpop.permute.xlu1 %4495  ;;  %8563 = vst.msk [vmem:[#allocation2 + $0x2f] sm:$0x1] %vm2980_vm1, %v8350_v33 }
 0x393   :  { %4710 = vst.msk [vmem:[#allocation2 + $0x15] sm:$0x1] %vm2980_vm1, %v4496_v6  ;;  %7777 = vrot.lane.b32.xlu0 %v6348_v42, %s12936_s11 }
 0x394   :  { %8065 = vrot.lane.b32.xlu1 %v6348_v42, %s12937_s12 }
 0x395   :  { %v4784_v4 = vpop.permute.xlu0 %4783 }
 0x396   :  { %v5072_v34 = vpop.permute.xlu1 %5071  ;;  %4998 = vst.msk [vmem:[#allocation2 + $0x16] sm:$0x1] %vm2980_vm1, %v4784_v4 }
 0x397   :  { %5286 = vst.msk [vmem:[#allocation2 + $0x17] sm:$0x1] %vm2980_vm1, %v5072_v34  ;;  %8353 = vrot.lane.b32.xlu0 %v6348_v42, %s12938_s13  ;;  %v17742_v42 = vld [vmem:[#allocation20_spill] sm:$0xff] }
 0x398   :  { %4515 = vrot.lane.b32.xlu1 %v13521_v55, %s12936_s11  ;;  %v6376_v16 = vrot.slane %v17742_v42, %v13143_v49 }
 0x399   :  { %v6620_v2 = vpop.permute.xlu0 %6619  ;;  %v8638_v60 = vld [vmem:[#allocation2 + $0x28] sm:$0xff] }
 0x39a   :  { %v6908_v43 = vpop.permute.xlu1 %6907  ;;  %6834 = vst.msk [vmem:[#allocation2 + $0x19] sm:$0x1] %vm2980_vm1, %v6620_v2  ;;  %v8813_v46 = vpack.c.bf16 %v8638_v60, %v8637_v8 }
 0x39b   :  { %7122 = vst.msk [vmem:[#allocation2 + $0x1a] sm:$0x1] %vm2980_vm1, %v6908_v43  ;;  %4803 = vrot.lane.b32.xlu0 %v13521_v55, %s12937_s12 }
 0x39c   :  { %5091 = vrot.lane.b32.xlu1 %v13521_v55, %s12938_s13  ;;  %12337 = vmatpush3.bf16.msra.mxu0 %v8813_v46 }
 0x39d   :  { %v7196_v13 = vpop.permute.xlu0 %7195  ;;  %12348 = vmatprep.subr.bf16.mxu0 %v17600_v24 }
 0x39e   :  { %v7484_v27 = vpop.permute.xlu1 %7483  ;;  %7410 = vst.msk [vmem:[#allocation2 + $0x1b] sm:$0x1] %vm2980_vm1, %v7196_v13  ;;  %v8635_v60 = vld [vmem:[#allocation2 + $0x10] sm:$0xff] }
 0x39f   :  { %7698 = vst.msk [vmem:[#allocation2 + $0x1c] sm:$0x1] %vm2980_vm1, %v7484_v27  ;;  %6639 = vrot.lane.b32.xlu0 %v6376_v16, %s12932_s4 }
 0x3a0   :  { %6927 = vrot.lane.b32.xlu1 %v6376_v16, %s12933_s5 }
 0x3a1   :  { %v7772_v33 = vpop.permute.xlu0 %7771 }
 0x3a2   :  { %v8060_v6 = vpop.permute.xlu1 %8059  ;;  %7986 = vst.msk [vmem:[#allocation2 + $0x1d] sm:$0x1] %vm2980_vm1, %v7772_v33 }
 0x3a3   :  { %8274 = vst.msk [vmem:[#allocation2 + $0x1e] sm:$0x1] %vm2980_vm1, %v8060_v6  ;;  %7215 = vrot.lane.b32.xlu0 %v6376_v16, %s12934_s0 }
 0x3a4   :  { %7503 = vrot.lane.b32.xlu1 %v6376_v16, %s12935_s10 }
 0x3a5   :  { %v8348_v55 = vpop.permute.xlu0 %8347 }
 0x3a6   :  { %v4494_v4 = vpop.permute.xlu1 %4493  ;;  %8562 = vst.msk [vmem:[#allocation2 + $0x1f] sm:$0x1] %vm2980_vm1, %v8348_v55 }
 0x3a7   :  { %4709 = vst.msk [vmem:[#allocation2 + $0x5] sm:$0x1] %vm2980_vm1, %v4494_v4  ;;  %7791 = vrot.lane.b32.xlu0 %v6376_v16, %s12936_s11 }
 0x3a8   :  { %8079 = vrot.lane.b32.xlu1 %v6376_v16, %s12937_s12 }
 0x3a9   :  { %v4782_v34 = vpop.permute.xlu0 %4781 }
 0x3aa   :  { %v5070_v2 = vpop.permute.xlu1 %5069  ;;  %4997 = vst.msk [vmem:[#allocation2 + $0x6] sm:$0x1] %vm2980_vm1, %v4782_v34 }
 0x3ab   :  { %5285 = vst.msk [vmem:[#allocation2 + $0x7] sm:$0x1] %vm2980_vm1, %v5070_v2  ;;  %8367 = vrot.lane.b32.xlu0 %v6376_v16, %s12938_s13  ;;  %v17743_v16 = vld [vmem:[#allocation18_spill] sm:$0xff] }
 0x3ac   :  { %4513 = vrot.lane.b32.xlu1 %v13539_v61, %s12936_s11  ;;  %v6372_v13 = vrot.slane %v17743_v16, %v13143_v49  ;;  %v17744_v16 = vld [vmem:[#allocation19_spill] sm:$0xff] }
 0x3ad   :  { %v6618_v43 = vpop.permute.xlu0 %6617  ;;  %v8636_v46 = vld [vmem:[#allocation2 + $0x18] sm:$0xff] }
 0x3ae   :  { %v6906_v8 = vpop.permute.xlu1 %6905  ;;  %6833 = vst.msk [vmem:[#allocation2 + $0x9] sm:$0x1] %vm2980_vm1, %v6618_v43  ;;  %v8778_v42 = vpack.c.bf16 %v8636_v46, %v8635_v60 }
 0x3af   :  { %7121 = vst.msk [vmem:[#allocation2 + $0xa] sm:$0x1] %vm2980_vm1, %v6906_v8  ;;  %4801 = vrot.lane.b32.xlu0 %v13539_v61, %s12937_s12 }
 0x3b0   :  { %5089 = vrot.lane.b32.xlu1 %v13539_v61, %s12938_s13  ;;  %12345 = vmatmul.mubr.msk.bf16.vlgmr.msra.gmra.mrb[72].mxu1 %vm145_vm0, %v8778_v42 }
 0x3b1   :  { %v7194_v27 = vpop.permute.xlu0 %7193  ;;  %12356 = vmatprep.mubr.msk.bf16.mxu1 %vm12940_vm2, %v17600_v24 }
 0x3b2   :  { %v7482_v33 = vpop.permute.xlu1 %7481  ;;  %7409 = vst.msk [vmem:[#allocation2 + $0xb] sm:$0x1] %vm2980_vm1, %v7194_v27  ;;  %v8633_v60 = vld [vmem:[#allocation2] sm:$0xff] }
 0x3b3   :  { %7697 = vst.msk [vmem:[#allocation2 + $0xc] sm:$0x1] %vm2980_vm1, %v7482_v33  ;;  %6637 = vrot.lane.b32.xlu0 %v6372_v13, %s12932_s4 }
 0x3b4   :  { %6925 = vrot.lane.b32.xlu1 %v6372_v13, %s12933_s5 }
 0x3b5   :  { %v7770_v6 = vpop.permute.xlu0 %7769 }
 0x3b6   :  { %v8058_v61 = vpop.permute.xlu1 %8057  ;;  %7985 = vst.msk [vmem:[#allocation2 + $0xd] sm:$0x1] %vm2980_vm1, %v7770_v6 }
 0x3b7   :  { %8273 = vst.msk [vmem:[#allocation2 + $0xe] sm:$0x1] %vm2980_vm1, %v8058_v61  ;;  %7213 = vrot.lane.b32.xlu0 %v6372_v13, %s12934_s0 }
 0x3b8   :  { %7501 = vrot.lane.b32.xlu1 %v6372_v13, %s12935_s10 }
 0x3b9   :  { %v8346_v55 = vpop.permute.xlu0 %8345 }
 0x3ba   :  { %v4508_v4 = vpop.permute.xlu1 %4507  ;;  %8561 = vst.msk [vmem:[#allocation2 + $0xf] sm:$0x1] %vm2980_vm1, %v8346_v55 }
 0x3bb   :  { %4716 = vst.msk [vmem:[#allocation2 + $0x75] sm:$0x1] %vm2980_vm1, %v4508_v4  ;;  %7789 = vrot.lane.b32.xlu0 %v6372_v13, %s12936_s11 }
 0x3bc   :  { %8077 = vrot.lane.b32.xlu1 %v6372_v13, %s12937_s12 }
 0x3bd   :  { %v4796_v34 = vpop.permute.xlu0 %4795 }
 0x3be   :  { %v5084_v2 = vpop.permute.xlu1 %5083  ;;  %5004 = vst.msk [vmem:[#allocation2 + $0x76] sm:$0x1] %vm2980_vm1, %v4796_v34 }
 0x3bf   :  { %5292 = vst.msk [vmem:[#allocation2 + $0x77] sm:$0x1] %vm2980_vm1, %v5084_v2  ;;  %8365 = vrot.lane.b32.xlu0 %v6372_v13, %s12938_s13  ;;  %v6368_v13 = vrot.slane %v17744_v16, %v13143_v49 }
 0x3c0   :  { %4511 = vrot.lane.b32.xlu1 %v13477_v47, %s12936_s11 }
 0x3c1   :  { %v6632_v43 = vpop.permute.xlu0 %6631  ;;  %v8634_v46 = vld [vmem:[#allocation2 + $0x8] sm:$0xff] }
 0x3c2   :  { %v6920_v8 = vpop.permute.xlu1 %6919  ;;  %6840 = vst.msk [vmem:[#allocation2 + $0x79] sm:$0x1] %vm2980_vm1, %v6632_v43  ;;  %v8777_v42 = vpack.c.bf16 %v8634_v46, %v8633_v60 }
 0x3c3   :  { %7128 = vst.msk [vmem:[#allocation2 + $0x7a] sm:$0x1] %vm2980_vm1, %v6920_v8  ;;  %4799 = vrot.lane.b32.xlu0 %v13477_v47, %s12937_s12 }
 0x3c4   :  { %5087 = vrot.lane.b32.xlu1 %v13477_v47, %s12938_s13  ;;  %12339 = vmatmul.mubr.msk.bf16.vlgmr.msra.gmra.mrb[72].mxu0 %vm145_vm0, %v8777_v42  ;;  %v17745_v42 = vld [vmem:[#allocation17_spill] sm:$0xff] }
 0x3c5   :  { %v7208_v27 = vpop.permute.xlu0 %7207  ;;  %12350 = vmatprep.mubr.msk.bf16.mxu0 %vm12940_vm2, %v17600_v24  ;;  %v6364_v16 = vrot.slane %v17745_v42, %v13143_v49 }
 0x3c6   :  { %v7496_v33 = vpop.permute.xlu1 %7495  ;;  %7416 = vst.msk [vmem:[#allocation2 + $0x7b] sm:$0x1] %vm2980_vm1, %v7208_v27  ;;  %v8647_v8 = vld [vmem:[#allocation2 + $0x70] sm:$0xff] }
 0x3c7   :  { %7704 = vst.msk [vmem:[#allocation2 + $0x7c] sm:$0x1] %vm2980_vm1, %v7496_v33  ;;  %6635 = vrot.lane.b32.xlu0 %v6368_v13, %s12932_s4 }
 0x3c8   :  { %6923 = vrot.lane.b32.xlu1 %v6368_v13, %s12933_s5 }
 0x3c9   :  { %v7784_v6 = vpop.permute.xlu0 %7783 }
 0x3ca   :  { %v8072_v47 = vpop.permute.xlu1 %8071  ;;  %7992 = vst.msk [vmem:[#allocation2 + $0x7d] sm:$0x1] %vm2980_vm1, %v7784_v6 }
 0x3cb   :  { %8280 = vst.msk [vmem:[#allocation2 + $0x7e] sm:$0x1] %vm2980_vm1, %v8072_v47  ;;  %7211 = vrot.lane.b32.xlu0 %v6368_v13, %s12934_s0 }
 0x3cc   :  { %7499 = vrot.lane.b32.xlu1 %v6368_v13, %s12935_s10 }
 0x3cd   :  { %v8360_v61 = vpop.permute.xlu0 %8359 }
 0x3ce   :  { %v4506_v55 = vpop.permute.xlu1 %4505  ;;  %8568 = vst.msk [vmem:[#allocation2 + $0x7f] sm:$0x1] %vm2980_vm1, %v8360_v61 }
 0x3cf   :  { %4715 = vst.msk [vmem:[#allocation2 + $0x65] sm:$0x1] %vm2980_vm1, %v4506_v55  ;;  %7787 = vrot.lane.b32.xlu0 %v6368_v13, %s12936_s11 }
 0x3d0   :  { %8075 = vrot.lane.b32.xlu1 %v6368_v13, %s12937_s12 }
 0x3d1   :  { %v4794_v4 = vpop.permute.xlu0 %4793 }
 0x3d2   :  { %v5082_v34 = vpop.permute.xlu1 %5081  ;;  %5003 = vst.msk [vmem:[#allocation2 + $0x66] sm:$0x1] %vm2980_vm1, %v4794_v4 }
 0x3d3   :  { %5291 = vst.msk [vmem:[#allocation2 + $0x67] sm:$0x1] %vm2980_vm1, %v5082_v34  ;;  %8363 = vrot.lane.b32.xlu0 %v6368_v13, %s12938_s13 }
 0x3d4   :  { %4509 = vrot.lane.b32.xlu1 %v13496_v53, %s12936_s11 }
 0x3d5   :  { %v6630_v2 = vpop.permute.xlu0 %6629  ;;  %v8648_v60 = vld [vmem:[#allocation2 + $0x78] sm:$0xff] }
 0x3d6   :  { %v6918_v43 = vpop.permute.xlu1 %6917  ;;  %6839 = vst.msk [vmem:[#allocation2 + $0x69] sm:$0x1] %vm2980_vm1, %v6630_v2  ;;  %v8816_v46 = vpack.c.bf16 %v8648_v60, %v8647_v8  ;;  %v17746_v60 = vld [vmem:[#allocation24_spill] sm:$0xff] }
 0x3d7   :  { %7127 = vst.msk [vmem:[#allocation2 + $0x6a] sm:$0x1] %vm2980_vm1, %v6918_v43  ;;  %4797 = vrot.lane.b32.xlu0 %v13496_v53, %s12937_s12 }
 0x3d8   :  { %5085 = vrot.lane.b32.xlu1 %v13496_v53, %s12938_s13  ;;  %12355 = vmatpush3.bf16.msra.mxu1 %v8816_v46  ;;  %v6392_v46 = vrot.slane %v17746_v60, %v13143_v49 }
 0x3d9   :  { %v7206_v13 = vpop.permute.xlu0 %7205  ;;  %12366 = vmatprep.subr.bf16.mxu1 %v17600_v24 }
 0x3da   :  { %v7494_v27 = vpop.permute.xlu1 %7493  ;;  %7415 = vst.msk [vmem:[#allocation2 + $0x6b] sm:$0x1] %vm2980_vm1, %v7206_v13  ;;  %v8645_v2 = vld [vmem:[#allocation2 + $0x60] sm:$0xff] }
 0x3db   :  { %7703 = vst.msk [vmem:[#allocation2 + $0x6c] sm:$0x1] %vm2980_vm1, %v7494_v27  ;;  %6633 = vrot.lane.b32.xlu0 %v6364_v16, %s12932_s4 }
 0x3dc   :  { %6921 = vrot.lane.b32.xlu1 %v6364_v16, %s12933_s5 }
 0x3dd   :  { %v7782_v33 = vpop.permute.xlu0 %7781 }
 0x3de   :  { %v8070_v6 = vpop.permute.xlu1 %8069  ;;  %7991 = vst.msk [vmem:[#allocation2 + $0x6d] sm:$0x1] %vm2980_vm1, %v7782_v33 }
 0x3df   :  { %8279 = vst.msk [vmem:[#allocation2 + $0x6e] sm:$0x1] %vm2980_vm1, %v8070_v6  ;;  %7209 = vrot.lane.b32.xlu0 %v6364_v16, %s12934_s0 }
 0x3e0   :  { %7497 = vrot.lane.b32.xlu1 %v6364_v16, %s12935_s10 }
 0x3e1   :  { %v8358_v53 = vpop.permute.xlu0 %8357 }
 0x3e2   :  { %v4504_v47 = vpop.permute.xlu1 %4503  ;;  %8567 = vst.msk [vmem:[#allocation2 + $0x6f] sm:$0x1] %vm2980_vm1, %v8358_v53 }
 0x3e3   :  { %4714 = vst.msk [vmem:[#allocation2 + $0x55] sm:$0x1] %vm2980_vm1, %v4504_v47  ;;  %7785 = vrot.lane.b32.xlu0 %v6364_v16, %s12936_s11 }
 0x3e4   :  { %8073 = vrot.lane.b32.xlu1 %v6364_v16, %s12937_s12 }
 0x3e5   :  { %v4792_v61 = vpop.permute.xlu0 %4791 }
 0x3e6   :  { %v5080_v55 = vpop.permute.xlu1 %5079  ;;  %5002 = vst.msk [vmem:[#allocation2 + $0x56] sm:$0x1] %vm2980_vm1, %v4792_v61 }
 0x3e7   :  { %5290 = vst.msk [vmem:[#allocation2 + $0x57] sm:$0x1] %vm2980_vm1, %v5080_v55  ;;  %8361 = vrot.lane.b32.xlu0 %v6364_v16, %s12938_s13 }
 0x3e8   :  { %4523 = vrot.lane.b32.xlu1 %v13659_v20, %s12936_s11 }
 0x3e9   :  { %v6628_v4 = vpop.permute.xlu0 %6627  ;;  %v8646_v43 = vld [vmem:[#allocation2 + $0x68] sm:$0xff] }
 0x3ea   :  { %v6916_v34 = vpop.permute.xlu1 %6915  ;;  %6838 = vst.msk [vmem:[#allocation2 + $0x59] sm:$0x1] %vm2980_vm1, %v6628_v4  ;;  %v8815_v8 = vpack.c.bf16 %v8646_v43, %v8645_v2  ;;  %v17747_v2 = vld [vmem:[#allocation22_spill] sm:$0xff] }
 0x3eb   :  { %7126 = vst.msk [vmem:[#allocation2 + $0x5a] sm:$0x1] %vm2980_vm1, %v6916_v34  ;;  %4811 = vrot.lane.b32.xlu0 %v13659_v20, %s12937_s12  ;;  %v6388_v43 = vrot.slane %v17747_v2, %v13143_v49 }
 0x3ec   :  { %5099 = vrot.lane.b32.xlu1 %v13659_v20, %s12938_s13  ;;  %12349 = vmatpush3.bf16.msra.mxu0 %v8815_v8 }
 0x3ed   :  { %v7204_v42 = vpop.permute.xlu0 %7203  ;;  %12360 = vmatprep.subr.bf16.mxu0 %v17600_v24 }
 0x3ee   :  { %v7492_v16 = vpop.permute.xlu1 %7491  ;;  %7414 = vst.msk [vmem:[#allocation2 + $0x5b] sm:$0x1] %vm2980_vm1, %v7204_v42  ;;  %v8643_v55 = vld [vmem:[#allocation2 + $0x50] sm:$0xff] }
 0x3ef   :  { %7702 = vst.msk [vmem:[#allocation2 + $0x5c] sm:$0x1] %vm2980_vm1, %v7492_v16  ;;  %6647 = vrot.lane.b32.xlu0 %v6392_v46, %s12932_s4 }
 0x3f0   :  { %6935 = vrot.lane.b32.xlu1 %v6392_v46, %s12933_s5 }
 0x3f1   :  { %v7780_v13 = vpop.permute.xlu0 %7779 }
 0x3f2   :  { %v8068_v27 = vpop.permute.xlu1 %8067  ;;  %7990 = vst.msk [vmem:[#allocation2 + $0x5d] sm:$0x1] %vm2980_vm1, %v7780_v13 }
 0x3f3   :  { %8278 = vst.msk [vmem:[#allocation2 + $0x5e] sm:$0x1] %vm2980_vm1, %v8068_v27  ;;  %7223 = vrot.lane.b32.xlu0 %v6392_v46, %s12934_s0 }
 0x3f4   :  { %7511 = vrot.lane.b32.xlu1 %v6392_v46, %s12935_s10 }
 0x3f5   :  { %v8356_v20 = vpop.permute.xlu0 %8355 }
 0x3f6   :  { %v4502_v33 = vpop.permute.xlu1 %4501  ;;  %8566 = vst.msk [vmem:[#allocation2 + $0x5f] sm:$0x1] %vm2980_vm1, %v8356_v20 }
 0x3f7   :  { %4713 = vst.msk [vmem:[#allocation2 + $0x45] sm:$0x1] %vm2980_vm1, %v4502_v33  ;;  %7799 = vrot.lane.b32.xlu0 %v6392_v46, %s12936_s11 }
 0x3f8   :  { %8087 = vrot.lane.b32.xlu1 %v6392_v46, %s12937_s12 }
 0x3f9   :  { %v4790_v6 = vpop.permute.xlu0 %4789 }
 0x3fa   :  { %v5078_v53 = vpop.permute.xlu1 %5077  ;;  %5001 = vst.msk [vmem:[#allocation2 + $0x46] sm:$0x1] %vm2980_vm1, %v4790_v6 }
 0x3fb   :  { %5289 = vst.msk [vmem:[#allocation2 + $0x47] sm:$0x1] %vm2980_vm1, %v5078_v53  ;;  %8375 = vrot.lane.b32.xlu0 %v6392_v46, %s12938_s13 }
 0x3fc   :  { %4521 = vrot.lane.b32.xlu1 %v13667_v35, %s12936_s11 }
 0x3fd   :  { %v6626_v47 = vpop.permute.xlu0 %6625  ;;  %v8644_v4 = vld [vmem:[#allocation2 + $0x58] sm:$0xff] }
 0x3fe   :  { %v6914_v61 = vpop.permute.xlu1 %6913  ;;  %6837 = vst.msk [vmem:[#allocation2 + $0x49] sm:$0x1] %vm2980_vm1, %v6626_v47  ;;  %v8780_v34 = vpack.c.bf16 %v8644_v4, %v8643_v55 }
 0x3ff   :  { %7125 = vst.msk [vmem:[#allocation2 + $0x4a] sm:$0x1] %vm2980_vm1, %v6914_v61  ;;  %4809 = vrot.lane.b32.xlu0 %v13667_v35, %s12937_s12  ;;  %v17748_v61 = vld [vmem:[#allocation23_spill] sm:$0xff] }
 0x400   :  { %5097 = vrot.lane.b32.xlu1 %v13667_v35, %s12938_s13  ;;  %12357 = vmatmul.mubr.msk.bf16.vlgmr.msra.gmra.mrb[76].mxu1 %vm145_vm0, %v8780_v34  ;;  %v6384_v55 = vrot.slane %v17748_v61, %v13143_v49 }
 0x401   :  { %v7202_v8 = vpop.permute.xlu0 %7201  ;;  %12368 = vmatprep.mubr.msk.bf16.mxu1 %vm12940_vm2, %v17600_v24 }
 0x402   :  { %v7490_v60 = vpop.permute.xlu1 %7489  ;;  %7413 = vst.msk [vmem:[#allocation2 + $0x4b] sm:$0x1] %vm2980_vm1, %v7202_v8  ;;  %v8641_v6 = vld [vmem:[#allocation2 + $0x40] sm:$0xff] }
 0x403   :  { %7701 = vst.msk [vmem:[#allocation2 + $0x4c] sm:$0x1] %vm2980_vm1, %v7490_v60  ;;  %6645 = vrot.lane.b32.xlu0 %v6388_v43, %s12932_s4 }
 0x404   :  { %6933 = vrot.lane.b32.xlu1 %v6388_v43, %s12933_s5 }
 0x405   :  { %v7778_v46 = vpop.permute.xlu0 %7777 }
 0x406   :  { %v8066_v35 = vpop.permute.xlu1 %8065  ;;  %7989 = vst.msk [vmem:[#allocation2 + $0x4d] sm:$0x1] %vm2980_vm1, %v7778_v46 }
 0x407   :  { %8277 = vst.msk [vmem:[#allocation2 + $0x4e] sm:$0x1] %vm2980_vm1, %v8066_v35  ;;  %7221 = vrot.lane.b32.xlu0 %v6388_v43, %s12934_s0 }
 0x408   :  { %7509 = vrot.lane.b32.xlu1 %v6388_v43, %s12935_s10 }
 0x409   :  { %v8354_v42 = vpop.permute.xlu0 %8353 }
 0x40a   :  { %v4516_v16 = vpop.permute.xlu1 %4515  ;;  %8565 = vst.msk [vmem:[#allocation2 + $0x4f] sm:$0x1] %vm2980_vm1, %v8354_v42 }
 0x40b   :  { %4720 = vst.msk [vmem:[#allocation2 + $0xb5] sm:$0x1] %vm2980_vm1, %v4516_v16  ;;  %7797 = vrot.lane.b32.xlu0 %v6388_v43, %s12936_s11 }
 0x40c   :  { %8085 = vrot.lane.b32.xlu1 %v6388_v43, %s12937_s12 }
 0x40d   :  { %v4804_v13 = vpop.permute.xlu0 %4803 }
 0x40e   :  { %v5092_v27 = vpop.permute.xlu1 %5091  ;;  %5008 = vst.msk [vmem:[#allocation2 + $0xb6] sm:$0x1] %vm2980_vm1, %v4804_v13 }
 0x40f   :  { %5296 = vst.msk [vmem:[#allocation2 + $0xb7] sm:$0x1] %vm2980_vm1, %v5092_v27  ;;  %8373 = vrot.lane.b32.xlu0 %v6388_v43, %s12938_s13 }
 0x410   :  { %4519 = vrot.lane.b32.xlu1 %v13647_v18, %s12936_s11 }
 0x411   :  { %v6640_v20 = vpop.permute.xlu0 %6639  ;;  %v8642_v53 = vld [vmem:[#allocation2 + $0x48] sm:$0xff] }
 0x412   :  { %v6928_v33 = vpop.permute.xlu1 %6927  ;;  %6844 = vst.msk [vmem:[#allocation2 + $0xb9] sm:$0x1] %vm2980_vm1, %v6640_v20  ;;  %v8779_v47 = vpack.c.bf16 %v8642_v53, %v8641_v6  ;;  %v17749_v20 = vld [vmem:[#allocation21_spill] sm:$0xff] }
 0x413   :  { %7132 = vst.msk [vmem:[#allocation2 + $0xba] sm:$0x1] %vm2980_vm1, %v6928_v33  ;;  %4807 = vrot.lane.b32.xlu0 %v13647_v18, %s12937_s12  ;;  %v6380_v33 = vrot.slane %v17749_v20, %v13143_v49 }
 0x414   :  { %5095 = vrot.lane.b32.xlu1 %v13647_v18, %s12938_s13  ;;  %12351 = vmatmul.mubr.msk.bf16.vlgmr.msra.gmra.mrb[76].mxu0 %vm145_vm0, %v8779_v47 }
 0x415   :  { %v7216_v4 = vpop.permute.xlu0 %7215  ;;  %12362 = vmatprep.mubr.msk.bf16.mxu0 %vm12940_vm2, %v17600_v24 }
 0x416   :  { %v7504_v34 = vpop.permute.xlu1 %7503  ;;  %7420 = vst.msk [vmem:[#allocation2 + $0xbb] sm:$0x1] %vm2980_vm1, %v7216_v4  ;;  %v8655_v16 = vld [vmem:[#allocation2 + $0xb0] sm:$0xff] }
 0x417   :  { %7708 = vst.msk [vmem:[#allocation2 + $0xbc] sm:$0x1] %vm2980_vm1, %v7504_v34  ;;  %6643 = vrot.lane.b32.xlu0 %v6384_v55, %s12932_s4 }
 0x418   :  { %6931 = vrot.lane.b32.xlu1 %v6384_v55, %s12933_s5 }
 0x419   :  { %v7792_v2 = vpop.permute.xlu0 %7791 }
 0x41a   :  { %v8080_v18 = vpop.permute.xlu1 %8079  ;;  %7996 = vst.msk [vmem:[#allocation2 + $0xbd] sm:$0x1] %vm2980_vm1, %v7792_v2 }
 0x41b   :  { %8284 = vst.msk [vmem:[#allocation2 + $0xbe] sm:$0x1] %vm2980_vm1, %v8080_v18  ;;  %7219 = vrot.lane.b32.xlu0 %v6384_v55, %s12934_s0 }
 0x41c   :  { %7507 = vrot.lane.b32.xlu1 %v6384_v55, %s12935_s10 }
 0x41d   :  { %v8368_v43 = vpop.permute.xlu0 %8367 }
 0x41e   :  { %v4514_v8 = vpop.permute.xlu1 %4513  ;;  %8572 = vst.msk [vmem:[#allocation2 + $0xbf] sm:$0x1] %vm2980_vm1, %v8368_v43 }
 0x41f   :  { %4719 = vst.msk [vmem:[#allocation2 + $0xa5] sm:$0x1] %vm2980_vm1, %v4514_v8  ;;  %7795 = vrot.lane.b32.xlu0 %v6384_v55, %s12936_s11 }
 0x420   :  { %8083 = vrot.lane.b32.xlu1 %v6384_v55, %s12937_s12 }
 0x421   :  { %v4802_v60 = vpop.permute.xlu0 %4801 }
 0x422   :  { %v5090_v46 = vpop.permute.xlu1 %5089  ;;  %5007 = vst.msk [vmem:[#allocation2 + $0xa6] sm:$0x1] %vm2980_vm1, %v4802_v60 }
 0x423   :  { %5295 = vst.msk [vmem:[#allocation2 + $0xa7] sm:$0x1] %vm2980_vm1, %v5090_v46  ;;  %8371 = vrot.lane.b32.xlu0 %v6384_v55, %s12938_s13  ;;  %v17750_v46 = vld [vmem:[#allocation28_spill] sm:$0xff] }
 0x424   :  { %4517 = vrot.lane.b32.xlu1 %v13655_v19, %s12936_s11 }
 0x425   :  { %v6638_v35 = vpop.permute.xlu0 %6637  ;;  %v8656_v13 = vld [vmem:[#allocation2 + $0xb8] sm:$0xff] }
 0x426   :  { %v6926_v42 = vpop.permute.xlu1 %6925  ;;  %6843 = vst.msk [vmem:[#allocation2 + $0xa9] sm:$0x1] %vm2980_vm1, %v6638_v35  ;;  %v8818_v27 = vpack.c.bf16 %v8656_v13, %v8655_v16  ;;  %v6408_v35 = vrot.slane %v17750_v46, %v13143_v49 }
 0x427   :  { %7131 = vst.msk [vmem:[#allocation2 + $0xaa] sm:$0x1] %vm2980_vm1, %v6926_v42  ;;  %4805 = vrot.lane.b32.xlu0 %v13655_v19, %s12937_s12 }
 0x428   :  { %5093 = vrot.lane.b32.xlu1 %v13655_v19, %s12938_s13  ;;  %12367 = vmatpush3.bf16.msra.mxu1 %v8818_v27 }
 0x429   :  { %v7214_v6 = vpop.permute.xlu0 %7213  ;;  %12378 = vmatprep.subr.bf16.mxu1 %v17600_v24 }
 0x42a   :  { %v7502_v53 = vpop.permute.xlu1 %7501  ;;  %7419 = vst.msk [vmem:[#allocation2 + $0xab] sm:$0x1] %vm2980_vm1, %v7214_v6  ;;  %v8653_v43 = vld [vmem:[#allocation2 + $0xa0] sm:$0xff] }
 0x42b   :  { %7707 = vst.msk [vmem:[#allocation2 + $0xac] sm:$0x1] %vm2980_vm1, %v7502_v53  ;;  %6641 = vrot.lane.b32.xlu0 %v6380_v33, %s12932_s4 }
 0x42c   :  { %6929 = vrot.lane.b32.xlu1 %v6380_v33, %s12933_s5 }
 0x42d   :  { %v7790_v47 = vpop.permute.xlu0 %7789 }
 0x42e   :  { %v8078_v61 = vpop.permute.xlu1 %8077  ;;  %7995 = vst.msk [vmem:[#allocation2 + $0xad] sm:$0x1] %vm2980_vm1, %v7790_v47 }
 0x42f   :  { %8283 = vst.msk [vmem:[#allocation2 + $0xae] sm:$0x1] %vm2980_vm1, %v8078_v61  ;;  %7217 = vrot.lane.b32.xlu0 %v6380_v33, %s12934_s0 }
 0x430   :  { %7505 = vrot.lane.b32.xlu1 %v6380_v33, %s12935_s10 }
 0x431   :  { %v8366_v19 = vpop.permute.xlu0 %8365 }
 0x432   :  { %v4512_v55 = vpop.permute.xlu1 %4511  ;;  %8571 = vst.msk [vmem:[#allocation2 + $0xaf] sm:$0x1] %vm2980_vm1, %v8366_v19 }
 0x433   :  { %4718 = vst.msk [vmem:[#allocation2 + $0x95] sm:$0x1] %vm2980_vm1, %v4512_v55  ;;  %7793 = vrot.lane.b32.xlu0 %v6380_v33, %s12936_s11 }
 0x434   :  { %8081 = vrot.lane.b32.xlu1 %v6380_v33, %s12937_s12 }
 0x435   :  { %v4800_v4 = vpop.permute.xlu0 %4799 }
 0x436   :  { %v5088_v34 = vpop.permute.xlu1 %5087  ;;  %5006 = vst.msk [vmem:[#allocation2 + $0x96] sm:$0x1] %vm2980_vm1, %v4800_v4  ;;  %v17751_v4 = vld [vmem:[#allocation26_spill] sm:$0xff] }
 0x437   :  { %5294 = vst.msk [vmem:[#allocation2 + $0x97] sm:$0x1] %vm2980_vm1, %v5088_v34  ;;  %8369 = vrot.lane.b32.xlu0 %v6380_v33, %s12938_s13  ;;  %v6404_v34 = vrot.slane %v17751_v4, %v13143_v49 }
 0x438   :  { %4531 = vrot.lane.b32.xlu1 %v17717_v29, %s12936_s11 }
 0x439   :  { %v6636_v2 = vpop.permute.xlu0 %6635  ;;  %v8654_v8 = vld [vmem:[#allocation2 + $0xa8] sm:$0xff] }
 0x43a   :  { %v6924_v18 = vpop.permute.xlu1 %6923  ;;  %6842 = vst.msk [vmem:[#allocation2 + $0x99] sm:$0x1] %vm2980_vm1, %v6636_v2  ;;  %v8817_v60 = vpack.c.bf16 %v8654_v8, %v8653_v43 }
 0x43b   :  { %7130 = vst.msk [vmem:[#allocation2 + $0x9a] sm:$0x1] %vm2980_vm1, %v6924_v18  ;;  %4819 = vrot.lane.b32.xlu0 %v17717_v29, %s12937_s12 }
 0x43c   :  { %5107 = vrot.lane.b32.xlu1 %v17717_v29, %s12938_s13  ;;  %12361 = vmatpush3.bf16.msra.mxu0 %v8817_v60 }
 0x43d   :  { %v7212_v42 = vpop.permute.xlu0 %7211  ;;  %12372 = vmatprep.subr.bf16.mxu0 %v17600_v24 }
 0x43e   :  { %v7500_v16 = vpop.permute.xlu1 %7499  ;;  %7418 = vst.msk [vmem:[#allocation2 + $0x9b] sm:$0x1] %vm2980_vm1, %v7212_v42  ;;  %v8651_v61 = vld [vmem:[#allocation2 + $0x90] sm:$0xff] }
 0x43f   :  { %7706 = vst.msk [vmem:[#allocation2 + $0x9c] sm:$0x1] %vm2980_vm1, %v7500_v16  ;;  %6655 = vrot.lane.b32.xlu0 %v6408_v35, %s12932_s4 }
 0x440   :  { %6943 = vrot.lane.b32.xlu1 %v6408_v35, %s12933_s5 }
 0x441   :  { %v7788_v13 = vpop.permute.xlu0 %7787 }
 0x442   :  { %v8076_v27 = vpop.permute.xlu1 %8075  ;;  %7994 = vst.msk [vmem:[#allocation2 + $0x9d] sm:$0x1] %vm2980_vm1, %v7788_v13 }
 0x443   :  { %8282 = vst.msk [vmem:[#allocation2 + $0x9e] sm:$0x1] %vm2980_vm1, %v8076_v27  ;;  %7231 = vrot.lane.b32.xlu0 %v6408_v35, %s12934_s0 }
 0x444   :  { %7519 = vrot.lane.b32.xlu1 %v6408_v35, %s12935_s10 }
 0x445   :  { %v8364_v29 = vpop.permute.xlu0 %8363 }
 0x446   :  { %v4510_v20 = vpop.permute.xlu1 %4509  ;;  %8570 = vst.msk [vmem:[#allocation2 + $0x9f] sm:$0x1] %vm2980_vm1, %v8364_v29 }
 0x447   :  { %4717 = vst.msk [vmem:[#allocation2 + $0x85] sm:$0x1] %vm2980_vm1, %v4510_v20  ;;  %7807 = vrot.lane.b32.xlu0 %v6408_v35, %s12936_s11  ;;  %v17752_v20 = vld [vmem:[#allocation27_spill] sm:$0xff] }
 0x448   :  { %8095 = vrot.lane.b32.xlu1 %v6408_v35, %s12937_s12 }
 0x449   :  { %v4798_v33 = vpop.permute.xlu0 %4797 }
 0x44a   :  { %v5086_v6 = vpop.permute.xlu1 %5085  ;;  %5005 = vst.msk [vmem:[#allocation2 + $0x86] sm:$0x1] %vm2980_vm1, %v4798_v33  ;;  %v6400_v33 = vrot.slane %v17752_v20, %v13143_v49 }
 0x44b   :  { %5293 = vst.msk [vmem:[#allocation2 + $0x87] sm:$0x1] %vm2980_vm1, %v5086_v6  ;;  %8383 = vrot.lane.b32.xlu0 %v6408_v35, %s12938_s13 }
 0x44c   :  { %4529 = vrot.lane.b32.xlu1 %v17716_v30, %s12936_s11 }
 0x44d   :  { %v6634_v53 = vpop.permute.xlu0 %6633  ;;  %v8652_v19 = vld [vmem:[#allocation2 + $0x98] sm:$0xff] }
 0x44e   :  { %v6922_v47 = vpop.permute.xlu1 %6921  ;;  %6841 = vst.msk [vmem:[#allocation2 + $0x89] sm:$0x1] %vm2980_vm1, %v6634_v53  ;;  %v8782_v55 = vpack.c.bf16 %v8652_v19, %v8651_v61 }
 0x44f   :  { %7129 = vst.msk [vmem:[#allocation2 + $0x8a] sm:$0x1] %vm2980_vm1, %v6922_v47  ;;  %4817 = vrot.lane.b32.xlu0 %v17716_v30, %s12937_s12 }
 0x450   :  { %5105 = vrot.lane.b32.xlu1 %v17716_v30, %s12938_s13  ;;  %12369 = vmatmul.mubr.msk.bf16.vlgmr.msra.gmra.mrb[80].mxu1 %vm145_vm0, %v8782_v55 }
 0x451   :  { %v7210_v2 = vpop.permute.xlu0 %7209  ;;  %12380 = vmatprep.mubr.msk.bf16.mxu1 %vm12940_vm2, %v17600_v24 }
 0x452   :  { %v7498_v18 = vpop.permute.xlu1 %7497  ;;  %7417 = vst.msk [vmem:[#allocation2 + $0x8b] sm:$0x1] %vm2980_vm1, %v7210_v2  ;;  %v8649_v13 = vld [vmem:[#allocation2 + $0x80] sm:$0xff] }
 0x453   :  { %7705 = vst.msk [vmem:[#allocation2 + $0x8c] sm:$0x1] %vm2980_vm1, %v7498_v18  ;;  %6653 = vrot.lane.b32.xlu0 %v6404_v34, %s12932_s4 }
 0x454   :  { %6941 = vrot.lane.b32.xlu1 %v6404_v34, %s12933_s5 }
 0x455   :  { %v7786_v43 = vpop.permute.xlu0 %7785 }
 0x456   :  { %v8074_v30 = vpop.permute.xlu1 %8073  ;;  %7993 = vst.msk [vmem:[#allocation2 + $0x8d] sm:$0x1] %vm2980_vm1, %v7786_v43 }
 0x457   :  { %8281 = vst.msk [vmem:[#allocation2 + $0x8e] sm:$0x1] %vm2980_vm1, %v8074_v30  ;;  %7229 = vrot.lane.b32.xlu0 %v6404_v34, %s12934_s0 }
 0x458   :  { %7517 = vrot.lane.b32.xlu1 %v6404_v34, %s12935_s10 }
 0x459   :  { %v8362_v8 = vpop.permute.xlu0 %8361 }
 0x45a   :  { %v4524_v60 = vpop.permute.xlu1 %4523  ;;  %8569 = vst.msk [vmem:[#allocation2 + $0x8f] sm:$0x1] %vm2980_vm1, %v8362_v8  ;;  %v17753_v8 = vld [vmem:[#allocation25_spill] sm:$0xff] }
 0x45b   :  { %4724 = vst.msk [vmem:[#allocation2 + $0xf5] sm:$0x1] %vm2980_vm1, %v4524_v60  ;;  %7805 = vrot.lane.b32.xlu0 %v6404_v34, %s12936_s11  ;;  %v6396_v60 = vrot.slane %v17753_v8, %v13143_v49 }
 0x45c   :  { %8093 = vrot.lane.b32.xlu1 %v6404_v34, %s12937_s12 }
 0x45d   :  { %v4812_v46 = vpop.permute.xlu0 %4811 }
 0x45e   :  { %v5100_v35 = vpop.permute.xlu1 %5099  ;;  %5012 = vst.msk [vmem:[#allocation2 + $0xf6] sm:$0x1] %vm2980_vm1, %v4812_v46 }
 0x45f   :  { %5300 = vst.msk [vmem:[#allocation2 + $0xf7] sm:$0x1] %vm2980_vm1, %v5100_v35  ;;  %8381 = vrot.lane.b32.xlu0 %v6404_v34, %s12938_s13 }
 0x460   :  { %4527 = vrot.lane.b32.xlu1 %v17715_v7, %s12936_s11 }
 0x461   :  { %v6648_v42 = vpop.permute.xlu0 %6647  ;;  %v8650_v27 = vld [vmem:[#allocation2 + $0x88] sm:$0xff] }
 0x462   :  { %v6936_v16 = vpop.permute.xlu1 %6935  ;;  %6848 = vst.msk [vmem:[#allocation2 + $0xf9] sm:$0x1] %vm2980_vm1, %v6648_v42  ;;  %v8781_v29 = vpack.c.bf16 %v8650_v27, %v8649_v13 }
 0x463   :  { %7136 = vst.msk [vmem:[#allocation2 + $0xfa] sm:$0x1] %vm2980_vm1, %v6936_v16  ;;  %4815 = vrot.lane.b32.xlu0 %v17715_v7, %s12937_s12 }
 0x464   :  { %5103 = vrot.lane.b32.xlu1 %v17715_v7, %s12938_s13  ;;  %12363 = vmatmul.mubr.msk.bf16.vlgmr.msra.gmra.mrb[80].mxu0 %vm145_vm0, %v8781_v29 }
 0x465   :  { %v7224_v6 = vpop.permute.xlu0 %7223  ;;  %12374 = vmatprep.mubr.msk.bf16.mxu0 %vm12940_vm2, %v17600_v24 }
 0x466   :  { %v7512_v53 = vpop.permute.xlu1 %7511  ;;  %7424 = vst.msk [vmem:[#allocation2 + $0xfb] sm:$0x1] %vm2980_vm1, %v7224_v6  ;;  %v8663_v18 = vld [vmem:[#allocation2 + $0xf0] sm:$0xff] }
 0x467   :  { %7712 = vst.msk [vmem:[#allocation2 + $0xfc] sm:$0x1] %vm2980_vm1, %v7512_v53  ;;  %6651 = vrot.lane.b32.xlu0 %v6400_v33, %s12932_s4 }
 0x468   :  { %6939 = vrot.lane.b32.xlu1 %v6400_v33, %s12933_s5 }
 0x469   :  { %v7800_v47 = vpop.permute.xlu0 %7799 }
 0x46a   :  { %v8088_v7 = vpop.permute.xlu1 %8087  ;;  %8000 = vst.msk [vmem:[#allocation2 + $0xfd] sm:$0x1] %vm2980_vm1, %v7800_v47 }
 0x46b   :  { %8288 = vst.msk [vmem:[#allocation2 + $0xfe] sm:$0x1] %vm2980_vm1, %v8088_v7  ;;  %7227 = vrot.lane.b32.xlu0 %v6400_v33, %s12934_s0 }
 0x46c   :  { %7515 = vrot.lane.b32.xlu1 %v6400_v33, %s12935_s10 }
 0x46d   :  { %v8376_v61 = vpop.permute.xlu0 %8375 }
 0x46e   :  { %v4522_v19 = vpop.permute.xlu1 %4521  ;;  %8576 = vst.msk [vmem:[#allocation2 + $0xff] sm:$0x1] %vm2980_vm1, %v8376_v61 }
 0x46f   :  { %4723 = vst.msk [vmem:[#allocation2 + $0xe5] sm:$0x1] %vm2980_vm1, %v4522_v19  ;;  %7803 = vrot.lane.b32.xlu0 %v6400_v33, %s12936_s11 }
 0x470   :  { %8091 = vrot.lane.b32.xlu1 %v6400_v33, %s12937_s12 }
 0x471   :  { %v4810_v55 = vpop.permute.xlu0 %4809 }
 0x472   :  { %v5098_v4 = vpop.permute.xlu1 %5097  ;;  %5011 = vst.msk [vmem:[#allocation2 + $0xe6] sm:$0x1] %vm2980_vm1, %v4810_v55 }
 0x473   :  { %5299 = vst.msk [vmem:[#allocation2 + $0xe7] sm:$0x1] %vm2980_vm1, %v5098_v4  ;;  %8379 = vrot.lane.b32.xlu0 %v6400_v33, %s12938_s13 }
 0x474   :  { %4525 = vrot.lane.b32.xlu1 %v13739_v63, %s12936_s11 }
 0x475   :  { %v6646_v34 = vpop.permute.xlu0 %6645  ;;  %v8664_v43 = vld [vmem:[#allocation2 + $0xf8] sm:$0xff] }
 0x476   :  { %v6934_v2 = vpop.permute.xlu1 %6933  ;;  %6847 = vst.msk [vmem:[#allocation2 + $0xe9] sm:$0x1] %vm2980_vm1, %v6646_v34  ;;  %v8820_v30 = vpack.c.bf16 %v8664_v43, %v8663_v18  ;;  %v17754_v34 = vld [vmem:[#allocation32_spill] sm:$0xff] }
 0x477   :  { %7135 = vst.msk [vmem:[#allocation2 + $0xea] sm:$0x1] %vm2980_vm1, %v6934_v2  ;;  %4813 = vrot.lane.b32.xlu0 %v13739_v63, %s12937_s12  ;;  %v6424_v2 = vrot.slane %v17754_v34, %v13143_v49 }
 0x478   :  { %5101 = vrot.lane.b32.xlu1 %v13739_v63, %s12938_s13  ;;  %12379 = vmatpush3.bf16.msra.mxu1 %v8820_v30 }
 0x479   :  { %v7222_v46 = vpop.permute.xlu0 %7221  ;;  %12390 = vmatprep.subr.bf16.mxu1 %v17600_v24 }
 0x47a   :  { %v7510_v35 = vpop.permute.xlu1 %7509  ;;  %7423 = vst.msk [vmem:[#allocation2 + $0xeb] sm:$0x1] %vm2980_vm1, %v7222_v46  ;;  %v8661_v61 = vld [vmem:[#allocation2 + $0xe0] sm:$0xff] }
 0x47b   :  { %7711 = vst.msk [vmem:[#allocation2 + $0xec] sm:$0x1] %vm2980_vm1, %v7510_v35  ;;  %6649 = vrot.lane.b32.xlu0 %v6396_v60, %s12932_s4 }
 0x47c   :  { %6937 = vrot.lane.b32.xlu1 %v6396_v60, %s12933_s5 }
 0x47d   :  { %v7798_v42 = vpop.permute.xlu0 %7797 }
 0x47e   :  { %v8086_v16 = vpop.permute.xlu1 %8085  ;;  %7999 = vst.msk [vmem:[#allocation2 + $0xed] sm:$0x1] %vm2980_vm1, %v7798_v42 }
 0x47f   :  { %8287 = vst.msk [vmem:[#allocation2 + $0xee] sm:$0x1] %vm2980_vm1, %v8086_v16  ;;  %7225 = vrot.lane.b32.xlu0 %v6396_v60, %s12934_s0 }
 0x480   :  { %7513 = vrot.lane.b32.xlu1 %v6396_v60, %s12935_s10 }
 0x481   :  { %v8374_v63 = vpop.permute.xlu0 %8373 }
 0x482   :  { %v4520_v13 = vpop.permute.xlu1 %4519  ;;  %8575 = vst.msk [vmem:[#allocation2 + $0xef] sm:$0x1] %vm2980_vm1, %v8374_v63 }
 0x483   :  { %4722 = vst.msk [vmem:[#allocation2 + $0xd5] sm:$0x1] %vm2980_vm1, %v4520_v13  ;;  %7801 = vrot.lane.b32.xlu0 %v6396_v60, %s12936_s11  ;;  %v15460_v27 = vpop.f32.mrb[72].mxu1 }
 0x484   :  { %8089 = vrot.lane.b32.xlu1 %v6396_v60, %s12937_s12  ;;  %v12346_v29 = vpop.f32.mrb[73].mxu1 }
 0x485   :  { %v4808_v20 = vpop.permute.xlu0 %4807  ;;  %v15463_v33 = vpop.f32.mrb[74].mxu1 }
 0x486   :  { %5010 = vst.msk [vmem:[#allocation2 + $0xd6] sm:$0x1] %vm2980_vm1, %v4808_v20  ;;  %v5096_v53 = vpop.permute.xlu1 %5095  ;;  %v12347_v47 = vpop.f32.mrb[75].mxu1 }
 0x487   :  { %5298 = vst.msk [vmem:[#allocation2 + $0xd7] sm:$0x1] %vm2980_vm1, %v5096_v53  ;;  %8377 = vrot.lane.b32.xlu0 %v6396_v60, %s12938_s13 }
 0x488   :  { %4539 = vrot.lane.b32.xlu1 %v17721_v38, %s12936_s11 }
 0x489   :  { %v6644_v7 = vpop.permute.xlu0 %6643  ;;  %v8662_v19 = vld [vmem:[#allocation2 + $0xe8] sm:$0xff] }
 0x48a   :  { %6846 = vst.msk [vmem:[#allocation2 + $0xd9] sm:$0x1] %vm2980_vm1, %v6644_v7  ;;  %v6932_v55 = vpop.permute.xlu1 %6931  ;;  %v8819_v4 = vpack.c.bf16 %v8662_v19, %v8661_v61  ;;  %v17755_v19 = vld [vmem:[#allocation30_spill] sm:$0xff] }
 0x48b   :  { %7134 = vst.msk [vmem:[#allocation2 + $0xda] sm:$0x1] %vm2980_vm1, %v6932_v55  ;;  %4827 = vrot.lane.b32.xlu0 %v17721_v38, %s12937_s12  ;;  %v6420_v55 = vrot.slane %v17755_v19, %v13143_v49 }
 0x48c   :  { %5115 = vrot.lane.b32.xlu1 %v17721_v38, %s12938_s13  ;;  %12373 = vmatpush3.bf16.msra.mxu0 %v8819_v4 }
 0x48d   :  { %v7220_v18 = vpop.permute.xlu0 %7219  ;;  %12384 = vmatprep.subr.bf16.mxu0 %v17600_v24 }
 0x48e   :  { %7422 = vst.msk [vmem:[#allocation2 + $0xdb] sm:$0x1] %vm2980_vm1, %v7220_v18  ;;  %v7508_v43 = vpop.permute.xlu1 %7507  ;;  %v8659_v53 = vld [vmem:[#allocation2 + $0xd0] sm:$0xff] }
 0x48f   :  { %7710 = vst.msk [vmem:[#allocation2 + $0xdc] sm:$0x1] %vm2980_vm1, %v7508_v43  ;;  %6663 = vrot.lane.b32.xlu0 %v6424_v2, %s12932_s4 }
 0x490   :  { %6951 = vrot.lane.b32.xlu1 %v6424_v2, %s12933_s5 }
 0x491   :  { %v7796_v30 = vpop.permute.xlu0 %7795 }
 0x492   :  { %7998 = vst.msk [vmem:[#allocation2 + $0xdd] sm:$0x1] %vm2980_vm1, %v7796_v30  ;;  %v8084_v38 = vpop.permute.xlu1 %8083 }
 0x493   :  { %8286 = vst.msk [vmem:[#allocation2 + $0xde] sm:$0x1] %vm2980_vm1, %v8084_v38  ;;  %7239 = vrot.lane.b32.xlu0 %v6424_v2, %s12934_s0 }
 0x494   :  { %7527 = vrot.lane.b32.xlu1 %v6424_v2, %s12935_s10 }
 0x495   :  { %v8372_v8 = vpop.permute.xlu0 %8371 }
 0x496   :  { %8574 = vst.msk [vmem:[#allocation2 + $0xdf] sm:$0x1] %vm2980_vm1, %v8372_v8  ;;  %v4518_v60 = vpop.permute.xlu1 %4517 }
 0x497   :  { %4721 = vst.msk [vmem:[#allocation2 + $0xc5] sm:$0x1] %vm2980_vm1, %v4518_v60  ;;  %7815 = vrot.lane.b32.xlu0 %v6424_v2, %s12936_s11  ;;  %v15493_v46 = vpop.f32.mrb[72].mxu0 }
 0x498   :  { %8103 = vrot.lane.b32.xlu1 %v6424_v2, %s12937_s12  ;;  %v12340_v35 = vpop.f32.mrb[73].mxu0 }
 0x499   :  { %v4806_v42 = vpop.permute.xlu0 %4805  ;;  %v15495_v16 = vpop.f32.mrb[74].mxu0 }
 0x49a   :  { %5009 = vst.msk [vmem:[#allocation2 + $0xc6] sm:$0x1] %vm2980_vm1, %v4806_v42  ;;  %v5094_v63 = vpop.permute.xlu1 %5093  ;;  %v12341_v29 = vpop.f32.mrb[75].mxu0 }
 0x49b   :  { %5297 = vst.msk [vmem:[#allocation2 + $0xc7] sm:$0x1] %vm2980_vm1, %v5094_v63  ;;  %8391 = vrot.lane.b32.xlu0 %v6424_v2, %s12938_s13  ;;  %v17756_v29 = vld [vmem:[#allocation31_spill] sm:$0xff] }
 0x49c   :  { %4537 = vrot.lane.b32.xlu1 %v17720_v37, %s12936_s11 }
 0x49d   :  { %v6642_v20 = vpop.permute.xlu0 %6641  ;;  %v8660_v47 = vld [vmem:[#allocation2 + $0xd8] sm:$0xff] }
 0x49e   :  { %6845 = vst.msk [vmem:[#allocation2 + $0xc9] sm:$0x1] %vm2980_vm1, %v6642_v20  ;;  %v6930_v7 = vpop.permute.xlu1 %6929  ;;  %v8784_v61 = vpack.c.bf16 %v8660_v47, %v8659_v53  ;;  %v6416_v20 = vrot.slane %v17756_v29, %v13143_v49 }
 0x49f   :  { %7133 = vst.msk [vmem:[#allocation2 + $0xca] sm:$0x1] %vm2980_vm1, %v6930_v7  ;;  %4825 = vrot.lane.b32.xlu0 %v17720_v37, %s12937_s12 }
 0x4a0   :  { %5113 = vrot.lane.b32.xlu1 %v17720_v37, %s12938_s13  ;;  %12381 = vmatmul.mubr.msk.bf16.vlgmr.msra.gmra.mrb[84].mxu1 %vm145_vm0, %v8784_v61 }
 0x4a1   :  { %v7218_v4 = vpop.permute.xlu0 %7217  ;;  %12392 = vmatprep.mubr.msk.bf16.mxu1 %vm12940_vm2, %v17600_v24 }
 0x4a2   :  { %7421 = vst.msk [vmem:[#allocation2 + $0xcb] sm:$0x1] %vm2980_vm1, %v7218_v4  ;;  %v7506_v34 = vpop.permute.xlu1 %7505  ;;  %v8657_v60 = vld [vmem:[#allocation2 + $0xc0] sm:$0xff] }
 0x4a3   :  { %7709 = vst.msk [vmem:[#allocation2 + $0xcc] sm:$0x1] %vm2980_vm1, %v7506_v34  ;;  %6661 = vrot.lane.b32.xlu0 %v6420_v55, %s12932_s4 }
 0x4a4   :  { %6949 = vrot.lane.b32.xlu1 %v6420_v55, %s12933_s5 }
 0x4a5   :  { %v7794_v2 = vpop.permute.xlu0 %7793 }
 0x4a6   :  { %7997 = vst.msk [vmem:[#allocation2 + $0xcd] sm:$0x1] %vm2980_vm1, %v7794_v2  ;;  %v8082_v37 = vpop.permute.xlu1 %8081 }
 0x4a7   :  { %8285 = vst.msk [vmem:[#allocation2 + $0xce] sm:$0x1] %vm2980_vm1, %v8082_v37  ;;  %7237 = vrot.lane.b32.xlu0 %v6420_v55, %s12934_s0 }
 0x4a8   :  { %7525 = vrot.lane.b32.xlu1 %v6420_v55, %s12935_s10 }
 0x4a9   :  { %v8370_v18 = vpop.permute.xlu0 %8369 }
 0x4aa   :  { %8573 = vst.msk [vmem:[#allocation2 + $0xcf] sm:$0x1] %vm2980_vm1, %v8370_v18  ;;  %v4532_v43 = vpop.permute.xlu1 %4531 }
 0x4ab   :  { %4728 = vst.msk [vmem:[#allocation2 + $0x135] sm:$0x1] %vm2980_vm1, %v4532_v43  ;;  %7813 = vrot.lane.b32.xlu0 %v6420_v55, %s12936_s11 }
 0x4ac   :  { %8101 = vrot.lane.b32.xlu1 %v6420_v55, %s12937_s12 }
 0x4ad   :  { %v4820_v30 = vpop.permute.xlu0 %4819 }
 0x4ae   :  { %5016 = vst.msk [vmem:[#allocation2 + $0x136] sm:$0x1] %vm2980_vm1, %v4820_v30  ;;  %v5108_v38 = vpop.permute.xlu1 %5107  ;;  %v17757_v30 = vld [vmem:[#allocation29_spill] sm:$0xff] }
 0x4af   :  { %5304 = vst.msk [vmem:[#allocation2 + $0x137] sm:$0x1] %vm2980_vm1, %v5108_v38  ;;  %8389 = vrot.lane.b32.xlu0 %v6420_v55, %s12938_s13  ;;  %v6412_v38 = vrot.slane %v17757_v30, %v13143_v49 }
 0x4b0   :  { %4535 = vrot.lane.b32.xlu1 %v17719_v9, %s12936_s11 }
 0x4b1   :  { %v6656_v8 = vpop.permute.xlu0 %6655  ;;  %v8658_v35 = vld [vmem:[#allocation2 + $0xc8] sm:$0xff] }
 0x4b2   :  { %6852 = vst.msk [vmem:[#allocation2 + $0x139] sm:$0x1] %vm2980_vm1, %v6656_v8  ;;  %v6944_v42 = vpop.permute.xlu1 %6943  ;;  %v8783_v63 = vpack.c.bf16 %v8658_v35, %v8657_v60 }
 0x4b3   :  { %7140 = vst.msk [vmem:[#allocation2 + $0x13a] sm:$0x1] %vm2980_vm1, %v6944_v42  ;;  %4823 = vrot.lane.b32.xlu0 %v17719_v9, %s12937_s12 }
 0x4b4   :  { %5111 = vrot.lane.b32.xlu1 %v17719_v9, %s12938_s13  ;;  %12375 = vmatmul.mubr.msk.bf16.vlgmr.msra.gmra.mrb[84].mxu0 %vm145_vm0, %v8783_v63 }
 0x4b5   :  { %v7232_v53 = vpop.permute.xlu0 %7231  ;;  %12386 = vmatprep.mubr.msk.bf16.mxu0 %vm12940_vm2, %v17600_v24 }
 0x4b6   :  { %7428 = vst.msk [vmem:[#allocation2 + $0x13b] sm:$0x1] %vm2980_vm1, %v7232_v53  ;;  %v7520_v47 = vpop.permute.xlu1 %7519  ;;  %v8671_v2 = vld [vmem:[#allocation2 + $0x130] sm:$0xff] }
 0x4b7   :  { %7716 = vst.msk [vmem:[#allocation2 + $0x13c] sm:$0x1] %vm2980_vm1, %v7520_v47  ;;  %6659 = vrot.lane.b32.xlu0 %v6416_v20, %s12932_s4 }
 0x4b8   :  { %6947 = vrot.lane.b32.xlu1 %v6416_v20, %s12933_s5 }
 0x4b9   :  { %v7808_v7 = vpop.permute.xlu0 %7807 }
 0x4ba   :  { %8004 = vst.msk [vmem:[#allocation2 + $0x13d] sm:$0x1] %vm2980_vm1, %v7808_v7  ;;  %v8096_v9 = vpop.permute.xlu1 %8095 }
 0x4bb   :  { %8292 = vst.msk [vmem:[#allocation2 + $0x13e] sm:$0x1] %vm2980_vm1, %v8096_v9  ;;  %7235 = vrot.lane.b32.xlu0 %v6416_v20, %s12934_s0 }
 0x4bc   :  { %7523 = vrot.lane.b32.xlu1 %v6416_v20, %s12935_s10 }
 0x4bd   :  { %v8384_v61 = vpop.permute.xlu0 %8383 }
 0x4be   :  { %8580 = vst.msk [vmem:[#allocation2 + $0x13f] sm:$0x1] %vm2980_vm1, %v8384_v61  ;;  %v4530_v19 = vpop.permute.xlu1 %4529 }
 0x4bf   :  { %4727 = vst.msk [vmem:[#allocation2 + $0x125] sm:$0x1] %vm2980_vm1, %v4530_v19  ;;  %7811 = vrot.lane.b32.xlu0 %v6416_v20, %s12936_s11 }
 0x4c0   :  { %8099 = vrot.lane.b32.xlu1 %v6416_v20, %s12937_s12 }
 0x4c1   :  { %v4818_v55 = vpop.permute.xlu0 %4817 }
 0x4c2   :  { %5015 = vst.msk [vmem:[#allocation2 + $0x126] sm:$0x1] %vm2980_vm1, %v4818_v55  ;;  %v5106_v4 = vpop.permute.xlu1 %5105 }
 0x4c3   :  { %5303 = vst.msk [vmem:[#allocation2 + $0x127] sm:$0x1] %vm2980_vm1, %v5106_v4  ;;  %8387 = vrot.lane.b32.xlu0 %v6416_v20, %s12938_s13 }
 0x4c4   :  { %4533 = vrot.lane.b32.xlu1 %v17718_v48, %s12936_s11 }
 0x4c5   :  { %v6654_v34 = vpop.permute.xlu0 %6653  ;;  %v8672_v37 = vld [vmem:[#allocation2 + $0x138] sm:$0xff] }
 0x4c6   :  { %6851 = vst.msk [vmem:[#allocation2 + $0x129] sm:$0x1] %vm2980_vm1, %v6654_v34  ;;  %v6942_v18 = vpop.permute.xlu1 %6941  ;;  %v8822_v43 = vpack.c.bf16 %v8672_v37, %v8671_v2  ;;  %v17758_v37 = vld [vmem:[#allocation36_spill] sm:$0xff] }
 0x4c7   :  { %7139 = vst.msk [vmem:[#allocation2 + $0x12a] sm:$0x1] %vm2980_vm1, %v6942_v18  ;;  %4821 = vrot.lane.b32.xlu0 %v17718_v48, %s12937_s12  ;;  %v6440_v18 = vrot.slane %v17758_v37, %v13143_v49 }
 0x4c8   :  { %5109 = vrot.lane.b32.xlu1 %v17718_v48, %s12938_s13  ;;  %12391 = vmatpush3.bf16.msra.mxu1 %v8822_v43 }
 0x4c9   :  { %v7230_v8 = vpop.permute.xlu0 %7229  ;;  %12402 = vmatprep.subr.bf16.mxu1 %v17600_v24 }
 0x4ca   :  { %7427 = vst.msk [vmem:[#allocation2 + $0x12b] sm:$0x1] %vm2980_vm1, %v7230_v8  ;;  %v7518_v60 = vpop.permute.xlu1 %7517  ;;  %v8669_v55 = vld [vmem:[#allocation2 + $0x120] sm:$0xff] }
 0x4cb   :  { %7715 = vst.msk [vmem:[#allocation2 + $0x12c] sm:$0x1] %vm2980_vm1, %v7518_v60  ;;  %6657 = vrot.lane.b32.xlu0 %v6412_v38, %s12932_s4 }
 0x4cc   :  { %6945 = vrot.lane.b32.xlu1 %v6412_v38, %s12933_s5 }
 0x4cd   :  { %v7806_v35 = vpop.permute.xlu0 %7805 }
 0x4ce   :  { %8003 = vst.msk [vmem:[#allocation2 + $0x12d] sm:$0x1] %vm2980_vm1, %v7806_v35  ;;  %v8094_v48 = vpop.permute.xlu1 %8093 }
 0x4cf   :  { %8291 = vst.msk [vmem:[#allocation2 + $0x12e] sm:$0x1] %vm2980_vm1, %v8094_v48  ;;  %7233 = vrot.lane.b32.xlu0 %v6412_v38, %s12934_s0 }
 0x4d0   :  { %7521 = vrot.lane.b32.xlu1 %v6412_v38, %s12935_s10 }
 0x4d1   :  { %v8382_v42 = vpop.permute.xlu0 %8381 }
 0x4d2   :  { %8579 = vst.msk [vmem:[#allocation2 + $0x12f] sm:$0x1] %vm2980_vm1, %v8382_v42  ;;  %v4528_v63 = vpop.permute.xlu1 %4527 }
 0x4d3   :  { %4726 = vst.msk [vmem:[#allocation2 + $0x115] sm:$0x1] %vm2980_vm1, %v4528_v63  ;;  %7809 = vrot.lane.b32.xlu0 %v6412_v38, %s12936_s11  ;;  %v15580_v29 = vpop.f32.mrb[76].mxu1 }
 0x4d4   :  { %8097 = vrot.lane.b32.xlu1 %v6412_v38, %s12937_s12  ;;  %v12358_v20 = vpop.f32.mrb[77].mxu1 }
 0x4d5   :  { %v4816_v53 = vpop.permute.xlu0 %4815  ;;  %v15583_v47 = vpop.f32.mrb[78].mxu1 }
 0x4d6   :  { %5014 = vst.msk [vmem:[#allocation2 + $0x116] sm:$0x1] %vm2980_vm1, %v4816_v53  ;;  %v5104_v9 = vpop.permute.xlu1 %5103  ;;  %v12359_v61 = vpop.f32.mrb[79].mxu1 }
 0x4d7   :  { %5302 = vst.msk [vmem:[#allocation2 + $0x117] sm:$0x1] %vm2980_vm1, %v5104_v9  ;;  %8385 = vrot.lane.b32.xlu0 %v6412_v38, %s12938_s13 }
 0x4d8   :  { %4547 = vrot.lane.b32.xlu1 %v17725_v56, %s12936_s11 }
 0x4d9   :  { %v6652_v19 = vpop.permute.xlu0 %6651  ;;  %v8670_v4 = vld [vmem:[#allocation2 + $0x128] sm:$0xff] }
 0x4da   :  { %6850 = vst.msk [vmem:[#allocation2 + $0x119] sm:$0x1] %vm2980_vm1, %v6652_v19  ;;  %v6940_v34 = vpop.permute.xlu1 %6939  ;;  %v8821_v2 = vpack.c.bf16 %v8670_v4, %v8669_v55 }
 0x4db   :  { %7138 = vst.msk [vmem:[#allocation2 + $0x11a] sm:$0x1] %vm2980_vm1, %v6940_v34  ;;  %4835 = vrot.lane.b32.xlu0 %v17725_v56, %s12937_s12 }
 0x4dc   :  { %5123 = vrot.lane.b32.xlu1 %v17725_v56, %s12938_s13  ;;  %12385 = vmatpush3.bf16.msra.mxu0 %v8821_v2  ;;  %v17759_v2 = vld [vmem:[#allocation34_spill] sm:$0xff] }
 0x4dd   :  { %v7228_v43 = vpop.permute.xlu0 %7227  ;;  %12396 = vmatprep.subr.bf16.mxu0 %v17600_v24  ;;  %v6436_v37 = vrot.slane %v17759_v2, %v13143_v49 }
 0x4de   :  { %7426 = vst.msk [vmem:[#allocation2 + $0x11b] sm:$0x1] %vm2980_vm1, %v7228_v43  ;;  %v7516_v30 = vpop.permute.xlu1 %7515  ;;  %v8667_v19 = vld [vmem:[#allocation2 + $0x110] sm:$0xff] }
 0x4df   :  { %7714 = vst.msk [vmem:[#allocation2 + $0x11c] sm:$0x1] %vm2980_vm1, %v7516_v30  ;;  %6671 = vrot.lane.b32.xlu0 %v6440_v18, %s12932_s4 }
 0x4e0   :  { %6959 = vrot.lane.b32.xlu1 %v6440_v18, %s12933_s5 }
 0x4e1   :  { %v7804_v38 = vpop.permute.xlu0 %7803 }
 0x4e2   :  { %8002 = vst.msk [vmem:[#allocation2 + $0x11d] sm:$0x1] %vm2980_vm1, %v7804_v38  ;;  %v8092_v56 = vpop.permute.xlu1 %8091 }
 0x4e3   :  { %8290 = vst.msk [vmem:[#allocation2 + $0x11e] sm:$0x1] %vm2980_vm1, %v8092_v56  ;;  %7247 = vrot.lane.b32.xlu0 %v6440_v18, %s12934_s0 }
 0x4e4   :  { %7535 = vrot.lane.b32.xlu1 %v6440_v18, %s12935_s10 }
 0x4e5   :  { %v8380_v8 = vpop.permute.xlu0 %8379 }
 0x4e6   :  { %8578 = vst.msk [vmem:[#allocation2 + $0x11f] sm:$0x1] %vm2980_vm1, %v8380_v8  ;;  %v4526_v60 = vpop.permute.xlu1 %4525 }
 0x4e7   :  { %4725 = vst.msk [vmem:[#allocation2 + $0x105] sm:$0x1] %vm2980_vm1, %v4526_v60  ;;  %7823 = vrot.lane.b32.xlu0 %v6440_v18, %s12936_s11  ;;  %v15613_v35 = vpop.f32.mrb[76].mxu0 }
 0x4e8   :  { %8111 = vrot.lane.b32.xlu1 %v6440_v18, %s12937_s12  ;;  %v12352_v48 = vpop.f32.mrb[77].mxu0 }
 0x4e9   :  { %v4814_v42 = vpop.permute.xlu0 %4813  ;;  %v15615_v63 = vpop.f32.mrb[78].mxu0 }
 0x4ea   :  { %5013 = vst.msk [vmem:[#allocation2 + $0x106] sm:$0x1] %vm2980_vm1, %v4814_v42  ;;  %v5102_v20 = vpop.permute.xlu1 %5101  ;;  %v12353_v9 = vpop.f32.mrb[79].mxu0 }
 0x4eb   :  { %5301 = vst.msk [vmem:[#allocation2 + $0x107] sm:$0x1] %vm2980_vm1, %v5102_v20  ;;  %8399 = vrot.lane.b32.xlu0 %v6440_v18, %s12938_s13 }
 0x4ec   :  { %4545 = vrot.lane.b32.xlu1 %v17724_v58, %s12936_s11 }
 0x4ed   :  { %v6650_v61 = vpop.permute.xlu0 %6649  ;;  %v8668_v55 = vld [vmem:[#allocation2 + $0x118] sm:$0xff] }
 0x4ee   :  { %6849 = vst.msk [vmem:[#allocation2 + $0x109] sm:$0x1] %vm2980_vm1, %v6650_v61  ;;  %v6938_v4 = vpop.permute.xlu1 %6937  ;;  %v8786_v34 = vpack.c.bf16 %v8668_v55, %v8667_v19  ;;  %v17760_v19 = vld [vmem:[#allocation35_spill] sm:$0xff] }
 0x4ef   :  { %7137 = vst.msk [vmem:[#allocation2 + $0x10a] sm:$0x1] %vm2980_vm1, %v6938_v4  ;;  %4833 = vrot.lane.b32.xlu0 %v17724_v58, %s12937_s12  ;;  %v6432_v55 = vrot.slane %v17760_v19, %v13143_v49 }
 0x4f0   :  { %5121 = vrot.lane.b32.xlu1 %v17724_v58, %s12938_s13  ;;  %12393 = vmatmul.mubr.msk.bf16.vlgmr.msra.gmra.mrb[88].mxu1 %vm145_vm0, %v8786_v34 }
 0x4f1   :  { %v7226_v18 = vpop.permute.xlu0 %7225  ;;  %12404 = vmatprep.mubr.msk.bf16.mxu1 %vm12940_vm2, %v17600_v24 }
 0x4f2   :  { %7425 = vst.msk [vmem:[#allocation2 + $0x10b] sm:$0x1] %vm2980_vm1, %v7226_v18  ;;  %v7514_v43 = vpop.permute.xlu1 %7513  ;;  %v8665_v42 = vld [vmem:[#allocation2 + $0x100] sm:$0xff] }
 0x4f3   :  { %7713 = vst.msk [vmem:[#allocation2 + $0x10c] sm:$0x1] %vm2980_vm1, %v7514_v43  ;;  %6669 = vrot.lane.b32.xlu0 %v6436_v37, %s12932_s4 }
 0x4f4   :  { %6957 = vrot.lane.b32.xlu1 %v6436_v37, %s12933_s5 }
 0x4f5   :  { %v7802_v30 = vpop.permute.xlu0 %7801 }
 0x4f6   :  { %8001 = vst.msk [vmem:[#allocation2 + $0x10d] sm:$0x1] %vm2980_vm1, %v7802_v30  ;;  %v8090_v58 = vpop.permute.xlu1 %8089 }
 0x4f7   :  { %8289 = vst.msk [vmem:[#allocation2 + $0x10e] sm:$0x1] %vm2980_vm1, %v8090_v58  ;;  %7245 = vrot.lane.b32.xlu0 %v6436_v37, %s12934_s0 }
 0x4f8   :  { %7533 = vrot.lane.b32.xlu1 %v6436_v37, %s12935_s10 }
 0x4f9   :  { %v8378_v38 = vpop.permute.xlu0 %8377 }
 0x4fa   :  { %8577 = vst.msk [vmem:[#allocation2 + $0x10f] sm:$0x1] %vm2980_vm1, %v8378_v38  ;;  %v4540_v56 = vpop.permute.xlu1 %4539 }
 0x4fb   :  { %4732 = vst.msk [vmem:[#allocation2 + $0x175] sm:$0x1] %vm2980_vm1, %v4540_v56  ;;  %7821 = vrot.lane.b32.xlu0 %v6436_v37, %s12936_s11 }
 0x4fc   :  { %8109 = vrot.lane.b32.xlu1 %v6436_v37, %s12937_s12 }
 0x4fd   :  { %v4828_v8 = vpop.permute.xlu0 %4827 }
 0x4fe   :  { %5020 = vst.msk [vmem:[#allocation2 + $0x176] sm:$0x1] %vm2980_vm1, %v4828_v8  ;;  %v5116_v60 = vpop.permute.xlu1 %5115 }
 0x4ff   :  { %5308 = vst.msk [vmem:[#allocation2 + $0x177] sm:$0x1] %vm2980_vm1, %v5116_v60  ;;  %8397 = vrot.lane.b32.xlu0 %v6436_v37, %s12938_s13 }
 0x500   :  { %4543 = vrot.lane.b32.xlu1 %v17723_v15, %s12936_s11 }
 0x501   :  { %v6664_v48 = vpop.permute.xlu0 %6663  ;;  %v8666_v20 = vld [vmem:[#allocation2 + $0x108] sm:$0xff] }
 0x502   :  { %6856 = vst.msk [vmem:[#allocation2 + $0x179] sm:$0x1] %vm2980_vm1, %v6664_v48  ;;  %v6952_v9 = vpop.permute.xlu1 %6951  ;;  %v8785_v61 = vpack.c.bf16 %v8666_v20, %v8665_v42  ;;  %v17761_v48 = vld [vmem:[#allocation33_spill] sm:$0xff] }
 0x503   :  { %7144 = vst.msk [vmem:[#allocation2 + $0x17a] sm:$0x1] %vm2980_vm1, %v6952_v9  ;;  %4831 = vrot.lane.b32.xlu0 %v17723_v15, %s12937_s12  ;;  %v6428_v42 = vrot.slane %v17761_v48, %v13143_v49 }
 0x504   :  { %5119 = vrot.lane.b32.xlu1 %v17723_v15, %s12938_s13  ;;  %12387 = vmatmul.mubr.msk.bf16.vlgmr.msra.gmra.mrb[88].mxu0 %vm145_vm0, %v8785_v61 }
 0x505   :  { %v7240_v4 = vpop.permute.xlu0 %7239  ;;  %12398 = vmatprep.mubr.msk.bf16.mxu0 %vm12940_vm2, %v17600_v24 }
 0x506   :  { %7432 = vst.msk [vmem:[#allocation2 + $0x17b] sm:$0x1] %vm2980_vm1, %v7240_v4  ;;  %v7528_v34 = vpop.permute.xlu1 %7527  ;;  %v8679_v38 = vld [vmem:[#allocation2 + $0x170] sm:$0xff] }
 0x507   :  { %7720 = vst.msk [vmem:[#allocation2 + $0x17c] sm:$0x1] %vm2980_vm1, %v7528_v34  ;;  %6667 = vrot.lane.b32.xlu0 %v6432_v55, %s12932_s4 }
 0x508   :  { %6955 = vrot.lane.b32.xlu1 %v6432_v55, %s12933_s5 }
 0x509   :  { %v7816_v2 = vpop.permute.xlu0 %7815 }
 0x50a   :  { %8008 = vst.msk [vmem:[#allocation2 + $0x17d] sm:$0x1] %vm2980_vm1, %v7816_v2  ;;  %v8104_v15 = vpop.permute.xlu1 %8103 }
 0x50b   :  { %8296 = vst.msk [vmem:[#allocation2 + $0x17e] sm:$0x1] %vm2980_vm1, %v8104_v15  ;;  %7243 = vrot.lane.b32.xlu0 %v6432_v55, %s12934_s0 }
 0x50c   :  { %7531 = vrot.lane.b32.xlu1 %v6432_v55, %s12935_s10 }
 0x50d   :  { %v8392_v37 = vpop.permute.xlu0 %8391 }
 0x50e   :  { %8584 = vst.msk [vmem:[#allocation2 + $0x17f] sm:$0x1] %vm2980_vm1, %v8392_v37  ;;  %v4538_v18 = vpop.permute.xlu1 %4537 }
 0x50f   :  { %4731 = vst.msk [vmem:[#allocation2 + $0x165] sm:$0x1] %vm2980_vm1, %v4538_v18  ;;  %7819 = vrot.lane.b32.xlu0 %v6432_v55, %s12936_s11 }
 0x510   :  { %8107 = vrot.lane.b32.xlu1 %v6432_v55, %s12937_s12 }
 0x511   :  { %v4826_v43 = vpop.permute.xlu0 %4825 }
 0x512   :  { %5019 = vst.msk [vmem:[#allocation2 + $0x166] sm:$0x1] %vm2980_vm1, %v4826_v43  ;;  %v5114_v30 = vpop.permute.xlu1 %5113 }
 0x513   :  { %5307 = vst.msk [vmem:[#allocation2 + $0x167] sm:$0x1] %vm2980_vm1, %v5114_v30  ;;  %8395 = vrot.lane.b32.xlu0 %v6432_v55, %s12938_s13 }
 0x514   :  { %4541 = vrot.lane.b32.xlu1 %v17722_v52, %s12936_s11 }
 0x515   :  { %v6662_v58 = vpop.permute.xlu0 %6661  ;;  %v8680_v56 = vld [vmem:[#allocation2 + $0x178] sm:$0xff] }
 0x516   :  { %6855 = vst.msk [vmem:[#allocation2 + $0x169] sm:$0x1] %vm2980_vm1, %v6662_v58  ;;  %v6950_v8 = vpop.permute.xlu1 %6949  ;;  %v8824_v60 = vpack.c.bf16 %v8680_v56, %v8679_v38 }
 0x517   :  { %7143 = vst.msk [vmem:[#allocation2 + $0x16a] sm:$0x1] %vm2980_vm1, %v6950_v8  ;;  %4829 = vrot.lane.b32.xlu0 %v17722_v52, %s12937_s12 }
 0x518   :  { %5117 = vrot.lane.b32.xlu1 %v17722_v52, %s12938_s13  ;;  %12403 = vmatpush3.bf16.msra.mxu1 %v8824_v60  ;;  %v17762_v60 = vld [vmem:[#allocation40_spill] sm:$0xff] }
 0x519   :  { %v7238_v20 = vpop.permute.xlu0 %7237  ;;  %12414 = vmatprep.subr.bf16.mxu1 %v17600_v24  ;;  %v6456_v48 = vrot.slane %v17762_v60, %v13143_v49 }
 0x51a   :  { %7431 = vst.msk [vmem:[#allocation2 + $0x16b] sm:$0x1] %vm2980_vm1, %v7238_v20  ;;  %v7526_v9 = vpop.permute.xlu1 %7525  ;;  %v8677_v58 = vld [vmem:[#allocation2 + $0x160] sm:$0xff] }
 0x51b   :  { %7719 = vst.msk [vmem:[#allocation2 + $0x16c] sm:$0x1] %vm2980_vm1, %v7526_v9  ;;  %6665 = vrot.lane.b32.xlu0 %v6428_v42, %s12932_s4 }
 0x51c   :  { %6953 = vrot.lane.b32.xlu1 %v6428_v42, %s12933_s5 }
 0x51d   :  { %v7814_v61 = vpop.permute.xlu0 %7813 }
 0x51e   :  { %8007 = vst.msk [vmem:[#allocation2 + $0x16d] sm:$0x1] %vm2980_vm1, %v7814_v61  ;;  %v8102_v52 = vpop.permute.xlu1 %8101 }
 0x51f   :  { %8295 = vst.msk [vmem:[#allocation2 + $0x16e] sm:$0x1] %vm2980_vm1, %v8102_v52  ;;  %7241 = vrot.lane.b32.xlu0 %v6428_v42, %s12934_s0 }
 0x520   :  { %7529 = vrot.lane.b32.xlu1 %v6428_v42, %s12935_s10 }
 0x521   :  { %v8390_v19 = vpop.permute.xlu0 %8389 }
 0x522   :  { %8583 = vst.msk [vmem:[#allocation2 + $0x16f] sm:$0x1] %vm2980_vm1, %v8390_v19  ;;  %v4536_v55 = vpop.permute.xlu1 %4535 }
 0x523   :  { %4730 = vst.msk [vmem:[#allocation2 + $0x155] sm:$0x1] %vm2980_vm1, %v4536_v55  ;;  %7817 = vrot.lane.b32.xlu0 %v6428_v42, %s12936_s11  ;;  %v15700_v4 = vpop.f32.mrb[80].mxu1 }
 0x524   :  { %8105 = vrot.lane.b32.xlu1 %v6428_v42, %s12937_s12  ;;  %v12370_v34 = vpop.f32.mrb[81].mxu1 }
 0x525   :  { %v4824_v2 = vpop.permute.xlu0 %4823  ;;  %v15703_v15 = vpop.f32.mrb[82].mxu1 }
 0x526   :  { %5018 = vst.msk [vmem:[#allocation2 + $0x156] sm:$0x1] %vm2980_vm1, %v4824_v2  ;;  %v5112_v18 = vpop.permute.xlu1 %5111  ;;  %v12371_v43 = vpop.f32.mrb[83].mxu1 }
 0x527   :  { %5306 = vst.msk [vmem:[#allocation2 + $0x157] sm:$0x1] %vm2980_vm1, %v5112_v18  ;;  %8393 = vrot.lane.b32.xlu0 %v6428_v42, %s12938_s13 }
 0x528   :  { %4555 = vrot.lane.b32.xlu1 %v17729_v31, %s12936_s11 }
 0x529   :  { %v6660_v30 = vpop.permute.xlu0 %6659  ;;  %v8678_v38 = vld [vmem:[#allocation2 + $0x168] sm:$0xff] }
 0x52a   :  { %6854 = vst.msk [vmem:[#allocation2 + $0x159] sm:$0x1] %vm2980_vm1, %v6660_v30  ;;  %v6948_v56 = vpop.permute.xlu1 %6947  ;;  %v8823_v8 = vpack.c.bf16 %v8678_v38, %v8677_v58 }
 0x52b   :  { %7142 = vst.msk [vmem:[#allocation2 + $0x15a] sm:$0x1] %vm2980_vm1, %v6948_v56  ;;  %4843 = vrot.lane.b32.xlu0 %v17729_v31, %s12937_s12 }
 0x52c   :  { %5131 = vrot.lane.b32.xlu1 %v17729_v31, %s12938_s13  ;;  %12397 = vmatpush3.bf16.msra.mxu0 %v8823_v8 }
 0x52d   :  { %v7236_v42 = vpop.permute.xlu0 %7235  ;;  %12408 = vmatprep.subr.bf16.mxu0 %v17600_v24 }
 0x52e   :  { %7430 = vst.msk [vmem:[#allocation2 + $0x15b] sm:$0x1] %vm2980_vm1, %v7236_v42  ;;  %v7524_v20 = vpop.permute.xlu1 %7523  ;;  %v8675_v38 = vld [vmem:[#allocation2 + $0x150] sm:$0xff] }
 0x52f   :  { %7718 = vst.msk [vmem:[#allocation2 + $0x15c] sm:$0x1] %vm2980_vm1, %v7524_v20  ;;  %6679 = vrot.lane.b32.xlu0 %v6456_v48, %s12932_s4 }
 0x530   :  { %6967 = vrot.lane.b32.xlu1 %v6456_v48, %s12933_s5 }
 0x531   :  { %v7812_v9 = vpop.permute.xlu0 %7811 }
 0x532   :  { %8006 = vst.msk [vmem:[#allocation2 + $0x15d] sm:$0x1] %vm2980_vm1, %v7812_v9  ;;  %v8100_v31 = vpop.permute.xlu1 %8099 }
 0x533   :  { %8294 = vst.msk [vmem:[#allocation2 + $0x15e] sm:$0x1] %vm2980_vm1, %v8100_v31  ;;  %7255 = vrot.lane.b32.xlu0 %v6456_v48, %s12934_s0 }
 0x534   :  { %7543 = vrot.lane.b32.xlu1 %v6456_v48, %s12935_s10 }
 0x535   :  { %v8388_v61 = vpop.permute.xlu0 %8387 }
 0x536   :  { %8582 = vst.msk [vmem:[#allocation2 + $0x15f] sm:$0x1] %vm2980_vm1, %v8388_v61  ;;  %v4534_v52 = vpop.permute.xlu1 %4533 }
 0x537   :  { %4729 = vst.msk [vmem:[#allocation2 + $0x145] sm:$0x1] %vm2980_vm1, %v4534_v52  ;;  %7831 = vrot.lane.b32.xlu0 %v6456_v48, %s12936_s11  ;;  %v15733_v19 = vpop.f32.mrb[80].mxu0 }
 0x538   :  { %8119 = vrot.lane.b32.xlu1 %v6456_v48, %s12937_s12  ;;  %v12364_v55 = vpop.f32.mrb[81].mxu0 }
 0x539   :  { %v4822_v34 = vpop.permute.xlu0 %4821  ;;  %v15735_v2 = vpop.f32.mrb[82].mxu0 }
 0x53a   :  { %5017 = vst.msk [vmem:[#allocation2 + $0x146] sm:$0x1] %vm2980_vm1, %v4822_v34  ;;  %v5110_v18 = vpop.permute.xlu1 %5109  ;;  %v12365_v30 = vpop.f32.mrb[83].mxu0 }
 0x53b   :  { %5305 = vst.msk [vmem:[#allocation2 + $0x147] sm:$0x1] %vm2980_vm1, %v5110_v18  ;;  %8407 = vrot.lane.b32.xlu0 %v6456_v48, %s12938_s13  ;;  %v17763_v48 = vld [vmem:[#allocation38_spill] sm:$0xff] }
 0x53c   :  { %4553 = vrot.lane.b32.xlu1 %v17728_v21, %s12936_s11  ;;  %v6452_v42 = vrot.slane %v17763_v48, %v13143_v49 }
 0x53d   :  { %v6658_v58 = vpop.permute.xlu0 %6657  ;;  %v8676_v56 = vld [vmem:[#allocation2 + $0x158] sm:$0xff] }
 0x53e   :  { %6853 = vst.msk [vmem:[#allocation2 + $0x149] sm:$0x1] %vm2980_vm1, %v6658_v58  ;;  %v6946_v8 = vpop.permute.xlu1 %6945  ;;  %v8788_v60 = vpack.c.bf16 %v8676_v56, %v8675_v38 }
 0x53f   :  { %7141 = vst.msk [vmem:[#allocation2 + $0x14a] sm:$0x1] %vm2980_vm1, %v6946_v8  ;;  %4841 = vrot.lane.b32.xlu0 %v17728_v21, %s12937_s12  ;;  %v17764_v8 = vld [vmem:[#allocation39_spill] sm:$0xff] }
 0x540   :  { %5129 = vrot.lane.b32.xlu1 %v17728_v21, %s12938_s13  ;;  %12405 = vmatmul.mubr.msk.bf16.vlgmr.msra.gmra.mrb[92].mxu1 %vm145_vm0, %v8788_v60  ;;  %v6448_v60 = vrot.slane %v17764_v8, %v13143_v49 }
 0x541   :  { %v7234_v20 = vpop.permute.xlu0 %7233  ;;  %12416 = vmatprep.mubr.msk.bf16.mxu1 %vm12940_vm2, %v17600_v24 }
 0x542   :  { %7429 = vst.msk [vmem:[#allocation2 + $0x14b] sm:$0x1] %vm2980_vm1, %v7234_v20  ;;  %v7522_v9 = vpop.permute.xlu1 %7521  ;;  %v8673_v30 = vld [vmem:[#allocation2 + $0x140] sm:$0xff] }
 0x543   :  { %7717 = vst.msk [vmem:[#allocation2 + $0x14c] sm:$0x1] %vm2980_vm1, %v7522_v9  ;;  %6677 = vrot.lane.b32.xlu0 %v6452_v42, %s12932_s4 }
 0x544   :  { %6965 = vrot.lane.b32.xlu1 %v6452_v42, %s12933_s5 }
 0x545   :  { %v7810_v31 = vpop.permute.xlu0 %7809 }
 0x546   :  { %8005 = vst.msk [vmem:[#allocation2 + $0x14d] sm:$0x1] %vm2980_vm1, %v7810_v31  ;;  %v8098_v21 = vpop.permute.xlu1 %8097 }
 0x547   :  { %8293 = vst.msk [vmem:[#allocation2 + $0x14e] sm:$0x1] %vm2980_vm1, %v8098_v21  ;;  %7253 = vrot.lane.b32.xlu0 %v6452_v42, %s12934_s0 }
 0x548   :  { %7541 = vrot.lane.b32.xlu1 %v6452_v42, %s12935_s10 }
 0x549   :  { %v8386_v61 = vpop.permute.xlu0 %8385 }
 0x54a   :  { %8581 = vst.msk [vmem:[#allocation2 + $0x14f] sm:$0x1] %vm2980_vm1, %v8386_v61  ;;  %v4548_v52 = vpop.permute.xlu1 %4547 }
 0x54b   :  { %4736 = vst.msk [vmem:[#allocation2 + $0x1b5] sm:$0x1] %vm2980_vm1, %v4548_v52  ;;  %7829 = vrot.lane.b32.xlu0 %v6452_v42, %s12936_s11 }
 0x54c   :  { %8117 = vrot.lane.b32.xlu1 %v6452_v42, %s12937_s12 }
 0x54d   :  { %v4836_v55 = vpop.permute.xlu0 %4835 }
 0x54e   :  { %5024 = vst.msk [vmem:[#allocation2 + $0x1b6] sm:$0x1] %vm2980_vm1, %v4836_v55  ;;  %v5124_v34 = vpop.permute.xlu1 %5123 }
 0x54f   :  { %5312 = vst.msk [vmem:[#allocation2 + $0x1b7] sm:$0x1] %vm2980_vm1, %v5124_v34  ;;  %8405 = vrot.lane.b32.xlu0 %v6452_v42, %s12938_s13 }
 0x550   :  { %4551 = vrot.lane.b32.xlu1 %v17727_v17, %s12936_s11 }
 0x551   :  { %v6672_v18 = vpop.permute.xlu0 %6671  ;;  %v8674_v58 = vld [vmem:[#allocation2 + $0x148] sm:$0xff] }
 0x552   :  { %6860 = vst.msk [vmem:[#allocation2 + $0x1b9] sm:$0x1] %vm2980_vm1, %v6672_v18  ;;  %v6960_v38 = vpop.permute.xlu1 %6959  ;;  %v8787_v56 = vpack.c.bf16 %v8674_v58, %v8673_v30  ;;  %v17765_v58 = vld [vmem:[#allocation37_spill] sm:$0xff] }
 0x553   :  { %7148 = vst.msk [vmem:[#allocation2 + $0x1ba] sm:$0x1] %vm2980_vm1, %v6960_v38  ;;  %4839 = vrot.lane.b32.xlu0 %v17727_v17, %s12937_s12  ;;  %v6444_v38 = vrot.slane %v17765_v58, %v13143_v49 }
 0x554   :  { %5127 = vrot.lane.b32.xlu1 %v17727_v17, %s12938_s13  ;;  %12399 = vmatmul.mubr.msk.bf16.vlgmr.msra.gmra.mrb[92].mxu0 %vm145_vm0, %v8787_v56 }
 0x555   :  { %v7248_v48 = vpop.permute.xlu0 %7247  ;;  %12410 = vmatprep.mubr.msk.bf16.mxu0 %vm12940_vm2, %v17600_v24 }
 0x556   :  { %7436 = vst.msk [vmem:[#allocation2 + $0x1bb] sm:$0x1] %vm2980_vm1, %v7248_v48  ;;  %v7536_v42 = vpop.permute.xlu1 %7535  ;;  %v8687_v55 = vld [vmem:[#allocation2 + $0x1b0] sm:$0xff] }
 0x557   :  { %7724 = vst.msk [vmem:[#allocation2 + $0x1bc] sm:$0x1] %vm2980_vm1, %v7536_v42  ;;  %6675 = vrot.lane.b32.xlu0 %v6448_v60, %s12932_s4 }
 0x558   :  { %6963 = vrot.lane.b32.xlu1 %v6448_v60, %s12933_s5 }
 0x559   :  { %v7824_v20 = vpop.permute.xlu0 %7823 }
 0x55a   :  { %8012 = vst.msk [vmem:[#allocation2 + $0x1bd] sm:$0x1] %vm2980_vm1, %v7824_v20  ;;  %v8112_v17 = vpop.permute.xlu1 %8111 }
 0x55b   :  { %8300 = vst.msk [vmem:[#allocation2 + $0x1be] sm:$0x1] %vm2980_vm1, %v8112_v17  ;;  %7251 = vrot.lane.b32.xlu0 %v6448_v60, %s12934_s0 }
 0x55c   :  { %7539 = vrot.lane.b32.xlu1 %v6448_v60, %s12935_s10 }
 0x55d   :  { %v8400_v9 = vpop.permute.xlu0 %8399 }
 0x55e   :  { %8588 = vst.msk [vmem:[#allocation2 + $0x1bf] sm:$0x1] %vm2980_vm1, %v8400_v9  ;;  %v4546_v31 = vpop.permute.xlu1 %4545 }
 0x55f   :  { %4735 = vst.msk [vmem:[#allocation2 + $0x1a5] sm:$0x1] %vm2980_vm1, %v4546_v31  ;;  %7827 = vrot.lane.b32.xlu0 %v6448_v60, %s12936_s11 }
 0x560   :  { %8115 = vrot.lane.b32.xlu1 %v6448_v60, %s12937_s12 }
 0x561   :  { %v4834_v21 = vpop.permute.xlu0 %4833 }
 0x562   :  { %5023 = vst.msk [vmem:[#allocation2 + $0x1a6] sm:$0x1] %vm2980_vm1, %v4834_v21  ;;  %v5122_v61 = vpop.permute.xlu1 %5121 }
 0x563   :  { %5311 = vst.msk [vmem:[#allocation2 + $0x1a7] sm:$0x1] %vm2980_vm1, %v5122_v61  ;;  %8403 = vrot.lane.b32.xlu0 %v6448_v60, %s12938_s13 }
 0x564   :  { %4549 = vrot.lane.b32.xlu1 %v17726_v26, %s12936_s11 }
 0x565   :  { %v6670_v52 = vpop.permute.xlu0 %6669  ;;  %v8688_v34 = vld [vmem:[#allocation2 + $0x1b8] sm:$0xff] }
 0x566   :  { %6859 = vst.msk [vmem:[#allocation2 + $0x1a9] sm:$0x1] %vm2980_vm1, %v6670_v52  ;;  %v6958_v18 = vpop.permute.xlu1 %6957  ;;  %v8826_v30 = vpack.c.bf16 %v8688_v34, %v8687_v55 }
 0x567   :  { %7147 = vst.msk [vmem:[#allocation2 + $0x1aa] sm:$0x1] %vm2980_vm1, %v6958_v18  ;;  %4837 = vrot.lane.b32.xlu0 %v17726_v26, %s12937_s12 }
 0x568   :  { %5125 = vrot.lane.b32.xlu1 %v17726_v26, %s12938_s13  ;;  %12415 = vmatpush3.bf16.msra.mxu1 %v8826_v30 }
 0x569   :  { %v7246_v56 = vpop.permute.xlu0 %7245  ;;  %12426 = vmatprep.subr.bf16.mxu1 %v17600_v24 }
 0x56a   :  { %7435 = vst.msk [vmem:[#allocation2 + $0x1ab] sm:$0x1] %vm2980_vm1, %v7246_v56  ;;  %v7534_v8 = vpop.permute.xlu1 %7533  ;;  %v8685_v34 = vld [vmem:[#allocation2 + $0x1a0] sm:$0xff] }
 0x56b   :  { %7723 = vst.msk [vmem:[#allocation2 + $0x1ac] sm:$0x1] %vm2980_vm1, %v7534_v8  ;;  %6673 = vrot.lane.b32.xlu0 %v6444_v38, %s12932_s4 }
 0x56c   :  { %6961 = vrot.lane.b32.xlu1 %v6444_v38, %s12933_s5 }
 0x56d   :  { %v7822_v60 = vpop.permute.xlu0 %7821 }
 0x56e   :  { %8011 = vst.msk [vmem:[#allocation2 + $0x1ad] sm:$0x1] %vm2980_vm1, %v7822_v60  ;;  %v8110_v26 = vpop.permute.xlu1 %8109 }
 0x56f   :  { %8299 = vst.msk [vmem:[#allocation2 + $0x1ae] sm:$0x1] %vm2980_vm1, %v8110_v26  ;;  %7249 = vrot.lane.b32.xlu0 %v6444_v38, %s12934_s0 }
 0x570   :  { %7537 = vrot.lane.b32.xlu1 %v6444_v38, %s12935_s10 }
 0x571   :  { %v8398_v48 = vpop.permute.xlu0 %8397 }
 0x572   :  { %8587 = vst.msk [vmem:[#allocation2 + $0x1af] sm:$0x1] %vm2980_vm1, %v8398_v48  ;;  %v4544_v42 = vpop.permute.xlu1 %4543 }
 0x573   :  { %4734 = vst.msk [vmem:[#allocation2 + $0x195] sm:$0x1] %vm2980_vm1, %v4544_v42  ;;  %7825 = vrot.lane.b32.xlu0 %v6444_v38, %s12936_s11  ;;  %v15820_v20 = vpop.f32.mrb[84].mxu1 }
 0x574   :  { %8113 = vrot.lane.b32.xlu1 %v6444_v38, %s12937_s12  ;;  %v12382_v17 = vpop.f32.mrb[85].mxu1 }
 0x575   :  { %v4832_v9 = vpop.permute.xlu0 %4831  ;;  %v15823_v31 = vpop.f32.mrb[86].mxu1 }
 0x576   :  { %5022 = vst.msk [vmem:[#allocation2 + $0x196] sm:$0x1] %vm2980_vm1, %v4832_v9  ;;  %v5120_v61 = vpop.permute.xlu1 %5119  ;;  %v12383_v52 = vpop.f32.mrb[87].mxu1 }
 0x577   :  { %5310 = vst.msk [vmem:[#allocation2 + $0x197] sm:$0x1] %vm2980_vm1, %v5120_v61  ;;  %8401 = vrot.lane.b32.xlu0 %v6444_v38, %s12938_s13  ;;  %v17766_v38 = vld [vmem:[#allocation44_spill] sm:$0xff] }
 0x578   :  { %4563 = vrot.lane.b32.xlu1 %v17733_v1, %s12936_s11  ;;  %v6472_v56 = vrot.slane %v17766_v38, %v13143_v49 }
 0x579   :  { %v6668_v55 = vpop.permute.xlu0 %6667  ;;  %v8686_v18 = vld [vmem:[#allocation2 + $0x1a8] sm:$0xff] }
 0x57a   :  { %6858 = vst.msk [vmem:[#allocation2 + $0x199] sm:$0x1] %vm2980_vm1, %v6668_v55  ;;  %v6956_v30 = vpop.permute.xlu1 %6955  ;;  %v8825_v58 = vpack.c.bf16 %v8686_v18, %v8685_v34 }
 0x57b   :  { %7146 = vst.msk [vmem:[#allocation2 + $0x19a] sm:$0x1] %vm2980_vm1, %v6956_v30  ;;  %4851 = vrot.lane.b32.xlu0 %v17733_v1, %s12937_s12 }
 0x57c   :  { %5139 = vrot.lane.b32.xlu1 %v17733_v1, %s12938_s13  ;;  %12409 = vmatpush3.bf16.msra.mxu0 %v8825_v58 }
 0x57d   :  { %v7244_v8 = vpop.permute.xlu0 %7243  ;;  %12420 = vmatprep.subr.bf16.mxu0 %v17600_v24 }
 0x57e   :  { %7434 = vst.msk [vmem:[#allocation2 + $0x19b] sm:$0x1] %vm2980_vm1, %v7244_v8  ;;  %v7532_v60 = vpop.permute.xlu1 %7531  ;;  %v8683_v58 = vld [vmem:[#allocation2 + $0x190] sm:$0xff] }
 0x57f   :  { %7722 = vst.msk [vmem:[#allocation2 + $0x19c] sm:$0x1] %vm2980_vm1, %v7532_v60  ;;  %6687 = vrot.lane.b32.xlu0 %v6472_v56, %s12932_s4 }
 0x580   :  { %6975 = vrot.lane.b32.xlu1 %v6472_v56, %s12933_s5 }
 0x581   :  { %v7820_v26 = vpop.permute.xlu0 %7819 }
 0x582   :  { %8010 = vst.msk [vmem:[#allocation2 + $0x19d] sm:$0x1] %vm2980_vm1, %v7820_v26  ;;  %v8108_v1 = vpop.permute.xlu1 %8107 }
 0x583   :  { %8298 = vst.msk [vmem:[#allocation2 + $0x19e] sm:$0x1] %vm2980_vm1, %v8108_v1  ;;  %7263 = vrot.lane.b32.xlu0 %v6472_v56, %s12934_s0 }
 0x584   :  { %7551 = vrot.lane.b32.xlu1 %v6472_v56, %s12935_s10 }
 0x585   :  { %v8396_v48 = vpop.permute.xlu0 %8395 }
 0x586   :  { %8586 = vst.msk [vmem:[#allocation2 + $0x19f] sm:$0x1] %vm2980_vm1, %v8396_v48  ;;  %v4542_v42 = vpop.permute.xlu1 %4541 }
 0x587   :  { %4733 = vst.msk [vmem:[#allocation2 + $0x185] sm:$0x1] %vm2980_vm1, %v4542_v42  ;;  %7839 = vrot.lane.b32.xlu0 %v6472_v56, %s12936_s11  ;;  %v15853_v17 = vpop.f32.mrb[84].mxu0 }
 0x588   :  { %8127 = vrot.lane.b32.xlu1 %v6472_v56, %s12937_s12  ;;  %v12376_v9 = vpop.f32.mrb[85].mxu0 }
 0x589   :  { %v4830_v61 = vpop.permute.xlu0 %4829  ;;  %v15855_v52 = vpop.f32.mrb[86].mxu0 }
 0x58a   :  { %5021 = vst.msk [vmem:[#allocation2 + $0x186] sm:$0x1] %vm2980_vm1, %v4830_v61  ;;  %v5118_v55 = vpop.permute.xlu1 %5117  ;;  %v12377_v18 = vpop.f32.mrb[87].mxu0 }
 0x58b   :  { %5309 = vst.msk [vmem:[#allocation2 + $0x187] sm:$0x1] %vm2980_vm1, %v5118_v55  ;;  %8415 = vrot.lane.b32.xlu0 %v6472_v56, %s12938_s13  ;;  %v17767_v56 = vld [vmem:[#allocation42_spill] sm:$0xff] }
 0x58c   :  { %4561 = vrot.lane.b32.xlu1 %v17732_v54, %s12936_s11  ;;  %v6468_v26 = vrot.slane %v17767_v56, %v13143_v49  ;;  %v17768_v56 = vld [vmem:[#allocation43_spill] sm:$0xff] }
 0x58d   :  { %v6666_v30 = vpop.permute.xlu0 %6665  ;;  %v8684_v38 = vld [vmem:[#allocation2 + $0x198] sm:$0xff] }
 0x58e   :  { %6857 = vst.msk [vmem:[#allocation2 + $0x189] sm:$0x1] %vm2980_vm1, %v6666_v30  ;;  %v6954_v8 = vpop.permute.xlu1 %6953  ;;  %v8790_v60 = vpack.c.bf16 %v8684_v38, %v8683_v58 }
 0x58f   :  { %7145 = vst.msk [vmem:[#allocation2 + $0x18a] sm:$0x1] %vm2980_vm1, %v6954_v8  ;;  %4849 = vrot.lane.b32.xlu0 %v17732_v54, %s12937_s12 }
 0x590   :  { %5137 = vrot.lane.b32.xlu1 %v17732_v54, %s12938_s13  ;;  %12417 = vmatmul.mubr.msk.bf16.vlgmr.msra.gmra.mrb[96].mxu1 %vm145_vm0, %v8790_v60 }
 0x591   :  { %v7242_v1 = vpop.permute.xlu0 %7241  ;;  %12428 = vmatprep.mubr.msk.bf16.mxu1 %vm12940_vm2, %v17600_v24 }
 0x592   :  { %7433 = vst.msk [vmem:[#allocation2 + $0x18b] sm:$0x1] %vm2980_vm1, %v7242_v1  ;;  %v7530_v48 = vpop.permute.xlu1 %7529  ;;  %v8681_v58 = vld [vmem:[#allocation2 + $0x180] sm:$0xff] }
 0x593   :  { %7721 = vst.msk [vmem:[#allocation2 + $0x18c] sm:$0x1] %vm2980_vm1, %v7530_v48  ;;  %6685 = vrot.lane.b32.xlu0 %v6468_v26, %s12932_s4 }
 0x594   :  { %6973 = vrot.lane.b32.xlu1 %v6468_v26, %s12933_s5 }
 0x595   :  { %v7818_v42 = vpop.permute.xlu0 %7817 }
 0x596   :  { %8009 = vst.msk [vmem:[#allocation2 + $0x18d] sm:$0x1] %vm2980_vm1, %v7818_v42  ;;  %v8106_v54 = vpop.permute.xlu1 %8105 }
 0x597   :  { %8297 = vst.msk [vmem:[#allocation2 + $0x18e] sm:$0x1] %vm2980_vm1, %v8106_v54  ;;  %7261 = vrot.lane.b32.xlu0 %v6468_v26, %s12934_s0 }
 0x598   :  { %7549 = vrot.lane.b32.xlu1 %v6468_v26, %s12935_s10 }
 0x599   :  { %v8394_v9 = vpop.permute.xlu0 %8393 }
 0x59a   :  { %8585 = vst.msk [vmem:[#allocation2 + $0x18f] sm:$0x1] %vm2980_vm1, %v8394_v9  ;;  %v4556_v61 = vpop.permute.xlu1 %4555 }
 0x59b   :  { %4740 = vst.msk [vmem:[#allocation2 + $0x1f5] sm:$0x1] %vm2980_vm1, %v4556_v61  ;;  %7837 = vrot.lane.b32.xlu0 %v6468_v26, %s12936_s11 }
 0x59c   :  { %8125 = vrot.lane.b32.xlu1 %v6468_v26, %s12937_s12 }
 0x59d   :  { %v4844_v55 = vpop.permute.xlu0 %4843 }
 0x59e   :  { %5028 = vst.msk [vmem:[#allocation2 + $0x1f6] sm:$0x1] %vm2980_vm1, %v4844_v55  ;;  %v5132_v18 = vpop.permute.xlu1 %5131 }
 0x59f   :  { %5316 = vst.msk [vmem:[#allocation2 + $0x1f7] sm:$0x1] %vm2980_vm1, %v5132_v18  ;;  %8413 = vrot.lane.b32.xlu0 %v6468_v26, %s12938_s13  ;;  %v6464_v26 = vrot.slane %v17768_v56, %v13143_v49 }
 0x5a0   :  { %4559 = vrot.lane.b32.xlu1 %v17731_v25, %s12936_s11 }
 0x5a1   :  { %v6680_v30 = vpop.permute.xlu0 %6679  ;;  %v8682_v38 = vld [vmem:[#allocation2 + $0x188] sm:$0xff] }
 0x5a2   :  { %6864 = vst.msk [vmem:[#allocation2 + $0x1f9] sm:$0x1] %vm2980_vm1, %v6680_v30  ;;  %v6968_v8 = vpop.permute.xlu1 %6967  ;;  %v8789_v60 = vpack.c.bf16 %v8682_v38, %v8681_v58 }
 0x5a3   :  { %7152 = vst.msk [vmem:[#allocation2 + $0x1fa] sm:$0x1] %vm2980_vm1, %v6968_v8  ;;  %4847 = vrot.lane.b32.xlu0 %v17731_v25, %s12937_s12 }
 0x5a4   :  { %5135 = vrot.lane.b32.xlu1 %v17731_v25, %s12938_s13  ;;  %12411 = vmatmul.mubr.msk.bf16.vlgmr.msra.gmra.mrb[96].mxu0 %vm145_vm0, %v8789_v60  ;;  %v17769_v60 = vld [vmem:[#allocation41_spill] sm:$0xff] }
 0x5a5   :  { %v7256_v1 = vpop.permute.xlu0 %7255  ;;  %12422 = vmatprep.mubr.msk.bf16.mxu0 %vm12940_vm2, %v17600_v24  ;;  %v6460_v56 = vrot.slane %v17769_v60, %v13143_v49 }
 0x5a6   :  { %7440 = vst.msk [vmem:[#allocation2 + $0x1fb] sm:$0x1] %vm2980_vm1, %v7256_v1  ;;  %v7544_v48 = vpop.permute.xlu1 %7543  ;;  %v8695_v30 = vld [vmem:[#allocation2 + $0x1f0] sm:$0xff] }
 0x5a7   :  { %7728 = vst.msk [vmem:[#allocation2 + $0x1fc] sm:$0x1] %vm2980_vm1, %v7544_v48  ;;  %6683 = vrot.lane.b32.xlu0 %v6464_v26, %s12932_s4 }
 0x5a8   :  { %6971 = vrot.lane.b32.xlu1 %v6464_v26, %s12933_s5 }
 0x5a9   :  { %v7832_v42 = vpop.permute.xlu0 %7831 }
 0x5aa   :  { %8016 = vst.msk [vmem:[#allocation2 + $0x1fd] sm:$0x1] %vm2980_vm1, %v7832_v42  ;;  %v8120_v25 = vpop.permute.xlu1 %8119 }
 0x5ab   :  { %8304 = vst.msk [vmem:[#allocation2 + $0x1fe] sm:$0x1] %vm2980_vm1, %v8120_v25  ;;  %7259 = vrot.lane.b32.xlu0 %v6464_v26, %s12934_s0 }
 0x5ac   :  { %7547 = vrot.lane.b32.xlu1 %v6464_v26, %s12935_s10 }
 0x5ad   :  { %v8408_v54 = vpop.permute.xlu0 %8407 }
 0x5ae   :  { %8592 = vst.msk [vmem:[#allocation2 + $0x1ff] sm:$0x1] %vm2980_vm1, %v8408_v54  ;;  %v4554_v9 = vpop.permute.xlu1 %4553 }
 0x5af   :  { %4739 = vst.msk [vmem:[#allocation2 + $0x1e5] sm:$0x1] %vm2980_vm1, %v4554_v9  ;;  %7835 = vrot.lane.b32.xlu0 %v6464_v26, %s12936_s11 }
 0x5b0   :  { %8123 = vrot.lane.b32.xlu1 %v6464_v26, %s12937_s12 }
 0x5b1   :  { %v4842_v61 = vpop.permute.xlu0 %4841 }
 0x5b2   :  { %5027 = vst.msk [vmem:[#allocation2 + $0x1e6] sm:$0x1] %vm2980_vm1, %v4842_v61  ;;  %v5130_v55 = vpop.permute.xlu1 %5129 }
 0x5b3   :  { %5315 = vst.msk [vmem:[#allocation2 + $0x1e7] sm:$0x1] %vm2980_vm1, %v5130_v55  ;;  %8411 = vrot.lane.b32.xlu0 %v6464_v26, %s12938_s13 }
 0x5b4   :  { %4557 = vrot.lane.b32.xlu1 %v17730_v62, %s12936_s11 }
 0x5b5   :  { %v6678_v18 = vpop.permute.xlu0 %6677  ;;  %v8696_v58 = vld [vmem:[#allocation2 + $0x1f8] sm:$0xff] }
 0x5b6   :  { %6863 = vst.msk [vmem:[#allocation2 + $0x1e9] sm:$0x1] %vm2980_vm1, %v6678_v18  ;;  %v6966_v38 = vpop.permute.xlu1 %6965  ;;  %v8828_v8 = vpack.c.bf16 %v8696_v58, %v8695_v30 }
 0x5b7   :  { %7151 = vst.msk [vmem:[#allocation2 + $0x1ea] sm:$0x1] %vm2980_vm1, %v6966_v38  ;;  %4845 = vrot.lane.b32.xlu0 %v17730_v62, %s12937_s12 }
 0x5b8   :  { %5133 = vrot.lane.b32.xlu1 %v17730_v62, %s12938_s13  ;;  %12427 = vmatpush3.bf16.msra.mxu1 %v8828_v8 }
 0x5b9   :  { %v7254_v26 = vpop.permute.xlu0 %7253  ;;  %12438 = vmatprep.subr.bf16.mxu1 %v17600_v24 }
 0x5ba   :  { %7439 = vst.msk [vmem:[#allocation2 + $0x1eb] sm:$0x1] %vm2980_vm1, %v7254_v26  ;;  %v7542_v1 = vpop.permute.xlu1 %7541  ;;  %v8693_v8 = vld [vmem:[#allocation2 + $0x1e0] sm:$0xff] }
 0x5bb   :  { %7727 = vst.msk [vmem:[#allocation2 + $0x1ec] sm:$0x1] %vm2980_vm1, %v7542_v1  ;;  %6681 = vrot.lane.b32.xlu0 %v6460_v56, %s12932_s4 }
 0x5bc   :  { %6969 = vrot.lane.b32.xlu1 %v6460_v56, %s12933_s5 }
 0x5bd   :  { %v7830_v48 = vpop.permute.xlu0 %7829 }
 0x5be   :  { %8015 = vst.msk [vmem:[#allocation2 + $0x1ed] sm:$0x1] %vm2980_vm1, %v7830_v48  ;;  %v8118_v62 = vpop.permute.xlu1 %8117 }
 0x5bf   :  { %8303 = vst.msk [vmem:[#allocation2 + $0x1ee] sm:$0x1] %vm2980_vm1, %v8118_v62  ;;  %7257 = vrot.lane.b32.xlu0 %v6460_v56, %s12934_s0 }
 0x5c0   :  { %7545 = vrot.lane.b32.xlu1 %v6460_v56, %s12935_s10 }
 0x5c1   :  { %v8406_v42 = vpop.permute.xlu0 %8405 }
 0x5c2   :  { %8591 = vst.msk [vmem:[#allocation2 + $0x1ef] sm:$0x1] %vm2980_vm1, %v8406_v42  ;;  %v4552_v25 = vpop.permute.xlu1 %4551 }
 0x5c3   :  { %4738 = vst.msk [vmem:[#allocation2 + $0x1d5] sm:$0x1] %vm2980_vm1, %v4552_v25  ;;  %7833 = vrot.lane.b32.xlu0 %v6460_v56, %s12936_s11  ;;  %v15940_v54 = vpop.f32.mrb[88].mxu1 }
 0x5c4   :  { %8121 = vrot.lane.b32.xlu1 %v6460_v56, %s12937_s12  ;;  %v12394_v9 = vpop.f32.mrb[89].mxu1 }
 0x5c5   :  { %v4840_v61 = vpop.permute.xlu0 %4839  ;;  %v15943_v55 = vpop.f32.mrb[90].mxu1 }
 0x5c6   :  { %5026 = vst.msk [vmem:[#allocation2 + $0x1d6] sm:$0x1] %vm2980_vm1, %v4840_v61  ;;  %v5128_v30 = vpop.permute.xlu1 %5127  ;;  %v12395_v58 = vpop.f32.mrb[91].mxu1 }
 0x5c7   :  { %5314 = vst.msk [vmem:[#allocation2 + $0x1d7] sm:$0x1] %vm2980_vm1, %v5128_v30  ;;  %8409 = vrot.lane.b32.xlu0 %v6460_v56, %s12938_s13  ;;  %v17770_v56 = vld [vmem:[#allocation48_spill] sm:$0xff] }
 0x5c8   :  { %4571 = vrot.lane.b32.xlu1 %v14303_v28, %s12936_s11  ;;  %v6488_v48 = vrot.slane %v17770_v56, %v13143_v49 }
 0x5c9   :  { %v6676_v38 = vpop.permute.xlu0 %6675  ;;  %v8694_v60 = vld [vmem:[#allocation2 + $0x1e8] sm:$0xff] }
 0x5ca   :  { %6862 = vst.msk [vmem:[#allocation2 + $0x1d9] sm:$0x1] %vm2980_vm1, %v6676_v38  ;;  %v6964_v26 = vpop.permute.xlu1 %6963  ;;  %v8827_v1 = vpack.c.bf16 %v8694_v60, %v8693_v8 }
 0x5cb   :  { %7150 = vst.msk [vmem:[#allocation2 + $0x1da] sm:$0x1] %vm2980_vm1, %v6964_v26  ;;  %4859 = vrot.lane.b32.xlu0 %v14303_v28, %s12937_s12 }
 0x5cc   :  { %5147 = vrot.lane.b32.xlu1 %v14303_v28, %s12938_s13  ;;  %12421 = vmatpush3.bf16.msra.mxu0 %v8827_v1 }
 0x5cd   :  { %v7252_v62 = vpop.permute.xlu0 %7251  ;;  %12432 = vmatprep.subr.bf16.mxu0 %v17600_v24 }
 0x5ce   :  { %7438 = vst.msk [vmem:[#allocation2 + $0x1db] sm:$0x1] %vm2980_vm1, %v7252_v62  ;;  %v7540_v42 = vpop.permute.xlu1 %7539  ;;  %v8691_v62 = vld [vmem:[#allocation2 + $0x1d0] sm:$0xff] }
 0x5cf   :  { %7726 = vst.msk [vmem:[#allocation2 + $0x1dc] sm:$0x1] %vm2980_vm1, %v7540_v42  ;;  %6695 = vrot.lane.b32.xlu0 %v6488_v48, %s12932_s4 }
 0x5d0   :  { %6983 = vrot.lane.b32.xlu1 %v6488_v48, %s12933_s5 }
 0x5d1   :  { %v7828_v25 = vpop.permute.xlu0 %7827 }
 0x5d2   :  { %8014 = vst.msk [vmem:[#allocation2 + $0x1dd] sm:$0x1] %vm2980_vm1, %v7828_v25  ;;  %v8116_v28 = vpop.permute.xlu1 %8115 }
 0x5d3   :  { %8302 = vst.msk [vmem:[#allocation2 + $0x1de] sm:$0x1] %vm2980_vm1, %v8116_v28  ;;  %7271 = vrot.lane.b32.xlu0 %v6488_v48, %s12934_s0 }
 0x5d4   :  { %7559 = vrot.lane.b32.xlu1 %v6488_v48, %s12935_s10 }
 0x5d5   :  { %v8404_v9 = vpop.permute.xlu0 %8403 }
 0x5d6   :  { %8590 = vst.msk [vmem:[#allocation2 + $0x1df] sm:$0x1] %vm2980_vm1, %v8404_v9  ;;  %v4550_v61 = vpop.permute.xlu1 %4549 }
 0x5d7   :  { %4737 = vst.msk [vmem:[#allocation2 + $0x1c5] sm:$0x1] %vm2980_vm1, %v4550_v61  ;;  %7847 = vrot.lane.b32.xlu0 %v6488_v48, %s12936_s11  ;;  %v15973_v30 = vpop.f32.mrb[88].mxu0 }
 0x5d8   :  { %8135 = vrot.lane.b32.xlu1 %v6488_v48, %s12937_s12  ;;  %v12388_v58 = vpop.f32.mrb[89].mxu0 }
 0x5d9   :  { %v4838_v38 = vpop.permute.xlu0 %4837  ;;  %v15975_v8 = vpop.f32.mrb[90].mxu0 }
 0x5da   :  { %5025 = vst.msk [vmem:[#allocation2 + $0x1c6] sm:$0x1] %vm2980_vm1, %v4838_v38  ;;  %v5126_v60 = vpop.permute.xlu1 %5125  ;;  %v12389_v1 = vpop.f32.mrb[91].mxu0 }
 0x5db   :  { %5313 = vst.msk [vmem:[#allocation2 + $0x1c7] sm:$0x1] %vm2980_vm1, %v5126_v60  ;;  %8423 = vrot.lane.b32.xlu0 %v6488_v48, %s12938_s13  ;;  %v17771_v48 = vld [vmem:[#allocation47_spill] sm:$0xff] }
 0x5dc   :  { %4569 = vrot.lane.b32.xlu1 %v14312_v40, %s12936_s11  ;;  %v6484_v9 = vrot.slane %v17771_v48, %v13143_v49 }
 0x5dd   :  { %v6674_v56 = vpop.permute.xlu0 %6673  ;;  %v8692_v42 = vld [vmem:[#allocation2 + $0x1d8] sm:$0xff] }
 0x5de   :  { %6861 = vst.msk [vmem:[#allocation2 + $0x1c9] sm:$0x1] %vm2980_vm1, %v6674_v56  ;;  %v6962_v25 = vpop.permute.xlu1 %6961  ;;  %v8792_v28 = vpack.c.bf16 %v8692_v42, %v8691_v62 }
 0x5df   :  { %7149 = vst.msk [vmem:[#allocation2 + $0x1ca] sm:$0x1] %vm2980_vm1, %v6962_v25  ;;  %4857 = vrot.lane.b32.xlu0 %v14312_v40, %s12937_s12 }
 0x5e0   :  { %5145 = vrot.lane.b32.xlu1 %v14312_v40, %s12938_s13  ;;  %12429 = vmatmul.mubr.msk.bf16.vlgmr.msra.gmra.mrb[100].mxu1 %vm145_vm0, %v8792_v28 }
 0x5e1   :  { %v7250_v61 = vpop.permute.xlu0 %7249  ;;  %12440 = vmatprep.mubr.msk.bf16.mxu1 %vm12940_vm2, %v17600_v24 }
 0x5e2   :  { %7437 = vst.msk [vmem:[#allocation2 + $0x1cb] sm:$0x1] %vm2980_vm1, %v7250_v61  ;;  %v7538_v58 = vpop.permute.xlu1 %7537  ;;  %v8689_v25 = vld [vmem:[#allocation2 + $0x1c0] sm:$0xff] }
 0x5e3   :  { %7725 = vst.msk [vmem:[#allocation2 + $0x1cc] sm:$0x1] %vm2980_vm1, %v7538_v58  ;;  %6693 = vrot.lane.b32.xlu0 %v6484_v9, %s12932_s4 }
 0x5e4   :  { %6981 = vrot.lane.b32.xlu1 %v6484_v9, %s12933_s5 }
 0x5e5   :  { %v7826_v38 = vpop.permute.xlu0 %7825 }
 0x5e6   :  { %8013 = vst.msk [vmem:[#allocation2 + $0x1cd] sm:$0x1] %vm2980_vm1, %v7826_v38  ;;  %v8114_v40 = vpop.permute.xlu1 %8113 }
 0x5e7   :  { %8301 = vst.msk [vmem:[#allocation2 + $0x1ce] sm:$0x1] %vm2980_vm1, %v8114_v40  ;;  %7269 = vrot.lane.b32.xlu0 %v6484_v9, %s12934_s0 }
 0x5e8   :  { %7557 = vrot.lane.b32.xlu1 %v6484_v9, %s12935_s10 }
 0x5e9   :  { %v8402_v60 = vpop.permute.xlu0 %8401 }
 0x5ea   :  { %8589 = vst.msk [vmem:[#allocation2 + $0x1cf] sm:$0x1] %vm2980_vm1, %v8402_v60  ;;  %v4564_v1 = vpop.permute.xlu1 %4563 }
 0x5eb   :  { %4744 = vst.msk [vmem:[#allocation2 + $0x235] sm:$0x1] %vm2980_vm1, %v4564_v1  ;;  %7845 = vrot.lane.b32.xlu0 %v6484_v9, %s12936_s11 }
 0x5ec   :  { %8133 = vrot.lane.b32.xlu1 %v6484_v9, %s12937_s12 }
 0x5ed   :  { %v4852_v56 = vpop.permute.xlu0 %4851 }
 0x5ee   :  { %5032 = vst.msk [vmem:[#allocation2 + $0x236] sm:$0x1] %vm2980_vm1, %v4852_v56  ;;  %v5140_v62 = vpop.permute.xlu1 %5139 }
 0x5ef   :  { %5320 = vst.msk [vmem:[#allocation2 + $0x237] sm:$0x1] %vm2980_vm1, %v5140_v62  ;;  %8421 = vrot.lane.b32.xlu0 %v6484_v9, %s12938_s13  ;;  %v17772_v9 = vld [vmem:[#allocation46_spill] sm:$0xff] }
 0x5f0   :  { %4567 = vrot.lane.b32.xlu1 %v14287_v39, %s12936_s11  ;;  %v6480_v58 = vrot.slane %v17772_v9, %v13143_v49 }
 0x5f1   :  { %v6688_v42 = vpop.permute.xlu0 %6687  ;;  %v8690_v28 = vld [vmem:[#allocation2 + $0x1c8] sm:$0xff] }
 0x5f2   :  { %6868 = vst.msk [vmem:[#allocation2 + $0x239] sm:$0x1] %vm2980_vm1, %v6688_v42  ;;  %v6976_v48 = vpop.permute.xlu1 %6975  ;;  %v8791_v61 = vpack.c.bf16 %v8690_v28, %v8689_v25 }
 0x5f3   :  { %7156 = vst.msk [vmem:[#allocation2 + $0x23a] sm:$0x1] %vm2980_vm1, %v6976_v48  ;;  %4855 = vrot.lane.b32.xlu0 %v14287_v39, %s12937_s12 }
 0x5f4   :  { %5143 = vrot.lane.b32.xlu1 %v14287_v39, %s12938_s13  ;;  %12423 = vmatmul.mubr.msk.bf16.vlgmr.msra.gmra.mrb[100].mxu0 %vm145_vm0, %v8791_v61 }
 0x5f5   :  { %v7264_v38 = vpop.permute.xlu0 %7263  ;;  %12434 = vmatprep.mubr.msk.bf16.mxu0 %vm12940_vm2, %v17600_v24 }
 0x5f6   :  { %7444 = vst.msk [vmem:[#allocation2 + $0x23b] sm:$0x1] %vm2980_vm1, %v7264_v38  ;;  %v7552_v40 = vpop.permute.xlu1 %7551  ;;  %v8703_v28 = vld [vmem:[#allocation2 + $0x230] sm:$0xff] }
 0x5f7   :  { %7732 = vst.msk [vmem:[#allocation2 + $0x23c] sm:$0x1] %vm2980_vm1, %v7552_v40  ;;  %6691 = vrot.lane.b32.xlu0 %v6480_v58, %s12932_s4 }
 0x5f8   :  { %6979 = vrot.lane.b32.xlu1 %v6480_v58, %s12933_s5 }
 0x5f9   :  { %v7840_v60 = vpop.permute.xlu0 %7839 }
 0x5fa   :  { %8020 = vst.msk [vmem:[#allocation2 + $0x23d] sm:$0x1] %vm2980_vm1, %v7840_v60  ;;  %v8128_v39 = vpop.permute.xlu1 %8127 }
 0x5fb   :  { %8308 = vst.msk [vmem:[#allocation2 + $0x23e] sm:$0x1] %vm2980_vm1, %v8128_v39  ;;  %7267 = vrot.lane.b32.xlu0 %v6480_v58, %s12934_s0 }
 0x5fc   :  { %7555 = vrot.lane.b32.xlu1 %v6480_v58, %s12935_s10 }
 0x5fd   :  { %v8416_v1 = vpop.permute.xlu0 %8415 }
 0x5fe   :  { %8596 = vst.msk [vmem:[#allocation2 + $0x23f] sm:$0x1] %vm2980_vm1, %v8416_v1  ;;  %v4562_v56 = vpop.permute.xlu1 %4561 }
 0x5ff   :  { %4743 = vst.msk [vmem:[#allocation2 + $0x225] sm:$0x1] %vm2980_vm1, %v4562_v56  ;;  %7843 = vrot.lane.b32.xlu0 %v6480_v58, %s12936_s11 }
 0x600   :  { %8131 = vrot.lane.b32.xlu1 %v6480_v58, %s12937_s12 }
 0x601   :  { %v4850_v62 = vpop.permute.xlu0 %4849 }
 0x602   :  { %5031 = vst.msk [vmem:[#allocation2 + $0x226] sm:$0x1] %vm2980_vm1, %v4850_v62  ;;  %v5138_v42 = vpop.permute.xlu1 %5137 }
 0x603   :  { %5319 = vst.msk [vmem:[#allocation2 + $0x227] sm:$0x1] %vm2980_vm1, %v5138_v42  ;;  %8419 = vrot.lane.b32.xlu0 %v6480_v58, %s12938_s13  ;;  %v17773_v58 = vld [vmem:[#allocation45_spill] sm:$0xff] }
 0x604   :  { %4565 = vrot.lane.b32.xlu1 %v14297_v11, %s12936_s11  ;;  %v6476_v38 = vrot.slane %v17773_v58, %v13143_v49 }
 0x605   :  { %v6686_v25 = vpop.permute.xlu0 %6685  ;;  %v8704_v48 = vld [vmem:[#allocation2 + $0x238] sm:$0xff] }
 0x606   :  { %6867 = vst.msk [vmem:[#allocation2 + $0x229] sm:$0x1] %vm2980_vm1, %v6686_v25  ;;  %v6974_v61 = vpop.permute.xlu1 %6973  ;;  %v8830_v9 = vpack.c.bf16 %v8704_v48, %v8703_v28 }
 0x607   :  { %7155 = vst.msk [vmem:[#allocation2 + $0x22a] sm:$0x1] %vm2980_vm1, %v6974_v61  ;;  %4853 = vrot.lane.b32.xlu0 %v14297_v11, %s12937_s12 }
 0x608   :  { %5141 = vrot.lane.b32.xlu1 %v14297_v11, %s12938_s13  ;;  %12439 = vmatpush3.bf16.msra.mxu1 %v8830_v9 }
 0x609   :  { %v7262_v40 = vpop.permute.xlu0 %7261  ;;  %12450 = vmatprep.subr.bf16.mxu1 %v17600_v24 }
 0x60a   :  { %7443 = vst.msk [vmem:[#allocation2 + $0x22b] sm:$0x1] %vm2980_vm1, %v7262_v40  ;;  %v7550_v60 = vpop.permute.xlu1 %7549  ;;  %v8701_v40 = vld [vmem:[#allocation2 + $0x220] sm:$0xff] }
 0x60b   :  { %7731 = vst.msk [vmem:[#allocation2 + $0x22c] sm:$0x1] %vm2980_vm1, %v7550_v60  ;;  %6689 = vrot.lane.b32.xlu0 %v6476_v38, %s12932_s4 }
 0x60c   :  { %6977 = vrot.lane.b32.xlu1 %v6476_v38, %s12933_s5 }
 0x60d   :  { %v7838_v39 = vpop.permute.xlu0 %7837 }
 0x60e   :  { %8019 = vst.msk [vmem:[#allocation2 + $0x22d] sm:$0x1] %vm2980_vm1, %v7838_v39  ;;  %v8126_v11 = vpop.permute.xlu1 %8125 }
 0x60f   :  { %8307 = vst.msk [vmem:[#allocation2 + $0x22e] sm:$0x1] %vm2980_vm1, %v8126_v11  ;;  %7265 = vrot.lane.b32.xlu0 %v6476_v38, %s12934_s0 }
 0x610   :  { %7553 = vrot.lane.b32.xlu1 %v6476_v38, %s12935_s10 }
 0x611   :  { %v8414_v1 = vpop.permute.xlu0 %8413 }
 0x612   :  { %8595 = vst.msk [vmem:[#allocation2 + $0x22f] sm:$0x1] %vm2980_vm1, %v8414_v1  ;;  %v4560_v56 = vpop.permute.xlu1 %4559 }
 0x613   :  { %4742 = vst.msk [vmem:[#allocation2 + $0x215] sm:$0x1] %vm2980_vm1, %v4560_v56  ;;  %7841 = vrot.lane.b32.xlu0 %v6476_v38, %s12936_s11  ;;  %v16060_v62 = vpop.f32.mrb[92].mxu1 }
 0x614   :  { %8129 = vrot.lane.b32.xlu1 %v6476_v38, %s12937_s12  ;;  %v12406_v42 = vpop.f32.mrb[93].mxu1 }
 0x615   :  { %v4848_v25 = vpop.permute.xlu0 %4847  ;;  %v16063_v28 = vpop.f32.mrb[94].mxu1 }
 0x616   :  { %5030 = vst.msk [vmem:[#allocation2 + $0x216] sm:$0x1] %vm2980_vm1, %v4848_v25  ;;  %v5136_v61 = vpop.permute.xlu1 %5135  ;;  %v12407_v9 = vpop.f32.mrb[95].mxu1 }
 0x617   :  { %5318 = vst.msk [vmem:[#allocation2 + $0x217] sm:$0x1] %vm2980_vm1, %v5136_v61  ;;  %8417 = vrot.lane.b32.xlu0 %v6476_v38, %s12938_s13  ;;  %v17774_v38 = vld [vmem:[#allocation55_spill] sm:$0xff] }
 0x618   :  { %4291 = vrot.lane.b32.xlu1 %v14399_v59, %s12935_s10  ;;  %v6504_v1 = vrot.slane %v17774_v38, %v13143_v49 }
 0x619   :  { %v6684_v58 = vpop.permute.xlu0 %6683  ;;  %v8702_v60 = vld [vmem:[#allocation2 + $0x228] sm:$0xff] }
 0x61a   :  { %6866 = vst.msk [vmem:[#allocation2 + $0x219] sm:$0x1] %vm2980_vm1, %v6684_v58  ;;  %v6972_v39 = vpop.permute.xlu1 %6971  ;;  %v8829_v11 = vpack.c.bf16 %v8702_v60, %v8701_v40 }
 0x61b   :  { %7154 = vst.msk [vmem:[#allocation2 + $0x21a] sm:$0x1] %vm2980_vm1, %v6972_v39  ;;  %4579 = vrot.lane.b32.xlu0 %v14399_v59, %s12936_s11 }
 0x61c   :  { %4867 = vrot.lane.b32.xlu1 %v14399_v59, %s12937_s12  ;;  %12433 = vmatpush3.bf16.msra.mxu0 %v8829_v11 }
 0x61d   :  { %v7260_v56 = vpop.permute.xlu0 %7259  ;;  %12444 = vmatprep.subr.bf16.mxu0 %v17600_v24 }
 0x61e   :  { %7442 = vst.msk [vmem:[#allocation2 + $0x21b] sm:$0x1] %vm2980_vm1, %v7260_v56  ;;  %v7548_v42 = vpop.permute.xlu1 %7547 }
 0x61f   :  { %7730 = vst.msk [vmem:[#allocation2 + $0x21c] sm:$0x1] %vm2980_vm1, %v7548_v42  ;;  %5155 = vrot.lane.b32.xlu0 %v14399_v59, %s12938_s13 }
 0x620   :  { %6703 = vrot.lane.b32.xlu1 %v6504_v1, %s12932_s4 }
 0x621   :  { %v7836_v25 = vpop.permute.xlu0 %7835 }
 0x622   :  { %8018 = vst.msk [vmem:[#allocation2 + $0x21d] sm:$0x1] %vm2980_vm1, %v7836_v25  ;;  %v8124_v61 = vpop.permute.xlu1 %8123  ;;  %v8699_v25 = vld [vmem:[#allocation2 + $0x210] sm:$0xff] }
 0x623   :  { %8306 = vst.msk [vmem:[#allocation2 + $0x21e] sm:$0x1] %vm2980_vm1, %v8124_v61  ;;  %6991 = vrot.lane.b32.xlu0 %v6504_v1, %s12933_s5 }
 0x624   :  { %7279 = vrot.lane.b32.xlu1 %v6504_v1, %s12934_s0 }
 0x625   :  { %v8412_v9 = vpop.permute.xlu0 %8411 }
 0x626   :  { %8594 = vst.msk [vmem:[#allocation2 + $0x21f] sm:$0x1] %vm2980_vm1, %v8412_v9  ;;  %v4558_v58 = vpop.permute.xlu1 %4557 }
 0x627   :  { %4741 = vst.msk [vmem:[#allocation2 + $0x205] sm:$0x1] %vm2980_vm1, %v4558_v58  ;;  %7567 = vrot.lane.b32.xlu0 %v6504_v1, %s12935_s10  ;;  %v16094_v59 = vpop.f32.mrb[92].mxu0 }
 0x628   :  { %7855 = vrot.lane.b32.xlu1 %v6504_v1, %s12936_s11  ;;  %v12400_v40 = vpop.f32.mrb[93].mxu0 }
 0x629   :  { %v4846_v60 = vpop.permute.xlu0 %4845  ;;  %v16096_v39 = vpop.f32.mrb[94].mxu0  ;;  %v17775_v40 = vld [vmem:[#allocation54_spill] sm:$0xff] }
 0x62a   :  { %5029 = vst.msk [vmem:[#allocation2 + $0x206] sm:$0x1] %vm2980_vm1, %v4846_v60  ;;  %v5134_v11 = vpop.permute.xlu1 %5133  ;;  %v12401_v56 = vpop.f32.mrb[95].mxu0 }
 0x62b   :  { %5317 = vst.msk [vmem:[#allocation2 + $0x207] sm:$0x1] %vm2980_vm1, %v5134_v11  ;;  %8143 = vrot.lane.b32.xlu0 %v6504_v1, %s12937_s12 }
 0x62c   :  { %8431 = vrot.lane.b32.xlu1 %v6504_v1, %s12938_s13  ;;  %v6500_v1 = vrot.slane %v17775_v40, %v13143_v49 }
 0x62d   :  { %v6682_v42 = vpop.permute.xlu0 %6681  ;;  %v8700_v61 = vld [vmem:[#allocation2 + $0x218] sm:$0xff] }
 0x62e   :  { %6865 = vst.msk [vmem:[#allocation2 + $0x209] sm:$0x1] %vm2980_vm1, %v6682_v42  ;;  %v6970_v9 = vpop.permute.xlu1 %6969  ;;  %v8794_v58 = vpack.c.bf16 %v8700_v61, %v8699_v25 }
 0x62f   :  { %7153 = vst.msk [vmem:[#allocation2 + $0x20a] sm:$0x1] %vm2980_vm1, %v6970_v9  ;;  %4577 = vrot.lane.b32.xlu0 %v14407_v22, %s12936_s11 }
 0x630   :  { %4865 = vrot.lane.b32.xlu1 %v14407_v22, %s12937_s12  ;;  %12441 = vmatmul.mubr.msk.bf16.vlgmr.msra.gmra.mrb[104].mxu1 %vm145_vm0, %v8794_v58 }
 0x631   :  { %v7258_v60 = vpop.permute.xlu0 %7257  ;;  %12452 = vmatprep.mubr.msk.bf16.mxu1 %vm12940_vm2, %v17600_v24 }
 0x632   :  { %7441 = vst.msk [vmem:[#allocation2 + $0x20b] sm:$0x1] %vm2980_vm1, %v7258_v60  ;;  %v7546_v11 = vpop.permute.xlu1 %7545  ;;  %v8697_v40 = vld [vmem:[#allocation2 + $0x200] sm:$0xff] }
 0x633   :  { %7729 = vst.msk [vmem:[#allocation2 + $0x20c] sm:$0x1] %vm2980_vm1, %v7546_v11  ;;  %5153 = vrot.lane.b32.xlu0 %v14407_v22, %s12938_s13 }
 0x634   :  { %6701 = vrot.lane.b32.xlu1 %v6500_v1, %s12932_s4 }
 0x635   :  { %v7834_v56 = vpop.permute.xlu0 %7833 }
 0x636   :  { %8017 = vst.msk [vmem:[#allocation2 + $0x20d] sm:$0x1] %vm2980_vm1, %v7834_v56  ;;  %v8122_v42 = vpop.permute.xlu1 %8121 }
 0x637   :  { %8305 = vst.msk [vmem:[#allocation2 + $0x20e] sm:$0x1] %vm2980_vm1, %v8122_v42  ;;  %6989 = vrot.lane.b32.xlu0 %v6500_v1, %s12933_s5  ;;  %v17776_v42 = vld [vmem:[#allocation53_spill] sm:$0xff] }
 0x638   :  { %7277 = vrot.lane.b32.xlu1 %v6500_v1, %s12934_s0 }
 0x639   :  { %v8410_v25 = vpop.permute.xlu0 %8409 }
 0x63a   :  { %8593 = vst.msk [vmem:[#allocation2 + $0x20f] sm:$0x1] %vm2980_vm1, %v8410_v25  ;;  %v4572_v61 = vpop.permute.xlu1 %4571 }
 0x63b   :  { %4748 = vst.msk [vmem:[#allocation2 + $0x275] sm:$0x1] %vm2980_vm1, %v4572_v61  ;;  %7565 = vrot.lane.b32.xlu0 %v6500_v1, %s12935_s10 }
 0x63c   :  { %7853 = vrot.lane.b32.xlu1 %v6500_v1, %s12936_s11 }
 0x63d   :  { %v4860_v22 = vpop.permute.xlu0 %4859 }
 0x63e   :  { %5036 = vst.msk [vmem:[#allocation2 + $0x276] sm:$0x1] %vm2980_vm1, %v4860_v22  ;;  %v5148_v9 = vpop.permute.xlu1 %5147 }
 0x63f   :  { %5324 = vst.msk [vmem:[#allocation2 + $0x277] sm:$0x1] %vm2980_vm1, %v5148_v9  ;;  %8141 = vrot.lane.b32.xlu0 %v6500_v1, %s12937_s12 }
 0x640   :  { %8429 = vrot.lane.b32.xlu1 %v6500_v1, %s12938_s13  ;;  %v6496_v1 = vrot.slane %v17776_v42, %v13143_v49 }
 0x641   :  { %v6696_v58 = vpop.permute.xlu0 %6695  ;;  %v8698_v60 = vld [vmem:[#allocation2 + $0x208] sm:$0xff] }
 0x642   :  { %6872 = vst.msk [vmem:[#allocation2 + $0x279] sm:$0x1] %vm2980_vm1, %v6696_v58  ;;  %v6984_v11 = vpop.permute.xlu1 %6983  ;;  %v8793_v56 = vpack.c.bf16 %v8698_v60, %v8697_v40 }
 0x643   :  { %7160 = vst.msk [vmem:[#allocation2 + $0x27a] sm:$0x1] %vm2980_vm1, %v6984_v11  ;;  %4575 = vrot.lane.b32.xlu0 %v14385_v45, %s12936_s11 }
 0x644   :  { %4863 = vrot.lane.b32.xlu1 %v14385_v45, %s12937_s12  ;;  %12435 = vmatmul.mubr.msk.bf16.vlgmr.msra.gmra.mrb[104].mxu0 %vm145_vm0, %v8793_v56 }
 0x645   :  { %v7272_v25 = vpop.permute.xlu0 %7271  ;;  %12446 = vmatprep.mubr.msk.bf16.mxu0 %vm12940_vm2, %v17600_v24 }
 0x646   :  { %7448 = vst.msk [vmem:[#allocation2 + $0x27b] sm:$0x1] %vm2980_vm1, %v7272_v25  ;;  %v7560_v61 = vpop.permute.xlu1 %7559  ;;  %v8711_v56 = vld [vmem:[#allocation2 + $0x270] sm:$0xff] }
 0x647   :  { %7736 = vst.msk [vmem:[#allocation2 + $0x27c] sm:$0x1] %vm2980_vm1, %v7560_v61  ;;  %5151 = vrot.lane.b32.xlu0 %v14385_v45, %s12938_s13 }
 0x648   :  { %6699 = vrot.lane.b32.xlu1 %v6496_v1, %s12932_s4 }
 0x649   :  { %v7848_v22 = vpop.permute.xlu0 %7847 }
 0x64a   :  { %8024 = vst.msk [vmem:[#allocation2 + $0x27d] sm:$0x1] %vm2980_vm1, %v7848_v22  ;;  %v8136_v9 = vpop.permute.xlu1 %8135  ;;  %v17777_v22 = vld [vmem:[#allocation52_spill] sm:$0xff] }
 0x64b   :  { %8312 = vst.msk [vmem:[#allocation2 + $0x27e] sm:$0x1] %vm2980_vm1, %v8136_v9  ;;  %6987 = vrot.lane.b32.xlu0 %v6496_v1, %s12933_s5  ;;  %v6492_v9 = vrot.slane %v17777_v22, %v13143_v49 }
 0x64c   :  { %7275 = vrot.lane.b32.xlu1 %v6496_v1, %s12934_s0 }
 0x64d   :  { %v8424_v58 = vpop.permute.xlu0 %8423 }
 0x64e   :  { %8600 = vst.msk [vmem:[#allocation2 + $0x27f] sm:$0x1] %vm2980_vm1, %v8424_v58  ;;  %v4570_v40 = vpop.permute.xlu1 %4569 }
 0x64f   :  { %4747 = vst.msk [vmem:[#allocation2 + $0x265] sm:$0x1] %vm2980_vm1, %v4570_v40  ;;  %7563 = vrot.lane.b32.xlu0 %v6496_v1, %s12935_s10 }
 0x650   :  { %7851 = vrot.lane.b32.xlu1 %v6496_v1, %s12936_s11 }
 0x651   :  { %v4858_v45 = vpop.permute.xlu0 %4857 }
 0x652   :  { %5035 = vst.msk [vmem:[#allocation2 + $0x266] sm:$0x1] %vm2980_vm1, %v4858_v45  ;;  %v5146_v60 = vpop.permute.xlu1 %5145 }
 0x653   :  { %5323 = vst.msk [vmem:[#allocation2 + $0x267] sm:$0x1] %vm2980_vm1, %v5146_v60  ;;  %8139 = vrot.lane.b32.xlu0 %v6496_v1, %s12937_s12 }
 0x654   :  { %8427 = vrot.lane.b32.xlu1 %v6496_v1, %s12938_s13 }
 0x655   :  { %v6694_v11 = vpop.permute.xlu0 %6693  ;;  %v8712_v42 = vld [vmem:[#allocation2 + $0x278] sm:$0xff] }
 0x656   :  { %6871 = vst.msk [vmem:[#allocation2 + $0x269] sm:$0x1] %vm2980_vm1, %v6694_v11  ;;  %v6982_v25 = vpop.permute.xlu1 %6981  ;;  %v8832_v61 = vpack.c.bf16 %v8712_v42, %v8711_v56 }
 0x657   :  { %7159 = vst.msk [vmem:[#allocation2 + $0x26a] sm:$0x1] %vm2980_vm1, %v6982_v25  ;;  %4573 = vrot.lane.b32.xlu0 %v14393_v23, %s12936_s11 }
 0x658   :  { %4861 = vrot.lane.b32.xlu1 %v14393_v23, %s12937_s12  ;;  %12451 = vmatpush3.bf16.msra.mxu1 %v8832_v61 }
 0x659   :  { %v7270_v1 = vpop.permute.xlu0 %7269  ;;  %12462 = vmatprep.subr.bf16.mxu1 %v17600_v24 }
 0x65a   :  { %7447 = vst.msk [vmem:[#allocation2 + $0x26b] sm:$0x1] %vm2980_vm1, %v7270_v1  ;;  %v7558_v58 = vpop.permute.xlu1 %7557 }
 0x65b   :  { %7735 = vst.msk [vmem:[#allocation2 + $0x26c] sm:$0x1] %vm2980_vm1, %v7558_v58  ;;  %5149 = vrot.lane.b32.xlu0 %v14393_v23, %s12938_s13 }
 0x65c   :  { %6697 = vrot.lane.b32.xlu1 %v6492_v9, %s12932_s4 }
 0x65d   :  { %v7846_v40 = vpop.permute.xlu0 %7845 }
 0x65e   :  { %8023 = vst.msk [vmem:[#allocation2 + $0x26d] sm:$0x1] %vm2980_vm1, %v7846_v40  ;;  %v8134_v45 = vpop.permute.xlu1 %8133  ;;  %v8709_v40 = vld [vmem:[#allocation2 + $0x260] sm:$0xff] }
 0x65f   :  { %8311 = vst.msk [vmem:[#allocation2 + $0x26e] sm:$0x1] %vm2980_vm1, %v8134_v45  ;;  %6985 = vrot.lane.b32.xlu0 %v6492_v9, %s12933_s5 }
 0x660   :  { %7273 = vrot.lane.b32.xlu1 %v6492_v9, %s12934_s0 }
 0x661   :  { %v8422_v60 = vpop.permute.xlu0 %8421 }
 0x662   :  { %8599 = vst.msk [vmem:[#allocation2 + $0x26f] sm:$0x1] %vm2980_vm1, %v8422_v60  ;;  %v4568_v11 = vpop.permute.xlu1 %4567 }
 0x663   :  { %4746 = vst.msk [vmem:[#allocation2 + $0x255] sm:$0x1] %vm2980_vm1, %v4568_v11  ;;  %7561 = vrot.lane.b32.xlu0 %v6492_v9, %s12935_s10  ;;  %v16181_v23 = vpop.f32.mrb[96].mxu1 }
 0x664   :  { %7849 = vrot.lane.b32.xlu1 %v6492_v9, %s12936_s11  ;;  %v12418_v56 = vpop.f32.mrb[97].mxu1 }
 0x665   :  { %v4856_v42 = vpop.permute.xlu0 %4855  ;;  %v16184_v25 = vpop.f32.mrb[98].mxu1 }
 0x666   :  { %5034 = vst.msk [vmem:[#allocation2 + $0x256] sm:$0x1] %vm2980_vm1, %v4856_v42  ;;  %v5144_v22 = vpop.permute.xlu1 %5143  ;;  %v12419_v1 = vpop.f32.mrb[99].mxu1  ;;  %v17778_v42 = vld [vmem:[#allocation63_spill] sm:$0xff] }
 0x667   :  { %5322 = vst.msk [vmem:[#allocation2 + $0x257] sm:$0x1] %vm2980_vm1, %v5144_v22  ;;  %8137 = vrot.lane.b32.xlu0 %v6492_v9, %s12937_s12  ;;  %v6520_v22 = vrot.slane %v17778_v42, %v13143_v49 }
 0x668   :  { %8425 = vrot.lane.b32.xlu1 %v6492_v9, %s12938_s13 }
 0x669   :  { %v6692_v58 = vpop.permute.xlu0 %6691  ;;  %v8710_v45 = vld [vmem:[#allocation2 + $0x268] sm:$0xff] }
 0x66a   :  { %6870 = vst.msk [vmem:[#allocation2 + $0x259] sm:$0x1] %vm2980_vm1, %v6692_v58  ;;  %v6980_v60 = vpop.permute.xlu1 %6979  ;;  %v8831_v11 = vpack.c.bf16 %v8710_v45, %v8709_v40 }
 0x66b   :  { %7158 = vst.msk [vmem:[#allocation2 + $0x25a] sm:$0x1] %vm2980_vm1, %v6980_v60  ;;  %4299 = vrot.lane.b32.xlu0 %v14445_v12, %s12935_s10 }
 0x66c   :  { %4587 = vrot.lane.b32.xlu1 %v14445_v12, %s12936_s11  ;;  %12445 = vmatpush3.bf16.msra.mxu0 %v8831_v11 }
 0x66d   :  { %v7268_v56 = vpop.permute.xlu0 %7267  ;;  %12456 = vmatprep.subr.bf16.mxu0 %v17600_v24 }
 0x66e   :  { %7446 = vst.msk [vmem:[#allocation2 + $0x25b] sm:$0x1] %vm2980_vm1, %v7268_v56  ;;  %v7556_v9 = vpop.permute.xlu1 %7555 }
 0x66f   :  { %7734 = vst.msk [vmem:[#allocation2 + $0x25c] sm:$0x1] %vm2980_vm1, %v7556_v9  ;;  %4875 = vrot.lane.b32.xlu0 %v14445_v12, %s12937_s12 }
 0x670   :  { %5163 = vrot.lane.b32.xlu1 %v14445_v12, %s12938_s13 }
 0x671   :  { %v7844_v1 = vpop.permute.xlu0 %7843 }
 0x672   :  { %8022 = vst.msk [vmem:[#allocation2 + $0x25d] sm:$0x1] %vm2980_vm1, %v7844_v1  ;;  %v8132_v58 = vpop.permute.xlu1 %8131 }
 0x673   :  { %8310 = vst.msk [vmem:[#allocation2 + $0x25e] sm:$0x1] %vm2980_vm1, %v8132_v58  ;;  %6711 = vrot.lane.b32.xlu0 %v6520_v22, %s12932_s4 }
 0x674   :  { %6999 = vrot.lane.b32.xlu1 %v6520_v22, %s12933_s5 }
 0x675   :  { %v8420_v40 = vpop.permute.xlu0 %8419 }
 0x676   :  { %8598 = vst.msk [vmem:[#allocation2 + $0x25f] sm:$0x1] %vm2980_vm1, %v8420_v40  ;;  %v4566_v45 = vpop.permute.xlu1 %4565  ;;  %v8707_v40 = vld [vmem:[#allocation2 + $0x250] sm:$0xff] }
 0x677   :  { %4745 = vst.msk [vmem:[#allocation2 + $0x245] sm:$0x1] %vm2980_vm1, %v4566_v45  ;;  %7287 = vrot.lane.b32.xlu0 %v6520_v22, %s12934_s0  ;;  %v16215_v12 = vpop.f32.mrb[96].mxu0 }
 0x678   :  { %7575 = vrot.lane.b32.xlu1 %v6520_v22, %s12935_s10  ;;  %v12412_v60 = vpop.f32.mrb[97].mxu0 }
 0x679   :  { %v4854_v11 = vpop.permute.xlu0 %4853  ;;  %v16217_v56 = vpop.f32.mrb[98].mxu0 }
 0x67a   :  { %5033 = vst.msk [vmem:[#allocation2 + $0x246] sm:$0x1] %vm2980_vm1, %v4854_v11  ;;  %v5142_v9 = vpop.permute.xlu1 %5141  ;;  %v12413_v1 = vpop.f32.mrb[99].mxu0 }
 0x67b   :  { %5321 = vst.msk [vmem:[#allocation2 + $0x247] sm:$0x1] %vm2980_vm1, %v5142_v9  ;;  %7863 = vrot.lane.b32.xlu0 %v6520_v22, %s12936_s11 }
 0x67c   :  { %8151 = vrot.lane.b32.xlu1 %v6520_v22, %s12937_s12 }
 0x67d   :  { %v6690_v58 = vpop.permute.xlu0 %6689  ;;  %v8708_v45 = vld [vmem:[#allocation2 + $0x258] sm:$0xff] }
 0x67e   :  { %6869 = vst.msk [vmem:[#allocation2 + $0x249] sm:$0x1] %vm2980_vm1, %v6690_v58  ;;  %v6978_v60 = vpop.permute.xlu1 %6977  ;;  %v8796_v26 = vpack.c.bf16 %v8708_v45, %v8707_v40 }
 0x67f   :  { %7157 = vst.msk [vmem:[#allocation2 + $0x24a] sm:$0x1] %vm2980_vm1, %v6978_v60  ;;  %8439 = vrot.lane.b32.xlu0 %v6520_v22, %s12938_s13  ;;  %v17779_v22 = vld [vmem:[#allocation62_spill] sm:$0xff] }
 0x680   :  { %4297 = vrot.lane.b32.xlu1 %v14453_v0, %s12935_s10  ;;  %12453 = vmatmul.mubr.msk.bf16.vlgmr.msra.gmra.mrb[108].mxu1 %vm145_vm0, %v8796_v26  ;;  %v6516_v1 = vrot.slane %v17779_v22, %v13143_v49 }
 0x681   :  { %v7266_v11 = vpop.permute.xlu0 %7265  ;;  %12464 = vmatprep.mubr.msk.bf16.mxu1 %vm12940_vm2, %v17600_v24 }
 0x682   :  { %7445 = vst.msk [vmem:[#allocation2 + $0x24b] sm:$0x1] %vm2980_vm1, %v7266_v11  ;;  %v7554_v9 = vpop.permute.xlu1 %7553 }
 0x683   :  { %7733 = vst.msk [vmem:[#allocation2 + $0x24c] sm:$0x1] %vm2980_vm1, %v7554_v9  ;;  %4585 = vrot.lane.b32.xlu0 %v14453_v0, %s12936_s11  ;;  %v8705_v9 = vld [vmem:[#allocation2 + $0x240] sm:$0xff] }
 0x684   :  { %4873 = vrot.lane.b32.xlu1 %v14453_v0, %s12937_s12 }
 0x685   :  { %v7842_v58 = vpop.permute.xlu0 %7841 }
 0x686   :  { %8021 = vst.msk [vmem:[#allocation2 + $0x24d] sm:$0x1] %vm2980_vm1, %v7842_v58  ;;  %v8130_v26 = vpop.permute.xlu1 %8129 }
 0x687   :  { %8309 = vst.msk [vmem:[#allocation2 + $0x24e] sm:$0x1] %vm2980_vm1, %v8130_v26  ;;  %5161 = vrot.lane.b32.xlu0 %v14453_v0, %s12938_s13 }
 0x688   :  { %6709 = vrot.lane.b32.xlu1 %v6516_v1, %s12932_s4 }
 0x689   :  { %v8418_v40 = vpop.permute.xlu0 %8417 }
 0x68a   :  { %8597 = vst.msk [vmem:[#allocation2 + $0x24f] sm:$0x1] %vm2980_vm1, %v8418_v40  ;;  %v4292_v45 = vpop.permute.xlu1 %4291 }
 0x68b   :  { %4464 = vst.msk [vmem:[#allocation2 + $0x2b4] sm:$0x1] %vm2980_vm1, %v4292_v45  ;;  %6997 = vrot.lane.b32.xlu0 %v6516_v1, %s12933_s5 }
 0x68c   :  { %7285 = vrot.lane.b32.xlu1 %v6516_v1, %s12934_s0 }
 0x68d   :  { %v4580_v60 = vpop.permute.xlu0 %4579 }
 0x68e   :  { %4752 = vst.msk [vmem:[#allocation2 + $0x2b5] sm:$0x1] %vm2980_vm1, %v4580_v60  ;;  %v4868_v11 = vpop.permute.xlu1 %4867 }
 0x68f   :  { %5040 = vst.msk [vmem:[#allocation2 + $0x2b6] sm:$0x1] %vm2980_vm1, %v4868_v11  ;;  %7573 = vrot.lane.b32.xlu0 %v6516_v1, %s12935_s10  ;;  %v17780_v11 = vld [vmem:[#allocation61_spill] sm:$0xff] }
 0x690   :  { %7861 = vrot.lane.b32.xlu1 %v6516_v1, %s12936_s11 }
 0x691   :  { %v5156_v0 = vpop.permute.xlu0 %5155  ;;  %v8706_v22 = vld [vmem:[#allocation2 + $0x248] sm:$0xff] }
 0x692   :  { %5328 = vst.msk [vmem:[#allocation2 + $0x2b7] sm:$0x1] %vm2980_vm1, %v5156_v0  ;;  %v6704_v58 = vpop.permute.xlu1 %6703  ;;  %v8795_v26 = vpack.c.bf16 %v8706_v22, %v8705_v9  ;;  %v6512_v0 = vrot.slane %v17780_v11, %v13143_v49 }
 0x693   :  { %6876 = vst.msk [vmem:[#allocation2 + $0x2b9] sm:$0x1] %vm2980_vm1, %v6704_v58  ;;  %8149 = vrot.lane.b32.xlu0 %v6516_v1, %s12937_s12 }
 0x694   :  { %8437 = vrot.lane.b32.xlu1 %v6516_v1, %s12938_s13  ;;  %12447 = vmatmul.mubr.msk.bf16.vlgmr.msra.gmra.mrb[108].mxu0 %vm145_vm0, %v8795_v26 }
 0x695   :  { %v6992_v40 = vpop.permute.xlu0 %6991  ;;  %12458 = vmatprep.mubr.msk.bf16.mxu0 %vm12940_vm2, %v17600_v24 }
 0x696   :  { %7164 = vst.msk [vmem:[#allocation2 + $0x2ba] sm:$0x1] %vm2980_vm1, %v6992_v40  ;;  %v7280_v45 = vpop.permute.xlu1 %7279 }
 0x697   :  { %7452 = vst.msk [vmem:[#allocation2 + $0x2bb] sm:$0x1] %vm2980_vm1, %v7280_v45  ;;  %4295 = vrot.lane.b32.xlu0 %v14431_v50, %s12935_s10 }
 0x698   :  { %4583 = vrot.lane.b32.xlu1 %v14431_v50, %s12936_s11 }
 0x699   :  { %v7568_v60 = vpop.permute.xlu0 %7567  ;;  %v8719_v45 = vld [vmem:[#allocation2 + $0x2b0] sm:$0xff] }
 0x69a   :  { %7740 = vst.msk [vmem:[#allocation2 + $0x2bc] sm:$0x1] %vm2980_vm1, %v7568_v60  ;;  %v7856_v1 = vpop.permute.xlu1 %7855 }
 0x69b   :  { %8028 = vst.msk [vmem:[#allocation2 + $0x2bd] sm:$0x1] %vm2980_vm1, %v7856_v1  ;;  %4871 = vrot.lane.b32.xlu0 %v14431_v50, %s12937_s12 }
 0x69c   :  { %5159 = vrot.lane.b32.xlu1 %v14431_v50, %s12938_s13 }
 0x69d   :  { %v8144_v9 = vpop.permute.xlu0 %8143 }
 0x69e   :  { %8316 = vst.msk [vmem:[#allocation2 + $0x2be] sm:$0x1] %vm2980_vm1, %v8144_v9  ;;  %v8432_v22 = vpop.permute.xlu1 %8431 }
 0x69f   :  { %8604 = vst.msk [vmem:[#allocation2 + $0x2bf] sm:$0x1] %vm2980_vm1, %v8432_v22  ;;  %6707 = vrot.lane.b32.xlu0 %v6512_v0, %s12932_s4 }
 0x6a0   :  { %6995 = vrot.lane.b32.xlu1 %v6512_v0, %s12933_s5 }
 0x6a1   :  { %v4578_v58 = vpop.permute.xlu0 %4577 }
 0x6a2   :  { %4751 = vst.msk [vmem:[#allocation2 + $0x2a5] sm:$0x1] %vm2980_vm1, %v4578_v58  ;;  %v4866_v26 = vpop.permute.xlu1 %4865 }
 0x6a3   :  { %5039 = vst.msk [vmem:[#allocation2 + $0x2a6] sm:$0x1] %vm2980_vm1, %v4866_v26  ;;  %7283 = vrot.lane.b32.xlu0 %v6512_v0, %s12934_s0  ;;  %v17781_v26 = vld [vmem:[#allocation60_spill] sm:$0xff] }
 0x6a4   :  { %7571 = vrot.lane.b32.xlu1 %v6512_v0, %s12935_s10 }
 0x6a5   :  { %v5154_v50 = vpop.permute.xlu0 %5153 }
 0x6a6   :  { %5327 = vst.msk [vmem:[#allocation2 + $0x2a7] sm:$0x1] %vm2980_vm1, %v5154_v50  ;;  %v6702_v40 = vpop.permute.xlu1 %6701  ;;  %v8720_v60 = vld [vmem:[#allocation2 + $0x2b8] sm:$0xff]  ;;  %v6508_v50 = vrot.slane %v17781_v26, %v13143_v49 }
 0x6a7   :  { %6875 = vst.msk [vmem:[#allocation2 + $0x2a9] sm:$0x1] %vm2980_vm1, %v6702_v40  ;;  %7859 = vrot.lane.b32.xlu0 %v6512_v0, %s12936_s11  ;;  %v8834_v1 = vpack.c.bf16 %v8720_v60, %v8719_v45 }
 0x6a8   :  { %8147 = vrot.lane.b32.xlu1 %v6512_v0, %s12937_s12 }
 0x6a9   :  { %12463 = vmatpush3.bf16.msra.mxu1 %v8834_v1  ;;  %v6990_v11 = vpop.permute.xlu0 %6989 }
 0x6aa   :  { %7163 = vst.msk [vmem:[#allocation2 + $0x2aa] sm:$0x1] %vm2980_vm1, %v6990_v11  ;;  %v7278_v9 = vpop.permute.xlu1 %7277  ;;  %12474 = vmatprep.subr.bf16.mxu1 %v17600_v24 }
 0x6ab   :  { %7451 = vst.msk [vmem:[#allocation2 + $0x2ab] sm:$0x1] %vm2980_vm1, %v7278_v9  ;;  %8435 = vrot.lane.b32.xlu0 %v6512_v0, %s12938_s13 }
 0x6ac   :  { %4293 = vrot.lane.b32.xlu1 %v14439_v14, %s12935_s10 }
 0x6ad   :  { %v7566_v22 = vpop.permute.xlu0 %7565 }
 0x6ae   :  { %7739 = vst.msk [vmem:[#allocation2 + $0x2ac] sm:$0x1] %vm2980_vm1, %v7566_v22  ;;  %v7854_v58 = vpop.permute.xlu1 %7853 }
 0x6af   :  { %8027 = vst.msk [vmem:[#allocation2 + $0x2ad] sm:$0x1] %vm2980_vm1, %v7854_v58  ;;  %4581 = vrot.lane.b32.xlu0 %v14439_v14, %s12936_s11 }
 0x6b0   :  { %4869 = vrot.lane.b32.xlu1 %v14439_v14, %s12937_s12 }
 0x6b1   :  { %v8142_v40 = vpop.permute.xlu0 %8141 }
 0x6b2   :  { %8315 = vst.msk [vmem:[#allocation2 + $0x2ae] sm:$0x1] %vm2980_vm1, %v8142_v40  ;;  %v8430_v0 = vpop.permute.xlu1 %8429  ;;  %v8717_v40 = vld [vmem:[#allocation2 + $0x2a0] sm:$0xff] }
 0x6b3   :  { %8603 = vst.msk [vmem:[#allocation2 + $0x2af] sm:$0x1] %vm2980_vm1, %v8430_v0  ;;  %5157 = vrot.lane.b32.xlu0 %v14439_v14, %s12938_s13  ;;  %v16305_v45 = vpop.f32.mrb[100].mxu1 }
 0x6b4   :  { %6705 = vrot.lane.b32.xlu1 %v6508_v50, %s12932_s4  ;;  %v12430_v60 = vpop.f32.mrb[101].mxu1 }
 0x6b5   :  { %v4576_v1 = vpop.permute.xlu0 %4575  ;;  %v16308_v11 = vpop.f32.mrb[102].mxu1 }
 0x6b6   :  { %4750 = vst.msk [vmem:[#allocation2 + $0x295] sm:$0x1] %vm2980_vm1, %v4576_v1  ;;  %v4864_v22 = vpop.permute.xlu1 %4863  ;;  %v12431_v58 = vpop.f32.mrb[103].mxu1 }
 0x6b7   :  { %5038 = vst.msk [vmem:[#allocation2 + $0x296] sm:$0x1] %vm2980_vm1, %v4864_v22  ;;  %6993 = vrot.lane.b32.xlu0 %v6508_v50, %s12933_s5 }
 0x6b8   :  { %7281 = vrot.lane.b32.xlu1 %v6508_v50, %s12934_s0 }
 0x6b9   :  { %v5152_v14 = vpop.permute.xlu0 %5151 }
 0x6ba   :  { %5326 = vst.msk [vmem:[#allocation2 + $0x297] sm:$0x1] %vm2980_vm1, %v5152_v14  ;;  %v6700_v26 = vpop.permute.xlu1 %6699  ;;  %v8718_v0 = vld [vmem:[#allocation2 + $0x2a8] sm:$0xff] }
 0x6bb   :  { %6874 = vst.msk [vmem:[#allocation2 + $0x299] sm:$0x1] %vm2980_vm1, %v6700_v26  ;;  %7569 = vrot.lane.b32.xlu0 %v6508_v50, %s12935_s10  ;;  %v8833_v60 = vpack.c.bf16 %v8718_v0, %v8717_v40 }
 0x6bc   :  { %7857 = vrot.lane.b32.xlu1 %v6508_v50, %s12936_s11 }
 0x6bd   :  { %12457 = vmatpush3.bf16.msra.mxu0 %v8833_v60  ;;  %v6988_v1 = vpop.permute.xlu0 %6987  ;;  %v17782_v60 = vld [vmem:[#allocation71_spill] sm:$0xff] }
 0x6be   :  { %7162 = vst.msk [vmem:[#allocation2 + $0x29a] sm:$0x1] %vm2980_vm1, %v6988_v1  ;;  %v7276_v22 = vpop.permute.xlu1 %7275  ;;  %12468 = vmatprep.subr.bf16.mxu0 %v17600_v24  ;;  %v6536_v1 = vrot.slane %v17782_v60, %v13143_v49 }
 0x6bf   :  { %7450 = vst.msk [vmem:[#allocation2 + $0x29b] sm:$0x1] %vm2980_vm1, %v7276_v22  ;;  %8145 = vrot.lane.b32.xlu0 %v6508_v50, %s12937_s12 }
 0x6c0   :  { %8433 = vrot.lane.b32.xlu1 %v6508_v50, %s12938_s13 }
 0x6c1   :  { %v7564_v58 = vpop.permute.xlu0 %7563  ;;  %v8715_v60 = vld [vmem:[#allocation2 + $0x290] sm:$0xff] }
 0x6c2   :  { %7738 = vst.msk [vmem:[#allocation2 + $0x29c] sm:$0x1] %vm2980_vm1, %v7564_v58  ;;  %v7852_v14 = vpop.permute.xlu1 %7851 }
 0x6c3   :  { %8026 = vst.msk [vmem:[#allocation2 + $0x29d] sm:$0x1] %vm2980_vm1, %v7852_v14  ;;  %4307 = vrot.lane.b32.xlu0 %v14485_v51, %s12935_s10 }
 0x6c4   :  { %4595 = vrot.lane.b32.xlu1 %v14485_v51, %s12936_s11 }
 0x6c5   :  { %v8140_v26 = vpop.permute.xlu0 %8139 }
 0x6c6   :  { %8314 = vst.msk [vmem:[#allocation2 + $0x29e] sm:$0x1] %vm2980_vm1, %v8140_v26  ;;  %v8428_v40 = vpop.permute.xlu1 %8427 }
 0x6c7   :  { %8602 = vst.msk [vmem:[#allocation2 + $0x29f] sm:$0x1] %vm2980_vm1, %v8428_v40  ;;  %4883 = vrot.lane.b32.xlu0 %v14485_v51, %s12937_s12  ;;  %v16337_v50 = vpop.f32.mrb[100].mxu0 }
 0x6c8   :  { %5171 = vrot.lane.b32.xlu1 %v14485_v51, %s12938_s13  ;;  %v12424_v0 = vpop.f32.mrb[101].mxu0 }
 0x6c9   :  { %v4574_v22 = vpop.permute.xlu0 %4573  ;;  %v16341_v58 = vpop.f32.mrb[102].mxu0 }
 0x6ca   :  { %4749 = vst.msk [vmem:[#allocation2 + $0x285] sm:$0x1] %vm2980_vm1, %v4574_v22  ;;  %v4862_v14 = vpop.permute.xlu1 %4861  ;;  %v12425_v40 = vpop.f32.mrb[103].mxu0 }
 0x6cb   :  { %5037 = vst.msk [vmem:[#allocation2 + $0x286] sm:$0x1] %vm2980_vm1, %v4862_v14  ;;  %6719 = vrot.lane.b32.xlu0 %v6536_v1, %s12932_s4 }
 0x6cc   :  { %7007 = vrot.lane.b32.xlu1 %v6536_v1, %s12933_s5 }
 0x6cd   :  { %v5150_v51 = vpop.permute.xlu0 %5149 }
 0x6ce   :  { %5325 = vst.msk [vmem:[#allocation2 + $0x287] sm:$0x1] %vm2980_vm1, %v5150_v51  ;;  %v6698_v0 = vpop.permute.xlu1 %6697  ;;  %v8716_v42 = vld [vmem:[#allocation2 + $0x298] sm:$0xff] }
 0x6cf   :  { %6873 = vst.msk [vmem:[#allocation2 + $0x289] sm:$0x1] %vm2980_vm1, %v6698_v0  ;;  %7295 = vrot.lane.b32.xlu0 %v6536_v1, %s12934_s0  ;;  %v8798_v22 = vpack.c.bf16 %v8716_v42, %v8715_v60 }
 0x6d0   :  { %7583 = vrot.lane.b32.xlu1 %v6536_v1, %s12935_s10 }
 0x6d1   :  { %12465 = vmatmul.mubr.msk.bf16.vlgmr.msra.gmra.mrb[112].mxu1 %vm145_vm0, %v8798_v22  ;;  %v6986_v14 = vpop.permute.xlu0 %6985  ;;  %v17783_v22 = vld [vmem:[#allocation69_spill] sm:$0xff] }
 0x6d2   :  { %7161 = vst.msk [vmem:[#allocation2 + $0x28a] sm:$0x1] %vm2980_vm1, %v6986_v14  ;;  %v7274_v40 = vpop.permute.xlu1 %7273  ;;  %12476 = vmatprep.mubr.msk.bf16.mxu1 %vm12940_vm2, %v17600_v24  ;;  %v6532_v14 = vrot.slane %v17783_v22, %v13143_v49 }
 0x6d3   :  { %7449 = vst.msk [vmem:[#allocation2 + $0x28b] sm:$0x1] %vm2980_vm1, %v7274_v40  ;;  %7871 = vrot.lane.b32.xlu0 %v6536_v1, %s12936_s11 }
 0x6d4   :  { %8159 = vrot.lane.b32.xlu1 %v6536_v1, %s12937_s12 }
 0x6d5   :  { %v7562_v51 = vpop.permute.xlu0 %7561 }
 0x6d6   :  { %7737 = vst.msk [vmem:[#allocation2 + $0x28c] sm:$0x1] %vm2980_vm1, %v7562_v51  ;;  %v7850_v0 = vpop.permute.xlu1 %7849 }
 0x6d7   :  { %8025 = vst.msk [vmem:[#allocation2 + $0x28d] sm:$0x1] %vm2980_vm1, %v7850_v0  ;;  %8447 = vrot.lane.b32.xlu0 %v6536_v1, %s12938_s13 }
 0x6d8   :  { %4305 = vrot.lane.b32.xlu1 %v14493_v10, %s12935_s10 }
 0x6d9   :  { %v8138_v42 = vpop.permute.xlu0 %8137 }
 0x6da   :  { %8313 = vst.msk [vmem:[#allocation2 + $0x28e] sm:$0x1] %vm2980_vm1, %v8138_v42  ;;  %v8426_v60 = vpop.permute.xlu1 %8425  ;;  %v8713_v42 = vld [vmem:[#allocation2 + $0x280] sm:$0xff] }
 0x6db   :  { %8601 = vst.msk [vmem:[#allocation2 + $0x28f] sm:$0x1] %vm2980_vm1, %v8426_v60  ;;  %4593 = vrot.lane.b32.xlu0 %v14493_v10, %s12936_s11 }
 0x6dc   :  { %4881 = vrot.lane.b32.xlu1 %v14493_v10, %s12937_s12 }
 0x6dd   :  { %v4300_v40 = vpop.permute.xlu0 %4299 }
 0x6de   :  { %4468 = vst.msk [vmem:[#allocation2 + $0x2f4] sm:$0x1] %vm2980_vm1, %v4300_v40  ;;  %v4588_v1 = vpop.permute.xlu1 %4587 }
 0x6df   :  { %4756 = vst.msk [vmem:[#allocation2 + $0x2f5] sm:$0x1] %vm2980_vm1, %v4588_v1  ;;  %5169 = vrot.lane.b32.xlu0 %v14493_v10, %s12938_s13 }
 0x6e0   :  { %6717 = vrot.lane.b32.xlu1 %v6532_v14, %s12932_s4 }
 0x6e1   :  { %v4876_v51 = vpop.permute.xlu0 %4875 }
 0x6e2   :  { %5044 = vst.msk [vmem:[#allocation2 + $0x2f6] sm:$0x1] %vm2980_vm1, %v4876_v51  ;;  %v5164_v0 = vpop.permute.xlu1 %5163  ;;  %v8714_v60 = vld [vmem:[#allocation2 + $0x288] sm:$0xff] }
 0x6e3   :  { %5332 = vst.msk [vmem:[#allocation2 + $0x2f7] sm:$0x1] %vm2980_vm1, %v5164_v0  ;;  %7005 = vrot.lane.b32.xlu0 %v6532_v14, %s12933_s5  ;;  %v8797_v22 = vpack.c.bf16 %v8714_v60, %v8713_v42 }
 0x6e4   :  { %7293 = vrot.lane.b32.xlu1 %v6532_v14, %s12934_s0 }
 0x6e5   :  { %12459 = vmatmul.mubr.msk.bf16.vlgmr.msra.gmra.mrb[112].mxu0 %vm145_vm0, %v8797_v22  ;;  %v6712_v40 = vpop.permute.xlu0 %6711 }
 0x6e6   :  { %6880 = vst.msk [vmem:[#allocation2 + $0x2f9] sm:$0x1] %vm2980_vm1, %v6712_v40  ;;  %v7000_v10 = vpop.permute.xlu1 %6999  ;;  %12470 = vmatprep.mubr.msk.bf16.mxu0 %vm12940_vm2, %v17600_v24 }
 0x6e7   :  { %7168 = vst.msk [vmem:[#allocation2 + $0x2fa] sm:$0x1] %vm2980_vm1, %v7000_v10  ;;  %7581 = vrot.lane.b32.xlu0 %v6532_v14, %s12935_s10 }
 0x6e8   :  { %7869 = vrot.lane.b32.xlu1 %v6532_v14, %s12936_s11 }
 0x6e9   :  { %v7288_v1 = vpop.permute.xlu0 %7287 }
 0x6ea   :  { %7456 = vst.msk [vmem:[#allocation2 + $0x2fb] sm:$0x1] %vm2980_vm1, %v7288_v1  ;;  %v7576_v51 = vpop.permute.xlu1 %7575 }
 0x6eb   :  { %7744 = vst.msk [vmem:[#allocation2 + $0x2fc] sm:$0x1] %vm2980_vm1, %v7576_v51  ;;  %8157 = vrot.lane.b32.xlu0 %v6532_v14, %s12937_s12 }
 0x6ec   :  { %8445 = vrot.lane.b32.xlu1 %v6532_v14, %s12938_s13  ;;  %v17784_v14 = vld [vmem:[#allocation67_spill] sm:$0xff] }
 0x6ed   :  { %v7864_v0 = vpop.permute.xlu0 %7863  ;;  %v6528_v40 = vrot.slane %v17784_v14, %v13143_v49 }
 0x6ee   :  { %8032 = vst.msk [vmem:[#allocation2 + $0x2fd] sm:$0x1] %vm2980_vm1, %v7864_v0  ;;  %v8152_v42 = vpop.permute.xlu1 %8151  ;;  %v8727_v0 = vld [vmem:[#allocation2 + $0x2f0] sm:$0xff] }
 0x6ef   :  { %8320 = vst.msk [vmem:[#allocation2 + $0x2fe] sm:$0x1] %vm2980_vm1, %v8152_v42  ;;  %4303 = vrot.lane.b32.xlu0 %v14471_v41, %s12935_s10 }
 0x6f0   :  { %4591 = vrot.lane.b32.xlu1 %v14471_v41, %s12936_s11 }
 0x6f1   :  { %v8440_v60 = vpop.permute.xlu0 %8439 }
 0x6f2   :  { %8608 = vst.msk [vmem:[#allocation2 + $0x2ff] sm:$0x1] %vm2980_vm1, %v8440_v60  ;;  %v4298_v22 = vpop.permute.xlu1 %4297 }
 0x6f3   :  { %4467 = vst.msk [vmem:[#allocation2 + $0x2e4] sm:$0x1] %vm2980_vm1, %v4298_v22  ;;  %4879 = vrot.lane.b32.xlu0 %v14471_v41, %s12937_s12 }
 0x6f4   :  { %5167 = vrot.lane.b32.xlu1 %v14471_v41, %s12938_s13 }
 0x6f5   :  { %v4586_v10 = vpop.permute.xlu0 %4585 }
 0x6f6   :  { %4755 = vst.msk [vmem:[#allocation2 + $0x2e5] sm:$0x1] %vm2980_vm1, %v4586_v10  ;;  %v4874_v1 = vpop.permute.xlu1 %4873 }
 0x6f7   :  { %5043 = vst.msk [vmem:[#allocation2 + $0x2e6] sm:$0x1] %vm2980_vm1, %v4874_v1  ;;  %6715 = vrot.lane.b32.xlu0 %v6528_v40, %s12932_s4 }
 0x6f8   :  { %7003 = vrot.lane.b32.xlu1 %v6528_v40, %s12933_s5 }
 0x6f9   :  { %v5162_v51 = vpop.permute.xlu0 %5161  ;;  %v8728_v42 = vld [vmem:[#allocation2 + $0x2f8] sm:$0xff] }
 0x6fa   :  { %5331 = vst.msk [vmem:[#allocation2 + $0x2e7] sm:$0x1] %vm2980_vm1, %v5162_v51  ;;  %v6710_v60 = vpop.permute.xlu1 %6709  ;;  %v8836_v41 = vpack.c.bf16 %v8728_v42, %v8727_v0 }
 0x6fb   :  { %6879 = vst.msk [vmem:[#allocation2 + $0x2e9] sm:$0x1] %vm2980_vm1, %v6710_v60  ;;  %7291 = vrot.lane.b32.xlu0 %v6528_v40, %s12934_s0 }
 0x6fc   :  { %7579 = vrot.lane.b32.xlu1 %v6528_v40, %s12935_s10  ;;  %12475 = vmatpush3.bf16.msra.mxu1 %v8836_v41 }
 0x6fd   :  { %v6998_v22 = vpop.permute.xlu0 %6997  ;;  %12486 = vmatprep.subr.bf16.mxu1 %v17600_v24 }
 0x6fe   :  { %7167 = vst.msk [vmem:[#allocation2 + $0x2ea] sm:$0x1] %vm2980_vm1, %v6998_v22  ;;  %v7286_v14 = vpop.permute.xlu1 %7285 }
 0x6ff   :  { %7455 = vst.msk [vmem:[#allocation2 + $0x2eb] sm:$0x1] %vm2980_vm1, %v7286_v14  ;;  %7867 = vrot.lane.b32.xlu0 %v6528_v40, %s12936_s11 }
 0x700   :  { %8155 = vrot.lane.b32.xlu1 %v6528_v40, %s12937_s12 }
 0x701   :  { %v7574_v10 = vpop.permute.xlu0 %7573 }
 0x702   :  { %7743 = vst.msk [vmem:[#allocation2 + $0x2ec] sm:$0x1] %vm2980_vm1, %v7574_v10  ;;  %v7862_v1 = vpop.permute.xlu1 %7861 }
 0x703   :  { %8031 = vst.msk [vmem:[#allocation2 + $0x2ed] sm:$0x1] %vm2980_vm1, %v7862_v1  ;;  %8443 = vrot.lane.b32.xlu0 %v6528_v40, %s12938_s13  ;;  %v16423_v51 = vpop.f32.mrb[104].mxu1  ;;  %v17785_v40 = vld [vmem:[#allocation65_spill] sm:$0xff] }
 0x704   :  { %4301 = vrot.lane.b32.xlu1 %v14479_v44, %s12935_s10  ;;  %v12442_v0 = vpop.f32.mrb[105].mxu1  ;;  %v6524_v10 = vrot.slane %v17785_v40, %v13143_v49 }
 0x705   :  { %v8150_v42 = vpop.permute.xlu0 %8149  ;;  %v16427_v60 = vpop.f32.mrb[106].mxu1 }
 0x706   :  { %8319 = vst.msk [vmem:[#allocation2 + $0x2ee] sm:$0x1] %vm2980_vm1, %v8150_v42  ;;  %v8438_v22 = vpop.permute.xlu1 %8437  ;;  %v12443_v14 = vpop.f32.mrb[107].mxu1 }
 0x707   :  { %8607 = vst.msk [vmem:[#allocation2 + $0x2ef] sm:$0x1] %vm2980_vm1, %v8438_v22  ;;  %4589 = vrot.lane.b32.xlu0 %v14479_v44, %s12936_s11  ;;  %v8725_v14 = vld [vmem:[#allocation2 + $0x2e0] sm:$0xff] }
 0x708   :  { %4877 = vrot.lane.b32.xlu1 %v14479_v44, %s12937_s12 }
 0x709   :  { %v4296_v1 = vpop.permute.xlu0 %4295 }
 0x70a   :  { %4466 = vst.msk [vmem:[#allocation2 + $0x2d4] sm:$0x1] %vm2980_vm1, %v4296_v1  ;;  %v4584_v0 = vpop.permute.xlu1 %4583 }
 0x70b   :  { %4754 = vst.msk [vmem:[#allocation2 + $0x2d5] sm:$0x1] %vm2980_vm1, %v4584_v0  ;;  %5165 = vrot.lane.b32.xlu0 %v14479_v44, %s12938_s13 }
 0x70c   :  { %6713 = vrot.lane.b32.xlu1 %v6524_v10, %s12932_s4 }
 0x70d   :  { %v4872_v42 = vpop.permute.xlu0 %4871 }
 0x70e   :  { %5042 = vst.msk [vmem:[#allocation2 + $0x2d6] sm:$0x1] %vm2980_vm1, %v4872_v42  ;;  %v5160_v22 = vpop.permute.xlu1 %5159  ;;  %v8726_v26 = vld [vmem:[#allocation2 + $0x2e8] sm:$0xff] }
 0x70f   :  { %5330 = vst.msk [vmem:[#allocation2 + $0x2d7] sm:$0x1] %vm2980_vm1, %v5160_v22  ;;  %7001 = vrot.lane.b32.xlu0 %v6524_v10, %s12933_s5  ;;  %v8835_v40 = vpack.c.bf16 %v8726_v26, %v8725_v14 }
 0x710   :  { %7289 = vrot.lane.b32.xlu1 %v6524_v10, %s12934_s0 }
 0x711   :  { %12469 = vmatpush3.bf16.msra.mxu0 %v8835_v40  ;;  %v6708_v1 = vpop.permute.xlu0 %6707 }
 0x712   :  { %6878 = vst.msk [vmem:[#allocation2 + $0x2d9] sm:$0x1] %vm2980_vm1, %v6708_v1  ;;  %v6996_v44 = vpop.permute.xlu1 %6995  ;;  %12480 = vmatprep.subr.bf16.mxu0 %v17600_v24 }
 0x713   :  { %7166 = vst.msk [vmem:[#allocation2 + $0x2da] sm:$0x1] %vm2980_vm1, %v6996_v44  ;;  %7577 = vrot.lane.b32.xlu0 %v6524_v10, %s12935_s10 }
 0x714   :  { %7865 = vrot.lane.b32.xlu1 %v6524_v10, %s12936_s11 }
 0x715   :  { %v7284_v0 = vpop.permute.xlu0 %7283 }
 0x716   :  { %7454 = vst.msk [vmem:[#allocation2 + $0x2db] sm:$0x1] %vm2980_vm1, %v7284_v0  ;;  %v7572_v42 = vpop.permute.xlu1 %7571 }
 0x717   :  { %7742 = vst.msk [vmem:[#allocation2 + $0x2dc] sm:$0x1] %vm2980_vm1, %v7572_v42  ;;  %8153 = vrot.lane.b32.xlu0 %v6524_v10, %s12937_s12  ;;  %v16457_v26 = vpop.f32.mrb[104].mxu0 }
 0x718   :  { %8441 = vrot.lane.b32.xlu1 %v6524_v10, %s12938_s13  ;;  %v12436_v22 = vpop.f32.mrb[105].mxu0 }
 0x719   :  { %v7860_v14 = vpop.permute.xlu0 %7859  ;;  %v16459_v40 = vpop.f32.mrb[106].mxu0  ;;  %v17786_v22 = vld [vmem:[#allocation75_spill] sm:$0xff] }
 0x71a   :  { %8030 = vst.msk [vmem:[#allocation2 + $0x2dd] sm:$0x1] %vm2980_vm1, %v7860_v14  ;;  %v8148_v1 = vpop.permute.xlu1 %8147  ;;  %v12437_v0 = vpop.f32.mrb[107].mxu0  ;;  %v6552_v14 = vrot.slane %v17786_v22, %v13143_v49 }
 0x71b   :  { %8318 = vst.msk [vmem:[#allocation2 + $0x2de] sm:$0x1] %vm2980_vm1, %v8148_v1  ;;  %4315 = vrot.lane.b32.xlu0 %v14525_v32, %s12935_s10 }
 0x71c   :  { %4603 = vrot.lane.b32.xlu1 %v14525_v32, %s12936_s11 }
 0x71d   :  { %v8436_v10 = vpop.permute.xlu0 %8435 }
 0x71e   :  { %8606 = vst.msk [vmem:[#allocation2 + $0x2df] sm:$0x1] %vm2980_vm1, %v8436_v10  ;;  %v4294_v42 = vpop.permute.xlu1 %4293 }
 0x71f   :  { %4465 = vst.msk [vmem:[#allocation2 + $0x2c4] sm:$0x1] %vm2980_vm1, %v4294_v42  ;;  %4891 = vrot.lane.b32.xlu0 %v14525_v32, %s12937_s12  ;;  %v8723_v42 = vld [vmem:[#allocation2 + $0x2d0] sm:$0xff] }
 0x720   :  { %5179 = vrot.lane.b32.xlu1 %v14525_v32, %s12938_s13 }
 0x721   :  { %v4582_v1 = vpop.permute.xlu0 %4581 }
 0x722   :  { %4753 = vst.msk [vmem:[#allocation2 + $0x2c5] sm:$0x1] %vm2980_vm1, %v4582_v1  ;;  %v4870_v0 = vpop.permute.xlu1 %4869 }
 0x723   :  { %5041 = vst.msk [vmem:[#allocation2 + $0x2c6] sm:$0x1] %vm2980_vm1, %v4870_v0  ;;  %6727 = vrot.lane.b32.xlu0 %v6552_v14, %s12932_s4 }
 0x724   :  { %7015 = vrot.lane.b32.xlu1 %v6552_v14, %s12933_s5 }
 0x725   :  { %v5158_v10 = vpop.permute.xlu0 %5157  ;;  %v8724_v44 = vld [vmem:[#allocation2 + $0x2d8] sm:$0xff] }
 0x726   :  { %5329 = vst.msk [vmem:[#allocation2 + $0x2c7] sm:$0x1] %vm2980_vm1, %v5158_v10  ;;  %v6706_v41 = vpop.permute.xlu1 %6705  ;;  %v8800_v32 = vpack.c.bf16 %v8724_v44, %v8723_v42  ;;  %v17787_v42 = vld [vmem:[#allocation74_spill] sm:$0xff] }
 0x727   :  { %6877 = vst.msk [vmem:[#allocation2 + $0x2c9] sm:$0x1] %vm2980_vm1, %v6706_v41  ;;  %7303 = vrot.lane.b32.xlu0 %v6552_v14, %s12934_s0 }
 0x728   :  { %7591 = vrot.lane.b32.xlu1 %v6552_v14, %s12935_s10  ;;  %12477 = vmatmul.mubr.msk.bf16.vlgmr.msra.gmra.mrb[116].mxu1 %vm145_vm0, %v8800_v32  ;;  %v6548_v32 = vrot.slane %v17787_v42, %v13143_v49 }
 0x729   :  { %v6994_v22 = vpop.permute.xlu0 %6993  ;;  %12488 = vmatprep.mubr.msk.bf16.mxu1 %vm12940_vm2, %v17600_v24 }
 0x72a   :  { %7165 = vst.msk [vmem:[#allocation2 + $0x2ca] sm:$0x1] %vm2980_vm1, %v6994_v22  ;;  %v7282_v1 = vpop.permute.xlu1 %7281 }
 0x72b   :  { %7453 = vst.msk [vmem:[#allocation2 + $0x2cb] sm:$0x1] %vm2980_vm1, %v7282_v1  ;;  %7879 = vrot.lane.b32.xlu0 %v6552_v14, %s12936_s11 }
 0x72c   :  { %8167 = vrot.lane.b32.xlu1 %v6552_v14, %s12937_s12 }
 0x72d   :  { %v7570_v41 = vpop.permute.xlu0 %7569 }
 0x72e   :  { %7741 = vst.msk [vmem:[#allocation2 + $0x2cc] sm:$0x1] %vm2980_vm1, %v7570_v41  ;;  %v7858_v44 = vpop.permute.xlu1 %7857 }
 0x72f   :  { %8029 = vst.msk [vmem:[#allocation2 + $0x2cd] sm:$0x1] %vm2980_vm1, %v7858_v44  ;;  %8455 = vrot.lane.b32.xlu0 %v6552_v14, %s12938_s13  ;;  %v8721_v44 = vld [vmem:[#allocation2 + $0x2c0] sm:$0xff] }
 0x730   :  { %4313 = vrot.lane.b32.xlu1 %v14533_v57, %s12935_s10 }
 0x731   :  { %v8146_v0 = vpop.permute.xlu0 %8145 }
 0x732   :  { %8317 = vst.msk [vmem:[#allocation2 + $0x2ce] sm:$0x1] %vm2980_vm1, %v8146_v0  ;;  %v8434_v10 = vpop.permute.xlu1 %8433 }
 0x733   :  { %8605 = vst.msk [vmem:[#allocation2 + $0x2cf] sm:$0x1] %vm2980_vm1, %v8434_v10  ;;  %4601 = vrot.lane.b32.xlu0 %v14533_v57, %s12936_s11 }
 0x734   :  { %4889 = vrot.lane.b32.xlu1 %v14533_v57, %s12937_s12 }
 0x735   :  { %v4308_v22 = vpop.permute.xlu0 %4307 }
 0x736   :  { %4472 = vst.msk [vmem:[#allocation2 + $0x334] sm:$0x1] %vm2980_vm1, %v4308_v22  ;;  %v4596_v14 = vpop.permute.xlu1 %4595 }
 0x737   :  { %4760 = vst.msk [vmem:[#allocation2 + $0x335] sm:$0x1] %vm2980_vm1, %v4596_v14  ;;  %5177 = vrot.lane.b32.xlu0 %v14533_v57, %s12938_s13 }
 0x738   :  { %6725 = vrot.lane.b32.xlu1 %v6548_v32, %s12932_s4 }
 0x739   :  { %v4884_v1 = vpop.permute.xlu0 %4883 }
 0x73a   :  { %5048 = vst.msk [vmem:[#allocation2 + $0x336] sm:$0x1] %vm2980_vm1, %v4884_v1  ;;  %v5172_v41 = vpop.permute.xlu1 %5171  ;;  %v8722_v0 = vld [vmem:[#allocation2 + $0x2c8] sm:$0xff] }
 0x73b   :  { %5336 = vst.msk [vmem:[#allocation2 + $0x337] sm:$0x1] %vm2980_vm1, %v5172_v41  ;;  %7013 = vrot.lane.b32.xlu0 %v6548_v32, %s12933_s5  ;;  %v8799_v10 = vpack.c.bf16 %v8722_v0, %v8721_v44 }
 0x73c   :  { %7301 = vrot.lane.b32.xlu1 %v6548_v32, %s12934_s0 }
 0x73d   :  { %12471 = vmatmul.mubr.msk.bf16.vlgmr.msra.gmra.mrb[116].mxu0 %vm145_vm0, %v8799_v10  ;;  %v6720_v42 = vpop.permute.xlu0 %6719 }
 0x73e   :  { %6884 = vst.msk [vmem:[#allocation2 + $0x339] sm:$0x1] %vm2980_vm1, %v6720_v42  ;;  %v7008_v57 = vpop.permute.xlu1 %7007  ;;  %12482 = vmatprep.mubr.msk.bf16.mxu0 %vm12940_vm2, %v17600_v24 }
 0x73f   :  { %7172 = vst.msk [vmem:[#allocation2 + $0x33a] sm:$0x1] %vm2980_vm1, %v7008_v57  ;;  %7589 = vrot.lane.b32.xlu0 %v6548_v32, %s12935_s10 }
 0x740   :  { %7877 = vrot.lane.b32.xlu1 %v6548_v32, %s12936_s11 }
 0x741   :  { %v7296_v22 = vpop.permute.xlu0 %7295 }
 0x742   :  { %7460 = vst.msk [vmem:[#allocation2 + $0x33b] sm:$0x1] %vm2980_vm1, %v7296_v22  ;;  %v7584_v14 = vpop.permute.xlu1 %7583 }
 0x743   :  { %7748 = vst.msk [vmem:[#allocation2 + $0x33c] sm:$0x1] %vm2980_vm1, %v7584_v14  ;;  %8165 = vrot.lane.b32.xlu0 %v6548_v32, %s12937_s12  ;;  %v8735_v14 = vld [vmem:[#allocation2 + $0x330] sm:$0xff] }
 0x744   :  { %8453 = vrot.lane.b32.xlu1 %v6548_v32, %s12938_s13  ;;  %v17788_v32 = vld [vmem:[#allocation73_spill] sm:$0xff] }
 0x745   :  { %v7872_v1 = vpop.permute.xlu0 %7871  ;;  %v6544_v10 = vrot.slane %v17788_v32, %v13143_v49 }
 0x746   :  { %8036 = vst.msk [vmem:[#allocation2 + $0x33d] sm:$0x1] %vm2980_vm1, %v7872_v1  ;;  %v8160_v41 = vpop.permute.xlu1 %8159 }
 0x747   :  { %8324 = vst.msk [vmem:[#allocation2 + $0x33e] sm:$0x1] %vm2980_vm1, %v8160_v41  ;;  %4311 = vrot.lane.b32.xlu0 %v14511_v3, %s12935_s10 }
 0x748   :  { %4599 = vrot.lane.b32.xlu1 %v14511_v3, %s12936_s11 }
 0x749   :  { %v8448_v44 = vpop.permute.xlu0 %8447 }
 0x74a   :  { %8612 = vst.msk [vmem:[#allocation2 + $0x33f] sm:$0x1] %vm2980_vm1, %v8448_v44  ;;  %v4306_v0 = vpop.permute.xlu1 %4305 }
 0x74b   :  { %4471 = vst.msk [vmem:[#allocation2 + $0x324] sm:$0x1] %vm2980_vm1, %v4306_v0  ;;  %4887 = vrot.lane.b32.xlu0 %v14511_v3, %s12937_s12 }
 0x74c   :  { %5175 = vrot.lane.b32.xlu1 %v14511_v3, %s12938_s13 }
 0x74d   :  { %v4594_v42 = vpop.permute.xlu0 %4593 }
 0x74e   :  { %4759 = vst.msk [vmem:[#allocation2 + $0x325] sm:$0x1] %vm2980_vm1, %v4594_v42  ;;  %v4882_v57 = vpop.permute.xlu1 %4881 }
 0x74f   :  { %5047 = vst.msk [vmem:[#allocation2 + $0x326] sm:$0x1] %vm2980_vm1, %v4882_v57  ;;  %6723 = vrot.lane.b32.xlu0 %v6544_v10, %s12932_s4 }
 0x750   :  { %7011 = vrot.lane.b32.xlu1 %v6544_v10, %s12933_s5 }
 0x751   :  { %v5170_v22 = vpop.permute.xlu0 %5169  ;;  %v8736_v1 = vld [vmem:[#allocation2 + $0x338] sm:$0xff] }
 0x752   :  { %5335 = vst.msk [vmem:[#allocation2 + $0x327] sm:$0x1] %vm2980_vm1, %v5170_v22  ;;  %v6718_v41 = vpop.permute.xlu1 %6717  ;;  %v8838_v3 = vpack.c.bf16 %v8736_v1, %v8735_v14 }
 0x753   :  { %6883 = vst.msk [vmem:[#allocation2 + $0x329] sm:$0x1] %vm2980_vm1, %v6718_v41  ;;  %7299 = vrot.lane.b32.xlu0 %v6544_v10, %s12934_s0  ;;  %v16546_v44 = vpop.f32.mrb[108].mxu1 }
 0x754   :  { %7587 = vrot.lane.b32.xlu1 %v6544_v10, %s12935_s10  ;;  %v12454_v0 = vpop.f32.mrb[109].mxu1  ;;  %12487 = vmatpush3.bf16.msra.mxu1 %v8838_v3 }
 0x755   :  { %v7006_v32 = vpop.permute.xlu0 %7005  ;;  %v16549_v42 = vpop.f32.mrb[110].mxu1  ;;  %12498 = vmatprep.subr.bf16.mxu1 %v17600_v24 }
 0x756   :  { %7171 = vst.msk [vmem:[#allocation2 + $0x32a] sm:$0x1] %vm2980_vm1, %v7006_v32  ;;  %v7294_v22 = vpop.permute.xlu1 %7293  ;;  %v12455_v14 = vpop.f32.mrb[111].mxu1  ;;  %v17789_v32 = vld [vmem:[#allocation72_spill] sm:$0xff] }
 0x757   :  { %7459 = vst.msk [vmem:[#allocation2 + $0x32b] sm:$0x1] %vm2980_vm1, %v7294_v22  ;;  %7875 = vrot.lane.b32.xlu0 %v6544_v10, %s12936_s11  ;;  %v6540_v22 = vrot.slane %v17789_v32, %v13143_v49 }
 0x758   :  { %8163 = vrot.lane.b32.xlu1 %v6544_v10, %s12937_s12 }
 0x759   :  { %v7582_v1 = vpop.permute.xlu0 %7581 }
 0x75a   :  { %7747 = vst.msk [vmem:[#allocation2 + $0x32c] sm:$0x1] %vm2980_vm1, %v7582_v1  ;;  %v7870_v41 = vpop.permute.xlu1 %7869 }
 0x75b   :  { %8035 = vst.msk [vmem:[#allocation2 + $0x32d] sm:$0x1] %vm2980_vm1, %v7870_v41  ;;  %8451 = vrot.lane.b32.xlu0 %v6544_v10, %s12938_s13 }
 0x75c   :  { %4309 = vrot.lane.b32.xlu1 %v14519_v36, %s12935_s10 }
 0x75d   :  { %v8158_v3 = vpop.permute.xlu0 %8157 }
 0x75e   :  { %8323 = vst.msk [vmem:[#allocation2 + $0x32e] sm:$0x1] %vm2980_vm1, %v8158_v3  ;;  %v8446_v0 = vpop.permute.xlu1 %8445  ;;  %v8733_v3 = vld [vmem:[#allocation2 + $0x320] sm:$0xff] }
 0x75f   :  { %8611 = vst.msk [vmem:[#allocation2 + $0x32f] sm:$0x1] %vm2980_vm1, %v8446_v0  ;;  %4597 = vrot.lane.b32.xlu0 %v14519_v36, %s12936_s11 }
 0x760   :  { %4885 = vrot.lane.b32.xlu1 %v14519_v36, %s12937_s12 }
 0x761   :  { %v4304_v14 = vpop.permute.xlu0 %4303 }
 0x762   :  { %4470 = vst.msk [vmem:[#allocation2 + $0x314] sm:$0x1] %vm2980_vm1, %v4304_v14  ;;  %v4592_v10 = vpop.permute.xlu1 %4591 }
 0x763   :  { %4758 = vst.msk [vmem:[#allocation2 + $0x315] sm:$0x1] %vm2980_vm1, %v4592_v10  ;;  %5173 = vrot.lane.b32.xlu0 %v14519_v36, %s12938_s13 }
 0x764   :  { %6721 = vrot.lane.b32.xlu1 %v6540_v22, %s12932_s4 }
 0x765   :  { %v4880_v1 = vpop.permute.xlu0 %4879 }
 0x766   :  { %5046 = vst.msk [vmem:[#allocation2 + $0x316] sm:$0x1] %vm2980_vm1, %v4880_v1  ;;  %v5168_v41 = vpop.permute.xlu1 %5167  ;;  %v8734_v0 = vld [vmem:[#allocation2 + $0x328] sm:$0xff] }
 0x767   :  { %5334 = vst.msk [vmem:[#allocation2 + $0x317] sm:$0x1] %vm2980_vm1, %v5168_v41  ;;  %7009 = vrot.lane.b32.xlu0 %v6540_v22, %s12933_s5  ;;  %v16580_v32 = vpop.f32.mrb[108].mxu0  ;;  %v8837_v14 = vpack.c.bf16 %v8734_v0, %v8733_v3 }
 0x768   :  { %7297 = vrot.lane.b32.xlu1 %v6540_v22, %s12934_s0  ;;  %v12448_v10 = vpop.f32.mrb[109].mxu0 }
 0x769   :  { %12481 = vmatpush3.bf16.msra.mxu0 %v8837_v14  ;;  %v6716_v36 = vpop.permute.xlu0 %6715  ;;  %v16582_v38 = vpop.f32.mrb[110].mxu0 }
 0x76a   :  { %6882 = vst.msk [vmem:[#allocation2 + $0x319] sm:$0x1] %vm2980_vm1, %v6716_v36  ;;  %v7004_v1 = vpop.permute.xlu1 %7003  ;;  %v12449_v57 = vpop.f32.mrb[111].mxu0  ;;  %12492 = vmatprep.subr.bf16.mxu0 %v17600_v24 }
 0x76b   :  { %7170 = vst.msk [vmem:[#allocation2 + $0x31a] sm:$0x1] %vm2980_vm1, %v7004_v1  ;;  %7585 = vrot.lane.b32.xlu0 %v6540_v22, %s12935_s10 }
 0x76c   :  { %7873 = vrot.lane.b32.xlu1 %v6540_v22, %s12936_s11 }
 0x76d   :  { %v7292_v41 = vpop.permute.xlu0 %7291 }
 0x76e   :  { %7458 = vst.msk [vmem:[#allocation2 + $0x31b] sm:$0x1] %vm2980_vm1, %v7292_v41  ;;  %v7580_v3 = vpop.permute.xlu1 %7579 }
 0x76f   :  { %7746 = vst.msk [vmem:[#allocation2 + $0x31c] sm:$0x1] %vm2980_vm1, %v7580_v3  ;;  %8161 = vrot.lane.b32.xlu0 %v6540_v22, %s12937_s12 }
 0x770   :  { %8449 = vrot.lane.b32.xlu1 %v6540_v22, %s12938_s13  ;;  %v17790_v22 = vld [vmem:[#allocation83_spill] sm:$0xff] }
 0x771   :  { %v7868_v0 = vpop.permute.xlu0 %7867  ;;  %v6568_v36 = vrot.slane %v17790_v22, %v13143_v49 }
 0x772   :  { %8034 = vst.msk [vmem:[#allocation2 + $0x31d] sm:$0x1] %vm2980_vm1, %v7868_v0  ;;  %v8156_v57 = vpop.permute.xlu1 %8155  ;;  %v8731_v0 = vld [vmem:[#allocation2 + $0x310] sm:$0xff] }
 0x773   :  { %8322 = vst.msk [vmem:[#allocation2 + $0x31e] sm:$0x1] %vm2980_vm1, %v8156_v57  ;;  %4323 = vrot.lane.b32.xlu0 %v14565_v5, %s12935_s10 }
 0x774   :  { %4611 = vrot.lane.b32.xlu1 %v14565_v5, %s12936_s11 }
 0x775   :  { %v8444_v14 = vpop.permute.xlu0 %8443 }
 0x776   :  { %8610 = vst.msk [vmem:[#allocation2 + $0x31f] sm:$0x1] %vm2980_vm1, %v8444_v14  ;;  %v4302_v10 = vpop.permute.xlu1 %4301 }
 0x777   :  { %4469 = vst.msk [vmem:[#allocation2 + $0x304] sm:$0x1] %vm2980_vm1, %v4302_v10  ;;  %4899 = vrot.lane.b32.xlu0 %v14565_v5, %s12937_s12 }
 0x778   :  { %5187 = vrot.lane.b32.xlu1 %v14565_v5, %s12938_s13 }
 0x779   :  { %v4590_v1 = vpop.permute.xlu0 %4589 }
 0x77a   :  { %4757 = vst.msk [vmem:[#allocation2 + $0x305] sm:$0x1] %vm2980_vm1, %v4590_v1  ;;  %v4878_v41 = vpop.permute.xlu1 %4877 }
 0x77b   :  { %5045 = vst.msk [vmem:[#allocation2 + $0x306] sm:$0x1] %vm2980_vm1, %v4878_v41  ;;  %6735 = vrot.lane.b32.xlu0 %v6568_v36, %s12932_s4 }
 0x77c   :  { %7023 = vrot.lane.b32.xlu1 %v6568_v36, %s12933_s5 }
 0x77d   :  { %v5166_v3 = vpop.permute.xlu0 %5165  ;;  %v8732_v57 = vld [vmem:[#allocation2 + $0x318] sm:$0xff] }
 0x77e   :  { %5333 = vst.msk [vmem:[#allocation2 + $0x307] sm:$0x1] %vm2980_vm1, %v5166_v3  ;;  %v6714_v14 = vpop.permute.xlu1 %6713  ;;  %v8802_v5 = vpack.c.bf16 %v8732_v57, %v8731_v0  ;;  %v17791_v3 = vld [vmem:[#allocation102_spill] sm:$0xff] }
 0x77f   :  { %6881 = vst.msk [vmem:[#allocation2 + $0x309] sm:$0x1] %vm2980_vm1, %v6714_v14  ;;  %7311 = vrot.lane.b32.xlu0 %v6568_v36, %s12934_s0  ;;  %v17792_v14 = vld [vmem:[#allocation82_spill] sm:$0xff] }
 0x780   :  { %7599 = vrot.lane.b32.xlu1 %v6568_v36, %s12935_s10  ;;  %12489 = vmatmul.mubr.msk.bf16.vlgmr.msra.gmra.mrb[120].mxu1 %vm145_vm0, %v8802_v5  ;;  %v6564_v5 = vrot.slane %v17792_v14, %v13143_v49 }
 0x781   :  { %v7002_v10 = vpop.permute.xlu0 %7001  ;;  %12500 = vmatprep.mubr.msk.bf16.mxu1 %vm12940_vm2, %v17600_v24 }
 0x782   :  { %7169 = vst.msk [vmem:[#allocation2 + $0x30a] sm:$0x1] %vm2980_vm1, %v7002_v10  ;;  %v7290_v22 = vpop.permute.xlu1 %7289 }
 0x783   :  { %7457 = vst.msk [vmem:[#allocation2 + $0x30b] sm:$0x1] %vm2980_vm1, %v7290_v22  ;;  %7887 = vrot.lane.b32.xlu0 %v6568_v36, %s12936_s11 }
 0x784   :  { %8175 = vrot.lane.b32.xlu1 %v6568_v36, %s12937_s12 }
 0x785   :  { %v7578_v1 = vpop.permute.xlu0 %7577 }
 0x786   :  { %7745 = vst.msk [vmem:[#allocation2 + $0x30c] sm:$0x1] %vm2980_vm1, %v7578_v1  ;;  %v7866_v41 = vpop.permute.xlu1 %7865 }
 0x787   :  { %8033 = vst.msk [vmem:[#allocation2 + $0x30d] sm:$0x1] %vm2980_vm1, %v7866_v41  ;;  %8463 = vrot.lane.b32.xlu0 %v6568_v36, %s12938_s13  ;;  %v8729_v41 = vld [vmem:[#allocation2 + $0x300] sm:$0xff] }
 0x788   :  { %4321 = vrot.lane.b32.xlu1 %v17791_v3, %s12935_s10 }
 0x789   :  { %v8154_v0 = vpop.permute.xlu0 %8153 }
 0x78a   :  { %8321 = vst.msk [vmem:[#allocation2 + $0x30e] sm:$0x1] %vm2980_vm1, %v8154_v0  ;;  %v8442_v57 = vpop.permute.xlu1 %8441 }
 0x78b   :  { %8609 = vst.msk [vmem:[#allocation2 + $0x30f] sm:$0x1] %vm2980_vm1, %v8442_v57  ;;  %4609 = vrot.lane.b32.xlu0 %v17791_v3, %s12936_s11 }
 0x78c   :  { %4897 = vrot.lane.b32.xlu1 %v17791_v3, %s12937_s12 }
 0x78d   :  { %v4316_v10 = vpop.permute.xlu0 %4315 }
 0x78e   :  { %4476 = vst.msk [vmem:[#allocation2 + $0x374] sm:$0x1] %vm2980_vm1, %v4316_v10  ;;  %v4604_v36 = vpop.permute.xlu1 %4603 }
 0x78f   :  { %4764 = vst.msk [vmem:[#allocation2 + $0x375] sm:$0x1] %vm2980_vm1, %v4604_v36  ;;  %5185 = vrot.lane.b32.xlu0 %v17791_v3, %s12938_s13 }
 0x790   :  { %6733 = vrot.lane.b32.xlu1 %v6564_v5, %s12932_s4 }
 0x791   :  { %v4892_v22 = vpop.permute.xlu0 %4891 }
 0x792   :  { %5052 = vst.msk [vmem:[#allocation2 + $0x376] sm:$0x1] %vm2980_vm1, %v4892_v22  ;;  %v5180_v1 = vpop.permute.xlu1 %5179  ;;  %v8730_v0 = vld [vmem:[#allocation2 + $0x308] sm:$0xff] }
 0x793   :  { %5340 = vst.msk [vmem:[#allocation2 + $0x377] sm:$0x1] %vm2980_vm1, %v5180_v1  ;;  %7021 = vrot.lane.b32.xlu0 %v6564_v5, %s12933_s5  ;;  %v8801_v57 = vpack.c.bf16 %v8730_v0, %v8729_v41  ;;  %v17793_v41 = vld [vmem:[#allocation100_spill] sm:$0xff] }
 0x794   :  { %7309 = vrot.lane.b32.xlu1 %v6564_v5, %s12934_s0 }
 0x795   :  { %12483 = vmatmul.mubr.msk.bf16.vlgmr.msra.gmra.mrb[120].mxu0 %vm145_vm0, %v8801_v57  ;;  %v6728_v14 = vpop.permute.xlu0 %6727 }
 0x796   :  { %6888 = vst.msk [vmem:[#allocation2 + $0x379] sm:$0x1] %vm2980_vm1, %v6728_v14  ;;  %v7016_v3 = vpop.permute.xlu1 %7015  ;;  %12494 = vmatprep.mubr.msk.bf16.mxu0 %vm12940_vm2, %v17600_v24  ;;  %v17794_v14 = vld [vmem:[#allocation81_spill] sm:$0xff] }
 0x797   :  { %7176 = vst.msk [vmem:[#allocation2 + $0x37a] sm:$0x1] %vm2980_vm1, %v7016_v3  ;;  %7597 = vrot.lane.b32.xlu0 %v6564_v5, %s12935_s10  ;;  %v6560_v3 = vrot.slane %v17794_v14, %v13143_v49 }
 0x798   :  { %7885 = vrot.lane.b32.xlu1 %v6564_v5, %s12936_s11 }
 0x799   :  { %v7304_v10 = vpop.permute.xlu0 %7303 }
 0x79a   :  { %7464 = vst.msk [vmem:[#allocation2 + $0x37b] sm:$0x1] %vm2980_vm1, %v7304_v10  ;;  %v7592_v36 = vpop.permute.xlu1 %7591  ;;  %v8743_v43 = vld [vmem:[#allocation2 + $0x370] sm:$0xff] }
 0x79b   :  { %7752 = vst.msk [vmem:[#allocation2 + $0x37c] sm:$0x1] %vm2980_vm1, %v7592_v36  ;;  %8173 = vrot.lane.b32.xlu0 %v6564_v5, %s12937_s12 }
 0x79c   :  { %8461 = vrot.lane.b32.xlu1 %v6564_v5, %s12938_s13 }
 0x79d   :  { %v7880_v22 = vpop.permute.xlu0 %7879 }
 0x79e   :  { %8040 = vst.msk [vmem:[#allocation2 + $0x37d] sm:$0x1] %vm2980_vm1, %v7880_v22  ;;  %v8168_v1 = vpop.permute.xlu1 %8167 }
 0x79f   :  { %8328 = vst.msk [vmem:[#allocation2 + $0x37e] sm:$0x1] %vm2980_vm1, %v8168_v1  ;;  %4319 = vrot.lane.b32.xlu0 %v17793_v41, %s12935_s10 }
 0x7a0   :  { %4607 = vrot.lane.b32.xlu1 %v17793_v41, %s12936_s11 }
 0x7a1   :  { %v8456_v0 = vpop.permute.xlu0 %8455 }
 0x7a2   :  { %8616 = vst.msk [vmem:[#allocation2 + $0x37f] sm:$0x1] %vm2980_vm1, %v8456_v0  ;;  %v4314_v57 = vpop.permute.xlu1 %4313 }
 0x7a3   :  { %4475 = vst.msk [vmem:[#allocation2 + $0x364] sm:$0x1] %vm2980_vm1, %v4314_v57  ;;  %4895 = vrot.lane.b32.xlu0 %v17793_v41, %s12937_s12 }
 0x7a4   :  { %5183 = vrot.lane.b32.xlu1 %v17793_v41, %s12938_s13  ;;  %v16669_v5 = vpop.f32.mrb[112].mxu1 }
 0x7a5   :  { %v12466_v10 = vpop.f32.mrb[113].mxu1  ;;  %v4602_v36 = vpop.permute.xlu0 %4601 }
 0x7a6   :  { %4763 = vst.msk [vmem:[#allocation2 + $0x365] sm:$0x1] %vm2980_vm1, %v4602_v36  ;;  %v16674_v22 = vpop.f32.mrb[114].mxu1  ;;  %v4890_v1 = vpop.permute.xlu1 %4889 }
 0x7a7   :  { %5051 = vst.msk [vmem:[#allocation2 + $0x366] sm:$0x1] %vm2980_vm1, %v4890_v1  ;;  %v12467_v57 = vpop.f32.mrb[115].mxu1  ;;  %6731 = vrot.lane.b32.xlu0 %v6560_v3, %s12932_s4 }
 0x7a8   :  { %7019 = vrot.lane.b32.xlu1 %v6560_v3, %s12933_s5 }
 0x7a9   :  { %v5178_v41 = vpop.permute.xlu0 %5177  ;;  %v8744_v14 = vld [vmem:[#allocation2 + $0x378] sm:$0xff] }
 0x7aa   :  { %5339 = vst.msk [vmem:[#allocation2 + $0x367] sm:$0x1] %vm2980_vm1, %v5178_v41  ;;  %v6726_v10 = vpop.permute.xlu1 %6725  ;;  %v8840_v36 = vpack.c.bf16 %v8744_v14, %v8743_v43  ;;  %v17795_v14 = vld [vmem:[#allocation101_spill] sm:$0xff] }
 0x7ab   :  { %6887 = vst.msk [vmem:[#allocation2 + $0x369] sm:$0x1] %vm2980_vm1, %v6726_v10  ;;  %7307 = vrot.lane.b32.xlu0 %v6560_v3, %s12934_s0 }
 0x7ac   :  { %7595 = vrot.lane.b32.xlu1 %v6560_v3, %s12935_s10  ;;  %12499 = vmatpush3.bf16.msra.mxu1 %v8840_v36 }
 0x7ad   :  { %v7014_v1 = vpop.permute.xlu0 %7013  ;;  %12510 = vmatprep.subr.bf16.mxu1 %v17600_v24 }
 0x7ae   :  { %7175 = vst.msk [vmem:[#allocation2 + $0x36a] sm:$0x1] %vm2980_vm1, %v7014_v1  ;;  %v7302_v57 = vpop.permute.xlu1 %7301 }
 0x7af   :  { %7463 = vst.msk [vmem:[#allocation2 + $0x36b] sm:$0x1] %vm2980_vm1, %v7302_v57  ;;  %7883 = vrot.lane.b32.xlu0 %v6560_v3, %s12936_s11  ;;  %v17797_v57 = vld [vmem:[#allocation80_spill] sm:$0xff] }
 0x7b0   :  { %8171 = vrot.lane.b32.xlu1 %v6560_v3, %s12937_s12 }
 0x7b1   :  { %v7590_v43 = vpop.permute.xlu0 %7589 }
 0x7b2   :  { %7751 = vst.msk [vmem:[#allocation2 + $0x36c] sm:$0x1] %vm2980_vm1, %v7590_v43  ;;  %v7878_v41 = vpop.permute.xlu1 %7877 }
 0x7b3   :  { %8039 = vst.msk [vmem:[#allocation2 + $0x36d] sm:$0x1] %vm2980_vm1, %v7878_v41  ;;  %8459 = vrot.lane.b32.xlu0 %v6560_v3, %s12938_s13  ;;  %v6556_v3 = vrot.slane %v17797_v57, %v13143_v49 }
 0x7b4   :  { %4317 = vrot.lane.b32.xlu1 %v17795_v14, %s12935_s10 }
 0x7b5   :  { %v8166_v10 = vpop.permute.xlu0 %8165 }
 0x7b6   :  { %8327 = vst.msk [vmem:[#allocation2 + $0x36e] sm:$0x1] %vm2980_vm1, %v8166_v10  ;;  %v8454_v36 = vpop.permute.xlu1 %8453 }
 0x7b7   :  { %8615 = vst.msk [vmem:[#allocation2 + $0x36f] sm:$0x1] %vm2980_vm1, %v8454_v36  ;;  %4605 = vrot.lane.b32.xlu0 %v17795_v14, %s12936_s11 }
 0x7b8   :  { %4893 = vrot.lane.b32.xlu1 %v17795_v14, %s12937_s12  ;;  %v16701_v1 = vpop.f32.mrb[112].mxu0 }
 0x7b9   :  { %17796 = vst [vmem:[#allocation49_spill] sm:$0xff] %v16701_v1  ;;  %v12460_v43 = vpop.f32.mrb[113].mxu0  ;;  %v4312_v41 = vpop.permute.xlu0 %4311 }
 0x7ba   :  { %4474 = vst.msk [vmem:[#allocation2 + $0x354] sm:$0x1] %vm2980_vm1, %v4312_v41  ;;  %v4600_v0 = vpop.permute.xlu1 %4599  ;;  %v16706_v10 = vpop.f32.mrb[114].mxu0  ;;  %v8741_v43 = vld [vmem:[#allocation2 + $0x360] sm:$0xff] }
 0x7bb   :  { %17798 = vst [vmem:[#allocation51_spill] sm:$0xff] %v16706_v10  ;;  %4762 = vst.msk [vmem:[#allocation2 + $0x355] sm:$0x1] %vm2980_vm1, %v4600_v0  ;;  %v12461_v61 = vpop.f32.mrb[115].mxu0  ;;  %5181 = vrot.lane.b32.xlu0 %v17795_v14, %s12938_s13 }
 0x7bc   :  { %6729 = vrot.lane.b32.xlu1 %v6556_v3, %s12932_s4 }
 0x7bd   :  { %v4888_v34 = vpop.permute.xlu0 %4887 }
 0x7be   :  { %5050 = vst.msk [vmem:[#allocation2 + $0x356] sm:$0x1] %vm2980_vm1, %v4888_v34  ;;  %v5176_v57 = vpop.permute.xlu1 %5175  ;;  %v8742_v41 = vld [vmem:[#allocation2 + $0x368] sm:$0xff] }
 0x7bf   :  { %5338 = vst.msk [vmem:[#allocation2 + $0x357] sm:$0x1] %vm2980_vm1, %v5176_v57  ;;  %7017 = vrot.lane.b32.xlu0 %v6556_v3, %s12933_s5  ;;  %v8839_v0 = vpack.c.bf16 %v8742_v41, %v8741_v43 }
 0x7c0   :  { %7305 = vrot.lane.b32.xlu1 %v6556_v3, %s12934_s0 }
 0x7c1   :  { %12493 = vmatpush3.bf16.msra.mxu0 %v8839_v0  ;;  %v6724_v61 = vpop.permute.xlu0 %6723  ;;  %v17799_v0 = vld [vmem:[#allocation105_spill] sm:$0xff] }
 0x7c2   :  { %6886 = vst.msk [vmem:[#allocation2 + $0x359] sm:$0x1] %vm2980_vm1, %v6724_v61  ;;  %v7012_v14 = vpop.permute.xlu1 %7011  ;;  %12504 = vmatprep.subr.bf16.mxu0 %v17600_v24 }
 0x7c3   :  { %7174 = vst.msk [vmem:[#allocation2 + $0x35a] sm:$0x1] %vm2980_vm1, %v7012_v14  ;;  %7593 = vrot.lane.b32.xlu0 %v6556_v3, %s12935_s10 }
 0x7c4   :  { %7881 = vrot.lane.b32.xlu1 %v6556_v3, %s12936_s11 }
 0x7c5   :  { %v7300_v34 = vpop.permute.xlu0 %7299 }
 0x7c6   :  { %7462 = vst.msk [vmem:[#allocation2 + $0x35b] sm:$0x1] %vm2980_vm1, %v7300_v34  ;;  %v7588_v57 = vpop.permute.xlu1 %7587 }
 0x7c7   :  { %7750 = vst.msk [vmem:[#allocation2 + $0x35c] sm:$0x1] %vm2980_vm1, %v7588_v57  ;;  %8169 = vrot.lane.b32.xlu0 %v6556_v3, %s12937_s12 }
 0x7c8   :  { %8457 = vrot.lane.b32.xlu1 %v6556_v3, %s12938_s13  ;;  %v17800_v3 = vld [vmem:[#allocation91_spill] sm:$0xff] }
 0x7c9   :  { %v7876_v43 = vpop.permute.xlu0 %7875  ;;  %v6584_v34 = vrot.slane %v17800_v3, %v13143_v49 }
 0x7ca   :  { %8038 = vst.msk [vmem:[#allocation2 + $0x35d] sm:$0x1] %vm2980_vm1, %v7876_v43  ;;  %v8164_v41 = vpop.permute.xlu1 %8163 }
 0x7cb   :  { %8326 = vst.msk [vmem:[#allocation2 + $0x35e] sm:$0x1] %vm2980_vm1, %v8164_v41  ;;  %4331 = vrot.lane.b32.xlu0 %v17799_v0, %s12935_s10 }
 0x7cc   :  { %4619 = vrot.lane.b32.xlu1 %v17799_v0, %s12936_s11 }
 0x7cd   :  { %v8452_v61 = vpop.permute.xlu0 %8451 }
 0x7ce   :  { %8614 = vst.msk [vmem:[#allocation2 + $0x35f] sm:$0x1] %vm2980_vm1, %v8452_v61  ;;  %v4310_v14 = vpop.permute.xlu1 %4309  ;;  %v8739_v61 = vld [vmem:[#allocation2 + $0x350] sm:$0xff] }
 0x7cf   :  { %4473 = vst.msk [vmem:[#allocation2 + $0x344] sm:$0x1] %vm2980_vm1, %v4310_v14  ;;  %4907 = vrot.lane.b32.xlu0 %v17799_v0, %s12937_s12 }
 0x7d0   :  { %5195 = vrot.lane.b32.xlu1 %v17799_v0, %s12938_s13 }
 0x7d1   :  { %v4598_v57 = vpop.permute.xlu0 %4597 }
 0x7d2   :  { %4761 = vst.msk [vmem:[#allocation2 + $0x345] sm:$0x1] %vm2980_vm1, %v4598_v57  ;;  %v4886_v43 = vpop.permute.xlu1 %4885 }
 0x7d3   :  { %5049 = vst.msk [vmem:[#allocation2 + $0x346] sm:$0x1] %vm2980_vm1, %v4886_v43  ;;  %6743 = vrot.lane.b32.xlu0 %v6584_v34, %s12932_s4 }
 0x7d4   :  { %7031 = vrot.lane.b32.xlu1 %v6584_v34, %s12933_s5 }
 0x7d5   :  { %v5174_v41 = vpop.permute.xlu0 %5173  ;;  %v8740_v14 = vld [vmem:[#allocation2 + $0x358] sm:$0xff] }
 0x7d6   :  { %5337 = vst.msk [vmem:[#allocation2 + $0x347] sm:$0x1] %vm2980_vm1, %v5174_v41  ;;  %v6722_v36 = vpop.permute.xlu1 %6721  ;;  %v8804_v0 = vpack.c.bf16 %v8740_v14, %v8739_v61  ;;  %v17801_v41 = vld [vmem:[#allocation106_spill] sm:$0xff] }
 0x7d7   :  { %6885 = vst.msk [vmem:[#allocation2 + $0x349] sm:$0x1] %vm2980_vm1, %v6722_v36  ;;  %7319 = vrot.lane.b32.xlu0 %v6584_v34, %s12934_s0 }
 0x7d8   :  { %7607 = vrot.lane.b32.xlu1 %v6584_v34, %s12935_s10  ;;  %12501 = vmatmul.mubr.msk.bf16.vlgmr.msra.gmra.mrb[124].mxu1 %vm145_vm0, %v8804_v0  ;;  %v17802_v0 = vld [vmem:[#allocation89_spill] sm:$0xff] }
 0x7d9   :  { %v7010_v3 = vpop.permute.xlu0 %7009  ;;  %12512 = vmatprep.mubr.msk.bf16.mxu1 %vm12940_vm2, %v17600_v24 }
 0x7da   :  { %7173 = vst.msk [vmem:[#allocation2 + $0x34a] sm:$0x1] %vm2980_vm1, %v7010_v3  ;;  %v7298_v57 = vpop.permute.xlu1 %7297  ;;  %v6580_v3 = vrot.slane %v17802_v0, %v13143_v49 }
 0x7db   :  { %7461 = vst.msk [vmem:[#allocation2 + $0x34b] sm:$0x1] %vm2980_vm1, %v7298_v57  ;;  %7895 = vrot.lane.b32.xlu0 %v6584_v34, %s12936_s11 }
 0x7dc   :  { %8183 = vrot.lane.b32.xlu1 %v6584_v34, %s12937_s12 }
 0x7dd   :  { %v7586_v36 = vpop.permute.xlu0 %7585 }
 0x7de   :  { %7749 = vst.msk [vmem:[#allocation2 + $0x34c] sm:$0x1] %vm2980_vm1, %v7586_v36  ;;  %v7874_v43 = vpop.permute.xlu1 %7873 }
 0x7df   :  { %8037 = vst.msk [vmem:[#allocation2 + $0x34d] sm:$0x1] %vm2980_vm1, %v7874_v43  ;;  %8471 = vrot.lane.b32.xlu0 %v6584_v34, %s12938_s13 }
 0x7e0   :  { %4329 = vrot.lane.b32.xlu1 %v17801_v41, %s12935_s10 }
 0x7e1   :  { %v8162_v61 = vpop.permute.xlu0 %8161 }
 0x7e2   :  { %8325 = vst.msk [vmem:[#allocation2 + $0x34e] sm:$0x1] %vm2980_vm1, %v8162_v61  ;;  %v8450_v14 = vpop.permute.xlu1 %8449  ;;  %v8737_v61 = vld [vmem:[#allocation2 + $0x340] sm:$0xff] }
 0x7e3   :  { %8613 = vst.msk [vmem:[#allocation2 + $0x34f] sm:$0x1] %vm2980_vm1, %v8450_v14  ;;  %4617 = vrot.lane.b32.xlu0 %v17801_v41, %s12936_s11 }
 0x7e4   :  { %4905 = vrot.lane.b32.xlu1 %v17801_v41, %s12937_s12 }
 0x7e5   :  { %v4324_v57 = vpop.permute.xlu0 %4323 }
 0x7e6   :  { %4480 = vst.msk [vmem:[#allocation2 + $0x3b4] sm:$0x1] %vm2980_vm1, %v4324_v57  ;;  %v4612_v34 = vpop.permute.xlu1 %4611 }
 0x7e7   :  { %4768 = vst.msk [vmem:[#allocation2 + $0x3b5] sm:$0x1] %vm2980_vm1, %v4612_v34  ;;  %5193 = vrot.lane.b32.xlu0 %v17801_v41, %s12938_s13 }
 0x7e8   :  { %6741 = vrot.lane.b32.xlu1 %v6580_v3, %s12932_s4 }
 0x7e9   :  { %v4900_v36 = vpop.permute.xlu0 %4899 }
 0x7ea   :  { %5056 = vst.msk [vmem:[#allocation2 + $0x3b6] sm:$0x1] %vm2980_vm1, %v4900_v36  ;;  %v5188_v43 = vpop.permute.xlu1 %5187  ;;  %v8738_v14 = vld [vmem:[#allocation2 + $0x348] sm:$0xff] }
 0x7eb   :  { %5344 = vst.msk [vmem:[#allocation2 + $0x3b7] sm:$0x1] %vm2980_vm1, %v5188_v43  ;;  %7029 = vrot.lane.b32.xlu0 %v6580_v3, %s12933_s5  ;;  %v8803_v0 = vpack.c.bf16 %v8738_v14, %v8737_v61  ;;  %v17803_v14 = vld [vmem:[#allocation103_spill] sm:$0xff] }
 0x7ec   :  { %7317 = vrot.lane.b32.xlu1 %v6580_v3, %s12934_s0 }
 0x7ed   :  { %12495 = vmatmul.mubr.msk.bf16.vlgmr.msra.gmra.mrb[124].mxu0 %vm145_vm0, %v8803_v0  ;;  %v6736_v57 = vpop.permute.xlu0 %6735 }
 0x7ee   :  { %6892 = vst.msk [vmem:[#allocation2 + $0x3b9] sm:$0x1] %vm2980_vm1, %v6736_v57  ;;  %v7024_v41 = vpop.permute.xlu1 %7023  ;;  %12506 = vmatprep.mubr.msk.bf16.mxu0 %vm12940_vm2, %v17600_v24 }
 0x7ef   :  { %7180 = vst.msk [vmem:[#allocation2 + $0x3ba] sm:$0x1] %vm2980_vm1, %v7024_v41  ;;  %7605 = vrot.lane.b32.xlu0 %v6580_v3, %s12935_s10 }
 0x7f0   :  { %7893 = vrot.lane.b32.xlu1 %v6580_v3, %s12936_s11 }
 0x7f1   :  { %v7312_v34 = vpop.permute.xlu0 %7311 }
 0x7f2   :  { %7468 = vst.msk [vmem:[#allocation2 + $0x3bb] sm:$0x1] %vm2980_vm1, %v7312_v34  ;;  %v7600_v36 = vpop.permute.xlu1 %7599  ;;  %v17804_v34 = vld [vmem:[#allocation87_spill] sm:$0xff] }
 0x7f3   :  { %7756 = vst.msk [vmem:[#allocation2 + $0x3bc] sm:$0x1] %vm2980_vm1, %v7600_v36  ;;  %8181 = vrot.lane.b32.xlu0 %v6580_v3, %s12937_s12  ;;  %v6576_v36 = vrot.slane %v17804_v34, %v13143_v49 }
 0x7f4   :  { %8469 = vrot.lane.b32.xlu1 %v6580_v3, %s12938_s13 }
 0x7f5   :  { %v7888_v43 = vpop.permute.xlu0 %7887 }
 0x7f6   :  { %8044 = vst.msk [vmem:[#allocation2 + $0x3bd] sm:$0x1] %vm2980_vm1, %v7888_v43  ;;  %v8176_v61 = vpop.permute.xlu1 %8175 }
 0x7f7   :  { %8332 = vst.msk [vmem:[#allocation2 + $0x3be] sm:$0x1] %vm2980_vm1, %v8176_v61  ;;  %4327 = vrot.lane.b32.xlu0 %v17803_v14, %s12935_s10 }
 0x7f8   :  { %4615 = vrot.lane.b32.xlu1 %v17803_v14, %s12936_s11 }
 0x7f9   :  { %v8464_v0 = vpop.permute.xlu0 %8463 }
 0x7fa   :  { %8620 = vst.msk [vmem:[#allocation2 + $0x3bf] sm:$0x1] %vm2980_vm1, %v8464_v0  ;;  %v4322_v57 = vpop.permute.xlu1 %4321 }
 0x7fb   :  { %4479 = vst.msk [vmem:[#allocation2 + $0x3a4] sm:$0x1] %vm2980_vm1, %v4322_v57  ;;  %4903 = vrot.lane.b32.xlu0 %v17803_v14, %s12937_s12  ;;  %v16799_v3 = vpop.f32.mrb[116].mxu1 }
 0x7fc   :  { %5191 = vrot.lane.b32.xlu1 %v17803_v14, %s12938_s13  ;;  %v12478_v41 = vpop.f32.mrb[117].mxu1 }
 0x7fd   :  { %v4610_v43 = vpop.permute.xlu0 %4609  ;;  %v16805_v61 = vpop.f32.mrb[118].mxu1  ;;  %v8751_v41 = vld [vmem:[#allocation2 + $0x3b0] sm:$0xff] }
 0x7fe   :  { %4767 = vst.msk [vmem:[#allocation2 + $0x3a5] sm:$0x1] %vm2980_vm1, %v4610_v43  ;;  %v4898_v57 = vpop.permute.xlu1 %4897  ;;  %v12479_v13 = vpop.f32.mrb[119].mxu1 }
 0x7ff   :  { %5055 = vst.msk [vmem:[#allocation2 + $0x3a6] sm:$0x1] %vm2980_vm1, %v4898_v57  ;;  %6739 = vrot.lane.b32.xlu0 %v6576_v36, %s12932_s4 }
 0x800   :  { %7027 = vrot.lane.b32.xlu1 %v6576_v36, %s12933_s5 }
 0x801   :  { %v5186_v14 = vpop.permute.xlu0 %5185  ;;  %v8752_v9 = vld [vmem:[#allocation2 + $0x3b8] sm:$0xff] }
 0x802   :  { %5343 = vst.msk [vmem:[#allocation2 + $0x3a7] sm:$0x1] %vm2980_vm1, %v5186_v14  ;;  %v6734_v34 = vpop.permute.xlu1 %6733  ;;  %v8842_v18 = vpack.c.bf16 %v8752_v9, %v8751_v41 }
 0x803   :  { %6891 = vst.msk [vmem:[#allocation2 + $0x3a9] sm:$0x1] %vm2980_vm1, %v6734_v34  ;;  %7315 = vrot.lane.b32.xlu0 %v6576_v36, %s12934_s0 }
 0x804   :  { %7603 = vrot.lane.b32.xlu1 %v6576_v36, %s12935_s10  ;;  %12511 = vmatpush3.bf16.msra.mxu1 %v8842_v18  ;;  %v17805_v18 = vld [vmem:[#allocation104_spill] sm:$0xff] }
 0x805   :  { %v7022_v13 = vpop.permute.xlu0 %7021  ;;  %12522 = vmatprep.subr.bf16.mxu1 %v17600_v24 }
 0x806   :  { %7179 = vst.msk [vmem:[#allocation2 + $0x3aa] sm:$0x1] %vm2980_vm1, %v7022_v13  ;;  %v7310_v43 = vpop.permute.xlu1 %7309  ;;  %v17806_v13 = vld [vmem:[#allocation85_spill] sm:$0xff] }
 0x807   :  { %7467 = vst.msk [vmem:[#allocation2 + $0x3ab] sm:$0x1] %vm2980_vm1, %v7310_v43  ;;  %7891 = vrot.lane.b32.xlu0 %v6576_v36, %s12936_s11 }
 0x808   :  { %8179 = vrot.lane.b32.xlu1 %v6576_v36, %s12937_s12 }
 0x809   :  { %v7598_v9 = vpop.permute.xlu0 %7597 }
 0x80a   :  { %7755 = vst.msk [vmem:[#allocation2 + $0x3ac] sm:$0x1] %vm2980_vm1, %v7598_v9  ;;  %v7886_v57 = vpop.permute.xlu1 %7885 }
 0x80b   :  { %8043 = vst.msk [vmem:[#allocation2 + $0x3ad] sm:$0x1] %vm2980_vm1, %v7886_v57  ;;  %8467 = vrot.lane.b32.xlu0 %v6576_v36, %s12938_s13  ;;  %v6572_v36 = vrot.slane %v17806_v13, %v13143_v49 }
 0x80c   :  { %4325 = vrot.lane.b32.xlu1 %v17805_v18, %s12935_s10 }
 0x80d   :  { %v8174_v14 = vpop.permute.xlu0 %8173 }
 0x80e   :  { %8331 = vst.msk [vmem:[#allocation2 + $0x3ae] sm:$0x1] %vm2980_vm1, %v8174_v14  ;;  %v8462_v41 = vpop.permute.xlu1 %8461 }
 0x80f   :  { %8619 = vst.msk [vmem:[#allocation2 + $0x3af] sm:$0x1] %vm2980_vm1, %v8462_v41  ;;  %4613 = vrot.lane.b32.xlu0 %v17805_v18, %s12936_s11 }
 0x810   :  { %4901 = vrot.lane.b32.xlu1 %v17805_v18, %s12937_s12  ;;  %v16833_v34 = vpop.f32.mrb[116].mxu0 }
 0x811   :  { %v12472_v43 = vpop.f32.mrb[117].mxu0  ;;  %v4320_v9 = vpop.permute.xlu0 %4319 }
 0x812   :  { %4478 = vst.msk [vmem:[#allocation2 + $0x394] sm:$0x1] %vm2980_vm1, %v4320_v9  ;;  %v4608_v57 = vpop.permute.xlu1 %4607  ;;  %v16838_v14 = vpop.f32.mrb[118].mxu0  ;;  %v8749_v43 = vld [vmem:[#allocation2 + $0x3a0] sm:$0xff] }
 0x813   :  { %4766 = vst.msk [vmem:[#allocation2 + $0x395] sm:$0x1] %vm2980_vm1, %v4608_v57  ;;  %v12473_v0 = vpop.f32.mrb[119].mxu0  ;;  %5189 = vrot.lane.b32.xlu0 %v17805_v18, %s12938_s13 }
 0x814   :  { %6737 = vrot.lane.b32.xlu1 %v6572_v36, %s12932_s4 }
 0x815   :  { %v4896_v53 = vpop.permute.xlu0 %4895 }
 0x816   :  { %5054 = vst.msk [vmem:[#allocation2 + $0x396] sm:$0x1] %vm2980_vm1, %v4896_v53  ;;  %v5184_v13 = vpop.permute.xlu1 %5183  ;;  %v8750_v9 = vld [vmem:[#allocation2 + $0x3a8] sm:$0xff] }
 0x817   :  { %5342 = vst.msk [vmem:[#allocation2 + $0x397] sm:$0x1] %vm2980_vm1, %v5184_v13  ;;  %7025 = vrot.lane.b32.xlu0 %v6572_v36, %s12933_s5  ;;  %v8841_v57 = vpack.c.bf16 %v8750_v9, %v8749_v43 }
 0x818   :  { %7313 = vrot.lane.b32.xlu1 %v6572_v36, %s12934_s0 }
 0x819   :  { %12505 = vmatpush3.bf16.msra.mxu0 %v8841_v57  ;;  %v6732_v0 = vpop.permute.xlu0 %6731  ;;  %v17807_v57 = vld [vmem:[#allocation109_spill] sm:$0xff] }
 0x81a   :  { %6890 = vst.msk [vmem:[#allocation2 + $0x399] sm:$0x1] %vm2980_vm1, %v6732_v0  ;;  %v7020_v18 = vpop.permute.xlu1 %7019  ;;  %12516 = vmatprep.subr.bf16.mxu0 %v17600_v24 }
 0x81b   :  { %7178 = vst.msk [vmem:[#allocation2 + $0x39a] sm:$0x1] %vm2980_vm1, %v7020_v18  ;;  %7601 = vrot.lane.b32.xlu0 %v6572_v36, %s12935_s10 }
 0x81c   :  { %7889 = vrot.lane.b32.xlu1 %v6572_v36, %s12936_s11 }
 0x81d   :  { %v7308_v53 = vpop.permute.xlu0 %7307 }
 0x81e   :  { %7466 = vst.msk [vmem:[#allocation2 + $0x39b] sm:$0x1] %vm2980_vm1, %v7308_v53  ;;  %v7596_v13 = vpop.permute.xlu1 %7595 }
 0x81f   :  { %7754 = vst.msk [vmem:[#allocation2 + $0x39c] sm:$0x1] %vm2980_vm1, %v7596_v13  ;;  %8177 = vrot.lane.b32.xlu0 %v6572_v36, %s12937_s12 }
 0x820   :  { %8465 = vrot.lane.b32.xlu1 %v6572_v36, %s12938_s13  ;;  %v17808_v36 = vld [vmem:[#allocation95_spill] sm:$0xff] }
 0x821   :  { %v7884_v43 = vpop.permute.xlu0 %7883  ;;  %v6600_v53 = vrot.slane %v17808_v36, %v13143_v49 }
 0x822   :  { %8042 = vst.msk [vmem:[#allocation2 + $0x39d] sm:$0x1] %vm2980_vm1, %v7884_v43  ;;  %v8172_v9 = vpop.permute.xlu1 %8171 }
 0x823   :  { %8330 = vst.msk [vmem:[#allocation2 + $0x39e] sm:$0x1] %vm2980_vm1, %v8172_v9  ;;  %4339 = vrot.lane.b32.xlu0 %v17807_v57, %s12935_s10 }
 0x824   :  { %4627 = vrot.lane.b32.xlu1 %v17807_v57, %s12936_s11 }
 0x825   :  { %v8460_v0 = vpop.permute.xlu0 %8459 }
 0x826   :  { %8618 = vst.msk [vmem:[#allocation2 + $0x39f] sm:$0x1] %vm2980_vm1, %v8460_v0  ;;  %v4318_v18 = vpop.permute.xlu1 %4317  ;;  %v8747_v0 = vld [vmem:[#allocation2 + $0x390] sm:$0xff] }
 0x827   :  { %4477 = vst.msk [vmem:[#allocation2 + $0x384] sm:$0x1] %vm2980_vm1, %v4318_v18  ;;  %4915 = vrot.lane.b32.xlu0 %v17807_v57, %s12937_s12 }
 0x828   :  { %5203 = vrot.lane.b32.xlu1 %v17807_v57, %s12938_s13 }
 0x829   :  { %v4606_v13 = vpop.permute.xlu0 %4605 }
 0x82a   :  { %4765 = vst.msk [vmem:[#allocation2 + $0x385] sm:$0x1] %vm2980_vm1, %v4606_v13  ;;  %v4894_v43 = vpop.permute.xlu1 %4893 }
 0x82b   :  { %5053 = vst.msk [vmem:[#allocation2 + $0x386] sm:$0x1] %vm2980_vm1, %v4894_v43  ;;  %6751 = vrot.lane.b32.xlu0 %v6600_v53, %s12932_s4 }
 0x82c   :  { %7039 = vrot.lane.b32.xlu1 %v6600_v53, %s12933_s5 }
 0x82d   :  { %v5182_v9 = vpop.permute.xlu0 %5181  ;;  %v8748_v18 = vld [vmem:[#allocation2 + $0x398] sm:$0xff] }
 0x82e   :  { %5341 = vst.msk [vmem:[#allocation2 + $0x387] sm:$0x1] %vm2980_vm1, %v5182_v9  ;;  %v6730_v41 = vpop.permute.xlu1 %6729  ;;  %v8806_v57 = vpack.c.bf16 %v8748_v18, %v8747_v0  ;;  %v17809_v9 = vld [vmem:[#allocation110_spill] sm:$0xff] }
 0x82f   :  { %6889 = vst.msk [vmem:[#allocation2 + $0x389] sm:$0x1] %vm2980_vm1, %v6730_v41  ;;  %7327 = vrot.lane.b32.xlu0 %v6600_v53, %s12934_s0 }
 0x830   :  { %7615 = vrot.lane.b32.xlu1 %v6600_v53, %s12935_s10  ;;  %12513 = vmatmul.mubr.msk.bf16.vlgmr.msra.gmra.mrb[128].mxu1 %vm145_vm0, %v8806_v57  ;;  %v17810_v57 = vld [vmem:[#allocation94_spill] sm:$0xff] }
 0x831   :  { %v7018_v36 = vpop.permute.xlu0 %7017  ;;  %12524 = vmatprep.mubr.msk.bf16.mxu1 %vm12940_vm2, %v17600_v24 }
 0x832   :  { %7177 = vst.msk [vmem:[#allocation2 + $0x38a] sm:$0x1] %vm2980_vm1, %v7018_v36  ;;  %v7306_v13 = vpop.permute.xlu1 %7305  ;;  %v6596_v36 = vrot.slane %v17810_v57, %v13143_v49 }
 0x833   :  { %7465 = vst.msk [vmem:[#allocation2 + $0x38b] sm:$0x1] %vm2980_vm1, %v7306_v13  ;;  %7903 = vrot.lane.b32.xlu0 %v6600_v53, %s12936_s11 }
 0x834   :  { %8191 = vrot.lane.b32.xlu1 %v6600_v53, %s12937_s12 }
 0x835   :  { %v7594_v41 = vpop.permute.xlu0 %7593 }
 0x836   :  { %7753 = vst.msk [vmem:[#allocation2 + $0x38c] sm:$0x1] %vm2980_vm1, %v7594_v41  ;;  %v7882_v43 = vpop.permute.xlu1 %7881 }
 0x837   :  { %8041 = vst.msk [vmem:[#allocation2 + $0x38d] sm:$0x1] %vm2980_vm1, %v7882_v43  ;;  %8479 = vrot.lane.b32.xlu0 %v6600_v53, %s12938_s13 }
 0x838   :  { %4337 = vrot.lane.b32.xlu1 %v17809_v9, %s12935_s10 }
 0x839   :  { %v8170_v0 = vpop.permute.xlu0 %8169 }
 0x83a   :  { %8329 = vst.msk [vmem:[#allocation2 + $0x38e] sm:$0x1] %vm2980_vm1, %v8170_v0  ;;  %v8458_v18 = vpop.permute.xlu1 %8457  ;;  %v8745_v0 = vld [vmem:[#allocation2 + $0x380] sm:$0xff] }
 0x83b   :  { %8617 = vst.msk [vmem:[#allocation2 + $0x38f] sm:$0x1] %vm2980_vm1, %v8458_v18  ;;  %4625 = vrot.lane.b32.xlu0 %v17809_v9, %s12936_s11 }
 0x83c   :  { %4913 = vrot.lane.b32.xlu1 %v17809_v9, %s12937_s12 }
 0x83d   :  { %v4332_v13 = vpop.permute.xlu0 %4331 }
 0x83e   :  { %4484 = vst.msk [vmem:[#allocation2 + $0x3f4] sm:$0x1] %vm2980_vm1, %v4332_v13  ;;  %v4620_v53 = vpop.permute.xlu1 %4619 }
 0x83f   :  { %4772 = vst.msk [vmem:[#allocation2 + $0x3f5] sm:$0x1] %vm2980_vm1, %v4620_v53  ;;  %5201 = vrot.lane.b32.xlu0 %v17809_v9, %s12938_s13 }
 0x840   :  { %6749 = vrot.lane.b32.xlu1 %v6596_v36, %s12932_s4 }
 0x841   :  { %v4908_v41 = vpop.permute.xlu0 %4907 }
 0x842   :  { %5060 = vst.msk [vmem:[#allocation2 + $0x3f6] sm:$0x1] %vm2980_vm1, %v4908_v41  ;;  %v5196_v43 = vpop.permute.xlu1 %5195  ;;  %v8746_v18 = vld [vmem:[#allocation2 + $0x388] sm:$0xff] }
 0x843   :  { %5348 = vst.msk [vmem:[#allocation2 + $0x3f7] sm:$0x1] %vm2980_vm1, %v5196_v43  ;;  %7037 = vrot.lane.b32.xlu0 %v6596_v36, %s12933_s5  ;;  %v8805_v57 = vpack.c.bf16 %v8746_v18, %v8745_v0  ;;  %v17811_v18 = vld [vmem:[#allocation107_spill] sm:$0xff] }
 0x844   :  { %7325 = vrot.lane.b32.xlu1 %v6596_v36, %s12934_s0 }
 0x845   :  { %12507 = vmatmul.mubr.msk.bf16.vlgmr.msra.gmra.mrb[128].mxu0 %vm145_vm0, %v8805_v57  ;;  %v6744_v13 = vpop.permute.xlu0 %6743 }
 0x846   :  { %6896 = vst.msk [vmem:[#allocation2 + $0x3f9] sm:$0x1] %vm2980_vm1, %v6744_v13  ;;  %v7032_v9 = vpop.permute.xlu1 %7031  ;;  %12518 = vmatprep.mubr.msk.bf16.mxu0 %vm12940_vm2, %v17600_v24 }
 0x847   :  { %7184 = vst.msk [vmem:[#allocation2 + $0x3fa] sm:$0x1] %vm2980_vm1, %v7032_v9  ;;  %7613 = vrot.lane.b32.xlu0 %v6596_v36, %s12935_s10 }
 0x848   :  { %7901 = vrot.lane.b32.xlu1 %v6596_v36, %s12936_s11 }
 0x849   :  { %v7320_v53 = vpop.permute.xlu0 %7319 }
 0x84a   :  { %7472 = vst.msk [vmem:[#allocation2 + $0x3fb] sm:$0x1] %vm2980_vm1, %v7320_v53  ;;  %v7608_v41 = vpop.permute.xlu1 %7607  ;;  %v17812_v53 = vld [vmem:[#allocation93_spill] sm:$0xff] }
 0x84b   :  { %7760 = vst.msk [vmem:[#allocation2 + $0x3fc] sm:$0x1] %vm2980_vm1, %v7608_v41  ;;  %8189 = vrot.lane.b32.xlu0 %v6596_v36, %s12937_s12  ;;  %v6592_v41 = vrot.slane %v17812_v53, %v13143_v49 }
 0x84c   :  { %8477 = vrot.lane.b32.xlu1 %v6596_v36, %s12938_s13 }
 0x84d   :  { %v7896_v43 = vpop.permute.xlu0 %7895 }
 0x84e   :  { %8048 = vst.msk [vmem:[#allocation2 + $0x3fd] sm:$0x1] %vm2980_vm1, %v7896_v43  ;;  %v8184_v0 = vpop.permute.xlu1 %8183 }
 0x84f   :  { %8336 = vst.msk [vmem:[#allocation2 + $0x3fe] sm:$0x1] %vm2980_vm1, %v8184_v0  ;;  %4335 = vrot.lane.b32.xlu0 %v17811_v18, %s12935_s10 }
 0x850   :  { %4623 = vrot.lane.b32.xlu1 %v17811_v18, %s12936_s11 }
 0x851   :  { %v8472_v57 = vpop.permute.xlu0 %8471 }
 0x852   :  { %8624 = vst.msk [vmem:[#allocation2 + $0x3ff] sm:$0x1] %vm2980_vm1, %v8472_v57  ;;  %v4330_v13 = vpop.permute.xlu1 %4329 }
 0x853   :  { %4483 = vst.msk [vmem:[#allocation2 + $0x3e4] sm:$0x1] %vm2980_vm1, %v4330_v13  ;;  %4911 = vrot.lane.b32.xlu0 %v17811_v18, %s12937_s12  ;;  %v16931_v36 = vpop.f32.mrb[120].mxu1 }
 0x854   :  { %5199 = vrot.lane.b32.xlu1 %v17811_v18, %s12938_s13  ;;  %v12490_v9 = vpop.f32.mrb[121].mxu1 }
 0x855   :  { %v4618_v43 = vpop.permute.xlu0 %4617  ;;  %v16937_v0 = vpop.f32.mrb[122].mxu1  ;;  %v8759_v9 = vld [vmem:[#allocation2 + $0x3f0] sm:$0xff] }
 0x856   :  { %4771 = vst.msk [vmem:[#allocation2 + $0x3e5] sm:$0x1] %vm2980_vm1, %v4618_v43  ;;  %v4906_v13 = vpop.permute.xlu1 %4905  ;;  %v12491_v48 = vpop.f32.mrb[123].mxu1 }
 0x857   :  { %5059 = vst.msk [vmem:[#allocation2 + $0x3e6] sm:$0x1] %vm2980_vm1, %v4906_v13  ;;  %6747 = vrot.lane.b32.xlu0 %v6592_v41, %s12932_s4 }
 0x858   :  { %7035 = vrot.lane.b32.xlu1 %v6592_v41, %s12933_s5 }
 0x859   :  { %v5194_v18 = vpop.permute.xlu0 %5193  ;;  %v8760_v37 = vld [vmem:[#allocation2 + $0x3f8] sm:$0xff] }
 0x85a   :  { %5347 = vst.msk [vmem:[#allocation2 + $0x3e7] sm:$0x1] %vm2980_vm1, %v5194_v18  ;;  %v6742_v53 = vpop.permute.xlu1 %6741  ;;  %v8844_v21 = vpack.c.bf16 %v8760_v37, %v8759_v9 }
 0x85b   :  { %6895 = vst.msk [vmem:[#allocation2 + $0x3e9] sm:$0x1] %vm2980_vm1, %v6742_v53  ;;  %7323 = vrot.lane.b32.xlu0 %v6592_v41, %s12934_s0 }
 0x85c   :  { %7611 = vrot.lane.b32.xlu1 %v6592_v41, %s12935_s10  ;;  %12523 = vmatpush3.bf16.msra.mxu1 %v8844_v21  ;;  %v17813_v21 = vld [vmem:[#allocation108_spill] sm:$0xff] }
 0x85d   :  { %v7030_v48 = vpop.permute.xlu0 %7029  ;;  %12534 = vmatprep.subr.bf16.mxu1 %v17600_v24 }
 0x85e   :  { %7183 = vst.msk [vmem:[#allocation2 + $0x3ea] sm:$0x1] %vm2980_vm1, %v7030_v48  ;;  %v7318_v43 = vpop.permute.xlu1 %7317  ;;  %v17815_v48 = vld [vmem:[#allocation92_spill] sm:$0xff] }
 0x85f   :  { %7471 = vst.msk [vmem:[#allocation2 + $0x3eb] sm:$0x1] %vm2980_vm1, %v7318_v43  ;;  %7899 = vrot.lane.b32.xlu0 %v6592_v41, %s12936_s11 }
 0x860   :  { %8187 = vrot.lane.b32.xlu1 %v6592_v41, %s12937_s12 }
 0x861   :  { %v7606_v37 = vpop.permute.xlu0 %7605 }
 0x862   :  { %7759 = vst.msk [vmem:[#allocation2 + $0x3ec] sm:$0x1] %vm2980_vm1, %v7606_v37  ;;  %v7894_v13 = vpop.permute.xlu1 %7893 }
 0x863   :  { %8047 = vst.msk [vmem:[#allocation2 + $0x3ed] sm:$0x1] %vm2980_vm1, %v7894_v13  ;;  %8475 = vrot.lane.b32.xlu0 %v6592_v41, %s12938_s13  ;;  %v6588_v41 = vrot.slane %v17815_v48, %v13143_v49 }
 0x864   :  { %4333 = vrot.lane.b32.xlu1 %v17813_v21, %s12935_s10 }
 0x865   :  { %v8182_v18 = vpop.permute.xlu0 %8181 }
 0x866   :  { %8335 = vst.msk [vmem:[#allocation2 + $0x3ee] sm:$0x1] %vm2980_vm1, %v8182_v18  ;;  %v8470_v9 = vpop.permute.xlu1 %8469 }
 0x867   :  { %8623 = vst.msk [vmem:[#allocation2 + $0x3ef] sm:$0x1] %vm2980_vm1, %v8470_v9  ;;  %4621 = vrot.lane.b32.xlu0 %v17813_v21, %s12936_s11 }
 0x868   :  { %4909 = vrot.lane.b32.xlu1 %v17813_v21, %s12937_s12  ;;  %v16965_v53 = vpop.f32.mrb[120].mxu0 }
 0x869   :  { %17814 = vst [vmem:[#allocation50_spill] sm:$0xff] %v16965_v53  ;;  %v12484_v43 = vpop.f32.mrb[121].mxu0  ;;  %v4328_v37 = vpop.permute.xlu0 %4327 }
 0x86a   :  { %4482 = vst.msk [vmem:[#allocation2 + $0x3d4] sm:$0x1] %vm2980_vm1, %v4328_v37  ;;  %v4616_v13 = vpop.permute.xlu1 %4615  ;;  %v16970_v18 = vpop.f32.mrb[122].mxu0  ;;  %v8757_v43 = vld [vmem:[#allocation2 + $0x3e0] sm:$0xff] }
 0x86b   :  { %17816 = vst [vmem:[#allocation57_spill] sm:$0xff] %v16970_v18  ;;  %4770 = vst.msk [vmem:[#allocation2 + $0x3d5] sm:$0x1] %vm2980_vm1, %v4616_v13  ;;  %v12485_v57 = vpop.f32.mrb[123].mxu0  ;;  %5197 = vrot.lane.b32.xlu0 %v17813_v21, %s12938_s13 }
 0x86c   :  { %6745 = vrot.lane.b32.xlu1 %v6588_v41, %s12932_s4 }
 0x86d   :  { %v4904_v6 = vpop.permute.xlu0 %4903 }
 0x86e   :  { %5058 = vst.msk [vmem:[#allocation2 + $0x3d6] sm:$0x1] %vm2980_vm1, %v4904_v6  ;;  %v5192_v48 = vpop.permute.xlu1 %5191  ;;  %v8758_v37 = vld [vmem:[#allocation2 + $0x3e8] sm:$0xff] }
 0x86f   :  { %5346 = vst.msk [vmem:[#allocation2 + $0x3d7] sm:$0x1] %vm2980_vm1, %v5192_v48  ;;  %7033 = vrot.lane.b32.xlu0 %v6588_v41, %s12933_s5  ;;  %v8843_v13 = vpack.c.bf16 %v8758_v37, %v8757_v43 }
 0x870   :  { %7321 = vrot.lane.b32.xlu1 %v6588_v41, %s12934_s0 }
 0x871   :  { %12517 = vmatpush3.bf16.msra.mxu0 %v8843_v13  ;;  %v6740_v57 = vpop.permute.xlu0 %6739  ;;  %v17817_v13 = vld [vmem:[#allocation113_spill] sm:$0xff] }
 0x872   :  { %6894 = vst.msk [vmem:[#allocation2 + $0x3d9] sm:$0x1] %vm2980_vm1, %v6740_v57  ;;  %v7028_v21 = vpop.permute.xlu1 %7027  ;;  %12528 = vmatprep.subr.bf16.mxu0 %v17600_v24 }
 0x873   :  { %7182 = vst.msk [vmem:[#allocation2 + $0x3da] sm:$0x1] %vm2980_vm1, %v7028_v21  ;;  %7609 = vrot.lane.b32.xlu0 %v6588_v41, %s12935_s10 }
 0x874   :  { %7897 = vrot.lane.b32.xlu1 %v6588_v41, %s12936_s11 }
 0x875   :  { %v7316_v6 = vpop.permute.xlu0 %7315 }
 0x876   :  { %7470 = vst.msk [vmem:[#allocation2 + $0x3db] sm:$0x1] %vm2980_vm1, %v7316_v6  ;;  %v7604_v48 = vpop.permute.xlu1 %7603 }
 0x877   :  { %7758 = vst.msk [vmem:[#allocation2 + $0x3dc] sm:$0x1] %vm2980_vm1, %v7604_v48  ;;  %8185 = vrot.lane.b32.xlu0 %v6588_v41, %s12937_s12 }
 0x878   :  { %8473 = vrot.lane.b32.xlu1 %v6588_v41, %s12938_s13  ;;  %v17818_v41 = vld [vmem:[#allocation99_spill] sm:$0xff] }
 0x879   :  { %v7892_v43 = vpop.permute.xlu0 %7891  ;;  %v6616_v6 = vrot.slane %v17818_v41, %v13143_v49 }
 0x87a   :  { %8046 = vst.msk [vmem:[#allocation2 + $0x3dd] sm:$0x1] %vm2980_vm1, %v7892_v43  ;;  %v8180_v37 = vpop.permute.xlu1 %8179 }
 0x87b   :  { %8334 = vst.msk [vmem:[#allocation2 + $0x3de] sm:$0x1] %vm2980_vm1, %v8180_v37  ;;  %4347 = vrot.lane.b32.xlu0 %v17817_v13, %s12935_s10 }
 0x87c   :  { %4635 = vrot.lane.b32.xlu1 %v17817_v13, %s12936_s11 }
 0x87d   :  { %v8468_v57 = vpop.permute.xlu0 %8467 }
 0x87e   :  { %8622 = vst.msk [vmem:[#allocation2 + $0x3df] sm:$0x1] %vm2980_vm1, %v8468_v57  ;;  %v4326_v21 = vpop.permute.xlu1 %4325  ;;  %v8755_v57 = vld [vmem:[#allocation2 + $0x3d0] sm:$0xff] }
 0x87f   :  { %4481 = vst.msk [vmem:[#allocation2 + $0x3c4] sm:$0x1] %vm2980_vm1, %v4326_v21  ;;  %4923 = vrot.lane.b32.xlu0 %v17817_v13, %s12937_s12 }
 0x880   :  { %5211 = vrot.lane.b32.xlu1 %v17817_v13, %s12938_s13 }
 0x881   :  { %v4614_v48 = vpop.permute.xlu0 %4613 }
 0x882   :  { %4769 = vst.msk [vmem:[#allocation2 + $0x3c5] sm:$0x1] %vm2980_vm1, %v4614_v48  ;;  %v4902_v43 = vpop.permute.xlu1 %4901 }
 0x883   :  { %5057 = vst.msk [vmem:[#allocation2 + $0x3c6] sm:$0x1] %vm2980_vm1, %v4902_v43  ;;  %6759 = vrot.lane.b32.xlu0 %v6616_v6, %s12932_s4 }
 0x884   :  { %7047 = vrot.lane.b32.xlu1 %v6616_v6, %s12933_s5 }
 0x885   :  { %v5190_v37 = vpop.permute.xlu0 %5189  ;;  %v8756_v21 = vld [vmem:[#allocation2 + $0x3d8] sm:$0xff] }
 0x886   :  { %5345 = vst.msk [vmem:[#allocation2 + $0x3c7] sm:$0x1] %vm2980_vm1, %v5190_v37  ;;  %v6738_v9 = vpop.permute.xlu1 %6737  ;;  %v8808_v13 = vpack.c.bf16 %v8756_v21, %v8755_v57  ;;  %v17819_v37 = vld [vmem:[#allocation114_spill] sm:$0xff] }
 0x887   :  { %6893 = vst.msk [vmem:[#allocation2 + $0x3c9] sm:$0x1] %vm2980_vm1, %v6738_v9  ;;  %7335 = vrot.lane.b32.xlu0 %v6616_v6, %s12934_s0 }
 0x888   :  { %7623 = vrot.lane.b32.xlu1 %v6616_v6, %s12935_s10  ;;  %12525 = vmatmul.mubr.msk.bf16.vlgmr.msra.gmra.mrb[132].mxu1 %vm145_vm0, %v8808_v13  ;;  %v17820_v13 = vld [vmem:[#allocation98_spill] sm:$0xff] }
 0x889   :  { %v7026_v41 = vpop.permute.xlu0 %7025  ;;  %12536 = vmatprep.mubr.msk.bf16.mxu1 %vm12940_vm2, %v17600_v24 }
 0x88a   :  { %7181 = vst.msk [vmem:[#allocation2 + $0x3ca] sm:$0x1] %vm2980_vm1, %v7026_v41  ;;  %v7314_v48 = vpop.permute.xlu1 %7313  ;;  %v6612_v41 = vrot.slane %v17820_v13, %v13143_v49 }
 0x88b   :  { %7469 = vst.msk [vmem:[#allocation2 + $0x3cb] sm:$0x1] %vm2980_vm1, %v7314_v48  ;;  %7911 = vrot.lane.b32.xlu0 %v6616_v6, %s12936_s11 }
 0x88c   :  { %8199 = vrot.lane.b32.xlu1 %v6616_v6, %s12937_s12 }
 0x88d   :  { %v7602_v9 = vpop.permute.xlu0 %7601 }
 0x88e   :  { %7757 = vst.msk [vmem:[#allocation2 + $0x3cc] sm:$0x1] %vm2980_vm1, %v7602_v9  ;;  %v7890_v43 = vpop.permute.xlu1 %7889 }
 0x88f   :  { %8045 = vst.msk [vmem:[#allocation2 + $0x3cd] sm:$0x1] %vm2980_vm1, %v7890_v43  ;;  %8487 = vrot.lane.b32.xlu0 %v6616_v6, %s12938_s13 }
 0x890   :  { %4345 = vrot.lane.b32.xlu1 %v17819_v37, %s12935_s10 }
 0x891   :  { %v8178_v57 = vpop.permute.xlu0 %8177 }
 0x892   :  { %8333 = vst.msk [vmem:[#allocation2 + $0x3ce] sm:$0x1] %vm2980_vm1, %v8178_v57  ;;  %v8466_v21 = vpop.permute.xlu1 %8465  ;;  %v8753_v57 = vld [vmem:[#allocation2 + $0x3c0] sm:$0xff] }
 0x893   :  { %8621 = vst.msk [vmem:[#allocation2 + $0x3cf] sm:$0x1] %vm2980_vm1, %v8466_v21  ;;  %4633 = vrot.lane.b32.xlu0 %v17819_v37, %s12936_s11 }
 0x894   :  { %4921 = vrot.lane.b32.xlu1 %v17819_v37, %s12937_s12 }
 0x895   :  { %v4340_v48 = vpop.permute.xlu0 %4339 }
 0x896   :  { %4488 = vst.msk [vmem:[#allocation2 + $0x434] sm:$0x1] %vm2980_vm1, %v4340_v48  ;;  %v4628_v6 = vpop.permute.xlu1 %4627 }
 0x897   :  { %4776 = vst.msk [vmem:[#allocation2 + $0x435] sm:$0x1] %vm2980_vm1, %v4628_v6  ;;  %5209 = vrot.lane.b32.xlu0 %v17819_v37, %s12938_s13 }
 0x898   :  { %6757 = vrot.lane.b32.xlu1 %v6612_v41, %s12932_s4 }
 0x899   :  { %v4916_v9 = vpop.permute.xlu0 %4915 }
 0x89a   :  { %5064 = vst.msk [vmem:[#allocation2 + $0x436] sm:$0x1] %vm2980_vm1, %v4916_v9  ;;  %v5204_v43 = vpop.permute.xlu1 %5203  ;;  %v8754_v21 = vld [vmem:[#allocation2 + $0x3c8] sm:$0xff] }
 0x89b   :  { %5352 = vst.msk [vmem:[#allocation2 + $0x437] sm:$0x1] %vm2980_vm1, %v5204_v43  ;;  %7045 = vrot.lane.b32.xlu0 %v6612_v41, %s12933_s5  ;;  %v8807_v13 = vpack.c.bf16 %v8754_v21, %v8753_v57  ;;  %v17821_v21 = vld [vmem:[#allocation111_spill] sm:$0xff] }
 0x89c   :  { %7333 = vrot.lane.b32.xlu1 %v6612_v41, %s12934_s0 }
 0x89d   :  { %12519 = vmatmul.mubr.msk.bf16.vlgmr.msra.gmra.mrb[132].mxu0 %vm145_vm0, %v8807_v13  ;;  %v6752_v48 = vpop.permute.xlu0 %6751 }
 0x89e   :  { %6900 = vst.msk [vmem:[#allocation2 + $0x439] sm:$0x1] %vm2980_vm1, %v6752_v48  ;;  %v7040_v37 = vpop.permute.xlu1 %7039  ;;  %12530 = vmatprep.mubr.msk.bf16.mxu0 %vm12940_vm2, %v17600_v24 }
 0x89f   :  { %7188 = vst.msk [vmem:[#allocation2 + $0x43a] sm:$0x1] %vm2980_vm1, %v7040_v37  ;;  %7621 = vrot.lane.b32.xlu0 %v6612_v41, %s12935_s10 }
 0x8a0   :  { %7909 = vrot.lane.b32.xlu1 %v6612_v41, %s12936_s11 }
 0x8a1   :  { %v7328_v6 = vpop.permute.xlu0 %7327 }
 0x8a2   :  { %7476 = vst.msk [vmem:[#allocation2 + $0x43b] sm:$0x1] %vm2980_vm1, %v7328_v6  ;;  %v7616_v9 = vpop.permute.xlu1 %7615  ;;  %v17822_v6 = vld [vmem:[#allocation97_spill] sm:$0xff] }
 0x8a3   :  { %7764 = vst.msk [vmem:[#allocation2 + $0x43c] sm:$0x1] %vm2980_vm1, %v7616_v9  ;;  %8197 = vrot.lane.b32.xlu0 %v6612_v41, %s12937_s12  ;;  %v6608_v9 = vrot.slane %v17822_v6, %v13143_v49 }
 0x8a4   :  { %8485 = vrot.lane.b32.xlu1 %v6612_v41, %s12938_s13 }
 0x8a5   :  { %v7904_v43 = vpop.permute.xlu0 %7903 }
 0x8a6   :  { %8052 = vst.msk [vmem:[#allocation2 + $0x43d] sm:$0x1] %vm2980_vm1, %v7904_v43  ;;  %v8192_v57 = vpop.permute.xlu1 %8191 }
 0x8a7   :  { %8340 = vst.msk [vmem:[#allocation2 + $0x43e] sm:$0x1] %vm2980_vm1, %v8192_v57  ;;  %4343 = vrot.lane.b32.xlu0 %v17821_v21, %s12935_s10 }
 0x8a8   :  { %4631 = vrot.lane.b32.xlu1 %v17821_v21, %s12936_s11 }
 0x8a9   :  { %v8480_v13 = vpop.permute.xlu0 %8479 }
 0x8aa   :  { %8628 = vst.msk [vmem:[#allocation2 + $0x43f] sm:$0x1] %vm2980_vm1, %v8480_v13  ;;  %v4338_v48 = vpop.permute.xlu1 %4337 }
 0x8ab   :  { %4487 = vst.msk [vmem:[#allocation2 + $0x424] sm:$0x1] %vm2980_vm1, %v4338_v48  ;;  %4919 = vrot.lane.b32.xlu0 %v17821_v21, %s12937_s12  ;;  %v17063_v41 = vpop.f32.mrb[124].mxu1 }
 0x8ac   :  { %5207 = vrot.lane.b32.xlu1 %v17821_v21, %s12938_s13  ;;  %v12502_v37 = vpop.f32.mrb[125].mxu1 }
 0x8ad   :  { %v4626_v43 = vpop.permute.xlu0 %4625  ;;  %v17069_v57 = vpop.f32.mrb[126].mxu1  ;;  %v8767_v37 = vld [vmem:[#allocation2 + $0x430] sm:$0xff] }
 0x8ae   :  { %4775 = vst.msk [vmem:[#allocation2 + $0x425] sm:$0x1] %vm2980_vm1, %v4626_v43  ;;  %v4914_v48 = vpop.permute.xlu1 %4913  ;;  %v12503_v7 = vpop.f32.mrb[127].mxu1  ;;  %v17823_v43 = vmov 0.0  }
 0x8af   :  { %5063 = vst.msk [vmem:[#allocation2 + $0x426] sm:$0x1] %vm2980_vm1, %v4914_v48  ;;  %6755 = vrot.lane.b32.xlu0 %v6608_v9, %s12932_s4 }
 0x8b0   :  { %7043 = vrot.lane.b32.xlu1 %v6608_v9, %s12933_s5 }
 0x8b1   :  { %v5202_v21 = vpop.permute.xlu0 %5201  ;;  %v8768_v24 = vld [vmem:[#allocation2 + $0x438] sm:$0xff] }
 0x8b2   :  { %5351 = vst.msk [vmem:[#allocation2 + $0x427] sm:$0x1] %vm2980_vm1, %v5202_v21  ;;  %v6750_v6 = vpop.permute.xlu1 %6749  ;;  %v8846_v53 = vpack.c.bf16 %v8768_v24, %v8767_v37 }
 0x8b3   :  { %6899 = vst.msk [vmem:[#allocation2 + $0x429] sm:$0x1] %vm2980_vm1, %v6750_v6  ;;  %7331 = vrot.lane.b32.xlu0 %v6608_v9, %s12934_s0 }
 0x8b4   :  { %7619 = vrot.lane.b32.xlu1 %v6608_v9, %s12935_s10  ;;  %12535 = vmatpush3.bf16.msra.mxu1 %v8846_v53  ;;  %v17824_v53 = vld [vmem:[#allocation112_spill] sm:$0xff] }
 0x8b5   :  { %v7038_v7 = vpop.permute.xlu0 %7037  ;;  %12546 = vmatprep.subr.bf16.mxu1 %v17823_v43 }
 0x8b6   :  { %7187 = vst.msk [vmem:[#allocation2 + $0x42a] sm:$0x1] %vm2980_vm1, %v7038_v7  ;;  %v7326_v48 = vpop.permute.xlu1 %7325 }
 0x8b7   :  { %7475 = vst.msk [vmem:[#allocation2 + $0x42b] sm:$0x1] %vm2980_vm1, %v7326_v48  ;;  %7907 = vrot.lane.b32.xlu0 %v6608_v9, %s12936_s11  ;;  %v17826_v48 = vld [vmem:[#allocation96_spill] sm:$0xff] }
 0x8b8   :  { %8195 = vrot.lane.b32.xlu1 %v6608_v9, %s12937_s12 }
 0x8b9   :  { %v7614_v24 = vpop.permute.xlu0 %7613 }
 0x8ba   :  { %7763 = vst.msk [vmem:[#allocation2 + $0x42c] sm:$0x1] %vm2980_vm1, %v7614_v24  ;;  %v7902_v21 = vpop.permute.xlu1 %7901  ;;  %v6604_v24 = vrot.slane %v17826_v48, %v13143_v49  ;;  %v8765_v48 = vld [vmem:[#allocation2 + $0x420] sm:$0xff] }
 0x8bb   :  { %8051 = vst.msk [vmem:[#allocation2 + $0x42d] sm:$0x1] %vm2980_vm1, %v7902_v21  ;;  %8483 = vrot.lane.b32.xlu0 %v6608_v9, %s12938_s13 }
 0x8bc   :  { %4341 = vrot.lane.b32.xlu1 %v17824_v53, %s12935_s10 }
 0x8bd   :  { %v8190_v37 = vpop.permute.xlu0 %8189 }
 0x8be   :  { %8339 = vst.msk [vmem:[#allocation2 + $0x42e] sm:$0x1] %vm2980_vm1, %v8190_v37  ;;  %v8478_v6 = vpop.permute.xlu1 %8477 }
 0x8bf   :  { %8627 = vst.msk [vmem:[#allocation2 + $0x42f] sm:$0x1] %vm2980_vm1, %v8478_v6  ;;  %4629 = vrot.lane.b32.xlu0 %v17824_v53, %s12936_s11 }
 0x8c0   :  { %4917 = vrot.lane.b32.xlu1 %v17824_v53, %s12937_s12  ;;  %v17097_v7 = vpop.f32.mrb[124].mxu0 }
 0x8c1   :  { %17825 = vst [vmem:[#allocation56_spill] sm:$0xff] %v17097_v7  ;;  %v12496_v21 = vpop.f32.mrb[125].mxu0  ;;  %v4336_v13 = vpop.permute.xlu0 %4335 }
 0x8c2   :  { %4486 = vst.msk [vmem:[#allocation2 + $0x414] sm:$0x1] %vm2980_vm1, %v4336_v13  ;;  %v4624_v9 = vpop.permute.xlu1 %4623  ;;  %v17102_v37 = vpop.f32.mrb[126].mxu0 }
 0x8c3   :  { %17827 = vst [vmem:[#allocation59_spill] sm:$0xff] %v17102_v37  ;;  %4774 = vst.msk [vmem:[#allocation2 + $0x415] sm:$0x1] %vm2980_vm1, %v4624_v9  ;;  %v12497_v18 = vpop.f32.mrb[127].mxu0  ;;  %5205 = vrot.lane.b32.xlu0 %v17824_v53, %s12938_s13 }
 0x8c4   :  { %6753 = vrot.lane.b32.xlu1 %v6604_v24, %s12932_s4 }
 0x8c5   :  { %v4912_v1 = vpop.permute.xlu0 %4911 }
 0x8c6   :  { %5062 = vst.msk [vmem:[#allocation2 + $0x416] sm:$0x1] %vm2980_vm1, %v4912_v1  ;;  %v5200_v49 = vpop.permute.xlu1 %5199  ;;  %v8766_v13 = vld [vmem:[#allocation2 + $0x428] sm:$0xff] }
 0x8c7   :  { %5350 = vst.msk [vmem:[#allocation2 + $0x417] sm:$0x1] %vm2980_vm1, %v5200_v49  ;;  %7041 = vrot.lane.b32.xlu0 %v6604_v24, %s12933_s5  ;;  %v8845_v21 = vpack.c.bf16 %v8766_v13, %v8765_v48 }
 0x8c8   :  { %7329 = vrot.lane.b32.xlu1 %v6604_v24, %s12934_s0 }
 0x8c9   :  { %12529 = vmatpush3.bf16.msra.mxu0 %v8845_v21  ;;  %v6748_v18 = vpop.permute.xlu0 %6747 }
 0x8ca   :  { %6898 = vst.msk [vmem:[#allocation2 + $0x419] sm:$0x1] %vm2980_vm1, %v6748_v18  ;;  %v7036_v9 = vpop.permute.xlu1 %7035  ;;  %12540 = vmatprep.subr.bf16.mxu0 %v17823_v43 }
 0x8cb   :  { %7186 = vst.msk [vmem:[#allocation2 + $0x41a] sm:$0x1] %vm2980_vm1, %v7036_v9  ;;  %7617 = vrot.lane.b32.xlu0 %v6604_v24, %s12935_s10 }
 0x8cc   :  { %7905 = vrot.lane.b32.xlu1 %v6604_v24, %s12936_s11 }
 0x8cd   :  { %v7324_v1 = vpop.permute.xlu0 %7323 }
 0x8ce   :  { %7474 = vst.msk [vmem:[#allocation2 + $0x41b] sm:$0x1] %vm2980_vm1, %v7324_v1  ;;  %v7612_v53 = vpop.permute.xlu1 %7611 }
 0x8cf   :  { %7762 = vst.msk [vmem:[#allocation2 + $0x41c] sm:$0x1] %vm2980_vm1, %v7612_v53  ;;  %8193 = vrot.lane.b32.xlu0 %v6604_v24, %s12937_s12 }
 0x8d0   :  { %8481 = vrot.lane.b32.xlu1 %v6604_v24, %s12938_s13  ;;  %v8763_v24 = vld [vmem:[#allocation2 + $0x410] sm:$0xff] }
 0x8d1   :  { %v7900_v49 = vpop.permute.xlu0 %7899 }
 0x8d2   :  { %8050 = vst.msk [vmem:[#allocation2 + $0x41d] sm:$0x1] %vm2980_vm1, %v7900_v49  ;;  %v8188_v48 = vpop.permute.xlu1 %8187 }
 0x8d3   :  { %8338 = vst.msk [vmem:[#allocation2 + $0x41e] sm:$0x1] %vm2980_vm1, %v8188_v48 }
 0x8d5   :  { %v8476_v13 = vpop.permute.xlu0 %8475 }
 0x8d6   :  { %8626 = vst.msk [vmem:[#allocation2 + $0x41f] sm:$0x1] %vm2980_vm1, %v8476_v13  ;;  %v4334_v21 = vpop.permute.xlu1 %4333 }
 0x8d7   :  { %4485 = vst.msk [vmem:[#allocation2 + $0x404] sm:$0x1] %vm2980_vm1, %v4334_v21 }
 0x8d9   :  { %v4622_v18 = vpop.permute.xlu0 %4621 }
 0x8da   :  { %4773 = vst.msk [vmem:[#allocation2 + $0x405] sm:$0x1] %vm2980_vm1, %v4622_v18  ;;  %v4910_v9 = vpop.permute.xlu1 %4909 }
 0x8db   :  { %5061 = vst.msk [vmem:[#allocation2 + $0x406] sm:$0x1] %vm2980_vm1, %v4910_v9 }
 0x8dd   :  { %v5198_v1 = vpop.permute.xlu0 %5197  ;;  %v8764_v53 = vld [vmem:[#allocation2 + $0x418] sm:$0xff] }
 0x8de   :  { %5349 = vst.msk [vmem:[#allocation2 + $0x407] sm:$0x1] %vm2980_vm1, %v5198_v1  ;;  %v6746_v49 = vpop.permute.xlu1 %6745  ;;  %v8810_v6 = vpack.c.bf16 %v8764_v53, %v8763_v24 }
 0x8df   :  { %6897 = vst.msk [vmem:[#allocation2 + $0x409] sm:$0x1] %vm2980_vm1, %v6746_v49 }
 0x8e0   :  { %12537 = vmatmul.mubr.msk.bf16.vlgmr.msra.gmra.mrb[136].mxu1 %vm145_vm0, %v8810_v6 }
 0x8e1   :  { %v7034_v48 = vpop.permute.xlu0 %7033  ;;  %12548 = vmatprep.mubr.msk.bf16.mxu1 %vm12940_vm2, %v17823_v43 }
 0x8e2   :  { %7185 = vst.msk [vmem:[#allocation2 + $0x40a] sm:$0x1] %vm2980_vm1, %v7034_v48  ;;  %v7322_v13 = vpop.permute.xlu1 %7321 }
 0x8e3   :  { %7473 = vst.msk [vmem:[#allocation2 + $0x40b] sm:$0x1] %vm2980_vm1, %v7322_v13 }
 0x8e5   :  { %v7610_v21 = vpop.permute.xlu0 %7609  ;;  %v8761_v48 = vld [vmem:[#allocation2 + $0x400] sm:$0xff] }
 0x8e6   :  { %7761 = vst.msk [vmem:[#allocation2 + $0x40c] sm:$0x1] %vm2980_vm1, %v7610_v21  ;;  %v7898_v18 = vpop.permute.xlu1 %7897 }
 0x8e7   :  { %8049 = vst.msk [vmem:[#allocation2 + $0x40d] sm:$0x1] %vm2980_vm1, %v7898_v18 }
 0x8e9   :  { %v8186_v9 = vpop.permute.xlu0 %8185 }
 0x8ea   :  { %8337 = vst.msk [vmem:[#allocation2 + $0x40e] sm:$0x1] %vm2980_vm1, %v8186_v9  ;;  %v8474_v1 = vpop.permute.xlu1 %8473 }
 0x8eb   :  { %8625 = vst.msk [vmem:[#allocation2 + $0x40f] sm:$0x1] %vm2980_vm1, %v8474_v1 }
 0x8ed   :  { %v4348_v6 = vpop.permute.xlu0 %4347 }
 0x8ee   :  { %4492 = vst.msk [vmem:[#allocation2 + $0x474] sm:$0x1] %vm2980_vm1, %v4348_v6  ;;  %v4636_v24 = vpop.permute.xlu1 %4635 }
 0x8ef   :  { %4780 = vst.msk [vmem:[#allocation2 + $0x475] sm:$0x1] %vm2980_vm1, %v4636_v24 }
 0x8f1   :  { %v4924_v53 = vpop.permute.xlu0 %4923 }
 0x8f2   :  { %5068 = vst.msk [vmem:[#allocation2 + $0x476] sm:$0x1] %vm2980_vm1, %v4924_v53  ;;  %v5212_v49 = vpop.permute.xlu1 %5211  ;;  %v8762_v13 = vld [vmem:[#allocation2 + $0x408] sm:$0xff] }
 0x8f3   :  { %5356 = vst.msk [vmem:[#allocation2 + $0x477] sm:$0x1] %vm2980_vm1, %v5212_v49  ;;  %v8809_v21 = vpack.c.bf16 %v8762_v13, %v8761_v48 }
 0x8f5   :  { %12531 = vmatmul.mubr.msk.bf16.vlgmr.msra.gmra.mrb[136].mxu0 %vm145_vm0, %v8809_v21  ;;  %v6760_v18 = vpop.permute.xlu0 %6759 }
 0x8f6   :  { %6904 = vst.msk [vmem:[#allocation2 + $0x479] sm:$0x1] %vm2980_vm1, %v6760_v18  ;;  %v7048_v9 = vpop.permute.xlu1 %7047  ;;  %12542 = vmatprep.mubr.msk.bf16.mxu0 %vm12940_vm2, %v17823_v43 }
 0x8f7   :  { %7192 = vst.msk [vmem:[#allocation2 + $0x47a] sm:$0x1] %vm2980_vm1, %v7048_v9 }
 0x8f9   :  { %v7336_v1 = vpop.permute.xlu0 %7335 }
 0x8fa   :  { %7480 = vst.msk [vmem:[#allocation2 + $0x47b] sm:$0x1] %vm2980_vm1, %v7336_v1  ;;  %v7624_v6 = vpop.permute.xlu1 %7623 }
 0x8fb   :  { %7768 = vst.msk [vmem:[#allocation2 + $0x47c] sm:$0x1] %vm2980_vm1, %v7624_v6 }
 0x8fd   :  { %v7912_v24 = vpop.permute.xlu0 %7911 }
 0x8fe   :  { %8056 = vst.msk [vmem:[#allocation2 + $0x47d] sm:$0x1] %vm2980_vm1, %v7912_v24  ;;  %v8200_v53 = vpop.permute.xlu1 %8199 }
 0x8ff   :  { %8344 = vst.msk [vmem:[#allocation2 + $0x47e] sm:$0x1] %vm2980_vm1, %v8200_v53 }
 0x901   :  { %v8488_v49 = vpop.permute.xlu0 %8487 }
 0x902   :  { %8632 = vst.msk [vmem:[#allocation2 + $0x47f] sm:$0x1] %vm2980_vm1, %v8488_v49  ;;  %v4346_v48 = vpop.permute.xlu1 %4345  ;;  %v8775_v49 = vld [vmem:[#allocation2 + $0x470] sm:$0xff] }
 0x903   :  { %4491 = vst.msk [vmem:[#allocation2 + $0x464] sm:$0x1] %vm2980_vm1, %v4346_v48  ;;  %v17155_v13 = vpop.f32.mrb[128].mxu1 }
 0x904   :  { %17828 = vst [vmem:[#allocation58_spill] sm:$0xff] %v17155_v13  ;;  %v12514_v21 = vpop.f32.mrb[129].mxu1 }
 0x905   :  { %v4634_v18 = vpop.permute.xlu0 %4633  ;;  %v17157_v9 = vpop.f32.mrb[130].mxu1 }
 0x906   :  { %4779 = vst.msk [vmem:[#allocation2 + $0x465] sm:$0x1] %vm2980_vm1, %v4634_v18  ;;  %v4922_v6 = vpop.permute.xlu1 %4921  ;;  %v12515_v24 = vpop.f32.mrb[131].mxu1 }
 0x907   :  { %5067 = vst.msk [vmem:[#allocation2 + $0x466] sm:$0x1] %vm2980_vm1, %v4922_v6 }
 0x909   :  { %v5210_v53 = vpop.permute.xlu0 %5209  ;;  %v8776_v7 = vld [vmem:[#allocation2 + $0x478] sm:$0xff] }
 0x90a   :  { %5355 = vst.msk [vmem:[#allocation2 + $0x467] sm:$0x1] %vm2980_vm1, %v5210_v53  ;;  %v6758_v48 = vpop.permute.xlu1 %6757  ;;  %v8848_v37 = vpack.c.bf16 %v8776_v7, %v8775_v49 }
 0x90b   :  { %6903 = vst.msk [vmem:[#allocation2 + $0x469] sm:$0x1] %vm2980_vm1, %v6758_v48 }
 0x90c   :  { %12547 = vmatpush3.bf16.msra.mxu1 %v8848_v37 }
 0x90d   :  { %v7046_v21 = vpop.permute.xlu0 %7045  ;;  %12558 = vmatprep.subr.bf16.mxu1 %v17823_v43 }
 0x90e   :  { %7191 = vst.msk [vmem:[#allocation2 + $0x46a] sm:$0x1] %vm2980_vm1, %v7046_v21  ;;  %v7334_v18 = vpop.permute.xlu1 %7333 }
 0x90f   :  { %7479 = vst.msk [vmem:[#allocation2 + $0x46b] sm:$0x1] %vm2980_vm1, %v7334_v18 }
 0x911   :  { %v7622_v24 = vpop.permute.xlu0 %7621 }
 0x912   :  { %7767 = vst.msk [vmem:[#allocation2 + $0x46c] sm:$0x1] %vm2980_vm1, %v7622_v24  ;;  %v7910_v6 = vpop.permute.xlu1 %7909 }
 0x913   :  { %8055 = vst.msk [vmem:[#allocation2 + $0x46d] sm:$0x1] %vm2980_vm1, %v7910_v6 }
 0x915   :  { %v8198_v53 = vpop.permute.xlu0 %8197 }
 0x916   :  { %8343 = vst.msk [vmem:[#allocation2 + $0x46e] sm:$0x1] %vm2980_vm1, %v8198_v53  ;;  %v8486_v7 = vpop.permute.xlu1 %8485 }
 0x917   :  { %8631 = vst.msk [vmem:[#allocation2 + $0x46f] sm:$0x1] %vm2980_vm1, %v8486_v7  ;;  %v8773_v7 = vld [vmem:[#allocation2 + $0x460] sm:$0xff] }
 0x918   :  { %v17172_v37 = vpop.f32.mrb[128].mxu0 }
 0x919   :  { %v12508_v49 = vpop.f32.mrb[129].mxu0  ;;  %v4344_v48 = vpop.permute.xlu0 %4343 }
 0x91a   :  { %4490 = vst.msk [vmem:[#allocation2 + $0x454] sm:$0x1] %vm2980_vm1, %v4344_v48  ;;  %v4632_v21 = vpop.permute.xlu1 %4631  ;;  %v17175_v18 = vpop.f32.mrb[130].mxu0 }
 0x91b   :  { %4778 = vst.msk [vmem:[#allocation2 + $0x455] sm:$0x1] %vm2980_vm1, %v4632_v21  ;;  %v12509_v6 = vpop.f32.mrb[131].mxu0 }
 0x91d   :  { %v4920_v1 = vpop.permute.xlu0 %4919 }
 0x91e   :  { %5066 = vst.msk [vmem:[#allocation2 + $0x456] sm:$0x1] %vm2980_vm1, %v4920_v1  ;;  %v5208_v53 = vpop.permute.xlu1 %5207  ;;  %v8774_v10 = vld [vmem:[#allocation2 + $0x468] sm:$0xff] }
 0x91f   :  { %5354 = vst.msk [vmem:[#allocation2 + $0x457] sm:$0x1] %vm2980_vm1, %v5208_v53  ;;  %v8847_v49 = vpack.c.bf16 %v8774_v10, %v8773_v7 }
 0x921   :  { %12541 = vmatpush3.bf16.msra.mxu0 %v8847_v49  ;;  %v6756_v48 = vpop.permute.xlu0 %6755 }
 0x922   :  { %v7044_v13 = vpop.permute.xlu1 %7043  ;;  %6902 = vst.msk [vmem:[#allocation2 + $0x459] sm:$0x1] %vm2980_vm1, %v6756_v48  ;;  %12552 = vmatprep.subr.bf16.mxu0 %v17823_v43 }
 0x923   :  { %7190 = vst.msk [vmem:[#allocation2 + $0x45a] sm:$0x1] %vm2980_vm1, %v7044_v13 }
 0x925   :  { %v7332_v21 = vpop.permute.xlu0 %7331 }
 0x926   :  { %v7620_v6 = vpop.permute.xlu1 %7619  ;;  %7478 = vst.msk [vmem:[#allocation2 + $0x45b] sm:$0x1] %vm2980_vm1, %v7332_v21  ;;  %v8771_v48 = vld [vmem:[#allocation2 + $0x450] sm:$0xff] }
 0x927   :  { %7766 = vst.msk [vmem:[#allocation2 + $0x45c] sm:$0x1] %vm2980_vm1, %v7620_v6 }
 0x929   :  { %v7908_v1 = vpop.permute.xlu0 %7907 }
 0x92a   :  { %v8196_v24 = vpop.permute.xlu1 %8195  ;;  %8054 = vst.msk [vmem:[#allocation2 + $0x45d] sm:$0x1] %vm2980_vm1, %v7908_v1 }
 0x92b   :  { %8342 = vst.msk [vmem:[#allocation2 + $0x45e] sm:$0x1] %vm2980_vm1, %v8196_v24  ;;  %v17829_v24 = vpack.c.bf16 %v15583_v47, %v15580_v29  ;;  %v17830_v29 = vpack.c.bf16 %v15463_v33, %v15460_v27  ;;  %v17831_v47 = vpack.c.bf16 %v15823_v31, %v15820_v20  ;;  %v17832_v27 = vpack.c.bf16 %v15703_v15, %v15700_v4 }
 0x92c   :  { %v17833_v33 = vpack.c.bf16 %v16063_v28, %v16060_v62  ;;  %v17835_v4 = vpack.c.bf16 %v15943_v55, %v15940_v54  ;;  %v17836_v15 = vpack.c.bf16 %v16308_v11, %v16305_v45  ;;  %v17839_v54 = vpack.c.bf16 %v16184_v25, %v16181_v23 }
 0x92d   :  { %v8484_v10 = vpop.permute.xlu0 %8483  ;;  %v17840_v55 = vpack.c.bf16 %v16549_v42, %v16546_v44  ;;  %v17842_v62 = vpack.c.bf16 %v16096_v39, %v16094_v59  ;;  %v17843_v25 = vpack.c.bf16 %v16427_v60, %v16423_v51  ;;  %v17846_v59 = vpack.c.bf16 %v16341_v58, %v16337_v50  ;;  %v17854_v44 = vld [vmem:[#allocation58_spill] sm:$0xff] }
 0x92e   :  { %v4342_v53 = vpop.permute.xlu1 %4341  ;;  %8630 = vst.msk [vmem:[#allocation2 + $0x45f] sm:$0x1] %vm2980_vm1, %v8484_v10  ;;  %v17847_v39 = vpack.c.bf16 %v16674_v22, %v16669_v5  ;;  %v17848_v45 = vpack.c.bf16 %v17069_v57, %v17063_v41  ;;  %v17851_v50 = vpack.c.bf16 %v16937_v0, %v16931_v36  ;;  %v17852_v51 = vpack.c.bf16 %v16459_v40, %v16457_v26  ;;  %v17856_v26 = vld [vmem:[#allocation51_spill] sm:$0xff]  ;;  %v17857_v40 = vld [vmem:[#allocation49_spill] sm:$0xff]  ;;  %v17860_v22 = vld [vmem:[#allocation56_spill] sm:$0xff] }
 0x92f   :  { %4489 = vst.msk [vmem:[#allocation2 + $0x444] sm:$0x1] %vm2980_vm1, %v4342_v53  ;;  %v17853_v60 = vpack.c.bf16 %v16838_v14, %v16833_v34  ;;  %v17855_v42 = vpack.c.bf16 %v17157_v9, %v17854_v44  ;;  %v17859_v5 = vld [vmem:[#allocation59_spill] sm:$0xff]  ;;  %v17863_v34 = vld [vmem:[#allocation50_spill] sm:$0xff]  ;;  %v17865_v36 = vpack.c.bf16 %v17175_v18, %v17172_v37 }
 0x931   :  { %v4630_v7 = vpop.permute.xlu0 %4629 }
 0x932   :  { %v4918_v13 = vpop.permute.xlu1 %4917  ;;  %4777 = vst.msk [vmem:[#allocation2 + $0x445] sm:$0x1] %vm2980_vm1, %v4630_v7 }
 0x933   :  { %5065 = vst.msk [vmem:[#allocation2 + $0x446] sm:$0x1] %vm2980_vm1, %v4918_v13 }
 0x935   :  { %v5206_v49 = vpop.permute.xlu0 %5205  ;;  %v8772_v21 = vld [vmem:[#allocation2 + $0x458] sm:$0xff] }
 0x936   :  { %v6754_v6 = vpop.permute.xlu1 %6753  ;;  %5353 = vst.msk [vmem:[#allocation2 + $0x447] sm:$0x1] %vm2980_vm1, %v5206_v49  ;;  %v8812_v1 = vpack.c.bf16 %v8772_v21, %v8771_v48 }
 0x937   :  { %6901 = vst.msk [vmem:[#allocation2 + $0x449] sm:$0x1] %vm2980_vm1, %v6754_v6  ;;  %v17834_v6 = vpack.c.bf16 %v15615_v63, %v15613_v35  ;;  %v17837_v35 = vpack.c.bf16 %v15495_v16, %v15493_v46  ;;  %v17838_v63 = vpack.c.bf16 %v15855_v52, %v15853_v17  ;;  %v17841_v17 = vpack.c.bf16 %v15735_v2, %v15733_v19 }
 0x938   :  { %12549 = vmatmul.mubr.msk.bf16.vlgmr.msra.gmra.mrb[140].mxu1 %vm145_vm0, %v8812_v1  ;;  %v17844_v19 = vpack.c.bf16 %v16805_v61, %v16799_v3  ;;  %v17845_v2 = vpack.c.bf16 %v15975_v8, %v15973_v30  ;;  %v17849_v30 = vpack.c.bf16 %v16217_v56, %v16215_v12  ;;  %v17850_v8 = vpack.c.bf16 %v16582_v38, %v16580_v32  ;;  %v17862_v61 = vld [vmem:[#allocation57_spill] sm:$0xff] }
 0x939   :  { %12559 = vmatpush3.bf16.msra.mxu1 %v17829_v24  ;;  %v7042_v10 = vpop.permute.xlu0 %7041  ;;  %12560 = vmatprep.mubr.msk.bf16.mxu1 %vm12940_vm2, %v17823_v43  ;;  %v17858_v32 = vpack.c.bf16 %v17856_v26, %v17857_v40  ;;  %v17861_v3 = vpack.c.bf16 %v17859_v5, %v17860_v22  ;;  %v17864_v14 = vpack.c.bf16 %v17862_v61, %v17863_v34 }
 0x93a   :  { %v7330_v53 = vpop.permute.xlu1 %7329  ;;  %7189 = vst.msk [vmem:[#allocation2 + $0x44a] sm:$0x1] %vm2980_vm1, %v7042_v10  ;;  %12570 = vmatprep.subr.bf16.mxu1 %v17823_v43 }
 0x93b   :  { %7477 = vst.msk [vmem:[#allocation2 + $0x44b] sm:$0x1] %vm2980_vm1, %v7330_v53 }
 0x93d   :  { %v7618_v7 = vpop.permute.xlu0 %7617  ;;  %v8769_v20 = vld [vmem:[#allocation2 + $0x440] sm:$0xff] }
 0x93e   :  { %v7906_v13 = vpop.permute.xlu1 %7905  ;;  %7765 = vst.msk [vmem:[#allocation2 + $0x44c] sm:$0x1] %vm2980_vm1, %v7618_v7 }
 0x93f   :  { %8053 = vst.msk [vmem:[#allocation2 + $0x44d] sm:$0x1] %vm2980_vm1, %v7906_v13 }
 0x940   :  { %12561 = vmatmul.mubr.msk.bf16.vlgmr.msra.gmra.mrb[144].mxu1 %vm145_vm0, %v17830_v29 }
 0x941   :  { %12571 = vmatpush3.bf16.msra.mxu1 %v17831_v47  ;;  %v8194_v49 = vpop.permute.xlu0 %8193  ;;  %12572 = vmatprep.mubr.msk.bf16.mxu1 %vm12940_vm2, %v17823_v43 }
 0x942   :  { %v8482_v48 = vpop.permute.xlu1 %8481  ;;  %8341 = vst.msk [vmem:[#allocation2 + $0x44e] sm:$0x1] %vm2980_vm1, %v8194_v49  ;;  %12582 = vmatprep.subr.bf16.mxu1 %v17823_v43 }
 0x943   :  { %8629 = vst.msk [vmem:[#allocation2 + $0x44f] sm:$0x1] %vm2980_vm1, %v8482_v48 }
 0x948   :  { %12573 = vmatmul.mubr.msk.bf16.vlgmr.msra.gmra.mrb[148].mxu1 %vm145_vm0, %v17832_v27 }
 0x949   :  { %12583 = vmatpush3.bf16.msra.mxu1 %v17833_v33  ;;  %12584 = vmatprep.mubr.msk.bf16.mxu1 %vm12940_vm2, %v17823_v43 }
 0x94a   :  { %v8770_v31 = vld [vmem:[#allocation2 + $0x448] sm:$0xff]  ;;  %12594 = vmatprep.subr.bf16.mxu1 %v17823_v43 }
 0x94b   :  { %v8811_v21 = vpack.c.bf16 %v8770_v31, %v8769_v20 }
 0x94d   :  { %12543 = vmatmul.mubr.msk.bf16.vlgmr.msra.gmra.mrb[140].mxu0 %vm145_vm0, %v8811_v21 }
 0x94e   :  { %12553 = vmatpush3.bf16.msra.mxu0 %v17834_v6  ;;  %12554 = vmatprep.mubr.msk.bf16.mxu0 %vm12940_vm2, %v17823_v43 }
 0x94f   :  { %12564 = vmatprep.subr.bf16.mxu0 %v17823_v43 }
 0x950   :  { %12585 = vmatmul.mubr.msk.bf16.vlgmr.msra.gmra.mrb[152].mxu1 %vm145_vm0, %v17835_v4 }
 0x951   :  { %12595 = vmatpush3.bf16.msra.mxu1 %v17836_v15  ;;  %12596 = vmatprep.mubr.msk.bf16.mxu1 %vm12940_vm2, %v17823_v43 }
 0x952   :  { %12606 = vmatprep.subr.bf16.mxu1 %v17823_v43 }
 0x955   :  { %12555 = vmatmul.mubr.msk.bf16.vlgmr.msra.gmra.mrb[144].mxu0 %vm145_vm0, %v17837_v35 }
 0x956   :  { %12565 = vmatpush3.bf16.msra.mxu0 %v17838_v63  ;;  %12566 = vmatprep.mubr.msk.bf16.mxu0 %vm12940_vm2, %v17823_v43 }
 0x957   :  { %12576 = vmatprep.subr.bf16.mxu0 %v17823_v43 }
 0x958   :  { %12597 = vmatmul.mubr.msk.bf16.vlgmr.msra.gmra.mrb[156].mxu1 %vm145_vm0, %v17839_v54 }
 0x959   :  { %12607 = vmatpush3.bf16.msra.mxu1 %v17840_v55  ;;  %12608 = vmatprep.mubr.msk.bf16.mxu1 %vm12940_vm2, %v17823_v43 }
 0x95a   :  { %12618 = vmatprep.subr.bf16.mxu1 %v17823_v43 }
 0x95b   :  { %v10250_v46 = vpop.f32.mrb[132].mxu1 }
 0x95c   :  { %v12526_v16 = vpop.f32.mrb[133].mxu1 }
 0x95d   :  { %12567 = vmatmul.mubr.msk.bf16.vlgmr.msra.gmra.mrb[148].mxu0 %vm145_vm0, %v17841_v17  ;;  %v10253_v52 = vpop.f32.mrb[134].mxu1 }
 0x95e   :  { %12577 = vmatpush3.bf16.msra.mxu0 %v17842_v62  ;;  %v10466_v28 = vpack.c.bf16 %v10253_v52, %v10250_v46  ;;  %v12527_v23 = vpop.f32.mrb[135].mxu1  ;;  %12578 = vmatprep.mubr.msk.bf16.mxu0 %vm12940_vm2, %v17823_v43 }
 0x95f   :  { %12588 = vmatprep.subr.bf16.mxu0 %v17823_v43 }
 0x960   :  { %12609 = vmatmul.mubr.msk.bf16.vlgmr.msra.gmra.mrb[160].mxu1 %vm145_vm0, %v17843_v25 }
 0x961   :  { %12619 = vmatpush3.bf16.msra.mxu1 %v17844_v19  ;;  %12620 = vmatprep.mubr.msk.bf16.mxu1 %vm12940_vm2, %v17823_v43 }
 0x962   :  { %12630 = vmatprep.subr.bf16.mxu1 %v17823_v43 }
 0x965   :  { %12579 = vmatmul.mubr.msk.bf16.vlgmr.msra.gmra.mrb[152].mxu0 %vm145_vm0, %v17845_v2 }
 0x966   :  { %12589 = vmatpush3.bf16.msra.mxu0 %v17846_v59  ;;  %12590 = vmatprep.mubr.msk.bf16.mxu0 %vm12940_vm2, %v17823_v43 }
 0x967   :  { %12600 = vmatprep.subr.bf16.mxu0 %v17823_v43 }
 0x968   :  { %12621 = vmatmul.mubr.msk.bf16.vlgmr.msra.gmra.mrb[164].mxu1 %vm145_vm0, %v17847_v39 }
 0x969   :  { %12631 = vmatpush3.bf16.msra.mxu1 %v17848_v45  ;;  %12632 = vmatprep.mubr.msk.bf16.mxu1 %vm12940_vm2, %v17823_v43 }
 0x96a   :  { %12642 = vmatprep.subr.bf16.mxu1 %v17823_v43 }
 0x96d   :  { %12591 = vmatmul.mubr.msk.bf16.vlgmr.msra.gmra.mrb[156].mxu0 %vm145_vm0, %v17849_v30 }
 0x96e   :  { %12601 = vmatpush3.bf16.msra.mxu0 %v17850_v8  ;;  %12602 = vmatprep.mubr.msk.bf16.mxu0 %vm12940_vm2, %v17823_v43 }
 0x96f   :  { %12612 = vmatprep.subr.bf16.mxu0 %v17823_v43 }
 0x970   :  { %v10206_v11 = vpop.f32.mrb[132].mxu0  ;;  %12633 = vmatmul.mubr.msk.bf16.vlgmr.msra.gmra.mrb[168].mxu1 %vm145_vm0, %v17851_v50 }
 0x971   :  { %v12520_v58 = vpop.f32.mrb[133].mxu0  ;;  %12643 = vmatpush3.bf16.msra.mxu1 %v10466_v28  ;;  %12644 = vmatprep.mubr.msk.bf16.mxu1 %vm12940_vm2, %v17823_v43 }
 0x972   :  { %v10209_v12 = vpop.f32.mrb[134].mxu0  ;;  %12654 = vmatprep.subr.bf16.mxu1 %v17823_v43 }
 0x973   :  { %v10465_v38 = vpack.c.bf16 %v10209_v12, %v10206_v11  ;;  %v12521_v56 = vpop.f32.mrb[135].mxu0 }
 0x975   :  { %12603 = vmatmul.mubr.msk.bf16.vlgmr.msra.gmra.mrb[160].mxu0 %vm145_vm0, %v17852_v51 }
 0x976   :  { %12613 = vmatpush3.bf16.msra.mxu0 %v17853_v60  ;;  %12614 = vmatprep.mubr.msk.bf16.mxu0 %vm12940_vm2, %v17823_v43 }
 0x977   :  { %12624 = vmatprep.subr.bf16.mxu0 %v17823_v43 }
 0x978   :  { %12645 = vmatmul.mubr.msk.bf16.vlgmr.msra.gmra.mrb[172].mxu1 %vm145_vm0, %v17855_v42 }
 0x979   :  { %12656 = vmatprep.mubr.msk.bf16.mxu1 %vm12940_vm2, %v17823_v43 }
 0x97d   :  { %12615 = vmatmul.mubr.msk.bf16.vlgmr.msra.gmra.mrb[164].mxu0 %vm145_vm0, %v17858_v32 }
 0x97e   :  { %12625 = vmatpush3.bf16.msra.mxu0 %v17861_v3  ;;  %12626 = vmatprep.mubr.msk.bf16.mxu0 %vm12940_vm2, %v17823_v43 }
 0x97f   :  { %12636 = vmatprep.subr.bf16.mxu0 %v17823_v43 }
 0x985   :  { %12627 = vmatmul.mubr.msk.bf16.vlgmr.msra.gmra.mrb[168].mxu0 %vm145_vm0, %v17864_v14 }
 0x986   :  { %12637 = vmatpush3.bf16.msra.mxu0 %v10465_v38  ;;  %12638 = vmatprep.mubr.msk.bf16.mxu0 %vm12940_vm2, %v17823_v43 }
 0x987   :  { %12648 = vmatprep.subr.bf16.mxu0 %v17823_v43 }
 0x98d   :  { %12639 = vmatmul.mubr.msk.bf16.vlgmr.msra.gmra.mrb[172].mxu0 %vm145_vm0, %v17865_v36 }
 0x98e   :  { %12650 = vmatprep.mubr.msk.bf16.mxu0 %vm12940_vm2, %v17823_v43 }
 0x9b3   :  { %v10338_v0 = vpop.f32.mrb[136].mxu1 }
 0x9b4   :  { %v12538_v41 = vpop.f32.mrb[137].mxu1 }
 0x9b5   :  { %v10341_v57 = vpop.f32.mrb[138].mxu1 }
 0x9b6   :  { %v10450_v9 = vpack.c.bf16 %v10341_v57, %v10338_v0  ;;  %v12539_v1 = vpop.f32.mrb[139].mxu1 }
 0x9c8   :  { %v10294_v24 = vpop.f32.mrb[136].mxu0 }
 0x9c9   :  { %v12532_v10 = vpop.f32.mrb[137].mxu0 }
 0x9ca   :  { %v10297_v53 = vpop.f32.mrb[138].mxu0 }
 0x9cb   :  { %v10449_v7 = vpack.c.bf16 %v10297_v53, %v10294_v24  ;;  %v12533_v13 = vpop.f32.mrb[139].mxu0 }
 0xa0b   :  { %v10426_v29 = vpop.f32.mrb[140].mxu1 }
 0xa0c   :  { %v12550_v47 = vpop.f32.mrb[141].mxu1 }
 0xa0d   :  { %v10429_v49 = vpop.f32.mrb[142].mxu1 }
 0xa0e   :  { %v10468_v48 = vpack.c.bf16 %v10429_v49, %v10426_v29  ;;  %v12551_v37 = vpop.f32.mrb[143].mxu1 }
 0xa10   :  { %12655 = vmatpush3.bf16.msra.mxu1 %v10468_v48 }
 0xa11   :  { %12666 = vmatprep.subr.bf16.mxu1 %v17823_v43 }
 0xa13   :  { %v10550_v18 = vpop.f32.mrb[144].mxu1  ;;  %12657 = vmatmul.mubr.msk.bf16.vlgmr.msra.gmra.mrb[176].mxu1 %vm145_vm0, %v10450_v9 }
 0xa14   :  { %v12562_v27 = vpop.f32.mrb[145].mxu1  ;;  %12668 = vmatprep.mubr.msk.bf16.mxu1 %vm12940_vm2, %v17823_v43 }
 0xa15   :  { %v10553_v33 = vpop.f32.mrb[146].mxu1 }
 0xa16   :  { %v11262_v20 = vpack.c.bf16 %v10553_v33, %v10550_v18  ;;  %v12563_v31 = vpop.f32.mrb[147].mxu1 }
 0xa1b   :  { %v10638_v21 = vpop.f32.mrb[148].mxu1 }
 0xa1c   :  { %v12574_v6 = vpop.f32.mrb[149].mxu1 }
 0xa1d   :  { %v10641_v4 = vpop.f32.mrb[150].mxu1 }
 0xa1e   :  { %v11270_v15 = vpack.c.bf16 %v10641_v4, %v10638_v21  ;;  %v12575_v35 = vpop.f32.mrb[151].mxu1 }
 0xa20   :  { %v10382_v63 = vpop.f32.mrb[140].mxu0  ;;  %12667 = vmatpush3.bf16.msra.mxu1 %v11270_v15 }
 0xa21   :  { %v12544_v54 = vpop.f32.mrb[141].mxu0  ;;  %12678 = vmatprep.subr.bf16.mxu1 %v17823_v43 }
 0xa22   :  { %v10385_v55 = vpop.f32.mrb[142].mxu0 }
 0xa23   :  { %v10467_v46 = vpack.c.bf16 %v10385_v55, %v10382_v63  ;;  %v12545_v16 = vpop.f32.mrb[143].mxu0  ;;  %v10726_v17 = vpop.f32.mrb[152].mxu1  ;;  %12669 = vmatmul.mubr.msk.bf16.vlgmr.msra.gmra.mrb[180].mxu1 %vm145_vm0, %v11262_v20 }
 0xa24   :  { %v12586_v52 = vpop.f32.mrb[153].mxu1  ;;  %12680 = vmatprep.mubr.msk.bf16.mxu1 %vm12940_vm2, %v17823_v43 }
 0xa25   :  { %12649 = vmatpush3.bf16.msra.mxu0 %v10467_v46  ;;  %v10729_v62 = vpop.f32.mrb[154].mxu1 }
 0xa26   :  { %v11264_v28 = vpack.c.bf16 %v10729_v62, %v10726_v17  ;;  %v12587_v23 = vpop.f32.mrb[155].mxu1  ;;  %12660 = vmatprep.subr.bf16.mxu0 %v17823_v43 }
 0xa28   :  { %v10506_v25 = vpop.f32.mrb[144].mxu0  ;;  %12651 = vmatmul.mubr.msk.bf16.vlgmr.msra.gmra.mrb[176].mxu0 %vm145_vm0, %v10449_v7 }
 0xa29   :  { %v12556_v19 = vpop.f32.mrb[145].mxu0  ;;  %12662 = vmatprep.mubr.msk.bf16.mxu0 %vm12940_vm2, %v17823_v43 }
 0xa2a   :  { %v10509_v2 = vpop.f32.mrb[146].mxu0 }
 0xa2b   :  { %v11261_v59 = vpack.c.bf16 %v10509_v2, %v10506_v25  ;;  %v12557_v39 = vpop.f32.mrb[147].mxu0  ;;  %v10814_v45 = vpop.f32.mrb[156].mxu1 }
 0xa2c   :  { %v12598_v30 = vpop.f32.mrb[157].mxu1 }
 0xa2d   :  { %v10817_v8 = vpop.f32.mrb[158].mxu1 }
 0xa2e   :  { %v11272_v11 = vpack.c.bf16 %v10817_v8, %v10814_v45  ;;  %v12599_v50 = vpop.f32.mrb[159].mxu1 }
 0xa30   :  { %v10594_v58 = vpop.f32.mrb[148].mxu0  ;;  %12679 = vmatpush3.bf16.msra.mxu1 %v11272_v11 }
 0xa31   :  { %v12568_v12 = vpop.f32.mrb[149].mxu0  ;;  %12690 = vmatprep.subr.bf16.mxu1 %v17823_v43 }
 0xa32   :  { %v10597_v38 = vpop.f32.mrb[150].mxu0 }
 0xa33   :  { %v11269_v56 = vpack.c.bf16 %v10597_v38, %v10594_v58  ;;  %v12569_v51 = vpop.f32.mrb[151].mxu0  ;;  %v10902_v60 = vpop.f32.mrb[160].mxu1  ;;  %12681 = vmatmul.mubr.msk.bf16.vlgmr.msra.gmra.mrb[184].mxu1 %vm145_vm0, %v11264_v28 }
 0xa34   :  { %v12610_v44 = vpop.f32.mrb[161].mxu1  ;;  %12692 = vmatprep.mubr.msk.bf16.mxu1 %vm12940_vm2, %v17823_v43 }
 0xa35   :  { %12661 = vmatpush3.bf16.msra.mxu0 %v11269_v56  ;;  %v10905_v42 = vpop.f32.mrb[162].mxu1 }
 0xa36   :  { %v11266_v26 = vpack.c.bf16 %v10905_v42, %v10902_v60  ;;  %v12611_v40 = vpop.f32.mrb[163].mxu1  ;;  %12672 = vmatprep.subr.bf16.mxu0 %v17823_v43 }
 0xa38   :  { %v10682_v32 = vpop.f32.mrb[152].mxu0  ;;  %12663 = vmatmul.mubr.msk.bf16.vlgmr.msra.gmra.mrb[180].mxu0 %vm145_vm0, %v11261_v59 }
 0xa39   :  { %v12580_v5 = vpop.f32.mrb[153].mxu0  ;;  %12674 = vmatprep.mubr.msk.bf16.mxu0 %vm12940_vm2, %v17823_v43 }
 0xa3a   :  { %v10685_v22 = vpop.f32.mrb[154].mxu0 }
 0xa3b   :  { %v11263_v3 = vpack.c.bf16 %v10685_v22, %v10682_v32  ;;  %v12581_v61 = vpop.f32.mrb[155].mxu0  ;;  %v10990_v34 = vpop.f32.mrb[164].mxu1 }
 0xa3c   :  { %v12622_v14 = vpop.f32.mrb[165].mxu1 }
 0xa3d   :  { %v10993_v36 = vpop.f32.mrb[166].mxu1 }
 0xa3e   :  { %v11274_v0 = vpack.c.bf16 %v10993_v36, %v10990_v34  ;;  %v12623_v41 = vpop.f32.mrb[167].mxu1 }
 0xa40   :  { %v10770_v57 = vpop.f32.mrb[156].mxu0  ;;  %12691 = vmatpush3.bf16.msra.mxu1 %v11274_v0 }
 0xa41   :  { %v12592_v9 = vpop.f32.mrb[157].mxu0  ;;  %12702 = vmatprep.subr.bf16.mxu1 %v17823_v43 }
 0xa42   :  { %v10773_v1 = vpop.f32.mrb[158].mxu0 }
 0xa43   :  { %v11271_v24 = vpack.c.bf16 %v10773_v1, %v10770_v57  ;;  %v12593_v10 = vpop.f32.mrb[159].mxu0  ;;  %v11078_v53 = vpop.f32.mrb[168].mxu1  ;;  %12693 = vmatmul.mubr.msk.bf16.vlgmr.msra.gmra.mrb[188].mxu1 %vm145_vm0, %v11266_v26 }
 0xa44   :  { %v12634_v7 = vpop.f32.mrb[169].mxu1  ;;  %12704 = vmatprep.mubr.msk.bf16.mxu1 %vm12940_vm2, %v17823_v43 }
 0xa45   :  { %12673 = vmatpush3.bf16.msra.mxu0 %v11271_v24  ;;  %v11081_v13 = vpop.f32.mrb[170].mxu1 }
 0xa46   :  { %v11268_v29 = vpack.c.bf16 %v11081_v13, %v11078_v53  ;;  %v12635_v47 = vpop.f32.mrb[171].mxu1  ;;  %12684 = vmatprep.subr.bf16.mxu0 %v17823_v43 }
 0xa48   :  { %v10858_v49 = vpop.f32.mrb[160].mxu0  ;;  %12675 = vmatmul.mubr.msk.bf16.vlgmr.msra.gmra.mrb[184].mxu0 %vm145_vm0, %v11263_v3 }
 0xa49   :  { %v12604_v48 = vpop.f32.mrb[161].mxu0  ;;  %12686 = vmatprep.mubr.msk.bf16.mxu0 %vm12940_vm2, %v17823_v43 }
 0xa4a   :  { %v10861_v37 = vpop.f32.mrb[162].mxu0 }
 0xa4b   :  { %v11265_v18 = vpack.c.bf16 %v10861_v37, %v10858_v49  ;;  %v12605_v27 = vpop.f32.mrb[163].mxu0  ;;  %v11166_v33 = vpop.f32.mrb[172].mxu1 }
 0xa4c   :  { %v12646_v20 = vpop.f32.mrb[173].mxu1 }
 0xa4d   :  { %v11169_v31 = vpop.f32.mrb[174].mxu1 }
 0xa4e   :  { %v11276_v21 = vpack.c.bf16 %v11169_v31, %v11166_v33  ;;  %v12647_v6 = vpop.f32.mrb[175].mxu1 }
 0xa50   :  { %v10946_v4 = vpop.f32.mrb[164].mxu0  ;;  %12703 = vmatpush3.bf16.msra.mxu1 %v11276_v21 }
 0xa51   :  { %v12616_v15 = vpop.f32.mrb[165].mxu0  ;;  %12714 = vmatprep.subr.bf16.mxu1 %v17823_v43 }
 0xa52   :  { %v10949_v35 = vpop.f32.mrb[166].mxu0 }
 0xa53   :  { %v11273_v63 = vpack.c.bf16 %v10949_v35, %v10946_v4  ;;  %v12617_v54 = vpop.f32.mrb[167].mxu0  ;;  %12705 = vmatmul.mubr.msk.bf16.vlgmr.msra.gmra.mrb[192].mxu1 %vm145_vm0, %v11268_v29 }
 0xa54   :  { %12716 = vmatprep.mubr.msk.bf16.mxu1 %vm12940_vm2, %v17823_v43 }
 0xa55   :  { %12685 = vmatpush3.bf16.msra.mxu0 %v11273_v63 }
 0xa56   :  { %12696 = vmatprep.subr.bf16.mxu0 %v17823_v43 }
 0xa58   :  { %v11034_v55 = vpop.f32.mrb[168].mxu0  ;;  %12687 = vmatmul.mubr.msk.bf16.vlgmr.msra.gmra.mrb[188].mxu0 %vm145_vm0, %v11265_v18 }
 0xa59   :  { %v12628_v46 = vpop.f32.mrb[169].mxu0  ;;  %12698 = vmatprep.mubr.msk.bf16.mxu0 %vm12940_vm2, %v17823_v43 }
 0xa5a   :  { %v11037_v16 = vpop.f32.mrb[170].mxu0 }
 0xa5b   :  { %v11267_v17 = vpack.c.bf16 %v11037_v16, %v11034_v55  ;;  %v12629_v52 = vpop.f32.mrb[171].mxu0 }
 0xa60   :  { %v11122_v62 = vpop.f32.mrb[172].mxu0 }
 0xa61   :  { %v12640_v28 = vpop.f32.mrb[173].mxu0 }
 0xa62   :  { %v11125_v23 = vpop.f32.mrb[174].mxu0 }
 0xa63   :  { %v11275_v25 = vpack.c.bf16 %v11125_v23, %v11122_v62  ;;  %v12641_v19 = vpop.f32.mrb[175].mxu0 }
 0xa65   :  { %12697 = vmatpush3.bf16.msra.mxu0 %v11275_v25 }
 0xa66   :  { %12708 = vmatprep.subr.bf16.mxu0 %v17823_v43 }
 0xa68   :  { %12699 = vmatmul.mubr.msk.bf16.vlgmr.msra.gmra.mrb[192].mxu0 %vm145_vm0, %v11267_v17 }
 0xa69   :  { %12710 = vmatprep.mubr.msk.bf16.mxu0 %vm12940_vm2, %v17823_v43 }
 0xae6   :  { %v17401_v2 = vpop.f32.mrb[176].mxu1 }
 0xae7   :  { %v12658_v59 = vpop.f32.mrb[177].mxu1 }
 0xae8   :  { %v17403_v39 = vpop.f32.mrb[178].mxu1 }
 0xae9   :  { %v11908_v45 = vpack.c.bf16 %v17403_v39, %v17401_v2  ;;  %v12659_v30 = vpop.f32.mrb[179].mxu1 }
 0xaf6   :  { %v11358_v8 = vpop.f32.mrb[180].mxu1 }
 0xaf7   :  { %v12670_v11 = vpop.f32.mrb[181].mxu1 }
 0xaf8   :  { %v11361_v50 = vpop.f32.mrb[182].mxu1 }
 0xaf9   :  { %v11630_v58 = vpack.c.bf16 %v11361_v50, %v11358_v8  ;;  %v12671_v12 = vpop.f32.mrb[183].mxu1 }
 0xafb   :  { %v17407_v38 = vpop.f32.mrb[176].mxu0 }
 0xafc   :  { %v12652_v56 = vpop.f32.mrb[177].mxu0 }
 0xafd   :  { %v17409_v51 = vpop.f32.mrb[178].mxu0 }
 0xafe   :  { %v11907_v60 = vpack.c.bf16 %v17409_v51, %v17407_v38  ;;  %v12653_v44 = vpop.f32.mrb[179].mxu0 }
 0xb06   :  { %v11446_v42 = vpop.f32.mrb[184].mxu1 }
 0xb07   :  { %v12682_v26 = vpop.f32.mrb[185].mxu1 }
 0xb08   :  { %v11449_v40 = vpop.f32.mrb[186].mxu1 }
 0xb09   :  { %v11634_v32 = vpack.c.bf16 %v11449_v40, %v11446_v42  ;;  %v12683_v5 = vpop.f32.mrb[187].mxu1 }
 0xb0b   :  { %v11314_v22 = vpop.f32.mrb[180].mxu0  ;;  %12715 = vmatpush3.bf16.msra.mxu1 %v11634_v32 }
 0xb0c   :  { %v12664_v3 = vpop.f32.mrb[181].mxu0  ;;  %12726 = vmatprep.subr.bf16.mxu1 %v17823_v43 }
 0xb0d   :  { %v11317_v61 = vpop.f32.mrb[182].mxu0 }
 0xb0e   :  { %v11629_v34 = vpack.c.bf16 %v11317_v61, %v11314_v22  ;;  %v12665_v14 = vpop.f32.mrb[183].mxu0  ;;  %12717 = vmatmul.mubr.msk.bf16.vlgmr.msra.gmra.mrb[196].mxu1 %vm145_vm0, %v11630_v58 }
 0xb0f   :  { %12728 = vmatprep.mubr.msk.bf16.mxu1 %vm12940_vm2, %v17823_v43 }
 0xb16   :  { %v11534_v36 = vpop.f32.mrb[188].mxu1 }
 0xb17   :  { %v12694_v0 = vpop.f32.mrb[189].mxu1 }
 0xb18   :  { %v11537_v41 = vpop.f32.mrb[190].mxu1 }
 0xb19   :  { %v11632_v57 = vpack.c.bf16 %v11537_v41, %v11534_v36  ;;  %v12695_v9 = vpop.f32.mrb[191].mxu1 }
 0xb1b   :  { %v11402_v1 = vpop.f32.mrb[184].mxu0 }
 0xb1c   :  { %v12676_v24 = vpop.f32.mrb[185].mxu0 }
 0xb1d   :  { %v11405_v10 = vpop.f32.mrb[186].mxu0 }
 0xb1e   :  { %v11633_v53 = vpack.c.bf16 %v11405_v10, %v11402_v1  ;;  %v12677_v7 = vpop.f32.mrb[187].mxu0 }
 0xb20   :  { %12709 = vmatpush3.bf16.msra.mxu0 %v11633_v53 }
 0xb21   :  { %12720 = vmatprep.subr.bf16.mxu0 %v17823_v43 }
 0xb23   :  { %12711 = vmatmul.mubr.msk.bf16.vlgmr.msra.gmra.mrb[196].mxu0 %vm145_vm0, %v11629_v34 }
 0xb24   :  { %12722 = vmatprep.mubr.msk.bf16.mxu0 %vm12940_vm2, %v17823_v43 }
 0xb26   :  { %v11622_v13 = vpop.f32.mrb[192].mxu1 }
 0xb27   :  { %v12706_v29 = vpop.f32.mrb[193].mxu1 }
 0xb28   :  { %v11625_v47 = vpop.f32.mrb[194].mxu1 }
 0xb29   :  { %v11636_v49 = vpack.c.bf16 %v11625_v47, %v11622_v13  ;;  %v12707_v48 = vpop.f32.mrb[195].mxu1 }
 0xb2b   :  { %v11490_v37 = vpop.f32.mrb[188].mxu0  ;;  %12727 = vmatpush3.bf16.msra.mxu1 %v11636_v49 }
 0xb2c   :  { %v12688_v18 = vpop.f32.mrb[189].mxu0  ;;  %12738 = vmatprep.subr.bf16.mxu1 %v17823_v43 }
 0xb2d   :  { %v11493_v27 = vpop.f32.mrb[190].mxu0 }
 0xb2e   :  { %v11631_v33 = vpack.c.bf16 %v11493_v27, %v11490_v37  ;;  %v12689_v20 = vpop.f32.mrb[191].mxu0  ;;  %12729 = vmatmul.mubr.msk.bf16.vlgmr.msra.gmra.mrb[200].mxu1 %vm145_vm0, %v11632_v57 }
 0xb2f   :  { %12740 = vmatprep.mubr.msk.bf16.mxu1 %vm12940_vm2, %v17823_v43 }
 0xb3b   :  { %v11578_v31 = vpop.f32.mrb[192].mxu0 }
 0xb3c   :  { %v12700_v21 = vpop.f32.mrb[193].mxu0 }
 0xb3d   :  { %v11581_v6 = vpop.f32.mrb[194].mxu0 }
 0xb3e   :  { %v11635_v4 = vpack.c.bf16 %v11581_v6, %v11578_v31  ;;  %v12701_v15 = vpop.f32.mrb[195].mxu0 }
 0xb40   :  { %12721 = vmatpush3.bf16.msra.mxu0 %v11635_v4 }
 0xb41   :  { %12732 = vmatprep.subr.bf16.mxu0 %v17823_v43 }
 0xb43   :  { %12723 = vmatmul.mubr.msk.bf16.vlgmr.msra.gmra.mrb[200].mxu0 %vm145_vm0, %v11631_v33 }
 0xb44   :  { %12734 = vmatprep.mubr.msk.bf16.mxu0 %vm12940_vm2, %v17823_v43 }
 0xbe1   :  { %v11718_v35 = vpop.f32.mrb[196].mxu1 }
 0xbe2   :  { %v12718_v63 = vpop.f32.mrb[197].mxu1 }
 0xbe3   :  { %v11721_v54 = vpop.f32.mrb[198].mxu1 }
 0xbe4   :  { %v11814_v55 = vpack.c.bf16 %v11721_v54, %v11718_v35  ;;  %v12719_v46 = vpop.f32.mrb[199].mxu1 }
 0xbf6   :  { %v11674_v16 = vpop.f32.mrb[196].mxu0 }
 0xbf7   :  { %v12712_v17 = vpop.f32.mrb[197].mxu0 }
 0xbf8   :  { %v11677_v52 = vpop.f32.mrb[198].mxu0 }
 0xbf9   :  { %v11813_v62 = vpack.c.bf16 %v11677_v52, %v11674_v16  ;;  %v12713_v28 = vpop.f32.mrb[199].mxu0 }
 0xc01   :  { %v11806_v23 = vpop.f32.mrb[200].mxu1 }
 0xc02   :  { %v12730_v25 = vpop.f32.mrb[201].mxu1 }
 0xc03   :  { %v11809_v19 = vpop.f32.mrb[202].mxu1 }
 0xc04   :  { %v11816_v59 = vpack.c.bf16 %v11809_v19, %v11806_v23  ;;  %v12731_v30 = vpop.f32.mrb[203].mxu1 }
 0xc06   :  { %12739 = vmatpush3.bf16.msra.mxu1 %v11816_v59 }
 0xc07   :  { %12750 = vmatprep.subr.bf16.mxu1 %v17823_v43 }
 0xc09   :  { %12741 = vmatmul.mubr.msk.bf16.vlgmr.msra.gmra.mrb[204].mxu1 %vm145_vm0, %v11814_v55 }
 0xc0a   :  { %12751 = vmatpush3.bf16.msra.mxu1 %v11908_v45  ;;  %12752 = vmatprep.mubr.msk.bf16.mxu1 %vm12940_vm2, %v17823_v43 }
 0xc16   :  { %v11762_v8 = vpop.f32.mrb[200].mxu0 }
 0xc17   :  { %v12724_v11 = vpop.f32.mrb[201].mxu0 }
 0xc18   :  { %v11765_v50 = vpop.f32.mrb[202].mxu0 }
 0xc19   :  { %v11815_v58 = vpack.c.bf16 %v11765_v50, %v11762_v8  ;;  %v12725_v12 = vpop.f32.mrb[203].mxu0 }
 0xc1b   :  { %12733 = vmatpush3.bf16.msra.mxu0 %v11815_v58 }
 0xc1c   :  { %12744 = vmatprep.subr.bf16.mxu0 %v17823_v43 }
 0xc1e   :  { %12735 = vmatmul.mubr.msk.bf16.vlgmr.msra.gmra.mrb[204].mxu0 %vm145_vm0, %v11813_v62 }
 0xc1f   :  { %12745 = vmatpush3.bf16.msra.mxu0 %v11907_v60  ;;  %12746 = vmatprep.mubr.msk.bf16.mxu0 %vm12940_vm2, %v17823_v43 }
 0xcdc   :  { %v11898_v2 = vpop.f32.mrb[204].mxu1 }
 0xcdd   :  { %v12742_v39 = vpop.f32.mrb[205].mxu1 }
 0xcde   :  { %v11901_v45 = vpop.f32.mrb[206].mxu1 }
 0xcdf   :  { %v11906_v56 = vpack.c.bf16 %v11901_v45, %v11898_v2  ;;  %v12743_v44 = vpop.f32.mrb[207].mxu1 }
 0xce1   :  { %12753 = vmatmul.mubr.msk.bf16.vlgmr.msra.gmra.mrb[208].mxu1 %vm145_vm0, %v11906_v56 }
 0xcf1   :  { %v11854_v42 = vpop.f32.mrb[204].mxu0 }
 0xcf2   :  { %v12736_v26 = vpop.f32.mrb[205].mxu0 }
 0xcf3   :  { %v11857_v40 = vpop.f32.mrb[206].mxu0 }
 0xcf4   :  { %v11905_v32 = vpack.c.bf16 %v11857_v40, %v11854_v42  ;;  %v12737_v5 = vpop.f32.mrb[207].mxu0 }
 0xcf6   :  { %12747 = vmatmul.mubr.msk.bf16.vlgmr.msra.gmra.mrb[208].mxu0 %vm145_vm0, %v11905_v32 }
 0xdb4   :  { %v11989_v22 = vpop.f32.mrb[208].mxu1 }
 0xdb5   :  { %v12754_v38 = vpop.f32.mrb[209].mxu1  ;;  %v11997_v43 = vrot.slane %v11989_v22, 7 }
 0xdb6   :  { %v11992_v51 = vpop.f32.mrb[210].mxu1 }
 0xdb7   :  { %v12755_v60 = vpop.f32.mrb[211].mxu1 }
 0xdc9   :  { %v11946_v3 = vpop.f32.mrb[208].mxu0 }
 0xdca   :  { %v11999_v61 = vsel %vm11998_vm3, %v11997_v43, %v11946_v3  ;;  %v12748_v34 = vpop.f32.mrb[209].mxu0 }
 0xdcb   :  { %v11949_v14 = vpop.f32.mrb[210].mxu0  ;;  %12002 = vst.msk [vmem:[#allocation6] sm:$0x3] %vm12001_vm4, %v11999_v61 }
 0xdcc   :  { %v12749_v36 = vpop.f32.mrb[211].mxu0 }
 0xdcd   :  { %12912 = shalt.err (!%p12909_p12)
}
 0xdce   :  { %s12913_s19 = scalar_lea.hbm %s17459_s2, 32 }
 0xdcf   :  { %p12914_p13 = scmp.ne.s32.totalorder %s17459_s2, %s12913_s19  ;;  %p12917_p0 = scmp.lt.u32.totalorder %s12913_s19, %s17459_s2 }
 0xdd1   :  { %p12919_p1 = pnand %p12917_p0, %p12914_p13 }
 0xdd3   :  { %12922 = shalt.err (!%p12919_p1)
}
 0xdd4   :  { %12012 = dma.vmem_to_hbm [thread:$0]  %s12010_s15, 32, %s17459_s2, [#allocation5]  }
 0xdd5   :  { %12925 = dma.done.wait [#allocation5], 32  }
 0xdd6   :  { %12926 = vsyncadd [#allocation5], 4294967264 }
 0xdd7   :  { %12016 = vsyncpa [#allocation4], 1 }
 0xdd8   :  { %12017 = vsyncpa [#allocation5], 1 }

</bundles_post_ra>
